<compile_context>
chip_gen: v7x
topology: tpu7x:2x2x1
jax: 0.10.0
libtpu: 0.0.40
codegen_flags: <defaults>
</compile_context>

<pallas_src>
import math

import numpy as np
import jax
import jax.numpy as jnp
from jax.experimental import pallas as pl
from jax.experimental.pallas import tpu as pltpu


def _vmem_limit_bytes():
    """Generation-aware scoped-VMEM limit: headroom under v7x's 64 MiB/TC,
    more room on v5e/v6e (128 MiB physical)."""
    try:
        kind = jax.devices()[0].device_kind.lower()
    except Exception:  # pragma: no cover
        kind = ""
    if "v7" in kind:
        return 32 * 1024 * 1024
    return 64 * 1024 * 1024


_VMEM_LIMIT = _vmem_limit_bytes()


def _prep_row_tile(n_rows, row_elems, n_streams=4):
    """Byte-aware row tile for the prep kernel: largest multiple-of-8 row count
    whose double-buffered working set (all f32 streams) fits in half the scoped
    VMEM limit.  Never falls back to an oversized single block."""
    budget = _VMEM_LIMIT // 2
    bytes_per_row = row_elems * 4 * n_streams * 2      # f32, double-buffered
    cap = (budget // max(bytes_per_row, 1)) // 8 * 8
    cap = max(8, min(1024, cap))
    return n_rows if n_rows <= cap else cap


# ----------------------------------------------------------------------------
# Pallas kernels
# ----------------------------------------------------------------------------
def _prep_kernel(coef_ref, x_ref, noise_ref, clip_ref, xt_ref):
    """Fused prep on lane-dense (rows, H*W) slabs:
         x_in = 2x - 1 ; clip = x_in ; x_t = c0*x_in + c1*noise   (q_sample)."""
    x_in = x_ref[...] * 2.0 - 1.0
    clip_ref[...] = x_in
    xt_ref[...] = coef_ref[0] * x_in + coef_ref[1] * noise_ref[...]


def _conv1_silu_kernel(xpad_ref, w_ref, b_ref, o_ref):
    """Layer-1 3x3 conv done in-kernel as 9 shifted matmuls over a halo-padded
    NHWC image block (no im2col), fused with (bias + timestep bias) and SiLU.

      xpad_ref: (1, H+2, W+2, C) bf16    w_ref: (9, C, NH) bf16 (resident)
      b_ref:    (1, NH) f32 (resident)   o_ref: (1, H, W, NH) bf16
    """
    _, hp, wp, c = xpad_ref.shape
    h, w = hp - 2, wp - 2
    nh = w_ref.shape[-1]
    acc = jnp.zeros((h * w, nh), jnp.float32)
    for k in range(9):                                  # unrolled 9-tap reduction
        dh, dw = k // 3, k % 3
        tap = xpad_ref[0, dh:dh + h, dw:dw + w, :].reshape(h * w, c)
        acc = acc + jnp.dot(tap, w_ref[k], preferred_element_type=jnp.float32)
    acc = acc + b_ref[...]                              # (1, NH) broadcast in-kernel
    acc = acc * jax.nn.sigmoid(acc)                     # SiLU in f32 (v5e-safe)
    o_ref[...] = acc.reshape(1, h, w, nh).astype(o_ref.dtype)


def _conv2_pred_kernel(coef_ref, hpad_ref, w_ref, b_ref, xt_ref, o_ref):
    """Layer-2 3x3 conv (9 shifted matmuls, no im2col) fused with the p_sample
    pred_xstart epilogue.  Only the first C of the 2C (learn_sigma) output
    channels are used; the output is stored dense (no zero lanes).

      hpad_ref: (1, H+2, W+2, NH) bf16   w_ref: (9, NH, 2C) bf16 (resident)
      b_ref:    (1, 2C) f32 (resident)   xt_ref: (1, H, W, C) f32 (dense residual)
      o_ref:    (1, H, W, C) f32
    """
    _, hp, wp, nh = hpad_ref.shape
    h, w = hp - 2, wp - 2
    n2 = w_ref.shape[-1]
    c = xt_ref.shape[-1]
    acc = jnp.zeros((h * w, n2), jnp.float32)
    for k in range(9):
        dh, dw = k // 3, k % 3
        tap = hpad_ref[0, dh:dh + h, dw:dw + w, :].reshape(h * w, nh)
        acc = acc + jnp.dot(tap, w_ref[k], preferred_element_type=jnp.float32)
    eps = (acc + b_ref[...])[:, :c]                     # learn_sigma: eps = out[:, :C]
    xt = xt_ref[...].reshape(h * w, c)
    pred = jnp.clip(coef_ref[0] * xt - coef_ref[1] * eps, -1.0, 1.0)
    o_ref[...] = pred.reshape(1, h, w, c)


# ----------------------------------------------------------------------------
# pallas_call wrappers
# ----------------------------------------------------------------------------
def _prep_pallas(x2d, noise2d, coef):
    n, l = x2d.shape
    tr = _prep_row_tile(n, l, n_streams=4)              # byte-aware, VMEM-safe tile
    return pl.pallas_call(
        _prep_kernel,
        grid=(pl.cdiv(n, tr),),
        in_specs=[
            pl.BlockSpec(memory_space=pltpu.MemorySpace.SMEM),   # q_sample coefs (2,)
            pl.BlockSpec((tr, l), lambda i: (i, 0)),
            pl.BlockSpec((tr, l), lambda i: (i, 0)),
        ],
        out_specs=(pl.BlockSpec((tr, l), lambda i: (i, 0)),
                   pl.BlockSpec((tr, l), lambda i: (i, 0))),
        out_shape=(jax.ShapeDtypeStruct((n, l), jnp.float32),
                   jax.ShapeDtypeStruct((n, l), jnp.float32)),
        compiler_params=pltpu.CompilerParams(
            dimension_semantics=("parallel",),           # v7x megacore sharding
            vmem_limit_bytes=_VMEM_LIMIT),
    )(coef, x2d, noise2d)


def _conv1_pallas(xpad, w1, bias1):
    b, hp, wp, c = xpad.shape
    h, w = hp - 2, wp - 2
    nh = w1.shape[-1]
    # Per-image halo-padded blocks: at 256x256 the double-buffered working set is
    # a few MiB, far below the scoped VMEM limit on every generation (incl. v7x).
    # TODO(synk): add row-tiling with explicit halos for very large images.
    return pl.pallas_call(
        _conv1_silu_kernel,
        grid=(b,),
        in_specs=[
            pl.BlockSpec((1, hp, wp, c), lambda i: (i, 0, 0, 0)),  # image (pipelined)
            pl.BlockSpec((9, c, nh), lambda i: (0, 0, 0)),         # weights resident
            pl.BlockSpec((1, nh), lambda i: (0, 0)),               # bias + temb resident
        ],
        out_specs=pl.BlockSpec((1, h, w, nh), lambda i: (i, 0, 0, 0)),
        out_shape=jax.ShapeDtypeStruct((b, h, w, nh), jnp.bfloat16),
        compiler_params=pltpu.CompilerParams(
            dimension_semantics=("parallel",),
            vmem_limit_bytes=_VMEM_LIMIT),
    )(xpad, w1, bias1)


def _conv2_pred_pallas(coef, hpad, w2, bias2, xt_nhwc):
    b, hp, wp, nh = hpad.shape
    h, w = hp - 2, wp - 2
    n2 = w2.shape[-1]
    c = xt_nhwc.shape[-1]
    return pl.pallas_call(
        _conv2_pred_kernel,
        grid=(b,),
        in_specs=[
            pl.BlockSpec(memory_space=pltpu.MemorySpace.SMEM),      # pred_xstart coefs
            pl.BlockSpec((1, hp, wp, nh), lambda i: (i, 0, 0, 0)),  # hidden (pipelined)
            pl.BlockSpec((9, nh, n2), lambda i: (0, 0, 0)),         # weights resident
            pl.BlockSpec((1, n2), lambda i: (0, 0)),                # bias resident
            pl.BlockSpec((1, h, w, c), lambda i: (i, 0, 0, 0)),     # dense x_t residual
        ],
        out_specs=pl.BlockSpec((1, h, w, c), lambda i: (i, 0, 0, 0)),
        out_shape=jax.ShapeDtypeStruct((b, h, w, c), jnp.float32),
        compiler_params=pltpu.CompilerParams(
            dimension_semantics=("parallel",),
            vmem_limit_bytes=_VMEM_LIMIT),
    )(coef, hpad, w2, bias2, xt_nhwc)


# ----------------------------------------------------------------------------
# Glue: diffusion schedule, timestep embedding
# ----------------------------------------------------------------------------
def _linear_beta_schedule(num_timesteps):
    scale = 1000.0 / num_timesteps
    betas = np.linspace(scale * 0.0001, scale * 0.02, num_timesteps, dtype=np.float64)
    alphas_cumprod = np.cumprod(1.0 - betas)
    return {
        "sqrt_alphas_cumprod": np.sqrt(alphas_cumprod),
        "sqrt_one_minus_alphas_cumprod": np.sqrt(1.0 - alphas_cumprod),
        "sqrt_recip_alphas_cumprod": np.sqrt(1.0 / alphas_cumprod),
        "sqrt_recipm1_alphas_cumprod": np.sqrt(1.0 / alphas_cumprod - 1.0),
    }


def _timestep_embedding(t, dim, max_period=10000.0):
    half = dim // 2
    freqs = jnp.exp(
        -math.log(max_period) * jnp.arange(half, dtype=jnp.float32) / half)
    args = jnp.float32(t) * freqs
    return jnp.concatenate([jnp.cos(args), jnp.sin(args)])  # (dim,)


# ----------------------------------------------------------------------------
# Denoiser module (JAX / Pallas)
# ----------------------------------------------------------------------------
class ImageNetDenoiserPallas:
    def __init__(self, channels=4, hidden=32, num_timesteps=1000,
                 key=jax.random.PRNGKey(0)):
        self.c = channels
        self.hidden = hidden
        self.sched = _linear_beta_schedule(num_timesteps)

        k1, k2, k3 = jax.random.split(key, 3)
        # Synthetic deterministic "model" weights (UNet stand-in).  Stored dense
        # per-tap (9, Cin, Cout) in bf16: no 128-lane zero padding, half traffic.
        self.w1 = (0.1 * jax.random.normal(
            k1, (9, channels, hidden), jnp.float32)).astype(jnp.bfloat16)
        self.w2 = (0.05 * jax.random.normal(
            k2, (9, hidden, 2 * channels), jnp.float32)).astype(jnp.bfloat16)
        self.b1 = jnp.zeros((hidden,), jnp.float32)
        self.b2 = jnp.zeros((1, 2 * channels), jnp.float32)
        self.wt = 0.1 * jax.random.normal(k3, (hidden, hidden), jnp.float32)
        self.bt = jnp.zeros((hidden,), jnp.float32)

        self._fwd = jax.jit(self._forward_impl)

    # All timestep dependence enters through runtime arrays (coefs / bias / noise),
    # so changing t does not retrace/recompile.
    def _forward_impl(self, x, noise, coef_q, coef_p, bias1):
        b, c, h, w = x.shape

        # ---- prep: x_in = 2x-1 ; x_t = q_sample on lane-dense (B*C, H*W) slabs ----
        x2d = x.reshape(b * c, h * w)
        noise2d = noise.reshape(b * c, h * w)
        clip2d, xt2d = _prep_pallas(x2d, noise2d, coef_q)
        clip_image = clip2d.reshape(b, c, h, w)

        # Conv path runs NHWC (channels on lanes).
        # TODO(synk): emit x_t directly in NHWC from the prep kernel (or fuse
        # q_sample into the conv1 input pipeline) to drop this transpose pass.
        xt_nhwc = jnp.transpose(xt2d.reshape(b, c, h, w), (0, 2, 3, 1))

        # ---- layer 1: 3x3 conv (+ timestep bias) + SiLU, in-kernel 9-tap conv ----
        xpad = jnp.pad(xt_nhwc.astype(jnp.bfloat16),          # bf16 before pad
                       ((0, 0), (1, 1), (1, 1), (0, 0)))
        hid = _conv1_pallas(xpad, self.w1, bias1)              # (B,H,W,hidden) bf16

        # ---- layer 2: 3x3 conv -> eps (learn_sigma: first C of 2C channels),
        #      fused with pred_xstart (clip(c0*x_t - c1*eps, -1, 1)) epilogue ----
        hpad = jnp.pad(hid, ((0, 0), (1, 1), (1, 1), (0, 0)))
        den_nhwc = _conv2_pred_pallas(coef_p, hpad, self.w2, self.b2, xt_nhwc)

        # TODO(synk): write pred_xstart directly as a (B, C, H*W) lane-dense slab in
        # the kernel to drop this small NHWC->NCHW transpose pass.
        denoised = jnp.transpose(den_nhwc, (0, 3, 1, 2))
        return clip_image, denoised

    def forward(self, x, t, seed=0):
        s = self.sched
        coef_q = jnp.array([s["sqrt_alphas_cumprod"][t],
                            s["sqrt_one_minus_alphas_cumprod"][t]], jnp.float32)
        coef_p = jnp.array([s["sqrt_recip_alphas_cumprod"][t],
                            s["sqrt_recipm1_alphas_cumprod"][t]], jnp.float32)
        temb = _timestep_embedding(t, self.hidden)
        temb_proj = jax.nn.silu(temb @ self.wt + self.bt)
        bias1 = (self.b1 + temb_proj)[None, :]                 # (1, hidden)
        # torch.randn_like equivalent: grid/tiling-invariant, reproducible noise.
        noise = jax.random.normal(jax.random.PRNGKey(seed), x.shape, jnp.float32)
        return self._fwd(x.astype(jnp.float32), noise, coef_q, coef_p, bias1)

    # Pure-JAX reference of the same stand-in model (for correctness checking).
    def reference_forward(self, x, t, seed=0):
        s = self.sched
        c = self.c
        coef_q = jnp.array([s["sqrt_alphas_cumprod"][t],
                            s["sqrt_one_minus_alphas_cumprod"][t]], jnp.float32)
        coef_p = jnp.array([s["sqrt_recip_alphas_cumprod"][t],
                            s["sqrt_recipm1_alphas_cumprod"][t]], jnp.float32)
        temb = _timestep_embedding(t, self.hidden)
        bias1 = (self.b1 + jax.nn.silu(temb @ self.wt + self.bt))[None, :]
        noise = jax.random.normal(jax.random.PRNGKey(seed), x.shape, jnp.float32)

        x = x.astype(jnp.float32)
        x_in = 2.0 * x - 1.0
        xt = coef_q[0] * x_in + coef_q[1] * noise
        xt_nhwc = jnp.transpose(xt, (0, 2, 3, 1))

        dn = ("NHWC", "HWIO", "NHWC")
        w1 = self.w1.reshape(3, 3, c, self.hidden)
        a = jax.lax.conv_general_dilated(
            xt_nhwc.astype(jnp.bfloat16), w1, (1, 1), "SAME",
            dimension_numbers=dn, preferred_element_type=jnp.float32)
        a = a + bias1.reshape(1, 1, 1, -1)
        hid = (a * jax.nn.sigmoid(a)).astype(jnp.bfloat16)

        w2 = self.w2.reshape(3, 3, self.hidden, 2 * c)
        e = jax.lax.conv_general_dilated(
            hid, w2, (1, 1), "SAME",
            dimension_numbers=dn, preferred_element_type=jnp.float32)
        eps = (e + self.b2.reshape(1, 1, 1, -1))[..., :c]
        pred = jnp.clip(coef_p[0] * xt_nhwc - coef_p[1] * eps, -1.0, 1.0)
        return x_in, jnp.transpose(pred, (0, 3, 1, 2))


# ----------------------------------------------------------------------------
if __name__ == "__main__":
    B, C, H, W = 2, 4, 16, 16
    t = 100

    x = jax.random.uniform(jax.random.PRNGKey(0), (B, C, H, W), jnp.float32)

    denoiser = ImageNetDenoiserPallas(channels=C, hidden=32,
                                      key=jax.random.PRNGKey(0))
    clip_image, denoised = denoiser.forward(x, t, seed=0)
    jax.block_until_ready((clip_image, denoised))

    assert clip_image.shape == (B, C, H, W)
    assert denoised.shape == (B, C, H, W)
    assert bool(jnp.all(jnp.isfinite(clip_image)))
    assert bool(jnp.all(jnp.isfinite(denoised)))
    assert float(jnp.max(jnp.abs(denoised))) <= 1.0 + 1e-6          # clip_denoised=True
    assert float(jnp.max(jnp.abs(clip_image - (2.0 * x - 1.0)))) < 1e-5

    # Cross-check the Pallas conv/pred path against a pure-JAX reference.
    clip_ref, den_ref = denoiser.reference_forward(x, t, seed=0)
    np.testing.assert_allclose(np.asarray(clip_image), np.asarray(clip_ref),
                               rtol=0, atol=1e-5)
    np.testing.assert_allclose(np.asarray(denoised), np.asarray(den_ref),
                               rtol=0, atol=5e-2)

    print("KERNEL_OK")
</pallas_src>

<mosaic_0001>
module attributes {stable_mosaic.version = 11 : i64} {
  func.func @_prep_kernel(%arg0: i32, %arg1: memref<2xf32, #tpu.memory_space<smem>>, %arg2: memref<8x256xf32, #tpu.memory_space<vmem>>, %arg3: memref<8x256xf32, #tpu.memory_space<vmem>>, %arg4: memref<8x256xf32, #tpu.memory_space<vmem>>, %arg5: memref<8x256xf32, #tpu.memory_space<vmem>>) attributes {dimension_semantics = [#tpu.dimension_semantics<parallel>], iteration_bounds = array<i64: 1>, scalar_prefetch = 0 : i64, scratch_operands = 0 : i64, tpu.core_type = #tpu.core_type<tc>, window_params = [{transform_indices = @transform_0, window_bounds = array<i64: 2>}, {transform_indices = @transform_1, window_bounds = array<i64: 8, 256>}, {transform_indices = @transform_2, window_bounds = array<i64: 8, 256>}, {transform_indices = @transform_3, window_bounds = array<i64: 8, 256>}, {transform_indices = @transform_4, window_bounds = array<i64: 8, 256>}]} {
    %c0 = arith.constant 0 : index
    %c0_0 = arith.constant 0 : index
    %0 = vector.load %arg2[%c0, %c0_0] : memref<8x256xf32, #tpu.memory_space<vmem>>, vector<8x256xf32>
    %cst = arith.constant 2.000000e+00 : f32
    %1 = vector.broadcast %cst : f32 to vector<8x256xf32>
    %2 = arith.mulf %0, %1 : vector<8x256xf32>
    %cst_1 = arith.constant 1.000000e+00 : f32
    %3 = vector.broadcast %cst_1 : f32 to vector<8x256xf32>
    %4 = arith.subf %2, %3 : vector<8x256xf32>
    %c0_2 = arith.constant 0 : index
    %c0_3 = arith.constant 0 : index
    %5 = vector.load %arg4[%c0_2, %c0_3] : memref<8x256xf32, #tpu.memory_space<vmem>>, vector<8x256xf32>
    tpu.vector_store %arg4[%c0_2, %c0_3], %4 {strides = array<i32>} : memref<8x256xf32, #tpu.memory_space<vmem>>, vector<8x256xf32>,
    %c0_4 = arith.constant 0 : index
    %6 = memref.load %arg1[%c0_4] : memref<2xf32, #tpu.memory_space<smem>>
    %7 = vector.broadcast %6 : f32 to vector<8x256xf32>
    %8 = arith.mulf %7, %4 : vector<8x256xf32>
    %c1 = arith.constant 1 : index
    %9 = memref.load %arg1[%c1] : memref<2xf32, #tpu.memory_space<smem>>
    %c0_5 = arith.constant 0 : index
    %c0_6 = arith.constant 0 : index
    %10 = vector.load %arg3[%c0_5, %c0_6] : memref<8x256xf32, #tpu.memory_space<vmem>>, vector<8x256xf32>
    %11 = vector.broadcast %9 : f32 to vector<8x256xf32>
    %12 = arith.mulf %11, %10 : vector<8x256xf32>
    %13 = arith.addf %8, %12 : vector<8x256xf32>
    %c0_7 = arith.constant 0 : index
    %c0_8 = arith.constant 0 : index
    %14 = vector.load %arg5[%c0_7, %c0_8] : memref<8x256xf32, #tpu.memory_space<vmem>>, vector<8x256xf32>
    tpu.vector_store %arg5[%c0_7, %c0_8], %13 {strides = array<i32>} : memref<8x256xf32, #tpu.memory_space<vmem>>, vector<8x256xf32>,
    return
  }
  func.func @transform_0(%arg0: i32) -> i32 {
    %c0_i32 = arith.constant 0 : i32
    %c0_i32_0 = arith.constant 0 : i32
    return %c0_i32 : i32
  }
  func.func @transform_1(%arg0: i32) -> (i32, i32) {
    %c0_i32 = arith.constant 0 : i32
    %c0_i32_0 = arith.constant 0 : i32
    return %arg0, %c0_i32 : i32, i32
  }
  func.func @transform_2(%arg0: i32) -> (i32, i32) {
    %c0_i32 = arith.constant 0 : i32
    %c0_i32_0 = arith.constant 0 : i32
    return %arg0, %c0_i32 : i32, i32
  }
  func.func @transform_3(%arg0: i32) -> (i32, i32) {
    %c0_i32 = arith.constant 0 : i32
    %c0_i32_0 = arith.constant 0 : i32
    return %arg0, %c0_i32 : i32, i32
  }
  func.func @transform_4(%arg0: i32) -> (i32, i32) {
    %c0_i32 = arith.constant 0 : i32
    %c0_i32_0 = arith.constant 0 : i32
    return %arg0, %c0_i32 : i32, i32
  }
}

module attributes {stable_mosaic.version = 11 : i64} {
  func.func @_conv1_silu_kernel(%arg0: i32, %arg1: memref<1x18x18x4xbf16, #tpu.memory_space<vmem>>, %arg2: memref<9x4x32xbf16, #tpu.memory_space<vmem>>, %arg3: memref<1x32xf32, #tpu.memory_space<vmem>>, %arg4: memref<1x16x16x32xbf16, #tpu.memory_space<vmem>>) attributes {dimension_semantics = [#tpu.dimension_semantics<parallel>], iteration_bounds = array<i64: 2>, scalar_prefetch = 0 : i64, scratch_operands = 0 : i64, tpu.core_type = #tpu.core_type<tc>, window_params = [{transform_indices = @transform_0, window_bounds = array<i64: 1, 18, 18, 4>}, {pipeline_mode = #tpu.pipeline_mode<synchronous>, transform_indices = @transform_1, window_bounds = array<i64: 9, 4, 32>}, {pipeline_mode = #tpu.pipeline_mode<synchronous>, transform_indices = @transform_2, window_bounds = array<i64: 1, 32>}, {transform_indices = @transform_3, window_bounds = array<i64: 1, 16, 16, 32>}]} {
    %cst = arith.constant 0.000000e+00 : f32
    %0 = vector.broadcast %cst : f32 to vector<256x32xf32>
    %c0 = arith.constant 0 : index
    %c0_0 = arith.constant 0 : index
    %c0_1 = arith.constant 0 : index
    %c0_2 = arith.constant 0 : index
    %1 = vector.load %arg1[%c0, %c0_0, %c0_1, %c0_2] : memref<1x18x18x4xbf16, #tpu.memory_space<vmem>>, vector<1x16x16x4xbf16>
    %2 = vector.shape_cast %1 : vector<1x16x16x4xbf16> to vector<16x16x4xbf16>
    %3 = vector.shape_cast %2 : vector<16x16x4xbf16> to vector<256x4xbf16>
    %c0_3 = arith.constant 0 : index
    %c0_4 = arith.constant 0 : index
    %c0_5 = arith.constant 0 : index
    %4 = vector.load %arg2[%c0_3, %c0_4, %c0_5] : memref<9x4x32xbf16, #tpu.memory_space<vmem>>, vector<1x4x32xbf16>
    %5 = vector.shape_cast %4 : vector<1x4x32xbf16> to vector<4x32xbf16>
    %cst_6 = arith.constant dense<0.000000e+00> : vector<256x32xf32>
    %6 = tpu.matmul %3, %5, %cst_6 {dimension_numbers = #tpu.dot_dimension_numbers<[1], [0], [0], [1], [0, 0, 1, 1], [], []>} : vector<256x4xbf16>, vector<4x32xbf16>, vector<256x32xf32> -> vector<256x32xf32>
    %7 = arith.addf %0, %6 : vector<256x32xf32>
    %c0_7 = arith.constant 0 : index
    %c0_8 = arith.constant 0 : index
    %c1 = arith.constant 1 : index
    %c0_9 = arith.constant 0 : index
    %8 = vector.load %arg1[%c0_7, %c0_8, %c1, %c0_9] : memref<1x18x18x4xbf16, #tpu.memory_space<vmem>>, vector<1x16x16x4xbf16>
    %9 = vector.shape_cast %8 : vector<1x16x16x4xbf16> to vector<16x16x4xbf16>
    %10 = vector.shape_cast %9 : vector<16x16x4xbf16> to vector<256x4xbf16>
    %c1_10 = arith.constant 1 : index
    %c0_11 = arith.constant 0 : index
    %c0_12 = arith.constant 0 : index
    %11 = vector.load %arg2[%c1_10, %c0_11, %c0_12] : memref<9x4x32xbf16, #tpu.memory_space<vmem>>, vector<1x4x32xbf16>
    %12 = vector.shape_cast %11 : vector<1x4x32xbf16> to vector<4x32xbf16>
    %cst_13 = arith.constant dense<0.000000e+00> : vector<256x32xf32>
    %13 = tpu.matmul %10, %12, %cst_13 {dimension_numbers = #tpu.dot_dimension_numbers<[1], [0], [0], [1], [0, 0, 1, 1], [], []>} : vector<256x4xbf16>, vector<4x32xbf16>, vector<256x32xf32> -> vector<256x32xf32>
    %14 = arith.addf %7, %13 : vector<256x32xf32>
    %c0_14 = arith.constant 0 : index
    %c0_15 = arith.constant 0 : index
    %c2 = arith.constant 2 : index
    %c0_16 = arith.constant 0 : index
    %15 = vector.load %arg1[%c0_14, %c0_15, %c2, %c0_16] : memref<1x18x18x4xbf16, #tpu.memory_space<vmem>>, vector<1x16x16x4xbf16>
    %16 = vector.shape_cast %15 : vector<1x16x16x4xbf16> to vector<16x16x4xbf16>
    %17 = vector.shape_cast %16 : vector<16x16x4xbf16> to vector<256x4xbf16>
    %c2_17 = arith.constant 2 : index
    %c0_18 = arith.constant 0 : index
    %c0_19 = arith.constant 0 : index
    %18 = vector.load %arg2[%c2_17, %c0_18, %c0_19] : memref<9x4x32xbf16, #tpu.memory_space<vmem>>, vector<1x4x32xbf16>
    %19 = vector.shape_cast %18 : vector<1x4x32xbf16> to vector<4x32xbf16>
    %cst_20 = arith.constant dense<0.000000e+00> : vector<256x32xf32>
    %20 = tpu.matmul %17, %19, %cst_20 {dimension_numbers = #tpu.dot_dimension_numbers<[1], [0], [0], [1], [0, 0, 1, 1], [], []>} : vector<256x4xbf16>, vector<4x32xbf16>, vector<256x32xf32> -> vector<256x32xf32>
    %21 = arith.addf %14, %20 : vector<256x32xf32>
    %c0_21 = arith.constant 0 : index
    %c1_22 = arith.constant 1 : index
    %c0_23 = arith.constant 0 : index
    %c0_24 = arith.constant 0 : index
    %22 = vector.load %arg1[%c0_21, %c1_22, %c0_23, %c0_24] : memref<1x18x18x4xbf16, #tpu.memory_space<vmem>>, vector<1x16x16x4xbf16>
    %23 = vector.shape_cast %22 : vector<1x16x16x4xbf16> to vector<16x16x4xbf16>
    %24 = vector.shape_cast %23 : vector<16x16x4xbf16> to vector<256x4xbf16>
    %c3 = arith.constant 3 : index
    %c0_25 = arith.constant 0 : index
    %c0_26 = arith.constant 0 : index
    %25 = vector.load %arg2[%c3, %c0_25, %c0_26] : memref<9x4x32xbf16, #tpu.memory_space<vmem>>, vector<1x4x32xbf16>
    %26 = vector.shape_cast %25 : vector<1x4x32xbf16> to vector<4x32xbf16>
    %cst_27 = arith.constant dense<0.000000e+00> : vector<256x32xf32>
    %27 = tpu.matmul %24, %26, %cst_27 {dimension_numbers = #tpu.dot_dimension_numbers<[1], [0], [0], [1], [0, 0, 1, 1], [], []>} : vector<256x4xbf16>, vector<4x32xbf16>, vector<256x32xf32> -> vector<256x32xf32>
    %28 = arith.addf %21, %27 : vector<256x32xf32>
    %c0_28 = arith.constant 0 : index
    %c1_29 = arith.constant 1 : index
    %c1_30 = arith.constant 1 : index
    %c0_31 = arith.constant 0 : index
    %29 = vector.load %arg1[%c0_28, %c1_29, %c1_30, %c0_31] : memref<1x18x18x4xbf16, #tpu.memory_space<vmem>>, vector<1x16x16x4xbf16>
    %30 = vector.shape_cast %29 : vector<1x16x16x4xbf16> to vector<16x16x4xbf16>
    %31 = vector.shape_cast %30 : vector<16x16x4xbf16> to vector<256x4xbf16>
    %c4 = arith.constant 4 : index
    %c0_32 = arith.constant 0 : index
    %c0_33 = arith.constant 0 : index
    %32 = vector.load %arg2[%c4, %c0_32, %c0_33] : memref<9x4x32xbf16, #tpu.memory_space<vmem>>, vector<1x4x32xbf16>
    %33 = vector.shape_cast %32 : vector<1x4x32xbf16> to vector<4x32xbf16>
    %cst_34 = arith.constant dense<0.000000e+00> : vector<256x32xf32>
    %34 = tpu.matmul %31, %33, %cst_34 {dimension_numbers = #tpu.dot_dimension_numbers<[1], [0], [0], [1], [0, 0, 1, 1], [], []>} : vector<256x4xbf16>, vector<4x32xbf16>, vector<256x32xf32> -> vector<256x32xf32>
    %35 = arith.addf %28, %34 : vector<256x32xf32>
    %c0_35 = arith.constant 0 : index
    %c1_36 = arith.constant 1 : index
    %c2_37 = arith.constant 2 : index
    %c0_38 = arith.constant 0 : index
    %36 = vector.load %arg1[%c0_35, %c1_36, %c2_37, %c0_38] : memref<1x18x18x4xbf16, #tpu.memory_space<vmem>>, vector<1x16x16x4xbf16>
    %37 = vector.shape_cast %36 : vector<1x16x16x4xbf16> to vector<16x16x4xbf16>
    %38 = vector.shape_cast %37 : vector<16x16x4xbf16> to vector<256x4xbf16>
    %c5 = arith.constant 5 : index
    %c0_39 = arith.constant 0 : index
    %c0_40 = arith.constant 0 : index
    %39 = vector.load %arg2[%c5, %c0_39, %c0_40] : memref<9x4x32xbf16, #tpu.memory_space<vmem>>, vector<1x4x32xbf16>
    %40 = vector.shape_cast %39 : vector<1x4x32xbf16> to vector<4x32xbf16>
    %cst_41 = arith.constant dense<0.000000e+00> : vector<256x32xf32>
    %41 = tpu.matmul %38, %40, %cst_41 {dimension_numbers = #tpu.dot_dimension_numbers<[1], [0], [0], [1], [0, 0, 1, 1], [], []>} : vector<256x4xbf16>, vector<4x32xbf16>, vector<256x32xf32> -> vector<256x32xf32>
    %42 = arith.addf %35, %41 : vector<256x32xf32>
    %c0_42 = arith.constant 0 : index
    %c2_43 = arith.constant 2 : index
    %c0_44 = arith.constant 0 : index
    %c0_45 = arith.constant 0 : index
    %43 = vector.load %arg1[%c0_42, %c2_43, %c0_44, %c0_45] : memref<1x18x18x4xbf16, #tpu.memory_space<vmem>>, vector<1x16x16x4xbf16>
    %44 = vector.shape_cast %43 : vector<1x16x16x4xbf16> to vector<16x16x4xbf16>
    %45 = vector.shape_cast %44 : vector<16x16x4xbf16> to vector<256x4xbf16>
    %c6 = arith.constant 6 : index
    %c0_46 = arith.constant 0 : index
    %c0_47 = arith.constant 0 : index
    %46 = vector.load %arg2[%c6, %c0_46, %c0_47] : memref<9x4x32xbf16, #tpu.memory_space<vmem>>, vector<1x4x32xbf16>
    %47 = vector.shape_cast %46 : vector<1x4x32xbf16> to vector<4x32xbf16>
    %cst_48 = arith.constant dense<0.000000e+00> : vector<256x32xf32>
    %48 = tpu.matmul %45, %47, %cst_48 {dimension_numbers = #tpu.dot_dimension_numbers<[1], [0], [0], [1], [0, 0, 1, 1], [], []>} : vector<256x4xbf16>, vector<4x32xbf16>, vector<256x32xf32> -> vector<256x32xf32>
    %49 = arith.addf %42, %48 : vector<256x32xf32>
    %c0_49 = arith.constant 0 : index
    %c2_50 = arith.constant 2 : index
    %c1_51 = arith.constant 1 : index
    %c0_52 = arith.constant 0 : index
    %50 = vector.load %arg1[%c0_49, %c2_50, %c1_51, %c0_52] : memref<1x18x18x4xbf16, #tpu.memory_space<vmem>>, vector<1x16x16x4xbf16>
    %51 = vector.shape_cast %50 : vector<1x16x16x4xbf16> to vector<16x16x4xbf16>
    %52 = vector.shape_cast %51 : vector<16x16x4xbf16> to vector<256x4xbf16>
    %c7 = arith.constant 7 : index
    %c0_53 = arith.constant 0 : index
    %c0_54 = arith.constant 0 : index
    %53 = vector.load %arg2[%c7, %c0_53, %c0_54] : memref<9x4x32xbf16, #tpu.memory_space<vmem>>, vector<1x4x32xbf16>
    %54 = vector.shape_cast %53 : vector<1x4x32xbf16> to vector<4x32xbf16>
    %cst_55 = arith.constant dense<0.000000e+00> : vector<256x32xf32>
    %55 = tpu.matmul %52, %54, %cst_55 {dimension_numbers = #tpu.dot_dimension_numbers<[1], [0], [0], [1], [0, 0, 1, 1], [], []>} : vector<256x4xbf16>, vector<4x32xbf16>, vector<256x32xf32> -> vector<256x32xf32>
    %56 = arith.addf %49, %55 : vector<256x32xf32>
    %c0_56 = arith.constant 0 : index
    %c2_57 = arith.constant 2 : index
    %c2_58 = arith.constant 2 : index
    %c0_59 = arith.constant 0 : index
    %57 = vector.load %arg1[%c0_56, %c2_57, %c2_58, %c0_59] : memref<1x18x18x4xbf16, #tpu.memory_space<vmem>>, vector<1x16x16x4xbf16>
    %58 = vector.shape_cast %57 : vector<1x16x16x4xbf16> to vector<16x16x4xbf16>
    %59 = vector.shape_cast %58 : vector<16x16x4xbf16> to vector<256x4xbf16>
    %c8 = arith.constant 8 : index
    %c0_60 = arith.constant 0 : index
    %c0_61 = arith.constant 0 : index
    %60 = vector.load %arg2[%c8, %c0_60, %c0_61] : memref<9x4x32xbf16, #tpu.memory_space<vmem>>, vector<1x4x32xbf16>
    %61 = vector.shape_cast %60 : vector<1x4x32xbf16> to vector<4x32xbf16>
    %cst_62 = arith.constant dense<0.000000e+00> : vector<256x32xf32>
    %62 = tpu.matmul %59, %61, %cst_62 {dimension_numbers = #tpu.dot_dimension_numbers<[1], [0], [0], [1], [0, 0, 1, 1], [], []>} : vector<256x4xbf16>, vector<4x32xbf16>, vector<256x32xf32> -> vector<256x32xf32>
    %63 = arith.addf %56, %62 : vector<256x32xf32>
    %c0_63 = arith.constant 0 : index
    %c0_64 = arith.constant 0 : index
    %64 = vector.load %arg3[%c0_63, %c0_64] : memref<1x32xf32, #tpu.memory_space<vmem>>, vector<1x32xf32>
    %65 = vector.broadcast %64 : vector<1x32xf32> to vector<256x32xf32>
    %66 = arith.addf %63, %65 : vector<256x32xf32>
    %67 = arith.negf %66 : vector<256x32xf32>
    %68 = math.exp %67 : vector<256x32xf32>
    %cst_65 = arith.constant 1.000000e+00 : f32
    %69 = vector.broadcast %cst_65 : f32 to vector<256x32xf32>
    %70 = arith.addf %69, %68 : vector<256x32xf32>
    %71 = arith.divf %69, %70 : vector<256x32xf32>
    %72 = arith.mulf %66, %71 : vector<256x32xf32>
    %73 = vector.shape_cast %72 : vector<256x32xf32> to vector<1x16x16x32xf32>
    %74 = arith.truncf %73 : vector<1x16x16x32xf32> to vector<1x16x16x32xbf16>
    %c0_66 = arith.constant 0 : index
    %c0_67 = arith.constant 0 : index
    %c0_68 = arith.constant 0 : index
    %c0_69 = arith.constant 0 : index
    %75 = vector.load %arg4[%c0_66, %c0_67, %c0_68, %c0_69] : memref<1x16x16x32xbf16, #tpu.memory_space<vmem>>, vector<1x16x16x32xbf16>
    tpu.vector_store %arg4[%c0_66, %c0_67, %c0_68, %c0_69], %74 {strides = array<i32>} : memref<1x16x16x32xbf16, #tpu.memory_space<vmem>>, vector<1x16x16x32xbf16>,
    return
  }
  func.func @transform_0(%arg0: i32) -> (i32, i32, i32, i32) {
    %c0_i32 = arith.constant 0 : i32
    %c0_i32_0 = arith.constant 0 : i32
    %c0_i32_1 = arith.constant 0 : i32
    %c0_i32_2 = arith.constant 0 : i32
    return %arg0, %c0_i32, %c0_i32_0, %c0_i32_1 : i32, i32, i32, i32
  }
  func.func @transform_1(%arg0: i32) -> (i32, i32, i32) {
    %c0_i32 = arith.constant 0 : i32
    %c0_i32_0 = arith.constant 0 : i32
    %c0_i32_1 = arith.constant 0 : i32
    %c0_i32_2 = arith.constant 0 : i32
    return %c0_i32, %c0_i32_0, %c0_i32_1 : i32, i32, i32
  }
  func.func @transform_2(%arg0: i32) -> (i32, i32) {
    %c0_i32 = arith.constant 0 : i32
    %c0_i32_0 = arith.constant 0 : i32
    %c0_i32_1 = arith.constant 0 : i32
    return %c0_i32, %c0_i32_0 : i32, i32
  }
  func.func @transform_3(%arg0: i32) -> (i32, i32, i32, i32) {
    %c0_i32 = arith.constant 0 : i32
    %c0_i32_0 = arith.constant 0 : i32
    %c0_i32_1 = arith.constant 0 : i32
    %c0_i32_2 = arith.constant 0 : i32
    return %arg0, %c0_i32, %c0_i32_0, %c0_i32_1 : i32, i32, i32, i32
  }
}

module attributes {stable_mosaic.version = 11 : i64} {
  func.func @_conv2_pred_kernel(%arg0: i32, %arg1: memref<2xf32, #tpu.memory_space<smem>>, %arg2: memref<1x18x18x32xbf16, #tpu.memory_space<vmem>>, %arg3: memref<9x32x8xbf16, #tpu.memory_space<vmem>>, %arg4: memref<1x8xf32, #tpu.memory_space<vmem>>, %arg5: memref<1x16x16x4xf32, #tpu.memory_space<vmem>>, %arg6: memref<1x16x16x4xf32, #tpu.memory_space<vmem>>) attributes {dimension_semantics = [#tpu.dimension_semantics<parallel>], iteration_bounds = array<i64: 2>, scalar_prefetch = 0 : i64, scratch_operands = 0 : i64, tpu.core_type = #tpu.core_type<tc>, window_params = [{transform_indices = @transform_0, window_bounds = array<i64: 2>}, {transform_indices = @transform_1, window_bounds = array<i64: 1, 18, 18, 32>}, {pipeline_mode = #tpu.pipeline_mode<synchronous>, transform_indices = @transform_2, window_bounds = array<i64: 9, 32, 8>}, {pipeline_mode = #tpu.pipeline_mode<synchronous>, transform_indices = @transform_3, window_bounds = array<i64: 1, 8>}, {transform_indices = @transform_4, window_bounds = array<i64: 1, 16, 16, 4>}, {transform_indices = @transform_5, window_bounds = array<i64: 1, 16, 16, 4>}]} {
    %cst = arith.constant 0.000000e+00 : f32
    %0 = vector.broadcast %cst : f32 to vector<256x8xf32>
    %c0 = arith.constant 0 : index
    %c0_0 = arith.constant 0 : index
    %c0_1 = arith.constant 0 : index
    %c0_2 = arith.constant 0 : index
    %1 = vector.load %arg2[%c0, %c0_0, %c0_1, %c0_2] : memref<1x18x18x32xbf16, #tpu.memory_space<vmem>>, vector<1x16x16x32xbf16>
    %2 = vector.shape_cast %1 : vector<1x16x16x32xbf16> to vector<16x16x32xbf16>
    %3 = vector.shape_cast %2 : vector<16x16x32xbf16> to vector<256x32xbf16>
    %c0_3 = arith.constant 0 : index
    %c0_4 = arith.constant 0 : index
    %c0_5 = arith.constant 0 : index
    %4 = vector.load %arg3[%c0_3, %c0_4, %c0_5] : memref<9x32x8xbf16, #tpu.memory_space<vmem>>, vector<1x32x8xbf16>
    %5 = vector.shape_cast %4 : vector<1x32x8xbf16> to vector<32x8xbf16>
    %cst_6 = arith.constant dense<0.000000e+00> : vector<256x8xf32>
    %6 = tpu.matmul %3, %5, %cst_6 {dimension_numbers = #tpu.dot_dimension_numbers<[1], [0], [0], [1], [0, 0, 1, 1], [], []>} : vector<256x32xbf16>, vector<32x8xbf16>, vector<256x8xf32> -> vector<256x8xf32>
    %7 = arith.addf %0, %6 : vector<256x8xf32>
    %c0_7 = arith.constant 0 : index
    %c0_8 = arith.constant 0 : index
    %c1 = arith.constant 1 : index
    %c0_9 = arith.constant 0 : index
    %8 = vector.load %arg2[%c0_7, %c0_8, %c1, %c0_9] : memref<1x18x18x32xbf16, #tpu.memory_space<vmem>>, vector<1x16x16x32xbf16>
    %9 = vector.shape_cast %8 : vector<1x16x16x32xbf16> to vector<16x16x32xbf16>
    %10 = vector.shape_cast %9 : vector<16x16x32xbf16> to vector<256x32xbf16>
    %c1_10 = arith.constant 1 : index
    %c0_11 = arith.constant 0 : index
    %c0_12 = arith.constant 0 : index
    %11 = vector.load %arg3[%c1_10, %c0_11, %c0_12] : memref<9x32x8xbf16, #tpu.memory_space<vmem>>, vector<1x32x8xbf16>
    %12 = vector.shape_cast %11 : vector<1x32x8xbf16> to vector<32x8xbf16>
    %cst_13 = arith.constant dense<0.000000e+00> : vector<256x8xf32>
    %13 = tpu.matmul %10, %12, %cst_13 {dimension_numbers = #tpu.dot_dimension_numbers<[1], [0], [0], [1], [0, 0, 1, 1], [], []>} : vector<256x32xbf16>, vector<32x8xbf16>, vector<256x8xf32> -> vector<256x8xf32>
    %14 = arith.addf %7, %13 : vector<256x8xf32>
    %c0_14 = arith.constant 0 : index
    %c0_15 = arith.constant 0 : index
    %c2 = arith.constant 2 : index
    %c0_16 = arith.constant 0 : index
    %15 = vector.load %arg2[%c0_14, %c0_15, %c2, %c0_16] : memref<1x18x18x32xbf16, #tpu.memory_space<vmem>>, vector<1x16x16x32xbf16>
    %16 = vector.shape_cast %15 : vector<1x16x16x32xbf16> to vector<16x16x32xbf16>
    %17 = vector.shape_cast %16 : vector<16x16x32xbf16> to vector<256x32xbf16>
    %c2_17 = arith.constant 2 : index
    %c0_18 = arith.constant 0 : index
    %c0_19 = arith.constant 0 : index
    %18 = vector.load %arg3[%c2_17, %c0_18, %c0_19] : memref<9x32x8xbf16, #tpu.memory_space<vmem>>, vector<1x32x8xbf16>
    %19 = vector.shape_cast %18 : vector<1x32x8xbf16> to vector<32x8xbf16>
    %cst_20 = arith.constant dense<0.000000e+00> : vector<256x8xf32>
    %20 = tpu.matmul %17, %19, %cst_20 {dimension_numbers = #tpu.dot_dimension_numbers<[1], [0], [0], [1], [0, 0, 1, 1], [], []>} : vector<256x32xbf16>, vector<32x8xbf16>, vector<256x8xf32> -> vector<256x8xf32>
    %21 = arith.addf %14, %20 : vector<256x8xf32>
    %c0_21 = arith.constant 0 : index
    %c1_22 = arith.constant 1 : index
    %c0_23 = arith.constant 0 : index
    %c0_24 = arith.constant 0 : index
    %22 = vector.load %arg2[%c0_21, %c1_22, %c0_23, %c0_24] : memref<1x18x18x32xbf16, #tpu.memory_space<vmem>>, vector<1x16x16x32xbf16>
    %23 = vector.shape_cast %22 : vector<1x16x16x32xbf16> to vector<16x16x32xbf16>
    %24 = vector.shape_cast %23 : vector<16x16x32xbf16> to vector<256x32xbf16>
    %c3 = arith.constant 3 : index
    %c0_25 = arith.constant 0 : index
    %c0_26 = arith.constant 0 : index
    %25 = vector.load %arg3[%c3, %c0_25, %c0_26] : memref<9x32x8xbf16, #tpu.memory_space<vmem>>, vector<1x32x8xbf16>
    %26 = vector.shape_cast %25 : vector<1x32x8xbf16> to vector<32x8xbf16>
    %cst_27 = arith.constant dense<0.000000e+00> : vector<256x8xf32>
    %27 = tpu.matmul %24, %26, %cst_27 {dimension_numbers = #tpu.dot_dimension_numbers<[1], [0], [0], [1], [0, 0, 1, 1], [], []>} : vector<256x32xbf16>, vector<32x8xbf16>, vector<256x8xf32> -> vector<256x8xf32>
    %28 = arith.addf %21, %27 : vector<256x8xf32>
    %c0_28 = arith.constant 0 : index
    %c1_29 = arith.constant 1 : index
    %c1_30 = arith.constant 1 : index
    %c0_31 = arith.constant 0 : index
    %29 = vector.load %arg2[%c0_28, %c1_29, %c1_30, %c0_31] : memref<1x18x18x32xbf16, #tpu.memory_space<vmem>>, vector<1x16x16x32xbf16>
    %30 = vector.shape_cast %29 : vector<1x16x16x32xbf16> to vector<16x16x32xbf16>
    %31 = vector.shape_cast %30 : vector<16x16x32xbf16> to vector<256x32xbf16>
    %c4 = arith.constant 4 : index
    %c0_32 = arith.constant 0 : index
    %c0_33 = arith.constant 0 : index
    %32 = vector.load %arg3[%c4, %c0_32, %c0_33] : memref<9x32x8xbf16, #tpu.memory_space<vmem>>, vector<1x32x8xbf16>
    %33 = vector.shape_cast %32 : vector<1x32x8xbf16> to vector<32x8xbf16>
    %cst_34 = arith.constant dense<0.000000e+00> : vector<256x8xf32>
    %34 = tpu.matmul %31, %33, %cst_34 {dimension_numbers = #tpu.dot_dimension_numbers<[1], [0], [0], [1], [0, 0, 1, 1], [], []>} : vector<256x32xbf16>, vector<32x8xbf16>, vector<256x8xf32> -> vector<256x8xf32>
    %35 = arith.addf %28, %34 : vector<256x8xf32>
    %c0_35 = arith.constant 0 : index
    %c1_36 = arith.constant 1 : index
    %c2_37 = arith.constant 2 : index
    %c0_38 = arith.constant 0 : index
    %36 = vector.load %arg2[%c0_35, %c1_36, %c2_37, %c0_38] : memref<1x18x18x32xbf16, #tpu.memory_space<vmem>>, vector<1x16x16x32xbf16>
    %37 = vector.shape_cast %36 : vector<1x16x16x32xbf16> to vector<16x16x32xbf16>
    %38 = vector.shape_cast %37 : vector<16x16x32xbf16> to vector<256x32xbf16>
    %c5 = arith.constant 5 : index
    %c0_39 = arith.constant 0 : index
    %c0_40 = arith.constant 0 : index
    %39 = vector.load %arg3[%c5, %c0_39, %c0_40] : memref<9x32x8xbf16, #tpu.memory_space<vmem>>, vector<1x32x8xbf16>
    %40 = vector.shape_cast %39 : vector<1x32x8xbf16> to vector<32x8xbf16>
    %cst_41 = arith.constant dense<0.000000e+00> : vector<256x8xf32>
    %41 = tpu.matmul %38, %40, %cst_41 {dimension_numbers = #tpu.dot_dimension_numbers<[1], [0], [0], [1], [0, 0, 1, 1], [], []>} : vector<256x32xbf16>, vector<32x8xbf16>, vector<256x8xf32> -> vector<256x8xf32>
    %42 = arith.addf %35, %41 : vector<256x8xf32>
    %c0_42 = arith.constant 0 : index
    %c2_43 = arith.constant 2 : index
    %c0_44 = arith.constant 0 : index
    %c0_45 = arith.constant 0 : index
    %43 = vector.load %arg2[%c0_42, %c2_43, %c0_44, %c0_45] : memref<1x18x18x32xbf16, #tpu.memory_space<vmem>>, vector<1x16x16x32xbf16>
    %44 = vector.shape_cast %43 : vector<1x16x16x32xbf16> to vector<16x16x32xbf16>
    %45 = vector.shape_cast %44 : vector<16x16x32xbf16> to vector<256x32xbf16>
    %c6 = arith.constant 6 : index
    %c0_46 = arith.constant 0 : index
    %c0_47 = arith.constant 0 : index
    %46 = vector.load %arg3[%c6, %c0_46, %c0_47] : memref<9x32x8xbf16, #tpu.memory_space<vmem>>, vector<1x32x8xbf16>
    %47 = vector.shape_cast %46 : vector<1x32x8xbf16> to vector<32x8xbf16>
    %cst_48 = arith.constant dense<0.000000e+00> : vector<256x8xf32>
    %48 = tpu.matmul %45, %47, %cst_48 {dimension_numbers = #tpu.dot_dimension_numbers<[1], [0], [0], [1], [0, 0, 1, 1], [], []>} : vector<256x32xbf16>, vector<32x8xbf16>, vector<256x8xf32> -> vector<256x8xf32>
    %49 = arith.addf %42, %48 : vector<256x8xf32>
    %c0_49 = arith.constant 0 : index
    %c2_50 = arith.constant 2 : index
    %c1_51 = arith.constant 1 : index
    %c0_52 = arith.constant 0 : index
    %50 = vector.load %arg2[%c0_49, %c2_50, %c1_51, %c0_52] : memref<1x18x18x32xbf16, #tpu.memory_space<vmem>>, vector<1x16x16x32xbf16>
    %51 = vector.shape_cast %50 : vector<1x16x16x32xbf16> to vector<16x16x32xbf16>
    %52 = vector.shape_cast %51 : vector<16x16x32xbf16> to vector<256x32xbf16>
    %c7 = arith.constant 7 : index
    %c0_53 = arith.constant 0 : index
    %c0_54 = arith.constant 0 : index
    %53 = vector.load %arg3[%c7, %c0_53, %c0_54] : memref<9x32x8xbf16, #tpu.memory_space<vmem>>, vector<1x32x8xbf16>
    %54 = vector.shape_cast %53 : vector<1x32x8xbf16> to vector<32x8xbf16>
    %cst_55 = arith.constant dense<0.000000e+00> : vector<256x8xf32>
    %55 = tpu.matmul %52, %54, %cst_55 {dimension_numbers = #tpu.dot_dimension_numbers<[1], [0], [0], [1], [0, 0, 1, 1], [], []>} : vector<256x32xbf16>, vector<32x8xbf16>, vector<256x8xf32> -> vector<256x8xf32>
    %56 = arith.addf %49, %55 : vector<256x8xf32>
    %c0_56 = arith.constant 0 : index
    %c2_57 = arith.constant 2 : index
    %c2_58 = arith.constant 2 : index
    %c0_59 = arith.constant 0 : index
    %57 = vector.load %arg2[%c0_56, %c2_57, %c2_58, %c0_59] : memref<1x18x18x32xbf16, #tpu.memory_space<vmem>>, vector<1x16x16x32xbf16>
    %58 = vector.shape_cast %57 : vector<1x16x16x32xbf16> to vector<16x16x32xbf16>
    %59 = vector.shape_cast %58 : vector<16x16x32xbf16> to vector<256x32xbf16>
    %c8 = arith.constant 8 : index
    %c0_60 = arith.constant 0 : index
    %c0_61 = arith.constant 0 : index
    %60 = vector.load %arg3[%c8, %c0_60, %c0_61] : memref<9x32x8xbf16, #tpu.memory_space<vmem>>, vector<1x32x8xbf16>
    %61 = vector.shape_cast %60 : vector<1x32x8xbf16> to vector<32x8xbf16>
    %cst_62 = arith.constant dense<0.000000e+00> : vector<256x8xf32>
    %62 = tpu.matmul %59, %61, %cst_62 {dimension_numbers = #tpu.dot_dimension_numbers<[1], [0], [0], [1], [0, 0, 1, 1], [], []>} : vector<256x32xbf16>, vector<32x8xbf16>, vector<256x8xf32> -> vector<256x8xf32>
    %63 = arith.addf %56, %62 : vector<256x8xf32>
    %c0_63 = arith.constant 0 : index
    %c0_64 = arith.constant 0 : index
    %64 = vector.load %arg4[%c0_63, %c0_64] : memref<1x8xf32, #tpu.memory_space<vmem>>, vector<1x8xf32>
    %65 = vector.broadcast %64 : vector<1x8xf32> to vector<256x8xf32>
    %66 = arith.addf %63, %65 : vector<256x8xf32>
    %67 = vector.extract_strided_slice %66 {offsets = [0, 0], sizes = [256, 4], strides = [1, 1]} : vector<256x8xf32> to vector<256x4xf32>
    %c0_65 = arith.constant 0 : index
    %c0_66 = arith.constant 0 : index
    %c0_67 = arith.constant 0 : index
    %c0_68 = arith.constant 0 : index
    %68 = vector.load %arg5[%c0_65, %c0_66, %c0_67, %c0_68] : memref<1x16x16x4xf32, #tpu.memory_space<vmem>>, vector<1x16x16x4xf32>
    %69 = vector.shape_cast %68 : vector<1x16x16x4xf32> to vector<256x4xf32>
    %c0_69 = arith.constant 0 : index
    %70 = memref.load %arg1[%c0_69] : memref<2xf32, #tpu.memory_space<smem>>
    %71 = vector.broadcast %70 : f32 to vector<256x4xf32>
    %72 = arith.mulf %71, %69 : vector<256x4xf32>
    %c1_70 = arith.constant 1 : index
    %73 = memref.load %arg1[%c1_70] : memref<2xf32, #tpu.memory_space<smem>>
    %74 = vector.broadcast %73 : f32 to vector<256x4xf32>
    %75 = arith.mulf %74, %67 : vector<256x4xf32>
    %76 = arith.subf %72, %75 : vector<256x4xf32>
    %cst_71 = arith.constant -1.000000e+00 : f32
    %cst_72 = arith.constant 1.000000e+00 : f32
    %77 = vector.broadcast %cst_71 : f32 to vector<256x4xf32>
    %78 = arith.maximumf %77, %76 : vector<256x4xf32>
    %79 = vector.broadcast %cst_72 : f32 to vector<256x4xf32>
    %80 = arith.minimumf %79, %78 : vector<256x4xf32>
    %81 = vector.shape_cast %80 : vector<256x4xf32> to vector<1x16x16x4xf32>
    %c0_73 = arith.constant 0 : index
    %c0_74 = arith.constant 0 : index
    %c0_75 = arith.constant 0 : index
    %c0_76 = arith.constant 0 : index
    %82 = vector.load %arg6[%c0_73, %c0_74, %c0_75, %c0_76] : memref<1x16x16x4xf32, #tpu.memory_space<vmem>>, vector<1x16x16x4xf32>
    tpu.vector_store %arg6[%c0_73, %c0_74, %c0_75, %c0_76], %81 {strides = array<i32>} : memref<1x16x16x4xf32, #tpu.memory_space<vmem>>, vector<1x16x16x4xf32>,
    return
  }
  func.func @transform_0(%arg0: i32) -> i32 {
    %c0_i32 = arith.constant 0 : i32
    %c0_i32_0 = arith.constant 0 : i32
    return %c0_i32 : i32
  }
  func.func @transform_1(%arg0: i32) -> (i32, i32, i32, i32) {
    %c0_i32 = arith.constant 0 : i32
    %c0_i32_0 = arith.constant 0 : i32
    %c0_i32_1 = arith.constant 0 : i32
    %c0_i32_2 = arith.constant 0 : i32
    return %arg0, %c0_i32, %c0_i32_0, %c0_i32_1 : i32, i32, i32, i32
  }
  func.func @transform_2(%arg0: i32) -> (i32, i32, i32) {
    %c0_i32 = arith.constant 0 : i32
    %c0_i32_0 = arith.constant 0 : i32
    %c0_i32_1 = arith.constant 0 : i32
    %c0_i32_2 = arith.constant 0 : i32
    return %c0_i32, %c0_i32_0, %c0_i32_1 : i32, i32, i32
  }
  func.func @transform_3(%arg0: i32) -> (i32, i32) {
    %c0_i32 = arith.constant 0 : i32
    %c0_i32_0 = arith.constant 0 : i32
    %c0_i32_1 = arith.constant 0 : i32
    return %c0_i32, %c0_i32_0 : i32, i32
  }
  func.func @transform_4(%arg0: i32) -> (i32, i32, i32, i32) {
    %c0_i32 = arith.constant 0 : i32
    %c0_i32_0 = arith.constant 0 : i32
    %c0_i32_1 = arith.constant 0 : i32
    %c0_i32_2 = arith.constant 0 : i32
    return %arg0, %c0_i32, %c0_i32_0, %c0_i32_1 : i32, i32, i32, i32
  }
  func.func @transform_5(%arg0: i32) -> (i32, i32, i32, i32) {
    %c0_i32 = arith.constant 0 : i32
    %c0_i32_0 = arith.constant 0 : i32
    %c0_i32_1 = arith.constant 0 : i32
    %c0_i32_2 = arith.constant 0 : i32
    return %arg0, %c0_i32, %c0_i32_0, %c0_i32_1 : i32, i32, i32, i32
  }
}

</mosaic_0001>

<bundles_post_ra>
// kernel: _forward_impl.3
= control target key start
LH: loop header
LB: loop body
LE: loop exit
PB: predicated region body
PF: predicated region fallthrough
CT: control target
= control target key end

     0   :  { %10 = vsyncpa [#allocation5], 0  ;;  %s318_s0 = inlined_call_operand.hbm [shape: f32[2], index: 0, kind: input, shape index: {}]   ;;  %s319_s1 = inlined_call_operand.hbm [shape: f32[8,256], index: 1, kind: input, shape index: {}]   ;;  %s320_s2 = inlined_call_operand.hbm [shape: f32[8,256], index: 2, kind: input, shape index: {}]   ;;  %s321_s3 = inlined_call_operand.hbm [shape: f32[8,256], index: 3, kind: output, shape index: {0}]   ;;  %s322_s4 = inlined_call_operand.hbm [shape: f32[8,256], index: 4, kind: output, shape index: {1}]  }
   0x1   :  { %11 = vsyncpa [#allocation3], 0 }
   0x2   :  { %12 = vsyncpa [#allocation8], 0 }
   0x3   :  { %13 = vsyncpa [#allocation4], 0 }
   0x4   :  { %14 = vsyncpa [#allocation11], 0  ;;  %s114_s17 = scalar_lea.hbm %s318_s0, 16 }
   0x5   :  { %p115_p0 = scmp.ne.s32.totalorder %s318_s0, %s114_s17  ;;  %p118_p1 = scmp.lt.u32.totalorder %s114_s17, %s318_s0 }
   0x7   :  { %p120_p2 = pnand %p118_p1, %p115_p0 }
   0x9   :  { %123 = shalt.err (!%p120_p2)
}
   0xa   :  { %s222_s22 = smov [#allocation2]   ;;  %s223_s25 = smov [#allocation6]  }
   0xb   :  { %22 = dma.hbm_to_smem %s318_s0, 16, %s222_s22, [#allocation5]  }
   0xc   :  { %s29_s26 = sshll.u32 %s223_s25, 4  ;;  %s224_s27 = smov [#allocation7]   ;;  %s30_s26 = int_to_ptr.vmem [resolvable:$true] %s29_s26 }
   0xd   :  { %s39_s28 = sshll.u32 %s224_s27, 4  ;;  %s124_s5 = scalar_lea.hbm %s319_s1, 256  ;;  %s40_s28 = int_to_ptr.vmem [resolvable:$true] %s39_s28 }
   0xe   :  { %p125_p3 = scmp.ne.s32.totalorder %s319_s1, %s124_s5  ;;  %p128_p4 = scmp.lt.u32.totalorder %s124_s5, %s319_s1 }
  0x10   :  { %p130_p5 = pnand %p128_p4, %p125_p3 }
  0x12   :  { %133 = shalt.err (!%p130_p5)
}
  0x13   :  { %s134_s0 = scalar_lea.vmem %s30_s26, 256  ;;  %p139_p7 = scmp.lt.s32.totalorder %s30_s26, %s30_s26 }
  0x14   :  { %p135_p6 = scmp.ne.s32.totalorder %s30_s26, %s134_s0  ;;  %p140_p8 = scmp.lt.s32.totalorder %s134_s0, %s134_s0 }
  0x16   :  { %p141_p9 = por %p140_p8, %p139_p7 }
  0x18   :  { %p142_p10 = pnand %p141_p9, %p135_p6 }
  0x1a   :  { %145 = shalt.err (!%p142_p10)
}
  0x1b   :  { %32 = dma.hbm_to_vmem [thread:$0]  %s319_s1, 256, %s30_s26, [#allocation3]  }
  0x1c   :  { %s146_s14 = scalar_lea.hbm %s320_s2, 256 }
  0x1d   :  { %p147_p11 = scmp.ne.s32.totalorder %s320_s2, %s146_s14  ;;  %p150_p12 = scmp.lt.u32.totalorder %s146_s14, %s320_s2 }
  0x1f   :  { %p152_p13 = pnand %p150_p12, %p147_p11 }
  0x21   :  { %155 = shalt.err (!%p152_p13)
}
  0x22   :  { %s156_s19 = scalar_lea.vmem %s40_s28, 256  ;;  %p161_p1 = scmp.lt.s32.totalorder %s40_s28, %s40_s28 }
  0x23   :  { %p157_p0 = scmp.ne.s32.totalorder %s40_s28, %s156_s19  ;;  %p162_p2 = scmp.lt.s32.totalorder %s156_s19, %s156_s19 }
  0x25   :  { %p163_p3 = por %p162_p2, %p161_p1 }
  0x27   :  { %p164_p4 = pnand %p163_p3, %p157_p0 }
  0x29   :  { %167 = shalt.err (!%p164_p4)
}
  0x2a   :  { %42 = dma.hbm_to_vmem [thread:$0]  %s320_s2, 256, %s40_s28, [#allocation8]  }
  0x2b   :  { %212 = dma.done.wait [#allocation5], 16  }
  0x2c   :  { %213 = vsyncadd [#allocation5], 4294967280 }
  0x2d   :  { %214 = dma.done.wait [#allocation3], 256  }
  0x2e   :  { %215 = vsyncadd [#allocation3], 4294967040 }
  0x2f   :  { %216 = dma.done.wait [#allocation8], 256  }
  0x30   :  { %217 = vsyncadd [#allocation8], 4294967040 }
  0x31   :  { %52 = sfence }
  0x32   :  { %v53_v0 = vld [vmem:[#allocation6] sm:$0xff]  ;;  %v54_v1 = vld [vmem:[#allocation6 + $0x8] sm:$0xff]  ;;  %s288_s21 = sld [smem:[#allocation2]]  ;;  %s290_s22 = sld [smem:[#allocation2 + $0x1]]  ;;  %v66_v6 = vld [vmem:[#allocation7] sm:$0xff] }
  0x33   :  { %v55_v2 = vmul.f32 2.0, %v53_v0  ;;  %v56_v3 = vmul.f32 2.0, %v54_v1  ;;  %s225_s23 = smov [#allocation9]   ;;  %v67_v7 = vld [vmem:[#allocation7 + $0x8] sm:$0xff]  ;;  %s226_s2 = smov [#allocation10]  }
  0x34   :  { %s81_s24 = sshll.u32 %s225_s23, 4  ;;  %s91_s25 = sshll.u32 %s226_s2, 4  ;;  %s82_s24 = int_to_ptr.vmem [resolvable:$true] %s81_s24  ;;  %s92_s25 = int_to_ptr.vmem [resolvable:$true] %s91_s25 }
  0x35   :  { %v106_v4 = vadd.f32 -1.0, %v55_v2  ;;  %v107_v5 = vadd.f32 -1.0, %v56_v3  ;;  %s168_s26 = scalar_lea.vmem %s82_s24, 256  ;;  %p173_p6 = scmp.lt.s32.totalorder %s82_s24, %s82_s24 }
  0x36   :  { %p169_p5 = scmp.ne.s32.totalorder %s82_s24, %s168_s26  ;;  %p174_p7 = scmp.lt.s32.totalorder %s168_s26, %s168_s26 }
  0x37   :  { %59 = vst [vmem:[#allocation9] sm:$0xff] %v106_v4  ;;  %60 = vst [vmem:[#allocation9 + $0x8] sm:$0xff] %v107_v5 }
  0x38   :  { %v62_v8 = vstv %s288_s21  ;;  %v68_v9 = vstv %s290_s22  ;;  %p175_p8 = por %p174_p7, %p173_p6 }
  0x3a   :  { %p176_p9 = pnand %p175_p8, %p169_p5 }
  0x3c   :  { %179 = shalt.err (!%p176_p9)
}
  0x3d   :  { %s180_s29 = scalar_lea.hbm %s321_s3, 256 }
  0x3e   :  { %p181_p10 = scmp.ne.s32.totalorder %s321_s3, %s180_s29  ;;  %p184_p11 = scmp.lt.u32.totalorder %s180_s29, %s321_s3 }
  0x40   :  { %p186_p12 = pnand %p184_p11, %p181_p10 }
  0x42   :  { %189 = shalt.err (!%p186_p12)
}
  0x43   :  { %84 = dma.vmem_to_hbm [thread:$0]  %s82_s24, 256, %s321_s3, [#allocation4]   ;;  %v63_v10 = vmul.f32 %v106_v4, %v62_v8  ;;  %v69_v11 = vmul.f32 %v68_v9, %v66_v6  ;;  %v64_v12 = vmul.f32 %v107_v5, %v62_v8  ;;  %v70_v13 = vmul.f32 %v68_v9, %v67_v7 }
  0x44   :  { %s190_s0 = scalar_lea.vmem %s92_s25, 256  ;;  %p195_p0 = scmp.lt.s32.totalorder %s92_s25, %s92_s25 }
  0x45   :  { %v71_v14 = vadd.f32 %v69_v11, %v63_v10  ;;  %v72_v15 = vadd.f32 %v70_v13, %v64_v12  ;;  %p191_p13 = scmp.ne.s32.totalorder %s92_s25, %s190_s0  ;;  %p196_p1 = scmp.lt.s32.totalorder %s190_s0, %s190_s0 }
  0x47   :  { %73 = vst [vmem:[#allocation10] sm:$0xff] %v71_v14  ;;  %74 = vst [vmem:[#allocation10 + $0x8] sm:$0xff] %v72_v15  ;;  %p197_p2 = por %p196_p1, %p195_p0 }
  0x49   :  { %p198_p3 = pnand %p197_p2, %p191_p13 }
  0x4b   :  { %201 = shalt.err (!%p198_p3)
}
  0x4c   :  { %s202_s3 = scalar_lea.hbm %s322_s4, 256 }
  0x4d   :  { %p203_p4 = scmp.ne.s32.totalorder %s322_s4, %s202_s3  ;;  %p206_p5 = scmp.lt.u32.totalorder %s202_s3, %s322_s4 }
  0x4f   :  { %p208_p6 = pnand %p206_p5, %p203_p4 }
  0x51   :  { %211 = shalt.err (!%p208_p6)
}
  0x52   :  { %94 = dma.vmem_to_hbm [thread:$0]  %s92_s25, 256, %s322_s4, [#allocation11]  }
  0x53   :  { %218 = dma.done.wait [#allocation4], 256  }
  0x54   :  { %219 = vsyncadd [#allocation4], 4294967040 }
  0x55   :  { %220 = dma.done.wait [#allocation11], 256  }
  0x56   :  { %221 = vsyncadd [#allocation11], 4294967040 }
  0x57   :  { %101 = vsyncpa [#allocation3], 1 }
  0x58   :  { %102 = vsyncpa [#allocation8], 1 }
  0x59   :  { %103 = vsyncpa [#allocation4], 1 }
  0x5a   :  { %104 = vsyncpa [#allocation11], 1 }
  0x5b   :  { %105 = vsyncpa [#allocation5], 1 }

// kernel: _forward_impl.5
= control target key start
LH: loop header
LB: loop body
LE: loop exit
PB: predicated region body
PF: predicated region fallthrough
CT: control target
= control target key end

     0   :  { %10 = vsyncpa [#allocation5], 0  ;;  %s9398_s0 = inlined_call_operand.hbm [shape: f32[2], index: 0, kind: input, shape index: {}]   ;;  %s9399_s1 = inlined_call_operand.hbm [shape: bf16[2,18,18,32], index: 1, kind: input, shape index: {}]   ;;  %s9400_s2 = inlined_call_operand.hbm [shape: bf16[9,32,8], index: 2, kind: input, shape index: {}]   ;;  %s9401_s3 = inlined_call_operand.hbm [shape: f32[1,8], index: 3, kind: input, shape index: {}]   ;;  %s9402_s4 = inlined_call_operand.hbm [shape: f32[2,16,16,4], index: 4, kind: input, shape index: {}]   ;;  %s9403_s5 = inlined_call_operand.hbm [shape: f32[2,16,16,4], index: 5, kind: output, shape index: {}]  }
   0x1   :  { %11 = vsyncpa [#allocation3], 0 }
   0x2   :  { %13 = vsyncpa [#allocation3 + $0x1], 0 }
   0x3   :  { %14 = vsyncpa [#allocation8], 0 }
   0x4   :  { %15 = vsyncpa [#allocation11], 0 }
   0x5   :  { %17 = vsyncpa [#allocation11 + $0x1], 0 }
   0x6   :  { %18 = vsyncpa [#allocation4], 0 }
   0x7   :  { %20 = vsyncpa [#allocation4 + $0x1], 0  ;;  %s7216_s18 = smov 0   ;;  %s7218_s19 = smov 0  }
   0x8   :  { %s7220_s20 = smov 0   ;;  %s7222_s21 = smov 0  }
   0x9 LB: > { %s7237_s22 = sadd.s32 4294967295, %s7172_s21   ;;  %s5398_s23 = sadd.s32 4294967294, %s7172_s21   ;;  %s7172_s21 = sphi %s7222_s21, %s9503_s21   ;;  %s7168_s20 = sphi %s7220_s20, %s9507_s20   ;;  %s7164_s19 = sphi %s7218_s19, %s9506_s19   ;;  %s7160_s18 = sphi %s7216_s18, %s9505_s18  }
   0xa   : > { %s7241_s24 = sadd.s32 1, %s7172_s21   ;;  %s54_s25 = sadd.s32 1, %s7168_s20 }
   0xb   : > { %9424 = sst [smem:[#allocation18_spill]] %s7241_s24  ;;  %s51_s26 = ssub.s32 %s7172_s21, %s7241_s24 }
   0xc   : > { %p61_p0 = scmp.ne.s32.totalorder %s7168_s20, %s7164_s19  ;;  %p52_p1 = scmp.eq.s32.totalorder %s51_s26, 0 }
   0xd   : > { %p62_p2 = scmp.eq.s32.totalorder %s7172_s21, 0  ;;  %p67_p3 = scmp.ne.s32.totalorder %s7164_s19, %s7160_s18 }
   0xe   : > { %p9404_p4 = scmp.eq.s32.totalorder %s7237_s22, 0  ;;  %p159_p7 = scmp.eq.s32.totalorder %s7237_s22, 1 }
   0xf   : > { %s7253_s27 = scalar_select %p52_p1, %s7168_s20, %s54_s25  }
  0x10   : > { %p7255_p5 = por %p62_p2, %p61_p0  ;;  %p7261_p6 = por %p9404_p4, %p67_p3 }
  0x11   : > { %9425 = sst [smem:[#allocation19_spill]] %s7253_s27  ;;  %p165_p8 = scmp.eq.s32.totalorder %s5398_s23, 1 }
  0x12   : > { %s9426_s28 = scalar_select %p7255_p5, 1, 0 }
  0x13   : > { %s9427_s29 = scalar_select %p7261_p6, 1, 0 }
  0x14   : > { %p5399_p9 = scmp.ge.s32.totalorder %s7172_s21, 1  ;;  %p172_p10 = scmp.lt.s32.totalorder %s7172_s21, 3 }
  0x15   : > { %p7268_p11 = por %p159_p7, %p61_p0  ;;  %p7272_p12 = por %p165_p8, %p67_p3 }
  0x16   : > { %p7276_p13 = pnand %p5399_p9, %p172_p10  ;;  %s7174_s8 = smov [#allocation7]  }
  0x17   : > { %s9428_s30 = scalar_select %p7268_p11, 1, 0 }
  0x18   : > { %s9429_s6 = scalar_select %p7272_p12, 1, 0 }
  0x19   : > { %s9431_s7 = scalar_select %p7276_p13, 1, 0 }
  0x1a   : > { %9430 = sst [smem:[#allocation20_spill]] %s9429_s6  ;;  %p6768_p1 = pneg %p7276_p13 }
  0x1b   : > { %s193_s9 = sshll.u32 %s7174_s8, 4  ;;  %s7175_s11 = smov [#allocation9]   ;;  %s194_s9 = int_to_ptr.vmem [resolvable:$true] %s193_s9 }
  0x1c   : > { %p7284_p2 = pnand %p6768_p1, %p9404_p4  ;;  %s7289_s12 = sshll.u32 %s7175_s11, 4  ;;  %s208_s12 = int_to_ptr.vmem [resolvable:$true] %s7289_s12 }
  0x1d   : > { %s6965_s15 = scalar_lea.hbm %s9400_s2, 2304 }
  0x1e   : > { %p6966_p3 = scmp.ne.s32.totalorder %s9400_s2, %s6965_s15  ;;  %p7299_p7 = pneg %p7284_p2 }
  0x1f   : > { %p6972_p10 = scmp.lt.u32.totalorder %s6965_s15, %s9400_s2 }
  0x20   : > { %p6968_p8 = pnand %p7299_p7, %p6966_p3 }
  0x22   : > { %p6969_p9 = pneg %p6968_p8 }
  0x24   : > { %p6974_p1 = pnand %p6972_p10, %p6969_p9 }
  0x26   : > { %6977 = shalt.err (!%p6974_p1)
}
  0x27   : > { %s6978_s8 = scalar_lea.vmem %s194_s9, 2304  ;;  %p6986_p11 = scmp.lt.s32.totalorder %s194_s9, %s194_s9 }
  0x28   : > { %p6979_p0 = scmp.ne.s32.totalorder %s194_s9, %s6978_s8  ;;  %p6987_p6 = scmp.lt.s32.totalorder %s6978_s8, %s6978_s8 }
  0x2a   : > { %p6981_p4 = pnand %p6979_p0, %p7299_p7  ;;  %p6988_p13 = por %p6987_p6, %p6986_p11 }
  0x2c   : > { %p6982_p12 = pneg %p6981_p4 }
  0x2e   : > { %p6989_p5 = pnand %p6988_p13, %p6982_p12 }
  0x30   : > { %6992 = shalt.err (!%p6989_p5)
}
  0x31   : > { %s7176_s11 = smov 64   ;;  %s7177_s13 = smov 4  }
  0x32   : > { %6774 = dma.hbm_to_vmem [thread:$0]  (!%p7284_p2), %s9400_s2, 2304, %s194_s9, [#allocation8], %s7176_s11, %s7176_s11, %s7177_s13  }
  0x33   : > { %s6993_s25 = scalar_lea.hbm %s9398_s0, 16 }
  0x34   : > { %p6994_p4 = scmp.ne.s32.totalorder %s9398_s0, %s6993_s25  ;;  %p7000_p11 = scmp.lt.u32.totalorder %s6993_s25, %s9398_s0 }
  0x36   : > { %p6996_p5 = pnand %p6994_p4, %p7299_p7 }
  0x38   : > { %p6997_p6 = pneg %p6996_p5 }
  0x3a   : > { %p7002_p12 = pnand %p7000_p11, %p6997_p6 }
  0x3c   : > { %7005 = shalt.err (!%p7002_p12)
}
  0x3d   : > { %s7178_s6 = smov [#allocation2]   ;;  %s7006_s17 = scalar_lea.hbm %s9401_s3, 16 }
  0x3e   : > { %6771 = dma.hbm_to_smem (!%p7284_p2), %s9398_s0, 16, %s7178_s6, [#allocation5]  }
  0x3f   : > { %p7007_p0 = scmp.ne.s32.totalorder %s9401_s3, %s7006_s17  ;;  %p7013_p9 = scmp.lt.u32.totalorder %s7006_s17, %s9401_s3 }
  0x41   : > { %p7009_p3 = pnand %p7007_p0, %p7299_p7 }
  0x43   : > { %p7010_p8 = pneg %p7009_p3 }
  0x45   : > { %p7015_p10 = pnand %p7013_p9, %p7010_p8 }
  0x47   : > { %7018 = shalt.err (!%p7015_p10)
}
  0x48   : > { %s7019_s6 = scalar_lea.vmem %s208_s12, 16  ;;  %s7026_s8 = scalar_lea.vmem %s208_s12, 32 }
  0x49   : > { %p7020_p1 = scmp.ne.s32.totalorder %s208_s12, %s7019_s6  ;;  %p7027_p6 = scmp.lt.s32.totalorder %s208_s12, %s208_s12 }
  0x4a   : > { %p7028_p11 = scmp.lt.s32.totalorder %s7026_s8, %s7019_s6 }
  0x4b   : > { %p7022_p4 = pnand %p7020_p1, %p7299_p7 }
  0x4c   : > { %p7029_p12 = por %p7028_p11, %p7027_p6 }
  0x4d   : > { %p7023_p5 = pneg %p7022_p4 }
  0x4f   : > { %p7030_p13 = pnand %p7029_p12, %p7023_p5 }
  0x51   : > { %7033 = shalt.err (!%p7030_p13)
}
  0x52   : > { %6777 = dma.hbm_to_vmem [thread:$0]  (!%p7284_p2), %s9401_s3, 16, %s208_s12, [#allocation8]  }
  0x53   : > { %s7355_s15 = sand.u32 1, %s7168_s20   ;;  %s6748_s23 = smul.u32 3456, %s7172_s21 }
  0x54   : > { %s6747_s16 = smul.u32 216, %s7355_s15  ;;  %p9434_p7 = scmp.ne.s32.totalorder %s9426_s28, 0 }
  0x55   : > { %s7362_s27 = scalar_lea.hbm %s9399_s1, %s6748_s23  ;;  %p9435_p13 = scmp.lt.s32.totalorder %s7172_s21, 2 }
  0x56   : > { %s222_s12 = scalar_lea.vmem [#allocation6], %s6747_s16  ;;  %s5405_s26 = sshll.u32 %s7355_s15, 8 }
  0x57   : > { %p7368_p0 = pnand %p9435_p13, %p9434_p7  ;;  %s229_s25 = sshll.u32 %s222_s12, 4  ;;  %s7372_s25 = int_to_ptr.vmem [resolvable:$true] %s229_s25 }
  0x58   : > { %s219_s6 = scalar_lea.sflag [#allocation3], %s7355_s15  ;;  %s7034_s8 = scalar_lea.hbm %s7362_s27, 3456 }
  0x59   : > { %p7035_p2 = scmp.ne.s32.totalorder %s7362_s27, %s7034_s8  ;;  %p7036_p3 = pneg %p7368_p0 }
  0x5a   : > { %s7039_s14 = scalar_lea.hbm %s9399_s1, 6912  ;;  %p7040_p10 = scmp.lt.u32.totalorder %s7362_s27, %s9399_s1 }
  0x5b   : > { %p7037_p8 = pnand %p7036_p3, %p7035_p2  ;;  %p7041_p1 = scmp.lt.u32.totalorder %s7039_s14, %s7034_s8 }
  0x5c   : > { %p7043_p5 = scmp.lt.u32.totalorder %s7034_s8, %s7362_s27 }
  0x5d   : > { %p7038_p9 = pneg %p7037_p8  ;;  %p7042_p4 = por %p7041_p1, %p7040_p10 }
  0x5f   : > { %p7044_p6 = por %p7043_p5, %p7042_p4 }
  0x61   : > { %p7045_p11 = pnand %p7044_p6, %p7038_p9 }
  0x63   : > { %7048 = shalt.err (!%p7045_p11)
}
  0x64   : > { %s7049_s16 = scalar_lea.vmem %s7372_s25, 3456  ;;  %s7179_s24 = smov [#allocation6]  }
  0x65   : > { %p7050_p12 = scmp.ne.s32.totalorder %s7372_s25, %s7049_s16  ;;  %s7054_s12 = sshll.u32 %s7179_s24, 4  ;;  %s7055_s12 = int_to_ptr.vmem [resolvable:$false] %s7054_s12 }
  0x66   : > { %s7056_s28 = scalar_lea.vmem %s7055_s12, 6912  ;;  %p7057_p2 = scmp.lt.s32.totalorder %s7372_s25, %s7055_s12 }
  0x67   : > { %p7052_p7 = pnand %p7050_p12, %p7036_p3  ;;  %p7058_p8 = scmp.lt.s32.totalorder %s7056_s28, %s7049_s16 }
  0x69   : > { %p7053_p13 = pneg %p7052_p7  ;;  %p7059_p10 = por %p7058_p8, %p7057_p2 }
  0x6b   : > { %p7060_p1 = pnand %p7059_p10, %p7053_p13 }
  0x6d   : > { %7063 = shalt.err (!%p7060_p1)
}
  0x6e   : > { %6781 = dma.hbm_to_vmem [thread:$0]  (!%p7368_p0), %s7362_s27, 3456, %s7372_s25, %s219_s6, %s7176_s11, %s7176_s11, %s7177_s13  }
  0x6f   : > { %s5999_s8 = sshll.u32 %s7172_s21, 12  ;;  %s243_s17 = scalar_lea.vmem [#allocation10], %s5405_s26 }
  0x70   : > { %s7410_s23 = scalar_lea.hbm %s9402_s4, %s5999_s8  ;;  %s250_s16 = sshll.u32 %s243_s17, 4  ;;  %s7414_s16 = int_to_ptr.vmem [resolvable:$true] %s250_s16 }
  0x71   : > { %s240_s24 = scalar_lea.sflag [#allocation11], %s7355_s15  ;;  %s7064_s12 = scalar_lea.hbm %s7410_s23, 4096 }
  0x72   : > { %p7065_p9 = scmp.ne.s32.totalorder %s7410_s23, %s7064_s12  ;;  %s7069_s27 = scalar_lea.hbm %s9402_s4, 8192 }
  0x73   : > { %p7070_p6 = scmp.lt.u32.totalorder %s7410_s23, %s9402_s4  ;;  %p7071_p11 = scmp.lt.u32.totalorder %s7069_s27, %s7064_s12 }
  0x74   : > { %p7067_p4 = pnand %p7065_p9, %p7036_p3  ;;  %p7073_p7 = scmp.lt.u32.totalorder %s7064_s12, %s7410_s23 }
  0x75   : > { %p7072_p12 = por %p7071_p11, %p7070_p6 }
  0x76   : > { %p7068_p5 = pneg %p7067_p4 }
  0x77   : > { %p7074_p13 = por %p7073_p7, %p7072_p12 }
  0x79   : > { %p7075_p2 = pnand %p7074_p13, %p7068_p5 }
  0x7b   : > { %7078 = shalt.err (!%p7075_p2)
}
  0x7c   : > { %s7079_s26 = scalar_lea.vmem %s7414_s16, 4096  ;;  %s7180_s28 = smov [#allocation10]  }
  0x7d   : > { %p7080_p8 = scmp.ne.s32.totalorder %s7414_s16, %s7079_s26  ;;  %s7084_s8 = sshll.u32 %s7180_s28, 4  ;;  %s7085_s8 = int_to_ptr.vmem [resolvable:$false] %s7084_s8 }
  0x7e   : > { %s7086_s9 = scalar_lea.vmem %s7085_s8, 8192  ;;  %p7087_p9 = scmp.lt.s32.totalorder %s7414_s16, %s7085_s8 }
  0x7f   : > { %p7082_p10 = pnand %p7080_p8, %p7036_p3  ;;  %p7088_p4 = scmp.lt.s32.totalorder %s7086_s9, %s7079_s26 }
  0x81   : > { %p7083_p1 = pneg %p7082_p10  ;;  %p7089_p6 = por %p7088_p4, %p7087_p9 }
  0x83   : > { %p7090_p11 = pnand %p7089_p6, %p7083_p1 }
  0x85   : > { %7093 = shalt.err (!%p7090_p11)
}
  0x86   : > { %s7181_s14 = smov 128   ;;  %s7182_s17 = smov 8  }
  0x87   : > { %6784 = dma.hbm_to_vmem [thread:$0]  (!%p7368_p0), %s7410_s23, 4096, %s7414_s16, %s240_s24, %s7181_s14, %s7181_s14, %s7182_s17  }
  0x88   : > { %p9437_p3 = scmp.ne.s32.totalorder %s9431_s7, 0 }
  0x8a   : > { %262 = sbr.rel (%p9437_p3) target bundleno = 749 (0x2ed), region = 40 }
  0x91   : > { %p9438_p5 = scmp.eq.s32.totalorder %s7237_s22, 0 }
  0x93   : > { %7139 = dma.done.wait (%p9438_p5), [#allocation5], 16   ;;  %p9439_p12 = pmov %p9438_p5 }
  0x94   : > { %s7449_s12 = sand.u32 1, %s7164_s19   ;;  %p9440_p0 = scmp.ne.s32.totalorder %s9427_s29, 0 }
  0x95   : > { %7141 = vsyncadd (%p9439_p12), [#allocation5], 4294967280  ;;  %s6749_s11 = smul.u32 216, %s7449_s12  ;;  %s269_s13 = scalar_lea.sflag [#allocation3], %s7449_s12 }
  0x97   : > { %s7453_s10 = scalar_lea.vmem [#allocation6], %s6749_s11 }
  0x98   : > { %7143 = dma.done.wait (%p9440_p0), %s269_s13, 3456  }
  0x99   : > { %7145 = vsyncadd (%p9440_p0), %s269_s13, 4294963840  ;;  %p9441_p7 = pmov %p9438_p5 }
  0x9a   : > { %p9442_p13 = pmov %p9438_p5 }
  0x9b   : > { %7147 = dma.done.wait (%p9441_p7), [#allocation8], 2320  }
  0x9c   : > { %7149 = vsyncadd (%p9442_p13), [#allocation8], 4294964976  ;;  %s5412_s7 = sshll.u32 %s7449_s12, 8  ;;  %s286_s15 = scalar_lea.sflag [#allocation11], %s7449_s12 }
  0x9d   : > { %s7467_s23 = scalar_lea.vmem [#allocation10], %s5412_s7 }
  0x9e   : > { %7151 = dma.done.wait (%p9440_p0), %s286_s15, 4096  }
  0x9f   : > { %7153 = vsyncadd (%p9440_p0), %s286_s15, 4294963200 }
  0xa0   : > { %294 = sfence }
  0xa1   : > { %v6838_v0 = vld [vmem:[#allocation7 + $0x10] sm:$0xff]   ;;  %v6839_v1 = vld [vmem:[#allocation7 + $0x40] sm:$0xff]   ;;  %v6840_v2 = vld [vmem:[#allocation7 + $0x18] sm:$0xff]   ;;  %vm375_vm0 = vsmask.f32 3328  ;;  %vm827_vm3 = vcmask 261120  }
  0xa2   : > { %6163 = vmatprep.subr.bf16.mxu1 %v6838_v0  ;;  %6307 = vmatprep.subr.bf16.mxu0 %v6839_v1  ;;  %v6841_v3 = vld [vmem:[#allocation7 + $0x48] sm:$0xff]   ;;  %v359_v6 = vld [vmem:[%s7453_s10 + $0x8] sm:$0x1]  ;;  %vm376_vm1 = vsmask.f32 7440  ;;  %v7476_v14 = vld [vmem:[#allocation7] sm:$0xff]  }
  0xa3   : > { %6164 = vmatpush3.bf16.msra.mxu1 %v6838_v0  ;;  %6308 = vmatpush3.bf16.msra.mxu0 %v6839_v1  ;;  %v323_v4 = vld [vmem:[%s7453_s10] sm:$0xf]  ;;  %v324_v5 = vld [vmem:[%s7453_s10 + $0x4] sm:$0xf]  ;;  %v398_v11 = vshll.u32 %v359_v6, 16  ;;  %vm7491_vm2 = vmor %vm375_vm0, %vm376_vm1  ;;  %vm1386_vm4 = vcmask 1042432  }
  0xa4   : > { %6165 = vmatprep.subr.bf16.mxu1 %v6840_v2  ;;  %6309 = vmatprep.subr.bf16.mxu0 %v6841_v3  ;;  %v379_v7 = vshrl.u32 %v323_v4, 16  ;;  %v382_v8 = vshll.u32 %v323_v4, 16  ;;  %v388_v9 = vshll.u32 %v324_v5, 16  ;;  %v392_v10 = vshrl.u32 %v324_v5, 16  ;;  %v7478_v15 = vld [vmem:[#allocation7 + $0x50] sm:$0xff]   ;;  %s5060_s29 = sld [smem:[#allocation2]] }
  0xa5   : > { %v400_v18 = vrot.slane %v398_v11, 5  ;;  %v5598_v19 = vld [vmem:[%s7453_s10 + $0xc] sm:$0xf]  ;;  %v7483_v21 = vld [vmem:[%s7453_s10 + $0x10] sm:$0xf]  ;;  %vm1387_vm5 = vcmask 1046532  }
  0xa6   : > { %v381_v12 = vrot.slane %v379_v7, 4  ;;  %v384_v13 = vrot.slane %v382_v8, 5  ;;  %v390_v16 = vrot.slane %v388_v9, 5  ;;  %v394_v17 = vrot.slane %v392_v10, 4  ;;  %v7486_v22 = vld [vmem:[%s7453_s10 + $0x14] sm:$0x1]  ;;  %vm7706_vm6 = vmor %vm1386_vm4, %vm1387_vm5 }
  0xa7   : > { %6166 = vmatpush3.bf16.msra.mxu1 %v6840_v2  ;;  %6310 = vmatpush3.bf16.msra.mxu0 %v6841_v3  ;;  %v2227_v23 = vshrl.u32 %v5598_v19, 16  ;;  %v2230_v24 = vshll.u32 %v5598_v19, 16  ;;  %v2236_v27 = vshll.u32 %v7483_v21, 16  ;;  %v2240_v28 = vshrl.u32 %v7483_v21, 16  ;;  %v325_v36 = vld [vmem:[%s7453_s10 + $0xc] sm:$0xf] }
  0xa8   : > { %v385_v20 = vor.u32 %v384_v13, %v381_v12  ;;  %6199 = vmatprep.subr.bf16.mxu1 %v7476_v14  ;;  %6343 = vmatprep.subr.bf16.mxu0 %v7478_v15  ;;  %v395_v26 = vor.u32 %v394_v17, %v390_v16  ;;  %v2246_v29 = vshll.u32 %v7486_v22, 16  ;;  %v326_v40 = vld [vmem:[%s7453_s10 + $0x10] sm:$0xf]  ;;  %v360_v41 = vld [vmem:[%s7453_s10 + $0x14] sm:$0x1]  ;;  %v403_v42 = vshrl.u32 %v325_v36, 16 }
  0xa9   : > { %v2229_v31 = vrot.slane %v2227_v23, 4  ;;  %v2232_v32 = vrot.slane %v2230_v24, 5  ;;  %v2238_v34 = vrot.slane %v2236_v27, 5  ;;  %v2242_v35 = vrot.slane %v2240_v28, 4  ;;  %v5601_v51 = vld [vmem:[%s7453_s10 + $0x18] sm:$0xf] }
  0xaa   : > { %v386_v30 = vrot.slane %v385_v20, 4  ;;  %v396_v33 = vrot.slane %v395_v26, 4  ;;  %v2248_v39 = vrot.slane %v2246_v29, 5  ;;  %v406_v45 = vshll.u32 %v325_v36, 16  ;;  %v7507_v56 = vld [vmem:[%s7453_s10 + $0x1c] sm:$0xf] }
  0xab   : > { %v2233_v38 = vor.u32 %v2232_v32, %v2229_v31  ;;  %v2243_v44 = vor.u32 %v2242_v35, %v2238_v34  ;;  %v412_v46 = vshll.u32 %v326_v40, 16  ;;  %v405_v49 = vrot.slane %v403_v42, 4  ;;  %v7515_v61 = vld [vmem:[%s7453_s10 + $0x20] sm:$0x1]  ;;  %v327_v10 = vld [vmem:[%s7453_s10 + $0x18] sm:$0xf] }
  0xac   : > { %v391_v37 = vsel %vm7491_vm2, %v386_v30, %v390_v16  ;;  %v401_v43 = vsel %vm7491_vm2, %v396_v33, %v400_v18  ;;  %v416_v50 = vshrl.u32 %v326_v40, 16  ;;  %v408_v53 = vrot.slane %v406_v45, 5  ;;  %v328_v17 = vld [vmem:[%s7453_s10 + $0x1c] sm:$0xf]  ;;  %v361_v24 = vld [vmem:[%s7453_s10 + $0x20] sm:$0x1] }
  0xad   : > { %v5414_v47 = vcombine.low %v391_v37, %v401_v43  ;;  %v2234_v48 = vrot.slane %v2233_v38, 4  ;;  %v2244_v52 = vrot.slane %v2243_v44, 4  ;;  %v414_v54 = vrot.slane %v412_v46, 5  ;;  %v5604_v30 = vld [vmem:[%s7453_s10 + $0x24] sm:$0xf]  ;;  %s5961_s16 = sld [smem:[#allocation2 + $0x1]] }
  0xae   : > { %v422_v55 = vshll.u32 %v360_v41, 16  ;;  %v2982_v58 = vrot.slane %v7483_v21, 5  ;;  %v2985_v59 = vrot.slane %v7486_v22, 5  ;;  %v418_v60 = vrot.slane %v416_v50, 4  ;;  %v6845_v35 = vld [vmem:[#allocation7 + $0x8] sm:$0xff]   ;;  %s9163_s24 = scalar_lea.vmem [#allocation12], %s5412_s7 }
  0xaf   : > { %6167 = vmatprep.mubr.msk.bf16.mxu1 %vm827_vm3, %v5414_v47  ;;  %v2239_v57 = vsel %vm7491_vm2, %v2234_v48, %v2238_v34  ;;  %v2249_v62 = vsel %vm7491_vm2, %v2244_v52, %v2248_v39  ;;  %v409_v63 = vor.u32 %v408_v53, %v405_v49  ;;  %v2251_v1 = vshrl.u32 %v5601_v51, 16  ;;  %v7538_v40 = vld [vmem:[%s7453_s10 + $0x28] sm:$0xf]  ;;  %v7542_v44 = vld [vmem:[%s7453_s10 + $0x2c] sm:$0x1]  ;;  %s6000_s27 = sshll.u32 %s7237_s22, 12 }
  0xb0   : > { %v424_v0 = vrot.slane %v422_v55, 5  ;;  %v5646_v2 = vcombine.low %v2239_v57, %v2249_v62  ;;  %v419_v3 = vor.u32 %v418_v60, %v414_v54  ;;  %v2254_v4 = vshll.u32 %v5601_v51, 16  ;;  %v329_v50 = vld [vmem:[%s7453_s10 + $0x24] sm:$0xf]  ;;  %v330_v55 = vld [vmem:[%s7453_s10 + $0x28] sm:$0xf]  ;;  %s9346_s28 = scalar_lea.hbm %s9403_s5, %s6000_s27 }
  0xb1   : > { %v2260_v5 = vshll.u32 %v7507_v56, 16  ;;  %v410_v6 = vrot.slane %v409_v63, 4  ;;  %v2253_v7 = vrot.slane %v2251_v1, 4  ;;  %v2264_v8 = vshrl.u32 %v7507_v56, 16  ;;  %v6844_v57 = vld [vmem:[#allocation7 + $0x58] sm:$0xff]   ;;  %v6848_v60 = vld [vmem:[#allocation7 + $0x20] sm:$0xff]  }
  0xb2   : > { %v2270_v9 = vshll.u32 %v7515_v61, 16  ;;  %6311 = vmatprep.mubr.msk.bf16.mxu0 %vm827_vm3, %v5646_v2  ;;  %v420_v11 = vrot.slane %v419_v3, 4  ;;  %v2256_v12 = vrot.slane %v2254_v4, 5  ;;  %v2989_v16 = vrot.slane %v7507_v56, 5  ;;  %s5271_s25 = sshll.u32 %s9163_s24, 4  ;;  %s5258_s22 = scalar_lea.sflag [#allocation4], %s7449_s12  ;;  %s9348_s25 = int_to_ptr.vmem [resolvable:$true] %s5271_s25 }
  0xb3   : > { %v2262_v13 = vrot.slane %v2260_v5, 5  ;;  %v415_v18 = vsel %vm7491_vm2, %v410_v6, %v414_v54  ;;  %v2266_v19 = vrot.slane %v2264_v8, 4  ;;  %v2992_v23 = vrot.slane %v7515_v61, 5  ;;  %v362_v8 = vld [vmem:[%s7453_s10 + $0x2c] sm:$0x1]  ;;  %s7094_s8 = scalar_lea.vmem %s9348_s25, 4096 }
  0xb4   : > { %v2272_v20 = vrot.slane %v2270_v9, 5  ;;  %v425_v26 = vsel %vm7491_vm2, %v420_v11, %v424_v0  ;;  %v2257_v27 = vor.u32 %v2256_v12, %v2253_v7  ;;  %v7534_v28 = vrot.slane %v2989_v16, 4  ;;  %p7095_p2 = scmp.ne.s32.totalorder %s9348_s25, %s7094_s8  ;;  %p9499_p8 = scmp.ne.s32.totalorder %s9428_s30, 0 }
  0xb5   : > { %v427_v29 = vshrl.u32 %v327_v10, 16  ;;  %v5415_v31 = vcombine.low %v415_v18, %v425_v26  ;;  %v2267_v32 = vor.u32 %v2266_v19, %v2262_v13  ;;  %v430_v33 = vshll.u32 %v327_v10, 16  ;;  %v7563_v26 = vld [vmem:[%s7453_s10 + $0x34] sm:$0xf]  ;;  %s7183_s9 = smov [#allocation12]  }
  0xb6   : > { %v436_v34 = vshll.u32 %v328_v17, 16  ;;  %v2258_v36 = vrot.slane %v2257_v27, 4  ;;  %v440_v38 = vshrl.u32 %v328_v17, 16  ;;  %v446_v39 = vshll.u32 %v361_v24, 16  ;;  %v5607_v17 = vld [vmem:[%s7453_s10 + $0x30] sm:$0xf]  ;;  %p7096_p10 = pnand %p7095_p2, %p9499_p8 }
  0xb7   : > { %v429_v37 = vrot.slane %v427_v29, 4  ;;  %6168 = vmatmul.mubr.msk.bf16.vlgmr.msra.gmra.mrb[0].mxu1 %vm827_vm3, %v5415_v31  ;;  %v2268_v41 = vrot.slane %v2267_v32, 4  ;;  %v432_v42 = vrot.slane %v430_v33, 5  ;;  %v2275_v45 = vshrl.u32 %v5604_v30, 16  ;;  %s7098_s14 = sshll.u32 %s7183_s9, 4  ;;  %s7099_s14 = int_to_ptr.vmem [resolvable:$false] %s7098_s14 }
  0xb8   : > { %v438_v43 = vrot.slane %v436_v34, 5  ;;  %6200 = vmatpush3.bf16.msra.mxu1 %v7476_v14  ;;  %v2263_v46 = vsel %vm7491_vm2, %v2258_v36, %v2262_v13  ;;  %v442_v47 = vrot.slane %v440_v38, 4  ;;  %v448_v48 = vrot.slane %v446_v39, 5  ;;  %p7097_p1 = pneg %p7096_p10  ;;  %s7100_s17 = scalar_lea.vmem %s7099_s14, 8192 }
  0xb9   : > { %v2278_v49 = vshll.u32 %v5604_v30, 16  ;;  %v2273_v51 = vsel %vm7491_vm2, %v2268_v41, %v2272_v20  ;;  %v433_v52 = vor.u32 %v432_v42, %v429_v37  ;;  %v2277_v53 = vrot.slane %v2275_v45, 4  ;;  %6201 = vmatprep.subr.bf16.mxu1 %v6845_v35  ;;  %v331_v42 = vld [vmem:[%s7453_s10 + $0x30] sm:$0xf]  ;;  %p7101_p9 = scmp.lt.s32.totalorder %s9348_s25, %s7099_s14  ;;  %p7102_p4 = scmp.lt.s32.totalorder %s7100_s17, %s7094_s8 }
  0xba   : > { %v2284_v54 = vshll.u32 %v7538_v40, 16  ;;  %v5647_v14 = vcombine.low %v2263_v46, %v2273_v51  ;;  %v443_v62 = vor.u32 %v442_v47, %v438_v43  ;;  %v2288_v0 = vshrl.u32 %v7538_v40, 16 }
  0xbb   : > { %v2280_v63 = vrot.slane %v2278_v49, 5  ;;  %v434_v1 = vrot.slane %v433_v52, 4  ;;  %v2294_v3 = vshll.u32 %v7542_v44, 16  ;;  %v451_v4 = vshrl.u32 %v329_v50, 16  ;;  %p7103_p6 = por %p7102_p4, %p7101_p9 }
  0xbc   : > { %v2286_v2 = vrot.slane %v2284_v54, 5  ;;  %6312 = vmatmul.mubr.msk.bf16.vlgmr.msra.gmra.mrb[0].mxu0 %vm827_vm3, %v5647_v14  ;;  %v444_v5 = vrot.slane %v443_v62, 4  ;;  %v2290_v7 = vrot.slane %v2288_v0, 4  ;;  %v454_v9 = vshll.u32 %v329_v50, 16  ;;  %6202 = vmatpush3.bf16.msra.mxu1 %v6845_v35  ;;  %v7570_v35 = vld [vmem:[%s7453_s10 + $0x38] sm:$0x1] }
  0xbd   : > { %v2281_v6 = vor.u32 %v2280_v63, %v2277_v53  ;;  %6344 = vmatpush3.bf16.msra.mxu0 %v7478_v15  ;;  %v439_v10 = vsel %vm7491_vm2, %v434_v1, %v438_v43  ;;  %v2296_v11 = vrot.slane %v2294_v3, 5  ;;  %v453_v12 = vrot.slane %v451_v4, 4  ;;  %6235 = vmatprep.subr.bf16.mxu1 %v6848_v60  ;;  %v7565_v15 = vld [vmem:[#allocation7 + $0x60] sm:$0xff]   ;;  %p7104_p11 = pnand %p7103_p6, %p7097_p1 }
  0xbe   : > { %v460_v13 = vshll.u32 %v330_v55, 16  ;;  %v449_v18 = vsel %vm7491_vm2, %v444_v5, %v448_v48  ;;  %v2291_v20 = vor.u32 %v2290_v7, %v2286_v2  ;;  %v456_v24 = vrot.slane %v454_v9, 5  ;;  %6345 = vmatprep.subr.bf16.mxu0 %v6844_v57  ;;  %v332_v48 = vld [vmem:[%s7453_s10 + $0x34] sm:$0xf]  ;;  %v363_v62 = vld [vmem:[%s7453_s10 + $0x38] sm:$0x1] }
  0xbf   : > { %v2282_v19 = vrot.slane %v2281_v6, 4  ;;  %v5416_v27 = vcombine.low %v439_v10, %v449_v18  ;;  %v464_v30 = vshrl.u32 %v330_v55, 16  ;;  %v470_v31 = vshll.u32 %v362_v8, 16  ;;  %v5610_v5 = vld [vmem:[%s7453_s10 + $0x3c] sm:$0xf] }
  0xc0   : > { %v462_v29 = vrot.slane %v460_v13, 5  ;;  %v2292_v33 = vrot.slane %v2291_v20, 4  ;;  %v457_v34 = vor.u32 %v456_v24, %v453_v12  ;;  %v2299_v36 = vshrl.u32 %v5607_v17, 16  ;;  %v7589_v10 = vld [vmem:[%s7453_s10 + $0x40] sm:$0xf] }
  0xc1   : > { %v2287_v32 = vsel %vm7491_vm2, %v2282_v19, %v2286_v2  ;;  %6171 = vmatprep.mubr.msk.bf16.mxu1 %vm827_vm3, %v5416_v27  ;;  %v466_v37 = vrot.slane %v464_v30, 4  ;;  %v472_v38 = vrot.slane %v470_v31, 5  ;;  %v2302_v39 = vshll.u32 %v5607_v17, 16  ;;  %6346 = vmatpush3.bf16.msra.mxu0 %v6844_v57  ;;  %v7594_v20 = vld [vmem:[%s7453_s10 + $0x44] sm:$0x1] }
  0xc2   : > { %v2308_v41 = vshll.u32 %v7563_v26, 16  ;;  %v2297_v43 = vsel %vm7491_vm2, %v2292_v33, %v2296_v11  ;;  %v458_v45 = vrot.slane %v457_v34, 4  ;;  %v2301_v46 = vrot.slane %v2299_v36, 4  ;;  %6379 = vmatprep.subr.bf16.mxu0 %v7565_v15  ;;  %v333_v33 = vld [vmem:[%s7453_s10 + $0x3c] sm:$0xf] }
  0xc3   : > { %v2312_v47 = vshrl.u32 %v7563_v26, 16  ;;  %v5648_v49 = vcombine.low %v2287_v32, %v2297_v43  ;;  %v467_v50 = vor.u32 %v466_v37, %v462_v29  ;;  %v2304_v51 = vrot.slane %v2302_v39, 5  ;;  %v334_v34 = vld [vmem:[%s7453_s10 + $0x40] sm:$0xf] }
  0xc4   : > { %v2310_v52 = vrot.slane %v2308_v41, 5  ;;  %v463_v53 = vsel %vm7491_vm2, %v458_v45, %v462_v29  ;;  %v2318_v55 = vshll.u32 %v7570_v35, 16  ;;  %v475_v57 = vshrl.u32 %v331_v42, 16  ;;  %v364_v41 = vld [vmem:[%s7453_s10 + $0x44] sm:$0x1] }
  0xc5   : > { %v2314_v54 = vrot.slane %v2312_v47, 4  ;;  %6315 = vmatprep.mubr.msk.bf16.mxu0 %vm827_vm3, %v5648_v49  ;;  %v468_v60 = vrot.slane %v467_v50, 4  ;;  %v2305_v14 = vor.u32 %v2304_v51, %v2301_v46  ;;  %v478_v63 = vshll.u32 %v331_v42, 16  ;;  %v5613_v51 = vld [vmem:[%s7453_s10 + $0x48] sm:$0xf] }
  0xc6   : > { %v484_v0 = vshll.u32 %v332_v48, 16  ;;  %v2320_v2 = vrot.slane %v2318_v55, 5  ;;  %v477_v3 = vrot.slane %v475_v57, 4  ;;  %v488_v4 = vshrl.u32 %v332_v48, 16 }
  0xc7   : > { %v2315_v1 = vor.u32 %v2314_v54, %v2310_v52  ;;  %v473_v6 = vsel %vm7491_vm2, %v468_v60, %v472_v38  ;;  %v2306_v7 = vrot.slane %v2305_v14, 4  ;;  %v480_v8 = vrot.slane %v478_v63, 5  ;;  %v7612_v63 = vld [vmem:[%s7453_s10 + $0x4c] sm:$0xf] }
  0xc8   : > { %v486_v9 = vrot.slane %v484_v0, 5  ;;  %v5417_v11 = vcombine.low %v463_v53, %v473_v6  ;;  %v490_v13 = vrot.slane %v488_v4, 4  ;;  %v494_v17 = vshll.u32 %v363_v62, 16  ;;  %v7618_v6 = vld [vmem:[%s7453_s10 + $0x50] sm:$0x1] }
  0xc9   : > { %v2316_v12 = vrot.slane %v2315_v1, 4  ;;  %v2311_v18 = vsel %vm7491_vm2, %v2306_v7, %v2310_v52  ;;  %v481_v19 = vor.u32 %v480_v8, %v477_v3  ;;  %v2323_v24 = vshrl.u32 %v5610_v5, 16 }
  0xca   : > { %v2326_v27 = vshll.u32 %v5610_v5, 16  ;;  %6172 = vmatmul.mubr.msk.bf16.gmra.mrb[4].mxu1 %vm827_vm3, %v5417_v11  ;;  %v491_v30 = vor.u32 %v490_v13, %v486_v9  ;;  %v496_v31 = vrot.slane %v494_v17, 5  ;;  %v2332_v32 = vshll.u32 %v7589_v10, 16 }
  0xcb   : > { %v2321_v29 = vsel %vm7491_vm2, %v2316_v12, %v2320_v2  ;;  %v482_v37 = vrot.slane %v481_v19, 4  ;;  %v2325_v38 = vrot.slane %v2323_v24, 4  ;;  %v2336_v45 = vshrl.u32 %v7589_v10, 16 }
  0xcc   : > { %v5649_v36 = vcombine.low %v2311_v18, %v2321_v29  ;;  %v2328_v39 = vrot.slane %v2326_v27, 5  ;;  %v492_v42 = vrot.slane %v491_v30, 4  ;;  %v2334_v43 = vrot.slane %v2332_v32, 5  ;;  %v7623_v27 = vld [vmem:[%s7453_s10 + $0x48] sm:$0xf] }
  0xcd   : > { %v2342_v46 = vshll.u32 %v7594_v20, 16  ;;  %v487_v47 = vsel %vm7491_vm2, %v482_v37, %v486_v9  ;;  %v499_v49 = vshrl.u32 %v333_v33, 16  ;;  %v502_v50 = vshll.u32 %v333_v33, 16  ;;  %v7629_v33 = vld [vmem:[%s7453_s10 + $0x4c] sm:$0xf] }
  0xce   : > { %6316 = vmatmul.mubr.msk.bf16.gmra.mrb[4].mxu0 %vm827_vm3, %v5649_v36  ;;  %v2329_v48 = vor.u32 %v2328_v39, %v2325_v38  ;;  %v497_v52 = vsel %vm7491_vm2, %v492_v42, %v496_v31  ;;  %v2338_v53 = vrot.slane %v2336_v45, 4  ;;  %v508_v55 = vshll.u32 %v334_v34, 16  ;;  %v365_v39 = vld [vmem:[%s7453_s10 + $0x50] sm:$0x1] }
  0xcf   : > { %v2344_v54 = vrot.slane %v2342_v46, 5  ;;  %v5418_v57 = vcombine.low %v487_v47, %v497_v52  ;;  %v501_v14 = vrot.slane %v499_v49, 4  ;;  %v504_v62 = vrot.slane %v502_v50, 5  ;;  %v5616_v50 = vld [vmem:[%s7453_s10 + $0x54] sm:$0xf] }
  0xd0   : > { %v2330_v60 = vrot.slane %v2329_v48, 4  ;;  %v2339_v0 = vor.u32 %v2338_v53, %v2334_v43  ;;  %v510_v1 = vrot.slane %v508_v55, 5  ;;  %v512_v2 = vshrl.u32 %v334_v34, 16  ;;  %v7643_v55 = vld [vmem:[%s7453_s10 + $0x58] sm:$0xf] }
  0xd1   : > { %v518_v3 = vshll.u32 %v364_v41, 16  ;;  %6175 = vmatprep.mubr.msk.bf16.mxu1 %vm827_vm3, %v5418_v57  ;;  %v505_v5 = vor.u32 %v504_v62, %v501_v14  ;;  %v2347_v7 = vshrl.u32 %v5613_v51, 16  ;;  %v2350_v8 = vshll.u32 %v5613_v51, 16 }
  0xd2   : > { %v2335_v4 = vsel %vm7491_vm2, %v2330_v60, %v2334_v43  ;;  %v2340_v9 = vrot.slane %v2339_v0, 4  ;;  %v514_v11 = vrot.slane %v512_v2, 4  ;;  %v2356_v13 = vshll.u32 %v7612_v63, 16 }
  0xd3   : > { %v520_v12 = vrot.slane %v518_v3, 5  ;;  %v506_v17 = vrot.slane %v505_v5, 4  ;;  %v2349_v18 = vrot.slane %v2347_v7, 4  ;;  %v2352_v19 = vrot.slane %v2350_v8, 5  ;;  %v7648_v3 = vld [vmem:[%s7453_s10 + $0x5c] sm:$0x1] }
  0xd4   : > { %v2360_v24 = vshrl.u32 %v7612_v63, 16  ;;  %v2345_v29 = vsel %vm7491_vm2, %v2340_v9, %v2344_v54  ;;  %v515_v30 = vor.u32 %v514_v11, %v510_v1  ;;  %v2358_v31 = vrot.slane %v2356_v13, 5  ;;  %v7656_v11 = vld [vmem:[%s7453_s10 + $0x54] sm:$0xf] }
  0xd5   : > { %v2366_v32 = vshll.u32 %v7618_v6, 16  ;;  %v5650_v34 = vcombine.low %v2335_v4, %v2345_v29  ;;  %v511_v36 = vsel %vm7491_vm2, %v506_v17, %v510_v1  ;;  %v2353_v37 = vor.u32 %v2352_v19, %v2349_v18  ;;  %v7659_v19 = vld [vmem:[%s7453_s10 + $0x58] sm:$0xf] }
  0xd6   : > { %v2362_v38 = vrot.slane %v2360_v24, 4  ;;  %v516_v41 = vrot.slane %v515_v30, 4  ;;  %v523_v43 = vshrl.u32 %v7623_v27, 16  ;;  %v526_v45 = vshll.u32 %v7623_v27, 16 }
  0xd7   : > { %v2368_v42 = vrot.slane %v2366_v32, 5  ;;  %6319 = vmatprep.mubr.msk.bf16.mxu0 %vm827_vm3, %v5650_v34  ;;  %v2354_v46 = vrot.slane %v2353_v37, 4  ;;  %v532_v48 = vshll.u32 %v7629_v33, 16  ;;  %v536_v49 = vshrl.u32 %v7629_v33, 16 }
  0xd8   : > { %v2363_v47 = vor.u32 %v2362_v38, %v2358_v31  ;;  %v521_v51 = vsel %vm7491_vm2, %v516_v41, %v520_v12  ;;  %v525_v52 = vrot.slane %v523_v43, 4  ;;  %v528_v53 = vrot.slane %v526_v45, 5  ;;  %v5619_v45 = vld [vmem:[%s7453_s10 + $0x60] sm:$0xf] }
  0xd9   : > { %v542_v54 = vshll.u32 %v365_v39, 16  ;;  %v5419_v57 = vcombine.low %v511_v36, %v521_v51  ;;  %v2359_v60 = vsel %vm7491_vm2, %v2354_v46, %v2358_v31  ;;  %v534_v62 = vrot.slane %v532_v48, 5 }
  0xda   : > { %v2364_v14 = vrot.slane %v2363_v47, 4  ;;  %v529_v0 = vor.u32 %v528_v53, %v525_v52  ;;  %v538_v1 = vrot.slane %v536_v49, 4  ;;  %v2371_v4 = vshrl.u32 %v5616_v50, 16 }
  0xdb   : > { %v544_v2 = vrot.slane %v542_v54, 5  ;;  %6176 = vmatmul.mubr.msk.bf16.gmra.mrb[8].mxu1 %vm827_vm3, %v5419_v57  ;;  %v2374_v7 = vshll.u32 %v5616_v50, 16  ;;  %v2380_v8 = vshll.u32 %v7643_v55, 16  ;;  %v2384_v9 = vshrl.u32 %v7643_v55, 16  ;;  %v7674_v50 = vld [vmem:[%s7453_s10 + $0x64] sm:$0xf] }
  0xdc   : > { %v2369_v5 = vsel %vm7491_vm2, %v2364_v14, %v2368_v42  ;;  %v530_v13 = vrot.slane %v529_v0, 4  ;;  %v539_v17 = vor.u32 %v538_v1, %v534_v62  ;;  %v2373_v18 = vrot.slane %v2371_v4, 4  ;;  %v366_v42 = vld [vmem:[%s7453_s10 + $0x5c] sm:$0x1] }
  0xdd   : > { %v5651_v12 = vcombine.low %v2359_v60, %v2369_v5  ;;  %v2376_v24 = vrot.slane %v2374_v7, 5  ;;  %v2382_v29 = vrot.slane %v2380_v8, 5  ;;  %v2386_v30 = vrot.slane %v2384_v9, 4  ;;  %v7686_v7 = vld [vmem:[%s7453_s10 + $0x60] sm:$0xf] }
  0xde   : > { %v2390_v31 = vshll.u32 %v7648_v3, 16  ;;  %v535_v32 = vsel %vm7491_vm2, %v530_v13, %v534_v62  ;;  %v540_v34 = vrot.slane %v539_v17, 4  ;;  %v547_v36 = vshrl.u32 %v7656_v11, 16  ;;  %v7677_v62 = vld [vmem:[%s7453_s10 + $0x68] sm:$0x1] }
  0xdf   : > { %6320 = vmatmul.mubr.msk.bf16.gmra.mrb[8].mxu0 %vm827_vm3, %v5651_v12  ;;  %v550_v37 = vshll.u32 %v7656_v11, 16  ;;  %v2377_v38 = vor.u32 %v2376_v24, %v2373_v18  ;;  %v2387_v39 = vor.u32 %v2386_v30, %v2382_v29  ;;  %v556_v43 = vshll.u32 %v7659_v19, 16  ;;  %v7689_v8 = vld [vmem:[%s7453_s10 + $0x64] sm:$0xf] }
  0xe0   : > { %v2392_v41 = vrot.slane %v2390_v31, 5  ;;  %v545_v46 = vsel %vm7491_vm2, %v540_v34, %v544_v2  ;;  %v549_v47 = vrot.slane %v547_v36, 4  ;;  %v560_v49 = vshrl.u32 %v7659_v19, 16  ;;  %v367_v36 = vld [vmem:[%s7453_s10 + $0x68] sm:$0x1] }
  0xe1   : > { %v552_v48 = vrot.slane %v550_v37, 5  ;;  %v5420_v51 = vcombine.low %v535_v32, %v545_v46  ;;  %v2378_v52 = vrot.slane %v2377_v38, 4  ;;  %v2388_v53 = vrot.slane %v2387_v39, 4 }
  0xe2   : > { %v558_v54 = vrot.slane %v556_v43, 5  ;;  %v562_v60 = vrot.slane %v560_v49, 4  ;;  %v566_v14 = vshll.u32 %v366_v42, 16  ;;  %v2395_v0 = vshrl.u32 %v5619_v45, 16  ;;  %v5680_v43 = vld [vmem:[%s7453_s10 + $0xc] sm:$0xe] }
  0xe3   : > { %v553_v57 = vor.u32 %v552_v48, %v549_v47  ;;  %6179 = vmatprep.mubr.msk.bf16.mxu1 %vm827_vm3, %v5420_v51  ;;  %v2383_v1 = vsel %vm7491_vm2, %v2378_v52, %v2382_v29  ;;  %v2393_v2 = vsel %vm7491_vm2, %v2388_v53, %v2392_v41  ;;  %v2398_v4 = vshll.u32 %v5619_v45, 16 }
  0xe4   : > { %v2404_v5 = vshll.u32 %v7674_v50, 16  ;;  %v5652_v9 = vcombine.low %v2383_v1, %v2393_v2  ;;  %v563_v13 = vor.u32 %v562_v60, %v558_v54  ;;  %v568_v17 = vrot.slane %v566_v14, 5 }
  0xe5   : > { %v554_v12 = vrot.slane %v553_v57, 4  ;;  %v2397_v18 = vrot.slane %v2395_v0, 4  ;;  %v2400_v24 = vrot.slane %v2398_v4, 5  ;;  %v2408_v29 = vshrl.u32 %v7674_v50, 16  ;;  %v7711_v57 = vld [vmem:[%s7453_s10 + $0x6c] sm:$0xf] }
  0xe6   : > { %v2406_v30 = vrot.slane %v2404_v5, 5  ;;  %6323 = vmatprep.mubr.msk.bf16.mxu0 %vm827_vm3, %v5652_v9  ;;  %v564_v32 = vrot.slane %v563_v13, 4  ;;  %v2414_v34 = vshll.u32 %v7677_v62, 16  ;;  %v571_v37 = vshrl.u32 %v7686_v7, 16 }
  0xe7   : > { %v559_v31 = vsel %vm7491_vm2, %v554_v12, %v558_v54  ;;  %v2401_v38 = vor.u32 %v2400_v24, %v2397_v18  ;;  %v2410_v39 = vrot.slane %v2408_v29, 4  ;;  %v574_v41 = vshll.u32 %v7686_v7, 16  ;;  %v7723_v18 = vld [vmem:[%s7453_s10 + $0x70] sm:$0xf] }
  0xe8   : > { %v580_v42 = vshll.u32 %v7689_v8, 16  ;;  %v569_v45 = vsel %vm7491_vm2, %v564_v32, %v568_v17  ;;  %v2416_v46 = vrot.slane %v2414_v34, 5  ;;  %v573_v47 = vrot.slane %v571_v37, 4  ;;  %v368_v32 = vld [vmem:[%s7453_s10 + $0x74] sm:$0x1] }
  0xe9   : > { %v584_v48 = vshrl.u32 %v7689_v8, 16  ;;  %v5421_v49 = vcombine.low %v559_v31, %v569_v45  ;;  %v2402_v51 = vrot.slane %v2401_v38, 4  ;;  %v2411_v52 = vor.u32 %v2410_v39, %v2406_v30  ;;  %v5681_v34 = vld [vmem:[%s7453_s10 + $0x18] sm:$0xe] }
  0xea   : > { %v576_v53 = vrot.slane %v574_v41, 5  ;;  %v582_v60 = vrot.slane %v580_v42, 5  ;;  %v590_v0 = vshll.u32 %v367_v36, 16  ;;  %v5696_v1 = vrot.slane %v5680_v43, 9  ;;  %v7740_v43 = vld [vmem:[%s7453_s10 + $0x78] sm:$0xf] }
  0xeb   : > { %v586_v14 = vrot.slane %v584_v48, 4  ;;  %6180 = vmatmul.mubr.msk.bf16.gmra.mrb[12].mxu1 %vm827_vm3, %v5421_v49  ;;  %v2407_v2 = vsel %vm7491_vm2, %v2402_v51, %v2406_v30  ;;  %v2412_v4 = vrot.slane %v2411_v52, 4  ;;  %v2984_v9 = vrot.slane %v2982_v58, 4  ;;  %v7751_v48 = vld [vmem:[%s7453_s10 + $0x7c] sm:$0xf] }
  0xec   : > { %v577_v5 = vor.u32 %v576_v53, %v573_v47  ;;  %v592_v13 = vrot.slane %v590_v0, 5  ;;  %v2983_v17 = vsel %vm7706_vm6, %v5696_v1, %v2982_v58  ;;  %v595_v24 = vshrl.u32 %v7711_v57, 16 }
  0xed   : > { %v587_v12 = vor.u32 %v586_v14, %v582_v60  ;;  %v2417_v30 = vsel %vm7491_vm2, %v2412_v4, %v2416_v46  ;;  %v2986_v31 = vsel %vm7706_vm6, %v2984_v9, %v2985_v59  ;;  %v598_v21 = vshll.u32 %v7711_v57, 16  ;;  %v7765_v9 = vld [vmem:[%s7453_s10 + $0x84] sm:$0xf] }
  0xee   : > { %v578_v29 = vrot.slane %v577_v5, 4  ;;  %v5653_v58 = vcombine.low %v2407_v2, %v2417_v30  ;;  %v5712_v37 = vcombine.low %v2983_v17, %v2986_v31  ;;  %v597_v38 = vrot.slane %v595_v24, 4  ;;  %v7769_v17 = vld [vmem:[%s7453_s10 + $0x88] sm:$0xf] }
  0xef   : > { %v588_v36 = vrot.slane %v587_v12, 4  ;;  %v600_v41 = vrot.slane %v598_v21, 5  ;;  %v604_v42 = vshll.u32 %v7723_v18, 16  ;;  %v608_v22 = vshrl.u32 %v7723_v18, 16 }
  0xf0   : > { %v583_v39 = vsel %vm7491_vm2, %v578_v29, %v582_v60  ;;  %6324 = vmatmul.mubr.msk.bf16.gmra.mrb[12].mxu0 %vm827_vm3, %v5653_v58  ;;  %v614_v45 = vshll.u32 %v368_v32, 16  ;;  %v5697_v46 = vrot.slane %v5681_v34, 9  ;;  %v2993_v47 = vsel %vm7706_vm6, %v7534_v28, %v2992_v23  ;;  %v369_v60 = vld [vmem:[%s7453_s10 + $0x80] sm:$0x1]  ;;  %v5682_v28 = vld [vmem:[%s7453_s10 + $0x24] sm:$0xe] }
  0xf1   : > { %v593_v59 = vsel %vm7491_vm2, %v588_v36, %v592_v13  ;;  %6347 = vmatprep.mubr.msk.bf16.mxu0 %vm827_vm3, %v5712_v37  ;;  %v601_v51 = vor.u32 %v600_v41, %v597_v38  ;;  %v606_v52 = vrot.slane %v604_v42, 5  ;;  %v610_v53 = vrot.slane %v608_v22, 4  ;;  %v370_v32 = vld [vmem:[%s7453_s10 + $0x8c] sm:$0x1]  ;;  %v5683_v37 = vld [vmem:[%s7453_s10 + $0x30] sm:$0xe] }
  0xf2   : > { %v5422_v49 = vcombine.low %v583_v39, %v593_v59  ;;  %v616_v14 = vrot.slane %v614_v45, 5  ;;  %v2990_v61 = vsel %vm7706_vm6, %v5697_v46, %v2989_v16  ;;  %v619_v0 = vshrl.u32 %v7740_v43, 16  ;;  %v6849_v38 = vld [vmem:[#allocation7 + $0x68] sm:$0xff]  }
  0xf3   : > { %v622_v23 = vshll.u32 %v7740_v43, 16  ;;  %v602_v1 = vrot.slane %v601_v51, 4  ;;  %v611_v2 = vor.u32 %v610_v53, %v606_v52  ;;  %v5713_v4 = vcombine.low %v2990_v61, %v2993_v47  ;;  %v7790_v53 = vld [vmem:[%s7453_s10 + $0x94] sm:$0xf] }
  0xf4   : > { %6183 = vmatprep.mubr.msk.bf16.mxu1 %vm827_vm3, %v5422_v49  ;;  %v628_v5 = vshll.u32 %v7751_v48, 16  ;;  %v621_v56 = vrot.slane %v619_v0, 4  ;;  %v632_v16 = vshrl.u32 %v7751_v48, 16  ;;  %v638_v13 = vshll.u32 %v369_v60, 16  ;;  %v7796_v0 = vld [vmem:[#allocation7 + $0x70] sm:$0xff]  }
  0xf5   : > { %v624_v12 = vrot.slane %v622_v23, 5  ;;  %v607_v24 = vsel %vm7491_vm2, %v602_v1, %v606_v52  ;;  %v612_v30 = vrot.slane %v611_v2, 4  ;;  %v5698_v31 = vrot.slane %v5682_v28, 9 }
  0xf6   : > { %v630_v29 = vrot.slane %v628_v5, 5  ;;  %v634_v34 = vrot.slane %v632_v16, 4  ;;  %v640_v58 = vrot.slane %v638_v13, 5  ;;  %v2996_v36 = vrot.slane %v7538_v40, 5  ;;  %v371_v16 = vld [vmem:[%s7453_s10 + $0x98] sm:$0x1] }
  0xf7   : > { %v625_v21 = vor.u32 %v624_v12, %v621_v56  ;;  %v617_v39 = vsel %vm7491_vm2, %v612_v30, %v616_v14  ;;  %v2999_v41 = vrot.slane %v7542_v44, 5  ;;  %v643_v42 = vshrl.u32 %v7765_v9, 16  ;;  %v7787_v44 = vld [vmem:[%s7453_s10 + $0x90] sm:$0xf]  ;;  %v5684_v13 = vld [vmem:[%s7453_s10 + $0x3c] sm:$0xe] }
  0xf8   : > { %v646_v22 = vshll.u32 %v7765_v9, 16  ;;  %v5423_v59 = vcombine.low %v607_v24, %v617_v39  ;;  %6348 = vmatmul.mubr.msk.bf16.vlgmr.msra.gmra.mrb[0].mxu0 %vm827_vm3, %v5713_v4  ;;  %v635_v46 = vor.u32 %v634_v34, %v630_v29  ;;  %v2997_v40 = vsel %vm7706_vm6, %v5698_v31, %v2996_v36 }
  0xf9   : > { %v626_v45 = vrot.slane %v625_v21, 4  ;;  %6380 = vmatpush3.bf16.msra.mxu0 %v7565_v15  ;;  %v2998_v47 = vrot.slane %v2996_v36, 4  ;;  %v645_v49 = vrot.slane %v643_v42, 4  ;;  %v652_v52 = vshll.u32 %v7769_v17, 16 }
  0xfa   : > { %v648_v51 = vrot.slane %v646_v22, 5  ;;  %6184 = vmatmul.mubr.msk.bf16.gmra.mrb[16].mxu1 %vm827_vm3, %v5423_v59  ;;  %v636_v14 = vrot.slane %v635_v46, 4  ;;  %v656_v61 = vshrl.u32 %v7769_v17, 16  ;;  %v662_v15 = vshll.u32 %v370_v32, 16  ;;  %6381 = vmatprep.subr.bf16.mxu0 %v6849_v38  ;;  %v7821_v59 = vld [vmem:[%s7453_s10 + $0xa0] sm:$0xf] }
  0xfb   : > { %v631_v60 = vsel %vm7491_vm2, %v626_v45, %v630_v29  ;;  %v3000_v23 = vsel %vm7706_vm6, %v2998_v47, %v2999_v41  ;;  %v654_v1 = vrot.slane %v652_v52, 5  ;;  %v5699_v2 = vrot.slane %v5683_v37, 9 }
  0xfc   : > { %v649_v28 = vor.u32 %v648_v51, %v645_v49  ;;  %v641_v4 = vsel %vm7491_vm2, %v636_v14, %v640_v58  ;;  %v5714_v5 = vcombine.low %v2997_v40, %v3000_v23  ;;  %v658_v56 = vrot.slane %v656_v61, 4  ;;  %v372_v49 = vld [vmem:[%s7453_s10 + $0xa4] sm:$0x1] }
  0xfd   : > { %v664_v12 = vrot.slane %v662_v15, 5  ;;  %v5424_v24 = vcombine.low %v631_v60, %v641_v4  ;;  %v3003_v29 = vrot.slane %v7563_v26, 5  ;;  %v3006_v31 = vrot.slane %v7570_v35, 5  ;;  %6382 = vmatpush3.bf16.msra.mxu0 %v6849_v38  ;;  %v7818_v38 = vld [vmem:[%s7453_s10 + $0x9c] sm:$0xf] }
  0xfe   : > { %v650_v30 = vrot.slane %v649_v28, 4  ;;  %6351 = vmatprep.mubr.msk.bf16.mxu0 %vm827_vm3, %v5714_v5  ;;  %v659_v32 = vor.u32 %v658_v56, %v654_v1  ;;  %v667_v21 = vshrl.u32 %v7787_v44, 16  ;;  %v670_v34 = vshll.u32 %v7787_v44, 16  ;;  %6415 = vmatprep.subr.bf16.mxu0 %v7796_v0 }
  0xff   : > { %v676_v58 = vshll.u32 %v7790_v53, 16  ;;  %6187 = vmatprep.mubr.msk.bf16.mxu1 %vm827_vm3, %v5424_v24  ;;  %v3004_v35 = vsel %vm7706_vm6, %v5699_v2, %v3003_v29  ;;  %v3005_v36 = vrot.slane %v3003_v29, 4  ;;  %v680_v37 = vshrl.u32 %v7790_v53, 16  ;;  %v7843_v24 = vld [vmem:[%s7453_s10 + $0xac] sm:$0xf] }
 0x100   : > { %v655_v26 = vsel %vm7491_vm2, %v650_v30, %v654_v1  ;;  %v660_v39 = vrot.slane %v659_v32, 4  ;;  %v669_v41 = vrot.slane %v667_v21, 4  ;;  %v672_v42 = vrot.slane %v670_v34, 5  ;;  %v5685_v1 = vld [vmem:[%s7453_s10 + $0x48] sm:$0xe] }
 0x101   : > { %v678_v22 = vrot.slane %v676_v58, 5  ;;  %v3007_v45 = vsel %vm7706_vm6, %v3005_v36, %v3006_v31  ;;  %v682_v46 = vrot.slane %v680_v37, 4  ;;  %v686_v40 = vshll.u32 %v371_v16, 16 }
 0x102   : > { %v5700_v47 = vrot.slane %v5684_v13, 9  ;;  %v665_v51 = vsel %vm7491_vm2, %v660_v39, %v664_v12  ;;  %v5715_v52 = vcombine.low %v3004_v35, %v3007_v45  ;;  %v673_v60 = vor.u32 %v672_v42, %v669_v41  ;;  %v7836_v12 = vld [vmem:[%s7453_s10 + $0xa8] sm:$0xf]  ;;  %v373_v41 = vld [vmem:[%s7453_s10 + $0xb0] sm:$0x1] }
 0x103   : > { %v3010_v14 = vrot.slane %v7589_v10, 5  ;;  %v5425_v61 = vcombine.low %v655_v26, %v665_v51  ;;  %v683_v15 = vor.u32 %v682_v46, %v678_v22  ;;  %v688_v23 = vrot.slane %v686_v40, 5 }
 0x104   : > { %v3013_v28 = vrot.slane %v7594_v20, 5  ;;  %6352 = vmatmul.mubr.msk.bf16.gmra.mrb[4].mxu0 %vm827_vm3, %v5715_v52  ;;  %v674_v2 = vrot.slane %v673_v60, 4  ;;  %v691_v56 = vshrl.u32 %v7818_v38, 16  ;;  %v694_v16 = vshll.u32 %v7818_v38, 16  ;;  %v5686_v52 = vld [vmem:[%s7453_s10 + $0x54] sm:$0xe] }
 0x105   : > { %v3011_v4 = vsel %vm7706_vm6, %v5700_v47, %v3010_v14  ;;  %v3012_v5 = vrot.slane %v3010_v14, 4  ;;  %6188 = vmatmul.mubr.msk.bf16.gmra.mrb[20].mxu1 %vm827_vm3, %v5425_v61  ;;  %v684_v10 = vrot.slane %v683_v15, 4  ;;  %v700_v20 = vshll.u32 %v7821_v59, 16 }
 0x106   : > { %v704_v13 = vshrl.u32 %v7821_v59, 16  ;;  %v679_v30 = vsel %vm7491_vm2, %v674_v2, %v678_v22  ;;  %v693_v31 = vrot.slane %v691_v56, 4  ;;  %v710_v32 = vshll.u32 %v372_v49, 16  ;;  %v7868_v56 = vld [vmem:[%s7453_s10 + $0xb4] sm:$0xf] }
 0x107   : > { %v3014_v29 = vsel %vm7706_vm6, %v3012_v5, %v3013_v28  ;;  %v689_v21 = vsel %vm7491_vm2, %v684_v10, %v688_v23  ;;  %v696_v58 = vrot.slane %v694_v16, 5  ;;  %v702_v26 = vrot.slane %v700_v20, 5 }
 0x108   : > { %v5716_v34 = vcombine.low %v3011_v4, %v3014_v29  ;;  %v5426_v35 = vcombine.low %v679_v30, %v689_v21  ;;  %v706_v36 = vrot.slane %v704_v13, 4  ;;  %v712_v37 = vrot.slane %v710_v32, 5  ;;  %v7873_v30 = vld [vmem:[%s7453_s10 + $0xb8] sm:$0xf] }
 0x109   : > { %v5701_v39 = vrot.slane %v5685_v1, 9  ;;  %v697_v42 = vor.u32 %v696_v58, %v693_v31  ;;  %v3017_v22 = vrot.slane %v7612_v63, 5  ;;  %v3020_v45 = vrot.slane %v7618_v6, 5 }
 0x10a   : > { %6355 = vmatprep.mubr.msk.bf16.mxu0 %vm827_vm3, %v5716_v34  ;;  %v715_v46 = vshrl.u32 %v7836_v12, 16  ;;  %6191 = vmatprep.mubr.msk.bf16.mxu1 %vm827_vm3, %v5426_v35  ;;  %v707_v40 = vor.u32 %v706_v36, %v702_v26  ;;  %v718_v47 = vshll.u32 %v7836_v12, 16  ;;  %v724_v49 = vshll.u32 %v7843_v24, 16  ;;  %v374_v34 = vld [vmem:[%s7453_s10 + $0xbc] sm:$0x1] }
 0x10b   : > { %v728_v51 = vshrl.u32 %v7843_v24, 16  ;;  %v698_v60 = vrot.slane %v697_v42, 4  ;;  %v3018_v14 = vsel %vm7706_vm6, %v5701_v39, %v3017_v22  ;;  %v3019_v63 = vrot.slane %v3017_v22, 4  ;;  %v5623_v42 = vld [vmem:[%s7453_s10 + $0x70] sm:$0xf] }
 0x10c   : > { %v717_v6 = vrot.slane %v715_v46, 4  ;;  %v708_v61 = vrot.slane %v707_v40, 4  ;;  %v720_v15 = vrot.slane %v718_v47, 5  ;;  %v726_v23 = vrot.slane %v724_v49, 5  ;;  %v5624_v22 = vld [vmem:[%s7453_s10 + $0x74] sm:$0x1] }
 0x10d   : > { %v730_v28 = vrot.slane %v728_v51, 4  ;;  %v703_v1 = vsel %vm7491_vm2, %v698_v60, %v702_v26  ;;  %v3021_v2 = vsel %vm7706_vm6, %v3019_v63, %v3020_v45  ;;  %v734_v4 = vshll.u32 %v373_v41, 16  ;;  %v5688_v49 = vld [vmem:[%s7453_s10 + $0x6c] sm:$0xe] }
 0x10e   : > { %v5702_v5 = vrot.slane %v5686_v52, 9  ;;  %v713_v10 = vsel %vm7491_vm2, %v708_v61, %v712_v37  ;;  %v5717_v16 = vcombine.low %v3018_v14, %v3021_v2  ;;  %v721_v20 = vor.u32 %v720_v15, %v717_v6  ;;  %v5687_v37 = vld [vmem:[%s7453_s10 + $0x60] sm:$0xe] }
 0x10f   : > { %v731_v13 = vor.u32 %v730_v28, %v726_v23  ;;  %v5427_v29 = vcombine.low %v703_v1, %v713_v10  ;;  %v736_v31 = vrot.slane %v734_v4, 5  ;;  %v3024_v32 = vrot.slane %v7643_v55, 5 }
 0x110   : > { %v3027_v21 = vrot.slane %v7648_v3, 5  ;;  %6356 = vmatmul.mubr.msk.bf16.gmra.mrb[8].mxu0 %vm827_vm3, %v5717_v16  ;;  %v722_v58 = vrot.slane %v721_v20, 4  ;;  %v739_v35 = vshrl.u32 %v7868_v56, 16  ;;  %v742_v36 = vshll.u32 %v7868_v56, 16 }
 0x111   : > { %v732_v26 = vrot.slane %v731_v13, 4  ;;  %6192 = vmatmul.mubr.msk.bf16.gmra.mrb[24].mxu1 %vm827_vm3, %v5427_v29  ;;  %v3025_v39 = vsel %vm7706_vm6, %v5702_v5, %v3024_v32  ;;  %v3026_v41 = vrot.slane %v3024_v32, 4  ;;  %v748_v55 = vshll.u32 %v7873_v30, 16 }
 0x112   : > { %v752_v3 = vshrl.u32 %v7873_v30, 16  ;;  %v727_v45 = vsel %vm7491_vm2, %v722_v58, %v726_v23  ;;  %v741_v40 = vrot.slane %v739_v35, 4  ;;  %v744_v47 = vrot.slane %v742_v36, 5  ;;  %v7916_v35 = vld [vmem:[%s7453_s10 + $0x4] sm:$0xf] }
 0x113   : > { %v737_v46 = vsel %vm7491_vm2, %v732_v26, %v736_v31  ;;  %v3028_v52 = vsel %vm7706_vm6, %v3026_v41, %v3027_v21  ;;  %v750_v60 = vrot.slane %v748_v55, 5  ;;  %v758_v61 = vshll.u32 %v374_v34, 16  ;;  %v5689_v21 = vld [vmem:[%s7453_s10 + $0x78] sm:$0xe]  ;;  %v6904_v26 = vld [vmem:[%s7453_s10] sm:$0xf] }
 0x114   : > { %v5428_v51 = vcombine.low %v727_v45, %v737_v46  ;;  %v754_v14 = vrot.slane %v752_v3, 4  ;;  %v5718_v63 = vcombine.low %v3025_v39, %v3028_v52  ;;  %v745_v6 = vor.u32 %v744_v47, %v741_v40  ;;  %v5690_v39 = vld [vmem:[%s7453_s10 + $0x84] sm:$0xe]  ;;  %v5632_v40 = vld [vmem:[%s7453_s10 + $0x94] sm:$0xf] }
 0x115   : > { %v5703_v15 = vrot.slane %v5687_v37, 9  ;;  %v3031_v28 = vrot.slane %v7674_v50, 5  ;;  %v3034_v1 = vrot.slane %v7677_v62, 5  ;;  %v5704_v2 = vrot.slane %v5688_v49, 9  ;;  %v7903_v50 = vld [vmem:[%s7453_s10 + $0x7c] sm:$0xf] }
 0x116   : > { %6195 = vmatprep.mubr.msk.bf16.mxu1 %vm827_vm3, %v5428_v51  ;;  %v755_v23 = vor.u32 %v754_v14, %v750_v60  ;;  %6359 = vmatprep.mubr.msk.bf16.mxu0 %vm827_vm3, %v5718_v63  ;;  %v746_v4 = vrot.slane %v745_v6, 4  ;;  %v760_v5 = vrot.slane %v758_v61, 5  ;;  %v3038_v10 = vrot.slane %v5623_v42, 5  ;;  %v7920_v37 = vld [vmem:[%s7453_s10 + $0x80] sm:$0x1] }
 0x117   : > { %v3041_v16 = vrot.slane %v5624_v22, 5  ;;  %v3032_v13 = vsel %vm7706_vm6, %v5703_v15, %v3031_v28  ;;  %v3033_v29 = vrot.slane %v3031_v28, 4  ;;  %v5448_v36 = vcombine.low %v6904_v26, %v7916_v35  ;;  %v5629_v42 = vld [vmem:[%s7453_s10 + $0x88] sm:$0xf]  ;;  %v5630_v22 = vld [vmem:[%s7453_s10 + $0x8c] sm:$0x1] }
 0x118   : > { %v756_v20 = vrot.slane %v755_v23, 4  ;;  %v751_v62 = vsel %vm7491_vm2, %v746_v4, %v750_v60  ;;  %v3039_v31 = vsel %vm7706_vm6, %v5704_v2, %v3038_v10  ;;  %v3040_v32 = vrot.slane %v3038_v10, 4  ;;  %v5633_v14 = vld [vmem:[%s7453_s10 + $0x98] sm:$0x1]  ;;  %v5691_v63 = vld [vmem:[%s7453_s10 + $0x90] sm:$0xe] }
 0x119   : > { %v3035_v58 = vsel %vm7706_vm6, %v3033_v29, %v3034_v1  ;;  %v5705_v46 = vrot.slane %v5689_v21, 9  ;;  %v3045_v47 = vrot.slane %v7903_v50, 5  ;;  %v3048_v49 = vrot.slane %v7920_v37, 5  ;;  %v5635_v23 = vld [vmem:[%s7453_s10 + $0xa0] sm:$0xf] }
 0x11a   : > { %v761_v34 = vsel %vm7491_vm2, %v756_v20, %v760_v5  ;;  %v5719_v55 = vcombine.low %v3032_v13, %v3035_v58  ;;  %v3042_v3 = vsel %vm7706_vm6, %v3040_v32, %v3041_v16  ;;  %v5706_v51 = vrot.slane %v5690_v39, 9  ;;  %v6906_v28 = vld [vmem:[%s7453_s10 + $0xc] sm:$0xf]  ;;  %v7941_v1 = vld [vmem:[%s7453_s10 + $0x10] sm:$0xf] }
 0x11b   : > { %v5429_v41 = vcombine.low %v751_v62, %v761_v34  ;;  %v5720_v45 = vcombine.low %v3039_v31, %v3042_v3  ;;  %v3052_v52 = vrot.slane %v5629_v42, 5  ;;  %v3055_v60 = vrot.slane %v5630_v22, 5  ;;  %v5636_v10 = vld [vmem:[%s7453_s10 + $0xa4] sm:$0x1]  ;;  %v5692_v16 = vld [vmem:[%s7453_s10 + $0x9c] sm:$0xe] }
 0x11c   : > { %6360 = vmatmul.mubr.msk.bf16.gmra.mrb[12].mxu0 %vm827_vm3, %v5719_v55  ;;  %v3046_v6 = vsel %vm7706_vm6, %v5705_v46, %v3045_v47  ;;  %v3047_v61 = vrot.slane %v3045_v47, 4  ;;  %v3059_v15 = vrot.slane %v5632_v40, 5  ;;  %v5449_v2 = vcombine.low %v6906_v28, %v7941_v1  ;;  %v6908_v13 = vld [vmem:[%s7453_s10 + $0x18] sm:$0xf]  ;;  %v7952_v29 = vld [vmem:[%s7453_s10 + $0x1c] sm:$0xf] }
 0x11d   : > { %6196 = vmatmul.mubr.msk.bf16.gmra.mrb[28].mxu1 %vm827_vm3, %v5429_v41  ;;  %6363 = vmatprep.mubr.msk.bf16.mxu0 %vm827_vm3, %v5720_v45  ;;  %v3053_v4 = vsel %vm7706_vm6, %v5706_v51, %v3052_v52  ;;  %v3054_v5 = vrot.slane %v3052_v52, 4  ;;  %v5450_v62 = vcombine.low %v6908_v13, %v7952_v29  ;;  %v5707_v31 = vrot.slane %v5691_v63, 9  ;;  %v5638_v55 = vld [vmem:[%s7453_s10 + $0xac] sm:$0xf]  ;;  %v6858_v3 = vld [vmem:[#allocation7 + $0x28] sm:$0xff]   ;;  %v6910_v45 = vld [vmem:[#allocation7 + $0x20] sm:$0xff]  }
 0x11e   : > { %6203 = vmatprep.mubr.msk.bf16.mxu1 %vm827_vm3, %v5448_v36  ;;  %v3049_v20 = vsel %vm7706_vm6, %v3047_v61, %v3048_v49  ;;  %v3062_v32 = vrot.slane %v5633_v14, 5  ;;  %v3061_v58 = vrot.slane %v3059_v15, 4  ;;  %v3066_v26 = vrot.slane %v5635_v23, 5  ;;  %v5641_v22 = vld [vmem:[%s7453_s10 + $0xb8] sm:$0xf]  ;;  %v7973_v63 = vld [vmem:[#allocation7 + $0x30] sm:$0xff]  }
 0x11f   : > { %v5721_v21 = vcombine.low %v3046_v6, %v3049_v20  ;;  %v3056_v34 = vsel %vm7706_vm6, %v3054_v5, %v3055_v60  ;;  %v5708_v39 = vrot.slane %v5692_v16, 9  ;;  %v3069_v41 = vrot.slane %v5636_v10, 5  ;;  %v5639_v52 = vld [vmem:[%s7453_s10 + $0xb0] sm:$0x1]  ;;  %v5693_v60 = vld [vmem:[%s7453_s10 + $0xa8] sm:$0xe] }
 0x120   : > { %v5722_v36 = vcombine.low %v3053_v4, %v3056_v34  ;;  %v3068_v42 = vrot.slane %v3066_v26, 4  ;;  %v3060_v46 = vsel %vm7706_vm6, %v5707_v31, %v3059_v15  ;;  %v3063_v40 = vsel %vm7706_vm6, %v3061_v58, %v3062_v32  ;;  %v5642_v6 = vld [vmem:[%s7453_s10 + $0xbc] sm:$0x1]  ;;  %v5694_v61 = vld [vmem:[%s7453_s10 + $0xb4] sm:$0xe] }
 0x121   : > { %v3073_v47 = vrot.slane %v5638_v55, 5  ;;  %v3067_v49 = vsel %vm7706_vm6, %v5708_v39, %v3066_v26  ;;  %v3080_v14 = vrot.slane %v5641_v22, 5  ;;  %v6911_v15 = vld [vmem:[%s7453_s10 + $0x24] sm:$0xf]  ;;  %v7979_v23 = vld [vmem:[%s7453_s10 + $0x28] sm:$0xf] }
 0x122   : > { %v3070_v51 = vsel %vm7706_vm6, %v3068_v42, %v3069_v41  ;;  %v5451_v28 = vcombine.low %v6911_v15, %v7979_v23  ;;  %v6913_v4 = vld [vmem:[%s7453_s10 + $0x30] sm:$0xf]  ;;  %v7984_v5 = vld [vmem:[%s7453_s10 + $0x34] sm:$0xf]  ;;  %v5709_v20 = vrot.slane %v5693_v60, 9  ;;  %v5710_v31 = vrot.slane %v5694_v61, 9 }
 0x123   : > { %v5452_v10 = vcombine.low %v6913_v4, %v7984_v5  ;;  %v5724_v16 = vcombine.low %v3067_v49, %v3070_v51  ;;  %v3075_v13 = vrot.slane %v3073_v47, 4  ;;  %v3082_v32 = vrot.slane %v3080_v14, 4  ;;  %v5644_v34 = vld [vmem:[%s7453_s10 + $0xc4] sm:$0xf]  ;;  %v6915_v42 = vld [vmem:[%s7453_s10 + $0x3c] sm:$0xf] }
 0x124   : > { %6364 = vmatmul.mubr.msk.bf16.gmra.mrb[16].mxu0 %vm827_vm3, %v5721_v21  ;;  %v3083_v21 = vrot.slane %v5642_v6, 5  ;;  %v3074_v58 = vsel %vm7706_vm6, %v5709_v20, %v3073_v47  ;;  %v3087_v39 = vrot.slane %v5644_v34, 5  ;;  %v3081_v41 = vsel %vm7706_vm6, %v5710_v31, %v3080_v14  ;;  %v8005_v22 = vld [vmem:[%s7453_s10 + $0x40] sm:$0xf]  ;;  %v6859_v61 = vld [vmem:[%s7453_s10 + $0x18] sm:$0xff]  }
 0x125   : > { %6204 = vmatmul.mubr.msk.bf16.vlgmr.msra.gmra.mrb[0].mxu1 %vm827_vm3, %v5449_v2  ;;  %6367 = vmatprep.mubr.msk.bf16.mxu0 %vm827_vm3, %v5722_v36  ;;  %v5723_v2 = vcombine.low %v3060_v46, %v3063_v40  ;;  %v5695_v36 = vld [vmem:[%s7453_s10 + $0xc0] sm:$0xe]  ;;  %v5454_v47 = vcombine.low %v7623_v27, %v7629_v33  ;;  %v5455_v33 = vcombine.low %v7656_v11, %v7659_v19  ;;  %v2452_v15 = vshll.u32 %v7903_v50, 16  ;;  %v6917_v4 = vld [vmem:[%s7453_s10 + $0x8] sm:$0x1] }
 0x126   : > { %6236 = vmatpush3.bf16.msra.mxu1 %v6910_v45  ;;  %6207 = vmatprep.mubr.msk.bf16.mxu1 %vm827_vm3, %v5450_v62  ;;  %v3076_v62 = vrot.slane %v5639_v52, 5  ;;  %v3084_v55 = vsel %vm7706_vm6, %v3082_v32, %v3083_v21  ;;  %v5453_v45 = vcombine.low %v6915_v42, %v8005_v22  ;;  %v5711_v40 = vrot.slane %v5695_v36, 9  ;;  %v1338_v11 = vld [vmem:[%s7453_s10] sm:$0xe]  ;;  %v1339_v19 = vld [vmem:[%s7453_s10 + $0xc] sm:$0xe] }
 0x127   : > { %6237 = vmatprep.subr.bf16.mxu1 %v6858_v3  ;;  %v5726_v49 = vcombine.low %v3081_v41, %v3084_v55  ;;  %v3089_v51 = vrot.slane %v3087_v39, 4  ;;  %v5456_v6 = vcombine.low %v7686_v7, %v7689_v8  ;;  %v1391_v7 = vrot.slane %v7916_v35, 5  ;;  %v1340_v8 = vld [vmem:[%s7453_s10 + $0x18] sm:$0xe]  ;;  %v6862_v35 = vld [vmem:[%s7453_s10 + $0x24] sm:$0xff]  }
 0x128   : > { %v3077_v26 = vsel %vm7706_vm6, %v3075_v13, %v3076_v62  ;;  %v3088_v60 = vsel %vm7706_vm6, %v5711_v40, %v3087_v39  ;;  %v8039_v13 = vrot.slane %v2452_v15, 5  ;;  %v1412_v31 = vrot.slane %v7979_v23, 5  ;;  %v6919_v55 = vld [vmem:[%s7453_s10 + $0x20] sm:$0x1] }
 0x129   : > { %v5725_v46 = vcombine.low %v3074_v58, %v3077_v26  ;;  %v5457_v21 = vcombine.low %v7711_v57, %v7723_v18  ;;  %v5482_v34 = vrot.slane %v1338_v11, 9  ;;  %v6864_v58 = vld [vmem:[%s7453_s10 + $0x30] sm:$0xff]   ;;  %v5483_v36 = vrot.slane %v1339_v19, 9  ;;  %v6866_v15 = vld [vmem:[%s7453_s10 + $0x3c] sm:$0xff]   ;;  %v5812_v11 = vld [vmem:[%s7453_s10 + $0x18] sm:$0xf] }
 0x12a   : > { %6238 = vmatpush3.bf16.msra.mxu1 %v6858_v3  ;;  %v5645_v3 = vld [vmem:[%s7453_s10 + $0xc8] sm:$0x1]  ;;  %9447 = vst [vmem:[#allocation21_spill] sm:$0xff] %v8039_v13  ;;  %v5484_v41 = vrot.slane %v1340_v8, 9  ;;  %v1393_v23 = vrot.slane %v1391_v7, 4  ;;  %vm5224_vm7 = vcmask 31744  }
 0x12b   : > { %6271 = vmatprep.subr.bf16.mxu1 %v7973_v63  ;;  %v3090_v52 = vrot.slane %v5645_v3, 5  ;;  %v6877_v26 = vld [vmem:[#allocation7 + $0x78] sm:$0xff]   ;;  %v1408_v3 = vrot.slane %v6919_v55, 5 }
 0x12c   : > { %6368 = vmatmul.mubr.msk.bf16.gmra.mrb[20].mxu0 %vm827_vm3, %v5723_v2  ;;  %v2462_v2 = vshll.u32 %v7920_v37, 16  ;;  %v1341_v37 = vld [vmem:[%s7453_s10 + $0x24] sm:$0xe]  ;;  %v1342_v57 = vld [vmem:[%s7453_s10 + $0x30] sm:$0xe]  ;;  %v6868_v19 = vld [vmem:[%s7453_s10 + $0x48] sm:$0xff]  }
 0x12d   : > { %6208 = vmatmul.mubr.msk.bf16.gmra.mrb[4].mxu1 %vm827_vm3, %v5451_v28  ;;  %6371 = vmatprep.mubr.msk.bf16.mxu0 %vm827_vm3, %v5724_v16  ;;  %v3091_v27 = vsel %vm7706_vm6, %v3089_v51, %v3090_v52  ;;  %v2456_v28 = vshrl.u32 %v7903_v50, 16  ;;  %v1398_v16 = vrot.slane %v7941_v1, 5  ;;  %v1405_v50 = vrot.slane %v7952_v29, 5  ;;  %v6918_v1 = vld [vmem:[%s7453_s10 + $0x14] sm:$0x1] }
 0x12e   : > { %6211 = vmatprep.mubr.msk.bf16.mxu1 %vm827_vm3, %v5452_v10  ;;  %v5727_v14 = vcombine.low %v3088_v60, %v3091_v27  ;;  %v1394_v10 = vrot.slane %v6917_v4, 5  ;;  %v1401_v20 = vrot.slane %v6918_v1, 5  ;;  %v8044_v32 = vrot.slane %v2462_v2, 5  ;;  %v1343_v60 = vld [vmem:[%s7453_s10 + $0x3c] sm:$0xe] }
 0x12f   : > { %v8041_v62 = vrot.slane %v2456_v28, 4  ;;  %v5458_v29 = vcombine.low %v7740_v43, %v7751_v48  ;;  %v1400_v39 = vrot.slane %v1398_v16, 4  ;;  %v1407_v42 = vrot.slane %v1405_v50, 4  ;;  %v5820_v51 = vld [vmem:[%s7453_s10 + $0x38] sm:$0x1] }
 0x130   : > { %9448 = vst [vmem:[#allocation22_spill] sm:$0xff] %v8044_v32  ;;  %v1419_v43 = vrot.slane %v7984_v5, 5  ;;  %v5459_v48 = vcombine.low %v7765_v9, %v7769_v17  ;;  %v8070_v5 = vsel %vm7706_vm6, %v5482_v34, %v1391_v7  ;;  %v8074_v9 = vsel %vm7706_vm6, %v5483_v36, %v1398_v16  ;;  %v6923_v34 = vld [vmem:[%s7453_s10 + $0x44] sm:$0x1]  ;;  %v8129_v36 = vld [vmem:[%s7453_s10 + $0x60] sm:$0xe] }
 0x131   : > { %v8078_v17 = vsel %vm7706_vm6, %v1400_v39, %v1401_v20  ;;  %v1426_v27 = vrot.slane %v8005_v22, 5  ;;  %v8097_v22 = vld [vmem:[%s7453_s10 + $0x48] sm:$0xe]  ;;  %v8120_v20 = vld [vmem:[%s7453_s10 + $0x54] sm:$0xe] }
 0x132   : > { %v1421_v4 = vrot.slane %v1419_v43, 4  ;;  %v5814_v39 = vld [vmem:[%s7453_s10 + $0x20] sm:$0x1]  ;;  %v8396_v32 = vld [vmem:[%s7453_s10 + $0x68] sm:$0x1] }
 0x133   : > { %9461 = vst [vmem:[#allocation27_spill] sm:$0xff] %v8396_v32 }
 0x134   : > { %6372 = vmatmul.mubr.msk.bf16.gmra.mrb[24].mxu0 %vm827_vm3, %v5725_v46  ;;  %v6920_v46 = vld [vmem:[%s7453_s10 + $0x2c] sm:$0x1] }
 0x135   : > { %6212 = vmatmul.mubr.msk.bf16.gmra.mrb[8].mxu1 %vm827_vm3, %v5453_v45  ;;  %6375 = vmatprep.mubr.msk.bf16.mxu0 %vm827_vm3, %v5726_v49  ;;  %v5485_v45 = vrot.slane %v1341_v37, 9  ;;  %v1415_v40 = vrot.slane %v6920_v46, 5  ;;  %v5460_v49 = vcombine.low %v7787_v44, %v7790_v53  ;;  %v6922_v37 = vld [vmem:[%s7453_s10 + $0x4c] sm:$0xf] }
 0x136   : > { %6215 = vmatprep.mubr.msk.bf16.mxu1 %vm827_vm3, %v5454_v47  ;;  %v1414_v47 = vrot.slane %v1412_v31, 4  ;;  %v1433_v1 = vrot.slane %v6922_v37, 5  ;;  %v5818_v37 = vld [vmem:[%s7453_s10 + $0x30] sm:$0xf] }
 0x137   : > { %v8105_v28 = vsel %vm7706_vm6, %v5485_v45, %v1412_v31  ;;  %v5813_v31 = vld [vmem:[%s7453_s10 + $0x1c] sm:$0xf]  ;;  %v5488_v45 = vrot.slane %v8097_v22, 9 }
 0x138   : > { %v8109_v2 = vsel %vm7706_vm6, %v1414_v47, %v1415_v40  ;;  %v3827_v46 = vshll.u32 %v5813_v31, 16  ;;  %v5815_v40 = vld [vmem:[%s7453_s10 + $0x24] sm:$0xf]  ;;  %v1435_v47 = vrot.slane %v1433_v1, 4 }
 0x139   : > { %v8174_v44 = vsel %vm7706_vm6, %v5488_v45, %v1433_v1 }
 0x13a   : > { %v8176_v53 = vrot.slane %v3827_v46, 5 }
 0x13c   : > { %6376 = vmatmul.mubr.msk.bf16.gmra.mrb[28].mxu0 %vm827_vm3, %v5727_v14  ;;  %v8090_v14 = vsel %vm7706_vm6, %v5484_v41, %v1405_v50  ;;  %v5487_v50 = vrot.slane %v1343_v60, 9  ;;  %v3866_v41 = vshrl.u32 %v5818_v37, 16 }
 0x13d   : > { %6216 = vmatmul.mubr.msk.bf16.gmra.mrb[12].mxu1 %vm827_vm3, %v5455_v33  ;;  %6383 = vmatprep.mubr.msk.bf16.mxu0 %vm827_vm3, %v6859_v61  ;;  %v8086_v33 = vsel %vm7706_vm6, %v1393_v23, %v1394_v10  ;;  %v5486_v61 = vrot.slane %v1342_v57, 9  ;;  %v6921_v10 = vld [vmem:[%s7453_s10 + $0x38] sm:$0x1]  ;;  %v3821_v23 = vshll.u32 %v5812_v11, 16 }
 0x13e   : > { %6219 = vmatprep.mubr.msk.bf16.mxu1 %vm827_vm3, %v5456_v6  ;;  %v8094_v6 = vsel %vm7706_vm6, %v1407_v42, %v1408_v3  ;;  %v1422_v16 = vrot.slane %v6921_v10, 5  ;;  %v3818_v3 = vshrl.u32 %v5812_v11, 16  ;;  %v8147_v57 = vsel %vm7706_vm6, %v5487_v50, %v1426_v27  ;;  %v6925_v10 = vld [vmem:[%s7453_s10 + $0x58] sm:$0xf] }
 0x13f   : > { %v8136_v55 = vsel %vm7706_vm6, %v5486_v61, %v1419_v43  ;;  %v6924_v43 = vld [vmem:[%s7453_s10 + $0x50] sm:$0x1]  ;;  %v5489_v61 = vrot.slane %v8120_v20, 9  ;;  %v5490_v50 = vrot.slane %v8129_v36, 9 }
 0x140   : > { %v8140_v42 = vsel %vm7706_vm6, %v1421_v4, %v1422_v16  ;;  %v1436_v60 = vrot.slane %v6924_v43, 5  ;;  %v5816_v4 = vld [vmem:[%s7453_s10 + $0x28] sm:$0xf]  ;;  %v6926_v16 = vld [vmem:[%s7453_s10 + $0x5c] sm:$0x1]  ;;  %v3820_v20 = vrot.slane %v3818_v3, 4 }
 0x141   : > { %v1443_v11 = vrot.slane %v6926_v16, 5  ;;  %v3845_v43 = vshll.u32 %v5815_v40, 16  ;;  %v1347_v16 = vld [vmem:[%s7453_s10 + $0x6c] sm:$0xe]  ;;  %v3851_v1 = vshll.u32 %v5816_v4, 16  ;;  %v3855_v45 = vshrl.u32 %v5816_v4, 16 }
 0x142   : > { %v3869_v3 = vshll.u32 %v5818_v37, 16  ;;  %v5491_v7 = vrot.slane %v1347_v16, 9  ;;  %v9449_v4 = vcombine.low %v7818_v38, %v7821_v59 }
 0x144   : > { %6384 = vmatmul.mubr.msk.bf16.vlgmr.msra.gmra.mrb[0].mxu0 %vm827_vm3, %v6862_v35 }
 0x145   : > { %6220 = vmatmul.mubr.msk.bf16.gmra.mrb[16].mxu1 %vm827_vm3, %v5457_v21  ;;  %6416 = vmatpush3.bf16.msra.mxu0 %v7796_v0  ;;  %v8099_v0 = vld [vmem:[#allocation7 + $0x80] sm:$0xff]  }
 0x146   : > { %6223 = vmatprep.mubr.msk.bf16.mxu1 %vm827_vm3, %v5458_v29  ;;  %6387 = vmatprep.mubr.msk.bf16.mxu0 %vm827_vm3, %v6864_v58  ;;  %v1428_v29 = vrot.slane %v1426_v27, 4  ;;  %v1429_v58 = vrot.slane %v6923_v34, 5  ;;  %v1440_v27 = vrot.slane %v6925_v10, 5  ;;  %v5819_v34 = vld [vmem:[%s7453_s10 + $0x34] sm:$0xf] }
 0x147   : > { %6417 = vmatprep.subr.bf16.mxu0 %v6877_v26  ;;  %v3875_v8 = vshll.u32 %v5819_v34, 16  ;;  %v3879_v21 = vshrl.u32 %v5819_v34, 16  ;;  %v3857_v34 = vrot.slane %v3855_v45, 4  ;;  %v6876_v45 = vld [vmem:[%s7453_s10 + $0x78] sm:$0xff]  }
 0x148   : > { %v8156_v22 = vsel %vm7706_vm6, %v1428_v29, %v1429_v58  ;;  %v3837_v29 = vshll.u32 %v5814_v39, 16  ;;  %v6870_v58 = vld [vmem:[%s7453_s10 + $0x54] sm:$0xff]   ;;  %v8183_v39 = vsel %vm7706_vm6, %v1435_v47, %v1436_v60  ;;  %v1442_v10 = vrot.slane %v1440_v27, 4  ;;  %v5817_v60 = vld [vmem:[%s7453_s10 + $0x2c] sm:$0x1] }
 0x149   : > { %6418 = vmatpush3.bf16.msra.mxu0 %v6877_v26  ;;  %v3831_v26 = vshrl.u32 %v5813_v31, 16  ;;  %v3823_v31 = vrot.slane %v3821_v23, 5  ;;  %v3842_v23 = vshrl.u32 %v5815_v40, 16  ;;  %v8208_v38 = vsel %vm7706_vm6, %v5489_v61, %v1440_v27 }
 0x14a   : > { %6451 = vmatprep.subr.bf16.mxu0 %v8099_v0  ;;  %v8190_v40 = vrot.slane %v3837_v29, 5  ;;  %v9450_v29 = vcombine.low %v7836_v12, %v7843_v24  ;;  %v8212_v59 = vsel %vm7706_vm6, %v1442_v10, %v1443_v11  ;;  %v8214_v12 = vrot.slane %v3875_v8, 5  ;;  %v1348_v8 = vld [vmem:[%s7453_s10 + $0x78] sm:$0xe] }
 0x14b   : > { %v3824_v35 = vor.u32 %v3823_v31, %v3820_v20  ;;  %v3844_v52 = vrot.slane %v3842_v23, 4  ;;  %v6930_v20 = vld [vmem:[%s7453_s10 + $0x74] sm:$0x1]  ;;  %v3871_v23 = vrot.slane %v3869_v3, 5  ;;  %v3881_v24 = vrot.slane %v3879_v21, 4 }
 0x14c   : > { %6388 = vmatmul.mubr.msk.bf16.gmra.mrb[4].mxu0 %vm827_vm3, %v6866_v15  ;;  %v1457_v31 = vrot.slane %v6930_v20, 5  ;;  %v3861_v11 = vshll.u32 %v5817_v60, 16  ;;  %v6931_v21 = vld [vmem:[%s7453_s10 + $0x7c] sm:$0xf]  ;;  %v3885_v10 = vshll.u32 %v5820_v51, 16  ;;  %v5492_v20 = vrot.slane %v1348_v8, 9 }
 0x14d   : > { %6224 = vmatmul.mubr.msk.bf16.gmra.mrb[20].mxu1 %vm827_vm3, %v5459_v48  ;;  %6391 = vmatprep.mubr.msk.bf16.mxu0 %vm827_vm3, %v6868_v19  ;;  %v6927_v48 = vld [vmem:[%s7453_s10 + $0x64] sm:$0xf]  ;;  %v1461_v3 = vrot.slane %v6931_v21, 5 }
 0x14e   : > { %6227 = vmatprep.mubr.msk.bf16.mxu1 %vm827_vm3, %v5460_v49  ;;  %v1447_v15 = vrot.slane %v6927_v48, 5  ;;  %v3833_v49 = vrot.slane %v3831_v26, 4  ;;  %v6872_v19 = vld [vmem:[%s7453_s10 + $0x60] sm:$0xff]   ;;  %v6928_v48 = vld [vmem:[%s7453_s10 + $0x70] sm:$0xf] }
 0x14f   : > { %v1454_v18 = vrot.slane %v6928_v48, 5  ;;  %v6929_v26 = vld [vmem:[%s7453_s10 + $0x68] sm:$0x1]  ;;  %v3847_v48 = vrot.slane %v3845_v43, 5  ;;  %v3825_v43 = vrot.slane %v3824_v35, 4 }
 0x150   : > { %v1449_v46 = vrot.slane %v1447_v15, 4  ;;  %v1450_v36 = vrot.slane %v6929_v26, 5  ;;  %v3834_v47 = vor.u32 %v3833_v49, %v8176_v53  ;;  %v8199_v49 = vrot.slane %v3851_v1, 5  ;;  %v6874_v1 = vld [vmem:[%s7453_s10 + $0x6c] sm:$0xff]  }
 0x151   : > { %v1456_v37 = vrot.slane %v1454_v18, 4  ;;  %v8221_v61 = vsel %vm7706_vm6, %v5490_v50, %v1447_v15  ;;  %v3848_v27 = vor.u32 %v3847_v48, %v3844_v52  ;;  %v8235_v52 = vsel %vm7706_vm6, %v5491_v7, %v1454_v18  ;;  %v5821_v18 = vld [vmem:[%s7453_s10 + $0x3c] sm:$0xf]  ;;  %v8252_v7 = vld [vmem:[%s7453_s10 + $0x40] sm:$0xf] }
 0x152   : > { %v3835_v16 = vrot.slane %v3834_v47, 4  ;;  %v3858_v35 = vor.u32 %v3857_v34, %v8199_v49  ;;  %v8231_v50 = vsel %vm7706_vm6, %v1449_v46, %v1450_v36  ;;  %v1349_v47 = vld [vmem:[%s7453_s10 + $0x84] sm:$0xe]  ;;  %v3830_v51 = vsel %vm7491_vm2, %v3825_v43, %v8176_v53  ;;  %v6932_v46 = vld [vmem:[%s7453_s10 + $0x88] sm:$0xf]  ;;  %9451 = vst [vmem:[#allocation23_spill] sm:$0xff] %v8252_v7 }
 0x153   : > { %v8239_v15 = vsel %vm7706_vm6, %v1456_v37, %v1457_v31  ;;  %v3882_v36 = vor.u32 %v3881_v24, %v8214_v12  ;;  %v1468_v48 = vrot.slane %v6932_v46, 5  ;;  %v3863_v37 = vrot.slane %v3861_v11, 5  ;;  %v6933_v31 = vld [vmem:[%s7453_s10 + $0x80] sm:$0x1]  ;;  %v6934_v11 = vld [vmem:[%s7453_s10 + $0x8c] sm:$0x1] }
 0x154   : > { %6392 = vmatmul.mubr.msk.bf16.gmra.mrb[8].mxu0 %vm827_vm3, %v6870_v58  ;;  %v3868_v58 = vrot.slane %v3866_v41, 4  ;;  %v3840_v60 = vsel %vm7491_vm2, %v3835_v16, %v8190_v40  ;;  %v1464_v34 = vrot.slane %v6933_v31, 5  ;;  %v9452_v53 = vcombine.low %v7868_v56, %v7873_v30  ;;  %v8297_v46 = vld [vmem:[%s7453_s10 + $0x4c] sm:$0xf]  ;;  %v8306_v31 = vld [vmem:[%s7453_s10 + $0x58] sm:$0xf] }
 0x155   : > { %6228 = vmatmul.mubr.msk.bf16.gmra.mrb[24].mxu1 %vm827_vm3, %v9449_v4  ;;  %6395 = vmatprep.mubr.msk.bf16.mxu0 %vm827_vm3, %v6872_v19  ;;  %v3849_v4 = vrot.slane %v3848_v27, 4  ;;  %v3859_v40 = vrot.slane %v3858_v35, 4  ;;  %v9453_v43 = vcombine.low %v8070_v5, %v8086_v33  ;;  %v3890_v24 = vshrl.u32 %v5821_v18, 16  ;;  %v6878_v5 = vld [vmem:[%s7453_s10 + $0x84] sm:$0xff]   ;;  %v1351_v33 = vld [vmem:[%s7453_s10 + $0x9c] sm:$0xe] }
 0x156   : > { %6231 = vmatprep.mubr.msk.bf16.mxu1 %vm827_vm3, %v9450_v29  ;;  %v3872_v26 = vor.u32 %v3871_v23, %v3868_v58  ;;  %v1463_v29 = vrot.slane %v1461_v3, 4  ;;  %v3887_v58 = vrot.slane %v3885_v10, 5  ;;  %v5493_v23 = vrot.slane %v1349_v47, 9  ;;  %v8362_v10 = vld [vmem:[%s7453_s10 + $0x5c] sm:$0x1] }
 0x157   : > { %v3893_v56 = vshll.u32 %v5821_v18, 16  ;;  %v3899_v30 = vshll.u32 %v8252_v7, 16  ;;  %v1470_v27 = vrot.slane %v1468_v48, 4  ;;  %v1471_v35 = vrot.slane %v6934_v11, 5  ;;  %v5827_v18 = vld [vmem:[%s7453_s10 + $0x54] sm:$0xf] }
 0x158   : > { %v3873_v16 = vrot.slane %v3872_v26, 4  ;;  %v3903_v8 = vshrl.u32 %v8252_v7, 16  ;;  %v8271_v21 = vcombine.low %v3830_v51, %v3840_v60  ;;  %v8280_v26 = vld [vmem:[%s7453_s10 + $0x44] sm:$0x1]  ;;  %v3854_v47 = vsel %vm7491_vm2, %v3849_v4, %v8199_v49 }
 0x159   : > { %9454 = vst [vmem:[#allocation24_spill] sm:$0xff] %v8280_v26  ;;  %v8289_v51 = vsel %vm7706_vm6, %v1463_v29, %v1464_v34  ;;  %v8293_v60 = vsel %vm7706_vm6, %v5493_v23, %v1468_v48  ;;  %v3892_v4 = vrot.slane %v3890_v24, 4  ;;  %v6879_v34 = vld [vmem:[%s7453_s10 + $0x90] sm:$0xff]   ;;  %v3909_v23 = vshll.u32 %v8280_v26, 16 }
 0x15a   : > { %v3878_v49 = vsel %vm7491_vm2, %v3873_v16, %v8214_v12  ;;  %v3905_v29 = vrot.slane %v3903_v8, 4  ;;  %v3923_v24 = vshll.u32 %v8297_v46, 16  ;;  %v3951_v11 = vshrl.u32 %v8306_v31, 16 }
 0x15c   : > { %6396 = vmatmul.mubr.msk.bf16.gmra.mrb[12].mxu0 %vm827_vm3, %v6874_v1  ;;  %v3883_v1 = vrot.slane %v3882_v36, 4  ;;  %v3864_v36 = vsel %vm7491_vm2, %v3859_v40, %v3863_v37  ;;  %v8303_v37 = vrot.slane %v3899_v30, 5  ;;  %v8313_v40 = vsel %vm7706_vm6, %v1470_v27, %v1471_v35 }
 0x15d   : > { %6232 = vmatmul.mubr.msk.bf16.gmra.mrb[28].mxu1 %vm827_vm3, %v9452_v53  ;;  %6399 = vmatprep.mubr.msk.bf16.mxu0 %vm827_vm3, %v6876_v45  ;;  %v8277_v45 = vsel %vm7706_vm6, %v5492_v20, %v1461_v3  ;;  %v5824_v3 = vld [vmem:[%s7453_s10 + $0x48] sm:$0xf]  ;;  %v3895_v20 = vrot.slane %v3893_v56, 5  ;;  %v3927_v56 = vshrl.u32 %v8297_v46, 16  ;;  %v9455_v30 = vcombine.low %v8074_v9, %v8078_v17  ;;  %v6935_v17 = vld [vmem:[%s7453_s10 + $0x94] sm:$0xf] }
 0x15e   : > { %6239 = vmatprep.mubr.msk.bf16.mxu1 %vm827_vm3, %v9453_v43  ;;  %v6885_v53 = vld [vmem:[#allocation7 + $0x38] sm:$0xff]   ;;  %v3888_v48 = vsel %vm7491_vm2, %v3883_v1, %v3887_v58  ;;  %v3914_v12 = vshrl.u32 %v5824_v3, 16  ;;  %v3917_v16 = vshll.u32 %v5824_v3, 16  ;;  %v3938_v58 = vshrl.u32 %v5827_v18, 16 }
 0x15f   : > { %v1350_v43 = vld [vmem:[%s7453_s10 + $0x90] sm:$0xe]  ;;  %v3941_v1 = vshll.u32 %v5827_v18, 16  ;;  %v3947_v27 = vshll.u32 %v8306_v31, 16  ;;  %v9456_v35 = vcombine.low %v8090_v14, %v8094_v6  ;;  %v8331_v9 = vcombine.low %v3854_v47, %v3864_v36  ;;  %v8344_v47 = vld [vmem:[%s7453_s10 + $0x50] sm:$0x1] }
 0x160   : > { %v3896_v8 = vor.u32 %v3895_v20, %v3892_v4  ;;  %v8336_v3 = vcombine.low %v3878_v49, %v3888_v48  ;;  %v3906_v14 = vor.u32 %v3905_v29, %v8303_v37  ;;  %v8341_v6 = vrot.slane %v3909_v23, 5  ;;  %v5830_v36 = vld [vmem:[%s7453_s10 + $0x60] sm:$0xf]  ;;  %v8350_v49 = vld [vmem:[%s7453_s10 + $0x64] sm:$0xf] }
 0x161   : > { %v3916_v18 = vrot.slane %v3914_v12, 4  ;;  %v3919_v4 = vrot.slane %v3917_v16, 5  ;;  %v8347_v20 = vrot.slane %v3923_v24, 5  ;;  %9457 = vst [vmem:[#allocation25_spill] sm:$0xff] %v8350_v49  ;;  %v6880_v48 = vld [vmem:[%s7453_s10 + $0x9c] sm:$0xff]   ;;  %v3943_v29 = vrot.slane %v3941_v1, 5 }
 0x162   : > { %v8354_v23 = vrot.slane %v3947_v27, 5  ;;  %v1475_v12 = vrot.slane %v6935_v17, 5  ;;  %v6936_v16 = vld [vmem:[%s7453_s10 + $0x98] sm:$0x1]  ;;  %v3962_v41 = vshrl.u32 %v5830_v36, 16  ;;  %v3965_v19 = vshll.u32 %v5830_v36, 16 }
 0x163   : > { %v1478_v24 = vrot.slane %v6936_v16, 5  ;;  %v3975_v1 = vshrl.u32 %v8350_v49, 16  ;;  %v8367_v27 = vld [vmem:[#allocation7 + $0x40] sm:$0xff]   ;;  %v9459_v36 = vcombine.low %v8105_v28, %v8109_v2 }
 0x164   : > { %6400 = vmatmul.mubr.msk.bf16.gmra.mrb[16].mxu0 %vm827_vm3, %v6878_v5  ;;  %v5494_v5 = vrot.slane %v1350_v43, 9  ;;  %v6881_v43 = vld [vmem:[%s7453_s10 + $0xa8] sm:$0xff]   ;;  %9458 = vst [vmem:[#allocation26_spill] sm:$0xff] %v8367_v27  ;;  %v1477_v28 = vrot.slane %v1475_v12, 4 }
 0x165   : > { %6240 = vmatmul.mubr.msk.bf16.vlgmr.msra.gmra.mrb[0].mxu1 %vm827_vm3, %v9455_v30  ;;  %6403 = vmatprep.mubr.msk.bf16.mxu0 %vm827_vm3, %v6879_v34  ;;  %v3929_v34 = vrot.slane %v3927_v56, 4  ;;  %v3940_v30 = vrot.slane %v3938_v58, 4  ;;  %v3933_v56 = vshll.u32 %v8344_v47, 16  ;;  %v3971_v58 = vshll.u32 %v8350_v49, 16 }
 0x166   : > { %6272 = vmatpush3.bf16.msra.mxu1 %v7973_v63  ;;  %6243 = vmatprep.mubr.msk.bf16.mxu1 %vm827_vm3, %v9456_v35  ;;  %v3953_v35 = vrot.slane %v3951_v11, 4  ;;  %v8356_v63 = vrot.slane %v3896_v8, 4  ;;  %v3920_v11 = vor.u32 %v3919_v4, %v3916_v18  ;;  %v6938_v8 = vld [vmem:[%s7453_s10 + $0xa0] sm:$0xf]  ;;  %v8381_v26 = vsel %vm7706_vm6, %v5494_v5, %v1475_v12  ;;  %v1352_v5 = vld [vmem:[%s7453_s10 + $0xa8] sm:$0xe] }
 0x167   : > { %6273 = vmatprep.subr.bf16.mxu1 %v6885_v53  ;;  %v3930_v17 = vor.u32 %v3929_v34, %v8347_v20  ;;  %v1482_v16 = vrot.slane %v6938_v8, 5  ;;  %v3957_v18 = vshll.u32 %v8362_v10, 16  ;;  %v9460_v4 = vcombine.low %v8136_v55, %v8140_v42  ;;  %v6882_v12 = vld [vmem:[%s7453_s10 + $0xb4] sm:$0xff]  }
 0x168   : > { %v3954_v7 = vor.u32 %v3953_v35, %v8354_v23  ;;  %v3935_v2 = vrot.slane %v3933_v56, 5  ;;  %v5495_v34 = vrot.slane %v1351_v33, 9  ;;  %v3967_v35 = vrot.slane %v3965_v19, 5 }
 0x169   : > { %v8392_v8 = vrot.slane %v3971_v58, 5  ;;  %v3921_v55 = vrot.slane %v3920_v11, 4  ;;  %v3931_v42 = vrot.slane %v3930_v17, 4  ;;  %v5496_v49 = vrot.slane %v1352_v5, 9  ;;  %v1353_v5 = vld [vmem:[%s7453_s10 + $0xb4] sm:$0xe] }
 0x16a   : > { %6274 = vmatpush3.bf16.msra.mxu1 %v6885_v53  ;;  %v8370_v53 = vrot.slane %v3906_v14, 4  ;;  %v3944_v14 = vor.u32 %v3943_v29, %v3940_v30  ;;  %v3964_v29 = vrot.slane %v3962_v41, 4  ;;  %v3955_v56 = vrot.slane %v3954_v7, 4  ;;  %v6883_v41 = vld [vmem:[%s7453_s10 + $0xc0] sm:$0xff]  }
 0x16b   : > { %6487 = vmatprep.subr.bf16.mxu1 %v8367_v27  ;;  %v6940_v27 = vld [vmem:[%s7453_s10 + $0xa4] sm:$0x1]  ;;  %v3902_v19 = vsel %vm7491_vm2, %v8356_v63, %v8303_v37  ;;  %v8411_v17 = vsel %vm7706_vm6, %v1477_v28, %v1478_v24  ;;  %v5833_v37 = vld [vmem:[%s7453_s10 + $0x6c] sm:$0xf]  ;;  %v3926_v63 = vsel %vm7491_vm2, %v3921_v55, %v8347_v20  ;;  %v8424_v24 = vsel %vm7706_vm6, %v5495_v34, %v1482_v16 }
 0x16c   : > { %6404 = vmatmul.mubr.msk.bf16.gmra.mrb[20].mxu0 %vm827_vm3, %v6880_v48  ;;  %v6939_v48 = vld [vmem:[%s7453_s10 + $0xac] sm:$0xf]  ;;  %v3945_v33 = vrot.slane %v3944_v14, 4  ;;  %v3912_v58 = vsel %vm7491_vm2, %v8370_v53, %v8341_v6  ;;  %v3968_v7 = vor.u32 %v3967_v35, %v3964_v29  ;;  %v3936_v6 = vsel %vm7491_vm2, %v3931_v42, %v3935_v2 }
 0x16d   : > { %6244 = vmatmul.mubr.msk.bf16.gmra.mrb[4].mxu1 %vm827_vm3, %v9459_v36  ;;  %6407 = vmatprep.mubr.msk.bf16.mxu0 %vm827_vm3, %v6881_v43  ;;  %v1489_v30 = vrot.slane %v6939_v48, 5  ;;  %v3977_v36 = vrot.slane %v3975_v1, 4  ;;  %v1485_v43 = vrot.slane %v6940_v27, 5  ;;  %v3959_v48 = vrot.slane %v3957_v18, 5  ;;  %v6941_v27 = vld [vmem:[%s7453_s10 + $0xb0] sm:$0x1] }
 0x16e   : > { %6247 = vmatprep.mubr.msk.bf16.mxu1 %vm827_vm3, %v9460_v4  ;;  %v1484_v4 = vrot.slane %v1482_v16, 4  ;;  %v1492_v11 = vrot.slane %v6941_v27, 5  ;;  %v3981_v18 = vshll.u32 %v8396_v32, 16  ;;  %v9462_v28 = vor.u32 %v8041_v62, %v8039_v13 }
 0x16f   : > { %v1491_v1 = vrot.slane %v1489_v30, 4  ;;  %v3978_v14 = vor.u32 %v3977_v36, %v8392_v8  ;;  %v9464_v20 = vcombine.low %v8147_v57, %v8156_v22  ;;  %v3950_v16 = vsel %vm7491_vm2, %v3945_v33, %v8354_v23  ;;  %v6942_v23 = vld [vmem:[%s7453_s10 + $0xb8] sm:$0xf] }
 0x170   : > { %v8428_v53 = vsel %vm7706_vm6, %v1484_v4, %v1485_v43  ;;  %v8433_v29 = vrot.slane %v9462_v28, 4  ;;  %v3960_v2 = vsel %vm7491_vm2, %v3955_v56, %v3959_v48  ;;  %v8447_v34 = vsel %vm7706_vm6, %v5496_v49, %v1489_v30  ;;  %v8460_v49 = vld [vmem:[%s7453_s10 + $0x70] sm:$0xf]  ;;  %v5836_v33 = vld [vmem:[%s7453_s10 + $0x78] sm:$0xf] }
 0x171   : > { %9465 = vst [vmem:[#allocation29_spill] sm:$0xff] %v8447_v34  ;;  %v9466_v62 = vcombine.low %v8174_v44, %v8183_v39  ;;  %v8456_v57 = vsel %vm7706_vm6, %v1491_v1, %v1492_v11  ;;  %v5497_v22 = vrot.slane %v1353_v5, 9  ;;  %v1496_v35 = vrot.slane %v6942_v23, 5  ;;  %9468 = vst [vmem:[#allocation31_spill] sm:$0xff] %v8460_v49  ;;  %v8480_v56 = vld [vmem:[%s7453_s10 + $0x7c] sm:$0xf] }
 0x172   : > { %9463 = vst [vmem:[#allocation28_spill] sm:$0xff] %v8433_v29  ;;  %9467 = vst [vmem:[#allocation30_spill] sm:$0xff] %v8456_v57  ;;  %v3986_v30 = vshrl.u32 %v5833_v37, 16  ;;  %v8462_v44 = vcombine.low %v3902_v19, %v3912_v58  ;;  %v8464_v39 = vrot.slane %v3968_v7, 4  ;;  %v8466_v36 = vrot.slane %v3978_v14, 4 }
 0x173   : > { %v8468_v55 = vrot.slane %v3981_v18, 5  ;;  %v8472_v4 = vcombine.low %v3926_v63, %v3936_v6  ;;  %9469 = vst [vmem:[#allocation32_spill] sm:$0xff] %v8480_v56  ;;  %v5839_v48 = vld [vmem:[%s7453_s10 + $0x84] sm:$0xf]  ;;  %v8487_v58 = vld [vmem:[%s7453_s10 + $0xbc] sm:$0x1]  ;;  %v8496_v14 = vsel %vm7706_vm6, %v5497_v22, %v1496_v35  ;;  %v9473_v19 = vcombine.low %v8208_v38, %v8212_v59 }
 0x174   : > { %6408 = vmatmul.mubr.msk.bf16.gmra.mrb[24].mxu0 %vm827_vm3, %v6882_v12  ;;  %v8476_v12 = vcombine.low %v3950_v16, %v3960_v2  ;;  %v3989_v27 = vshll.u32 %v5833_v37, 16  ;;  %v3995_v11 = vshll.u32 %v8460_v49, 16  ;;  %v8492_v7 = vld [vmem:[%s7453_s10 + $0x88] sm:$0xf]  ;;  %v8498_v18 = vrot.slane %v1496_v35, 4 }
 0x175   : > { %6248 = vmatmul.mubr.msk.bf16.gmra.mrb[8].mxu1 %vm827_vm3, %v9464_v20  ;;  %6411 = vmatprep.mubr.msk.bf16.mxu0 %vm827_vm3, %v6883_v41  ;;  %v6884_v41 = vld [vmem:[%s7453_s10 + $0xcc] sm:$0xff]   ;;  %9470 = vst [vmem:[#allocation33_spill] sm:$0xff] %v8492_v7  ;;  %v8500_v5 = vrot.slane %v3986_v30, 4  ;;  %v3999_v63 = vshrl.u32 %v8460_v49, 16  ;;  %v4010_v20 = vshrl.u32 %v5836_v33, 16  ;;  %v4013_v16 = vshll.u32 %v5836_v33, 16 }
 0x176   : > { %6251 = vmatprep.mubr.msk.bf16.mxu1 %vm827_vm3, %v9466_v62  ;;  %v5842_v6 = vld [vmem:[%s7453_s10 + $0x90] sm:$0xf]  ;;  %v8513_v2 = vld [vmem:[%s7453_s10 + $0x94] sm:$0xf]  ;;  %v4019_v22 = vshll.u32 %v8480_v56, 16  ;;  %v4023_v23 = vshrl.u32 %v8480_v56, 16  ;;  %v9474_v42 = vcombine.low %v8221_v61, %v8231_v50 }
 0x177   : > { %9471 = vst [vmem:[#allocation34_spill] sm:$0xff] %v8513_v2  ;;  %v8516_v62 = vld [vmem:[%s7453_s10 + $0x74] sm:$0x1]  ;;  %v4034_v35 = vshrl.u32 %v5839_v48, 16  ;;  %v4037_v30 = vshll.u32 %v5839_v48, 16  ;;  %v4043_v33 = vshll.u32 %v8492_v7, 16 }
 0x178   : > { %9472 = vst [vmem:[#allocation35_spill] sm:$0xff] %v8516_v62  ;;  %v4047_v43 = vshrl.u32 %v8492_v7, 16  ;;  %v4058_v37 = vshrl.u32 %v5842_v6, 16  ;;  %v4061_v28 = vshll.u32 %v5842_v6, 16  ;;  %v3991_v38 = vrot.slane %v3989_v27, 5 }
 0x179   : > { %v8533_v59 = vrot.slane %v3995_v11, 5  ;;  %v8536_v48 = vld [vmem:[%s7453_s10 + $0x80] sm:$0x1]  ;;  %v4001_v6 = vrot.slane %v3999_v63, 4  ;;  %v4005_v1 = vshll.u32 %v8516_v62, 16  ;;  %v4012_v61 = vrot.slane %v4010_v20, 4 }
 0x17a   : > { %v4015_v50 = vrot.slane %v4013_v16, 5  ;;  %v8542_v13 = vrot.slane %v4019_v22, 5  ;;  %v8545_v27 = vld [vmem:[%s7453_s10 + $0x8c] sm:$0x1]  ;;  %v4036_v11 = vrot.slane %v4034_v35, 4  ;;  %v4039_v7 = vrot.slane %v4037_v30, 5 }
 0x17b   : > { %v8547_v29 = vrot.slane %v4043_v33, 5  ;;  %v4049_v56 = vrot.slane %v4047_v43, 4  ;;  %v4060_v49 = vrot.slane %v4058_v37, 4  ;;  %v4063_v32 = vrot.slane %v4061_v28, 5  ;;  %v8553_v63 = vld [vmem:[%s7453_s10 + $0x98] sm:$0x1] }
 0x17c   : > { %6412 = vmatmul.mubr.msk.bf16.gmra.mrb[28].mxu0 %vm827_vm3, %v6884_v41  ;;  %v4067_v41 = vshll.u32 %v8513_v2, 16  ;;  %v4002_v57 = vor.u32 %v4001_v6, %v8533_v59  ;;  %v4016_v35 = vor.u32 %v4015_v50, %v4012_v61  ;;  %v4029_v30 = vshll.u32 %v8536_v48, 16  ;;  %v6888_v33 = vld [vmem:[#allocation7 + $0x88] sm:$0xff]  }
 0x17d   : > { %6252 = vmatmul.mubr.msk.bf16.gmra.mrb[12].mxu1 %vm827_vm3, %v9473_v19  ;;  %6419 = vmatprep.mubr.msk.bf16.mxu0 %vm827_vm3, %v8271_v21  ;;  %v4071_v19 = vshrl.u32 %v8513_v2, 16  ;;  %v4025_v21 = vrot.slane %v4023_v23, 4  ;;  %v8550_v2 = vld [vmem:[%s7453_s10 + $0xa0] sm:$0xf]  ;;  %v3992_v23 = vor.u32 %v3991_v38, %v8500_v5  ;;  %v4040_v37 = vor.u32 %v4039_v7, %v4036_v11 }
 0x17e   : > { %6255 = vmatprep.mubr.msk.bf16.mxu1 %vm827_vm3, %v9474_v42  ;;  %v5845_v42 = vld [vmem:[%s7453_s10 + $0x9c] sm:$0xf]  ;;  %v8555_v62 = vrot.slane %v4067_v41, 5  ;;  %v4091_v28 = vshll.u32 %v8550_v2, 16  ;;  %v4095_v34 = vshrl.u32 %v8550_v2, 16  ;;  %v9475_v41 = vcombine.low %v8235_v52, %v8239_v15 }
 0x17f   : > { %v4073_v20 = vrot.slane %v4071_v19, 4  ;;  %v4082_v16 = vshrl.u32 %v5845_v42, 16  ;;  %v4085_v22 = vshll.u32 %v5845_v42, 16  ;;  %v4026_v43 = vor.u32 %v4025_v21, %v8542_v13 }
 0x180   : > { %v4050_v5 = vor.u32 %v4049_v56, %v8547_v29  ;;  %v4053_v38 = vshll.u32 %v8545_v27, 16  ;;  %v4064_v19 = vor.u32 %v4063_v32, %v4060_v49  ;;  %v4077_v7 = vshll.u32 %v8553_v63, 16 }
 0x181   : > { %v9476_v6 = vcombine.low %v8277_v45, %v8289_v51  ;;  %v4007_v52 = vrot.slane %v4005_v1, 5  ;;  %v4074_v15 = vor.u32 %v4073_v20, %v8555_v62  ;;  %v4084_v61 = vrot.slane %v4082_v16, 4 }
 0x182   : > { %v3993_v56 = vrot.slane %v3992_v23, 4  ;;  %v4003_v32 = vrot.slane %v4002_v57, 4  ;;  %v4017_v49 = vrot.slane %v4016_v35, 4  ;;  %v4031_v50 = vrot.slane %v4029_v30, 5  ;;  %v8587_v57 = vld [vmem:[%s7453_s10 + $0xac] sm:$0xf] }
 0x183   : > { %v4027_v42 = vrot.slane %v4026_v43, 4  ;;  %v4041_v45 = vrot.slane %v4040_v37, 4  ;;  %v8581_v51 = vrot.slane %v4091_v28, 5  ;;  %v4097_v1 = vrot.slane %v4095_v34, 4 }
 0x184   : > { %6420 = vmatmul.mubr.msk.bf16.vlgmr.msra.gmra.mrb[0].mxu0 %vm827_vm3, %v8331_v9  ;;  %v4087_v9 = vrot.slane %v4085_v22, 5  ;;  %v4051_v21 = vrot.slane %v4050_v5, 4  ;;  %v4055_v11 = vrot.slane %v4053_v38, 5  ;;  %v4065_v20 = vrot.slane %v4064_v19, 4  ;;  %v8584_v22 = vld [vmem:[%s7453_s10 + $0xa4] sm:$0x1] }
 0x185   : > { %6256 = vmatmul.mubr.msk.bf16.gmra.mrb[16].mxu1 %vm827_vm3, %v9475_v41  ;;  %6452 = vmatpush3.bf16.msra.mxu0 %v8099_v0  ;;  %v5848_v0 = vld [vmem:[%s7453_s10 + $0xa8] sm:$0xf]  ;;  %v4079_v16 = vrot.slane %v4077_v7, 5  ;;  %v9477_v43 = vrot.slane %v8487_v58, 5  ;;  %v3998_v37 = vsel %vm7491_vm2, %v3993_v56, %v8533_v59  ;;  %v4022_v28 = vsel %vm7491_vm2, %v4017_v49, %v8542_v13  ;;  %v5851_v56 = vld [vmem:[%s7453_s10 + $0xb4] sm:$0xf] }
 0x186   : > { %6259 = vmatprep.mubr.msk.bf16.mxu1 %vm827_vm3, %v9476_v6  ;;  %6423 = vmatprep.mubr.msk.bf16.mxu0 %vm827_vm3, %v8336_v3  ;;  %v4075_v3 = vrot.slane %v4074_v15, 4  ;;  %v4088_v23 = vor.u32 %v4087_v9, %v4084_v61  ;;  %v4106_v35 = vshrl.u32 %v5848_v0, 16  ;;  %v4109_v30 = vshll.u32 %v5848_v0, 16  ;;  %v5898_v7 = vld [vmem:[%s7453_s10 + $0x48] sm:$0xe] }
 0x187   : > { %6453 = vmatprep.subr.bf16.mxu0 %v6888_v33  ;;  %v8594_v34 = vsel %vm7706_vm6, %v8498_v18, %v9477_v43  ;;  %v4032_v58 = vsel %vm7491_vm2, %v4027_v42, %v4031_v50  ;;  %v4046_v18 = vsel %vm7491_vm2, %v4041_v45, %v8547_v29  ;;  %v4098_v41 = vor.u32 %v4097_v1, %v8581_v51  ;;  %v8634_v6 = vld [vmem:[%s7453_s10 + $0xb0] sm:$0x1] }
 0x188   : > { %v4101_v5 = vshll.u32 %v8584_v22, 16  ;;  %v9478_v59 = vcombine.low %v8293_v60, %v8313_v40  ;;  %v4056_v13 = vsel %vm7491_vm2, %v4051_v21, %v4055_v11  ;;  %v4070_v29 = vsel %vm7491_vm2, %v4065_v20, %v8555_v62  ;;  %v5900_v20 = vld [vmem:[%s7453_s10 + $0x60] sm:$0xe] }
 0x189   : > { %6454 = vmatpush3.bf16.msra.mxu0 %v6888_v33  ;;  %v4008_v33 = vsel %vm7491_vm2, %v4003_v32, %v4007_v52  ;;  %v4115_v38 = vshll.u32 %v8587_v57, 16  ;;  %v4119_v19 = vshrl.u32 %v8587_v57, 16  ;;  %v9479_v60 = vcombine.low %v8381_v26, %v8411_v17 }
 0x18a   : > { %v4080_v40 = vsel %vm7491_vm2, %v4075_v3, %v4079_v16  ;;  %v4108_v62 = vrot.slane %v4106_v35, 4  ;;  %v4111_v52 = vrot.slane %v4109_v30, 5  ;;  %v9480_v15 = vsel %vm7491_vm2, %v8466_v36, %v8468_v55  ;;  %v5899_v55 = vld [vmem:[%s7453_s10 + $0x54] sm:$0xe]  ;;  %v5901_v30 = vld [vmem:[%s7453_s10 + $0x6c] sm:$0xe] }
 0x18b   : > { %v9481_v26 = vsel %vm7491_vm2, %v8464_v39, %v8392_v8  ;;  %v8648_v61 = vcombine.low %v3998_v37, %v4008_v33  ;;  %v8650_v9 = vcombine.low %v4022_v28, %v4032_v58  ;;  %v8653_v32 = vcombine.low %v4046_v18, %v4056_v13  ;;  %v9483_v18 = vld [vmem:[#allocation29_spill] sm:$0xff] }
 0x18c   : > { %6424 = vmatmul.mubr.msk.bf16.gmra.mrb[4].mxu0 %vm827_vm3, %v8462_v44  ;;  %v4089_v44 = vrot.slane %v4088_v23, 4  ;;  %v5866_v17 = vcombine.low %v9481_v26, %v9480_v15  ;;  %v4099_v49 = vrot.slane %v4098_v41, 4  ;;  %v4103_v50 = vrot.slane %v4101_v5, 5  ;;  %v9484_v41 = vld [vmem:[#allocation30_spill] sm:$0xff] }
 0x18d   : > { %6260 = vmatmul.mubr.msk.bf16.gmra.mrb[20].mxu1 %vm827_vm3, %v9478_v59  ;;  %6427 = vmatprep.mubr.msk.bf16.mxu0 %vm827_vm3, %v8472_v4  ;;  %v5513_v4 = vcombine.low %v8496_v14, %v8594_v34  ;;  %v5914_v36 = vrot.slane %v5898_v7, 9  ;;  %v8656_v0 = vcombine.low %v4070_v29, %v4080_v40  ;;  %v8658_v8 = vrot.slane %v4115_v38, 5  ;;  %v9487_v59 = vld [vmem:[#allocation27_spill] sm:$0xff] }
 0x18e   : > { %6263 = vmatprep.mubr.msk.bf16.mxu1 %vm827_vm3, %v9479_v60  ;;  %v4121_v39 = vrot.slane %v4119_v19, 4  ;;  %v4125_v42 = vshll.u32 %v8634_v6, 16  ;;  %v4094_v45 = vsel %vm7491_vm2, %v4089_v44, %v8581_v51  ;;  %v4112_v1 = vor.u32 %v4111_v52, %v4108_v62  ;;  %v9488_v7 = vld [vmem:[#allocation31_spill] sm:$0xff] }
 0x18f   : > { %v4601_v21 = vrot.slane %v8297_v46, 5  ;;  %v4604_v11 = vrot.slane %v8344_v47, 5  ;;  %v4130_v16 = vshrl.u32 %v5851_v56, 16  ;;  %v5915_v3 = vrot.slane %v5899_v55, 9  ;;  %v9489_v40 = vld [vmem:[#allocation35_spill] sm:$0xff] }
 0x190   : > { %v4608_v23 = vrot.slane %v8306_v31, 5  ;;  %v4611_v35 = vrot.slane %v8362_v10, 5  ;;  %v4104_v43 = vsel %vm7491_vm2, %v4099_v49, %v4103_v50  ;;  %v4133_v37 = vshll.u32 %v5851_v56, 16  ;;  %v8684_v31 = vld [vmem:[%s7453_s10 + $0xb8] sm:$0xf] }
 0x191   : > { %v8674_v51 = vsel %vm7706_vm6, %v5914_v36, %v4601_v21  ;;  %v4603_v33 = vrot.slane %v4601_v21, 4  ;;  %v9482_v46 = vcombine.low %v8424_v24, %v8428_v53  ;;  %v4122_v10 = vor.u32 %v4121_v39, %v8658_v8  ;;  %v9486_v53 = vld [vmem:[#allocation25_spill] sm:$0xff]  ;;  %v5902_v55 = vld [vmem:[%s7453_s10 + $0x78] sm:$0xe] }
 0x192   : > { %v8688_v47 = vsel %vm7706_vm6, %v5915_v3, %v4608_v23  ;;  %v4610_v28 = vrot.slane %v4608_v23, 4  ;;  %v5916_v58 = vrot.slane %v5900_v20, 9  ;;  %v9485_v5 = vcombine.low %v9483_v18, %v9484_v41  ;;  %v5854_v52 = vld [vmem:[%s7453_s10 + $0xc0] sm:$0xf]  ;;  %v6887_v39 = vld [vmem:[%s7453_s10 + $0xc] sm:$0xff]  }
 0x193   : > { %v8697_v24 = vsel %vm7706_vm6, %v4603_v33, %v4604_v11  ;;  %v4618_v13 = vrot.slane %v9487_v59, 5  ;;  %v5917_v29 = vrot.slane %v5901_v30, 9  ;;  %v4622_v60 = vrot.slane %v9488_v7, 5  ;;  %v5625_v3 = vld [vmem:[%s7453_s10 + $0x78] sm:$0xf] }
 0x194   : > { %6428 = vmatmul.mubr.msk.bf16.gmra.mrb[8].mxu0 %vm827_vm3, %v8476_v12  ;;  %v4615_v12 = vrot.slane %v9486_v53, 5  ;;  %v5930_v38 = vcombine.low %v8674_v51, %v8697_v24  ;;  %v8705_v19 = vsel %vm7706_vm6, %v4610_v28, %v4611_v35  ;;  %v4625_v44 = vrot.slane %v9489_v40, 5  ;;  %v8742_v30 = vld [vmem:[%s7453_s10 + $0xc4] sm:$0xf] }
 0x195   : > { %6264 = vmatmul.mubr.msk.bf16.gmra.mrb[24].mxu1 %vm827_vm3, %v9482_v46  ;;  %6431 = vmatprep.mubr.msk.bf16.mxu0 %vm827_vm3, %v5866_v17  ;;  %v4139_v62 = vshll.u32 %v8684_v31, 16  ;;  %v5931_v15 = vcombine.low %v8688_v47, %v8705_v19  ;;  %v8717_v56 = vrot.slane %v4125_v42, 5  ;;  %v4143_v49 = vshrl.u32 %v8684_v31, 16  ;;  %v9492_v53 = vld [vmem:[#allocation28_spill] sm:$0xff]  ;;  %v9493_v40 = vld [vmem:[#allocation33_spill] sm:$0xff] }
 0x196   : > { %6267 = vmatprep.mubr.msk.bf16.mxu1 %vm827_vm3, %v9485_v5  ;;  %v8715_v26 = vsel %vm7706_vm6, %v5916_v58, %v4615_v12  ;;  %v4617_v17 = vrot.slane %v4615_v12, 4  ;;  %v8722_v50 = vsel %vm7706_vm6, %v5917_v29, %v4622_v60  ;;  %v4624_v36 = vrot.slane %v4622_v60, 4  ;;  %v9490_v58 = vld [vmem:[#allocation32_spill] sm:$0xff]  ;;  %v6956_v19 = vld [vmem:[%s7453_s10 + $0x8c] sm:$0x1] }
 0x197   : > { %v8726_v21 = vcombine.low %v4094_v45, %v4104_v43  ;;  %v8728_v11 = vrot.slane %v4112_v1, 4  ;;  %v8730_v20 = vrot.slane %v4130_v16, 4  ;;  %v8737_v23 = vrot.slane %v4122_v10, 4  ;;  %v5903_v10 = vld [vmem:[%s7453_s10 + $0x84] sm:$0xe] }
 0x198   : > { %v8734_v42 = vsel %vm7706_vm6, %v4617_v17, %v4618_v13  ;;  %v8739_v35 = vrot.slane %v4133_v37, 5  ;;  %v8748_v1 = vsel %vm7706_vm6, %v4624_v36, %v4625_v44  ;;  %v8750_v16 = vrot.slane %v4139_v62, 5  ;;  %v8762_v37 = vld [vmem:[%s7453_s10 + $0xbc] sm:$0x1]  ;;  %v5857_v36 = vld [vmem:[%s7453_s10 + $0xcc] sm:$0xf] }
 0x199   : > { %v5932_v45 = vcombine.low %v8715_v26, %v8734_v42  ;;  %v4154_v43 = vshrl.u32 %v5854_v52, 16  ;;  %v5933_v33 = vcombine.low %v8722_v50, %v8748_v1  ;;  %v5918_v46 = vrot.slane %v5902_v55, 9  ;;  %v6889_v62 = vld [vmem:[%s7453_s10 + $0x18] sm:$0xff]  }
 0x19a   : > { %v4157_v28 = vshll.u32 %v5854_v52, 16  ;;  %v4629_v18 = vrot.slane %v9490_v58, 5  ;;  %v4632_v41 = vrot.slane %v8536_v48, 5  ;;  %v2443_v5 = vshrl.u32 %v5625_v3, 16 }
 0x19b   : > { %v4163_v14 = vshll.u32 %v8742_v30, 16  ;;  %v4167_v34 = vshrl.u32 %v8742_v30, 16  ;;  %v5919_v29 = vrot.slane %v5903_v10, 9  ;;  %v4149_v7 = vshll.u32 %v8762_v37, 16 }
 0x19c   : > { %6432 = vmatmul.mubr.msk.bf16.gmra.mrb[12].mxu0 %vm827_vm3, %v8648_v61  ;;  %v9491_v61 = vld [vmem:[#allocation22_spill] sm:$0xff]  ;;  %v8777_v48 = vsel %vm7706_vm6, %v5918_v46, %v4629_v18  ;;  %v4631_v59 = vrot.slane %v4629_v18, 4  ;;  %v2445_v13 = vrot.slane %v2443_v5, 4  ;;  %v4636_v44 = vrot.slane %v9493_v40, 5 }
 0x19d   : > { %6268 = vmatmul.mubr.msk.bf16.gmra.mrb[28].mxu1 %vm827_vm3, %v5513_v4  ;;  %6435 = vmatprep.mubr.msk.bf16.mxu0 %vm827_vm3, %v8650_v9  ;;  %v2446_v4 = vshll.u32 %v5625_v3, 16  ;;  %v2465_v12 = vsel %vm7491_vm2, %v9492_v53, %v9491_v61  ;;  %v4145_v9 = vrot.slane %v4143_v49, 4  ;;  %v4118_v52 = vsel %vm7491_vm2, %v8728_v11, %v8658_v8  ;;  %v5904_v18 = vld [vmem:[%s7453_s10 + $0x90] sm:$0xe] }
 0x19e   : > { %6275 = vmatprep.mubr.msk.bf16.mxu1 %vm827_vm3, %v6887_v39  ;;  %v4136_v17 = vor.u32 %v8739_v35, %v8730_v20  ;;  %v8791_v49 = vsel %vm7706_vm6, %v4631_v59, %v4632_v41  ;;  %v4639_v55 = vrot.slane %v8545_v27, 5  ;;  %v6890_v39 = vld [vmem:[%s7453_s10 + $0x24] sm:$0xff]   ;;  %v4156_v3 = vrot.slane %v4154_v43, 4  ;;  %v8801_v20 = vld [vmem:[%s7453_s10 + $0xd0] sm:$0xf] }
 0x19f   : > { %v2448_v60 = vrot.slane %v2446_v4, 5  ;;  %v4159_v46 = vrot.slane %v4157_v28, 5  ;;  %v5934_v10 = vcombine.low %v8777_v48, %v8791_v49  ;;  %v8798_v8 = vrot.slane %v4163_v14, 5  ;;  %v8813_v28 = vld [vmem:[%s7453_s10 + $0xc8] sm:$0x1]  ;;  %v9494_v53 = vld [vmem:[#allocation34_spill] sm:$0xff] }
 0x1a0   : > { %v4169_v11 = vrot.slane %v4167_v34, 4  ;;  %v8805_v35 = vsel %vm7706_vm6, %v5919_v29, %v4636_v44  ;;  %v4638_v41 = vrot.slane %v4636_v44, 4  ;;  %v4128_v27 = vsel %vm7491_vm2, %v8737_v23, %v8717_v56  ;;  %v9495_v56 = vld [vmem:[#allocation26_spill] sm:$0xff]  ;;  %v9496_v29 = vld [vmem:[#allocation21_spill] sm:$0xff] }
 0x1a1   : > { %v2449_v58 = vor.u32 %v2448_v60, %v2445_v13  ;;  %v4146_v43 = vor.u32 %v4145_v9, %v8750_v16  ;;  %v4178_v5 = vshrl.u32 %v5857_v36, 16  ;;  %v4181_v34 = vshll.u32 %v5857_v36, 16 }
 0x1a2   : > { %v8820_v4 = vsel %vm7706_vm6, %v4638_v41, %v4639_v55  ;;  %v5920_v61 = vrot.slane %v5904_v18, 9  ;;  %v4643_v59 = vrot.slane %v9494_v53, 5  ;;  %v4187_v23 = vshll.u32 %v8801_v20, 16  ;;  %v6891_v18 = vld [vmem:[%s7453_s10 + $0x30] sm:$0xff]   ;;  %v6892_v53 = vld [vmem:[%s7453_s10 + $0x3c] sm:$0xff]  }
 0x1a3   : > { %v2450_v14 = vrot.slane %v2449_v58, 4  ;;  %v4191_v13 = vshrl.u32 %v8801_v20, 16  ;;  %v5935_v9 = vcombine.low %v8805_v35, %v8820_v4  ;;  %v4160_v60 = vor.u32 %v4159_v46, %v4156_v3  ;;  %v6962_v35 = vld [vmem:[%s7453_s10 + $0xc4] sm:$0xf] }
 0x1a4   : > { %6436 = vmatmul.mubr.msk.bf16.gmra.mrb[16].mxu0 %vm827_vm3, %v8653_v32  ;;  %v4170_v40 = vor.u32 %v4169_v11, %v8798_v8  ;;  %v4173_v44 = vshll.u32 %v8813_v28, 16  ;;  %v4151_v55 = vrot.slane %v4149_v7, 5  ;;  %v4645_v58 = vrot.slane %v4643_v59, 4 }
 0x1a5   : > { %6276 = vmatmul.mubr.msk.bf16.vlgmr.msra.gmra.mrb[0].mxu1 %vm827_vm3, %v6889_v62  ;;  %v2455_v32 = vsel %vm7491_vm2, %v2450_v14, %v9496_v29  ;;  %6439 = vmatprep.mubr.msk.bf16.mxu0 %vm827_vm3, %v8656_v0  ;;  %v6944_v62 = vld [vmem:[#allocation7 + $0x48] sm:$0xff]   ;;  %v4646_v0 = vrot.slane %v8553_v63, 5  ;;  %v5872_v3 = vcombine.low %v4118_v52, %v4128_v27  ;;  %v4137_v46 = vrot.slane %v4136_v17, 4 }
 0x1a6   : > { %6489 = vmatpush3.bf16.msra.mxu1 %v9495_v56  ;;  %6279 = vmatprep.mubr.msk.bf16.mxu1 %vm827_vm3, %v6890_v39  ;;  %v8836_v36 = vcombine.low %v2455_v32, %v2465_v12  ;;  %v8840_v39 = vsel %vm7706_vm6, %v5920_v61, %v4643_v59  ;;  %v4147_v41 = vrot.slane %v4146_v43, 4  ;;  %v4180_v11 = vrot.slane %v4178_v5, 4  ;;  %v5905_v14 = vld [vmem:[%s7453_s10 + $0x9c] sm:$0xe]  ;;  %v8847_v56 = vld [vmem:[%s7453_s10 + $0xd4] sm:$0x1] }
 0x1a7   : > { %6488 = vmatprep.subr.bf16.mxu1 %v6944_v62  ;;  %v4183_v29 = vrot.slane %v4181_v34, 5  ;;  %v8849_v12 = vrot.slane %v4187_v23, 5  ;;  %v4193_v7 = vrot.slane %v4191_v13, 4  ;;  %v8853_v61 = vsel %vm7706_vm6, %v4645_v58, %v4646_v0  ;;  %v5894_v32 = vld [vmem:[%s7453_s10 + $0x18] sm:$0xe]  ;;  %v6893_v0 = vld [vmem:[%s7453_s10 + $0x48] sm:$0xff]  }
 0x1a8   : > { %v4161_v59 = vrot.slane %v4160_v60, 4  ;;  %v4171_v63 = vrot.slane %v4170_v40, 4  ;;  %v4175_v52 = vrot.slane %v4173_v44, 5  ;;  %v5936_v17 = vcombine.low %v8840_v39, %v8853_v61  ;;  %v6945_v44 = vld [vmem:[%s7453_s10 + $0x1c] sm:$0xf] }
 0x1a9   : > { %v5921_v27 = vrot.slane %v5905_v14, 9  ;;  %v4650_v43 = vrot.slane %v8550_v2, 5  ;;  %v4142_v5 = vsel %vm7491_vm2, %v4137_v46, %v8750_v16  ;;  %v4152_v34 = vsel %vm7491_vm2, %v4147_v41, %v4151_v55  ;;  %v5906_v58 = vld [vmem:[%s7453_s10 + $0xa8] sm:$0xe] }
 0x1aa   : > { %6490 = vmatpush3.bf16.msra.mxu1 %v6944_v62  ;;  %v4197_v23 = vshll.u32 %v8847_v56, 16  ;;  %v4653_v13 = vrot.slane %v8584_v22, 5  ;;  %v4184_v2 = vor.u32 %v4183_v29, %v4180_v11  ;;  %v4166_v40 = vsel %vm7491_vm2, %v4161_v59, %v8798_v8  ;;  %v6894_v11 = vld [vmem:[%s7453_s10 + $0x54] sm:$0xff]   ;;  %v6946_v29 = vld [vmem:[%s7453_s10 + $0x20] sm:$0x1] }
 0x1ab   : > { %v8874_v16 = vsel %vm7706_vm6, %v5921_v27, %v4650_v43  ;;  %v4652_v60 = vrot.slane %v4650_v43, 4  ;;  %v4176_v22 = vsel %vm7491_vm2, %v4171_v63, %v4175_v52  ;;  %v4573_v62 = vrot.slane %v6945_v44, 5  ;;  %v5907_v43 = vld [vmem:[%s7453_s10 + $0xb4] sm:$0xe]  ;;  %v5896_v44 = vld [vmem:[%s7453_s10 + $0x30] sm:$0xe] }
 0x1ac   : > { %6440 = vmatmul.mubr.msk.bf16.gmra.mrb[20].mxu0 %vm827_vm3, %v8726_v21  ;;  %v4194_v21 = vor.u32 %v4193_v7, %v8849_v12  ;;  %v5910_v46 = vrot.slane %v5894_v32, 9  ;;  %v5874_v8 = vcombine.low %v4166_v40, %v4176_v22  ;;  %v4185_v14 = vrot.slane %v4184_v2, 4  ;;  %v6947_v2 = vld [vmem:[%s7453_s10 + $0x28] sm:$0xf] }
 0x1ad   : > { %6280 = vmatmul.mubr.msk.bf16.gmra.mrb[4].mxu1 %vm827_vm3, %v6891_v18  ;;  %6443 = vmatprep.mubr.msk.bf16.mxu0 %vm827_vm3, %v5872_v3  ;;  %v8884_v55 = vsel %vm7706_vm6, %v4652_v60, %v4653_v13  ;;  %v5873_v18 = vcombine.low %v4142_v5, %v4152_v34  ;;  %v4199_v3 = vrot.slane %v4197_v23, 5  ;;  %v4576_v7 = vrot.slane %v6946_v29, 5  ;;  %v5895_v13 = vld [vmem:[%s7453_s10 + $0x24] sm:$0xe]  ;;  %v6948_v60 = vld [vmem:[%s7453_s10 + $0x34] sm:$0xf] }
 0x1ae   : > { %6283 = vmatprep.mubr.msk.bf16.mxu1 %vm827_vm3, %v6892_v53  ;;  %v5937_v41 = vcombine.low %v8874_v16, %v8884_v55  ;;  %v4195_v53 = vrot.slane %v4194_v21, 4  ;;  %v4575_v59 = vrot.slane %v4573_v62, 4  ;;  %v5922_v63 = vrot.slane %v5906_v58, 9 }
 0x1af   : > { %v4657_v52 = vrot.slane %v8587_v57, 5  ;;  %v4660_v27 = vrot.slane %v8634_v6, 5  ;;  %v4190_v57 = vsel %vm7491_vm2, %v4185_v14, %v8849_v12  ;;  %v4574_v23 = vsel %vm7706_vm6, %v5910_v46, %v4573_v62  ;;  %v6949_v46 = vld [vmem:[%s7453_s10 + $0x2c] sm:$0x1] }
 0x1b0   : > { %v4200_v6 = vsel %vm7491_vm2, %v4195_v53, %v4199_v3  ;;  %v4580_v21 = vrot.slane %v6947_v2, 5  ;;  %v4577_v32 = vsel %vm7706_vm6, %v4575_v59, %v4576_v7  ;;  %v4587_v40 = vrot.slane %v6948_v60, 5  ;;  %v6896_v14 = vld [vmem:[%s7453_s10 + $0x6c] sm:$0xff]  }
 0x1b1   : > { %v8899_v5 = vsel %vm7706_vm6, %v5922_v63, %v4657_v52  ;;  %v4659_v34 = vrot.slane %v4657_v52, 4  ;;  %v5923_v12 = vrot.slane %v5907_v43, 9  ;;  %v4664_v62 = vrot.slane %v8684_v31, 5  ;;  %v6950_v31 = vld [vmem:[%s7453_s10 + $0x38] sm:$0x1] }
 0x1b2   : > { %v5911_v3 = vrot.slane %v5895_v13, 9  ;;  %v5926_v53 = vcombine.low %v4574_v23, %v4577_v32  ;;  %v4582_v29 = vrot.slane %v4580_v21, 4  ;;  %v5912_v63 = vrot.slane %v5896_v44, 9  ;;  %v5908_v43 = vld [vmem:[%s7453_s10 + $0xc0] sm:$0xe] }
 0x1b3   : > { %v8917_v22 = vsel %vm7706_vm6, %v4659_v34, %v4660_v27  ;;  %v8929_v7 = vsel %vm7706_vm6, %v5923_v12, %v4664_v62  ;;  %v4666_v59 = vrot.slane %v4664_v62, 4  ;;  %v4589_v52 = vrot.slane %v4587_v40, 4  ;;  %v9497_v23 = vld [vmem:[#allocation23_spill] sm:$0xff] }
 0x1b4   : > { %6444 = vmatmul.mubr.msk.bf16.gmra.mrb[24].mxu0 %vm827_vm3, %v5873_v18  ;;  %v5938_v58 = vcombine.low %v8899_v5, %v8917_v22  ;;  %v5875_v18 = vcombine.low %v4190_v57, %v4200_v6  ;;  %v4590_v27 = vrot.slane %v6950_v31, 5  ;;  %v4581_v57 = vsel %vm7706_vm6, %v5911_v3, %v4580_v21  ;;  %v5897_v12 = vld [vmem:[%s7453_s10 + $0x3c] sm:$0xe] }
 0x1b5   : > { %6284 = vmatmul.mubr.msk.bf16.gmra.mrb[8].mxu1 %vm827_vm3, %v6893_v0  ;;  %6447 = vmatprep.mubr.msk.bf16.mxu0 %vm827_vm3, %v5874_v8  ;;  %v6895_v0 = vld [vmem:[%s7453_s10 + $0x60] sm:$0xff]   ;;  %v4667_v8 = vrot.slane %v8762_v37, 5  ;;  %v4594_v13 = vrot.slane %v9497_v23, 5  ;;  %v5924_v2 = vrot.slane %v5908_v43, 9  ;;  %v4588_v32 = vsel %vm7706_vm6, %v5912_v63, %v4587_v40  ;;  %v6897_v21 = vld [vmem:[%s7453_s10 + $0x78] sm:$0xff]  }
 0x1b6   : > { %6287 = vmatprep.mubr.msk.bf16.mxu1 %vm827_vm3, %v6894_v11  ;;  %v4583_v11 = vrot.slane %v6949_v46, 5  ;;  %v4591_v60 = vsel %vm7706_vm6, %v4589_v52, %v4590_v27  ;;  %v4671_v44 = vrot.slane %v8742_v30, 5  ;;  %v4674_v62 = vrot.slane %v8813_v28, 5  ;;  %v6951_v27 = vld [vmem:[%s7453_s10 + $0x70] sm:$0xf] }
 0x1b7   : > { %v8935_v34 = vsel %vm7706_vm6, %v4666_v59, %v4667_v8  ;;  %v6898_v8 = vld [vmem:[%s7453_s10 + $0x84] sm:$0xff]   ;;  %v5928_v40 = vcombine.low %v4588_v32, %v4591_v60  ;;  %v2428_v43 = vshll.u32 %v6951_v27, 16  ;;  %v4681_v23 = vrot.slane %v8847_v56, 5 }
 0x1b8   : > { %v5939_v37 = vcombine.low %v8929_v7, %v8935_v34  ;;  %v4584_v6 = vsel %vm7706_vm6, %v4582_v29, %v4583_v11  ;;  %v8960_v46 = vsel %vm7706_vm6, %v5924_v2, %v4671_v44  ;;  %v4673_v11 = vrot.slane %v4671_v44, 4  ;;  %v9498_v29 = vld [vmem:[#allocation24_spill] sm:$0xff] }
 0x1b9   : > { %v5927_v3 = vcombine.low %v4581_v57, %v4584_v6  ;;  %v4597_v59 = vrot.slane %v9498_v29, 5  ;;  %v2432_v57 = vshrl.u32 %v6951_v27, 16  ;;  %v4678_v6 = vrot.slane %v8801_v20, 5  ;;  %v5631_v27 = vld [vmem:[%s7453_s10 + $0x90] sm:$0xf] }
 0x1ba   : > { %v8966_v28 = vsel %vm7706_vm6, %v4673_v11, %v4674_v62  ;;  %v6899_v62 = vld [vmem:[%s7453_s10 + $0x90] sm:$0xff]   ;;  %v2491_v51 = vshrl.u32 %v5631_v27, 16  ;;  %v2494_v24 = vshll.u32 %v5631_v27, 16  ;;  %v6903_v27 = vld [vmem:[%s7453_s10 + $0xc0] sm:$0xff]   ;;  %v2596_v4 = vshll.u32 %v6962_v35, 16 }
 0x1bb   : > { %v5940_v31 = vcombine.low %v8960_v46, %v8966_v28  ;;  %v4680_v20 = vrot.slane %v4678_v6, 4 }
 0x1bc   : > { %6448 = vmatmul.mubr.msk.bf16.gmra.mrb[28].mxu0 %vm827_vm3, %v5875_v18  ;;  %v5909_v18 = vld [vmem:[%s7453_s10 + $0xcc] sm:$0xe]  ;;  %v2598_v39 = vrot.slane %v2596_v4, 5 }
 0x1bd   : > { %6288 = vmatmul.mubr.msk.bf16.gmra.mrb[12].mxu1 %vm827_vm3, %v6895_v0  ;;  %6455 = vmatprep.mubr.msk.bf16.mxu0 %vm827_vm3, %v5926_v53  ;;  %v5622_v0 = vld [vmem:[%s7453_s10 + $0x6c] sm:$0xf]  ;;  %v4596_v53 = vrot.slane %v4594_v13, 4  ;;  %v5925_v52 = vrot.slane %v5909_v18, 9  ;;  %v2434_v18 = vrot.slane %v2432_v57, 4 }
 0x1be   : > { %6291 = vmatprep.mubr.msk.bf16.mxu1 %vm827_vm3, %v6896_v14  ;;  %v5913_v14 = vrot.slane %v5897_v12, 9  ;;  %v2419_v63 = vshrl.u32 %v5622_v0, 16  ;;  %v2422_v30 = vshll.u32 %v5622_v0, 16  ;;  %v2430_v0 = vrot.slane %v2428_v43, 5  ;;  %v6901_v43 = vld [vmem:[%s7453_s10 + $0xa8] sm:$0xff]  }
 0x1bf   : > { %v4598_v32 = vsel %vm7706_vm6, %v4596_v53, %v4597_v59  ;;  %v8983_v44 = vsel %vm7706_vm6, %v5925_v52, %v4678_v6  ;;  %v6953_v59 = vld [vmem:[%s7453_s10 + $0x88] sm:$0xf] }
 0x1c0   : > { %v4595_v2 = vsel %vm7706_vm6, %v5913_v14, %v4594_v13  ;;  %v2421_v60 = vrot.slane %v2419_v63, 4  ;;  %v2424_v12 = vrot.slane %v2422_v30, 5  ;;  %v6900_v13 = vld [vmem:[%s7453_s10 + $0x9c] sm:$0xff]   ;;  %v6952_v14 = vld [vmem:[%s7453_s10 + $0x74] sm:$0x1]  ;;  %v2476_v63 = vshll.u32 %v6953_v59, 16 }
 0x1c1   : > { %v5929_v56 = vcombine.low %v4595_v2, %v4598_v32  ;;  %v2438_v53 = vshll.u32 %v6952_v14, 16  ;;  %v2480_v30 = vshrl.u32 %v6953_v59, 16  ;;  %v5634_v32 = vld [vmem:[%s7453_s10 + $0x9c] sm:$0xf]  ;;  %v6955_v14 = vld [vmem:[%s7453_s10 + $0xa0] sm:$0xf] }
 0x1c3   : > { %v2440_v6 = vrot.slane %v2438_v53, 5  ;;  %v2528_v53 = vshrl.u32 %v6955_v14, 16 }
 0x1c4   : > { %6456 = vmatmul.mubr.msk.bf16.vlgmr.msra.gmra.mrb[0].mxu0 %vm827_vm3, %v5927_v3  ;;  %v5628_v3 = vld [vmem:[%s7453_s10 + $0x84] sm:$0xf] }
 0x1c5   : > { %6292 = vmatmul.mubr.msk.bf16.gmra.mrb[16].mxu1 %vm827_vm3, %v6897_v21  ;;  %6459 = vmatprep.mubr.msk.bf16.mxu0 %vm827_vm3, %v5928_v40  ;;  %v8988_v21 = vsel %vm7706_vm6, %v4680_v20, %v4681_v23  ;;  %v2435_v40 = vor.u32 %v2434_v18, %v2430_v0  ;;  %v2467_v54 = vshrl.u32 %v5628_v3, 16  ;;  %v2470_v29 = vshll.u32 %v5628_v3, 16 }
 0x1c6   : > { %6295 = vmatprep.mubr.msk.bf16.mxu1 %vm827_vm3, %v6898_v8  ;;  %v5941_v11 = vcombine.low %v8983_v44, %v8988_v21  ;;  %v2425_v8 = vor.u32 %v2424_v12, %v2421_v60  ;;  %v6902_v60 = vld [vmem:[%s7453_s10 + $0xb4] sm:$0xff]   ;;  %v9007_v12 = vrot.slane %v2476_v63, 5  ;;  %v2482_v20 = vrot.slane %v2480_v30, 4 }
 0x1c7   : > { %v2436_v57 = vrot.slane %v2435_v40, 4  ;;  %v2469_v23 = vrot.slane %v2467_v54, 4  ;;  %v2472_v2 = vrot.slane %v2470_v29, 5  ;;  %v2518_v3 = vshll.u32 %v5634_v32, 16 }
 0x1c8   : > { %v2426_v52 = vrot.slane %v2425_v8, 4  ;;  %v2483_v47 = vor.u32 %v2482_v20, %v9007_v12  ;;  %v2493_v54 = vrot.slane %v2491_v51, 4  ;;  %v2496_v29 = vrot.slane %v2494_v24, 5  ;;  %v6958_v24 = vld [vmem:[%s7453_s10 + $0xa4] sm:$0x1] }
 0x1c9   : > { %v2441_v8 = vsel %vm7491_vm2, %v2436_v57, %v2440_v6  ;;  %v2473_v40 = vor.u32 %v2472_v2, %v2469_v23  ;;  %v5637_v57 = vld [vmem:[%s7453_s10 + $0xa8] sm:$0xf] }
 0x1ca   : > { %v2484_v6 = vrot.slane %v2483_v47, 4  ;;  %v2497_v2 = vor.u32 %v2496_v29, %v2493_v54  ;;  %v6960_v47 = vld [vmem:[%s7453_s10 + $0xb8] sm:$0xf] }
 0x1cb   : > { %v2474_v26 = vrot.slane %v2473_v40, 4 }
 0x1cc   : > { %6460 = vmatmul.mubr.msk.bf16.gmra.mrb[4].mxu0 %vm827_vm3, %v5929_v56  ;;  %v2498_v1 = vrot.slane %v2497_v2, 4 }
 0x1cd   : > { %6296 = vmatmul.mubr.msk.bf16.gmra.mrb[20].mxu1 %vm827_vm3, %v6899_v62  ;;  %6463 = vmatprep.mubr.msk.bf16.mxu0 %vm827_vm3, %v5930_v38  ;;  %v2431_v38 = vsel %vm7491_vm2, %v2426_v52, %v2430_v0  ;;  %v6954_v62 = vld [vmem:[%s7453_s10 + $0x94] sm:$0xf]  ;;  %v2524_v0 = vshll.u32 %v6955_v14, 16  ;;  %v2520_v52 = vrot.slane %v2518_v3, 5  ;;  %v6959_v3 = vld [vmem:[%s7453_s10 + $0xac] sm:$0xf]  ;;  %v2479_v14 = vsel %vm7491_vm2, %v2474_v26, %v9007_v12 }
 0x1ce   : > { %6299 = vmatprep.mubr.msk.bf16.mxu1 %vm827_vm3, %v6900_v13  ;;  %v2500_v56 = vshll.u32 %v6954_v62, 16  ;;  %v2504_v18 = vshrl.u32 %v6954_v62, 16  ;;  %v2515_v13 = vshrl.u32 %v5634_v32, 16  ;;  %v6957_v32 = vld [vmem:[%s7453_s10 + $0x98] sm:$0x1]  ;;  %v2534_v62 = vshll.u32 %v6958_v24, 16 }
 0x1cf   : > { %v9030_v42 = vrot.slane %v2524_v0, 5  ;;  %v2552_v40 = vshrl.u32 %v6959_v3, 16  ;;  %v2600_v24 = vshrl.u32 %v6962_v35, 16 }
 0x1d0   : > { %v9027_v59 = vrot.slane %v2500_v56, 5  ;;  %v2506_v63 = vrot.slane %v2504_v18, 4  ;;  %v2517_v30 = vrot.slane %v2515_v13, 4  ;;  %v2539_v56 = vshrl.u32 %v5637_v57, 16  ;;  %v5640_v18 = vld [vmem:[%s7453_s10 + $0xb4] sm:$0xf] }
 0x1d1   : > { %v2542_v13 = vshll.u32 %v5637_v57, 16  ;;  %v2563_v0 = vshrl.u32 %v5640_v18, 16  ;;  %v2536_v48 = vrot.slane %v2534_v62, 5  ;;  %v2554_v12 = vrot.slane %v2552_v40, 4  ;;  %v5643_v57 = vld [vmem:[%s7453_s10 + $0xc0] sm:$0xf] }
 0x1d2   : > { %v2507_v20 = vor.u32 %v2506_v63, %v9027_v59  ;;  %v2521_v51 = vor.u32 %v2520_v52, %v2517_v30  ;;  %v2541_v49 = vrot.slane %v2539_v56, 4  ;;  %v6963_v56 = vld [vmem:[%s7453_s10 + $0xbc] sm:$0x1]  ;;  %v2602_v61 = vrot.slane %v2600_v24, 4  ;;  %v5029_v24 = vld [vmem:[%s7467_s23 + $0x8] sm:$0xff] }
 0x1d3   : > { %v2544_v63 = vrot.slane %v2542_v13, 5 }
 0x1d4   : > { %6464 = vmatmul.mubr.msk.bf16.gmra.mrb[8].mxu0 %vm827_vm3, %v5931_v15  ;;  %v2486_v15 = vshll.u32 %v6956_v19, 16  ;;  %v2572_v19 = vshll.u32 %v6960_v47, 16  ;;  %v2508_v54 = vrot.slane %v2507_v20, 4  ;;  %v2522_v29 = vrot.slane %v2521_v51, 4  ;;  %v6961_v20 = vld [vmem:[%s7453_s10 + $0xb0] sm:$0x1] }
 0x1d5   : > { %6300 = vmatmul.mubr.msk.bf16.gmra.mrb[24].mxu1 %vm827_vm3, %v6901_v43  ;;  %6467 = vmatprep.mubr.msk.bf16.mxu0 %vm827_vm3, %v5932_v45  ;;  %v5654_v43 = vcombine.low %v2431_v38, %v2441_v8  ;;  %v2530_v45 = vrot.slane %v2528_v53, 4  ;;  %v2548_v8 = vshll.u32 %v6959_v3, 16  ;;  %v2566_v53 = vshll.u32 %v5640_v18, 16 }
 0x1d6   : > { %6303 = vmatprep.mubr.msk.bf16.mxu1 %vm827_vm3, %v6902_v60  ;;  %v2488_v23 = vrot.slane %v2486_v15, 5  ;;  %v2510_v60 = vshll.u32 %v6957_v32, 16  ;;  %v2576_v15 = vshrl.u32 %v6960_v47, 16  ;;  %v2574_v26 = vrot.slane %v2572_v19, 5 }
 0x1d7   : > { %v2531_v38 = vor.u32 %v2530_v45, %v9030_v42  ;;  %v2550_v30 = vrot.slane %v2548_v8, 5  ;;  %v2527_v2 = vsel %vm7491_vm2, %v2522_v29, %v9030_v42  ;;  %v2558_v51 = vshll.u32 %v6961_v20, 16 }
 0x1d8   : > { %v2489_v50 = vsel %vm7491_vm2, %v2484_v6, %v2488_v23  ;;  %v2578_v45 = vrot.slane %v2576_v15, 4  ;;  %v2503_v6 = vsel %vm7491_vm2, %v2498_v1, %v9027_v59  ;;  %v2545_v59 = vor.u32 %v2544_v63, %v2541_v49  ;;  %v6964_v15 = vld [vmem:[%s7453_s10 + $0xc8] sm:$0x1] }
 0x1d9   : > { %v5656_v52 = vcombine.low %v2479_v14, %v2489_v50  ;;  %v2590_v42 = vshll.u32 %v5643_v57, 16  ;;  %v2582_v18 = vshll.u32 %v6963_v56, 16  ;;  %v2560_v40 = vrot.slane %v2558_v51, 5  ;;  %v5031_v51 = vld [vmem:[%s7467_s23 + $0x18] sm:$0xff] }
 0x1da   : > { %v2579_v62 = vor.u32 %v2578_v45, %v2574_v26  ;;  %v2546_v3 = vrot.slane %v2545_v59, 4  ;;  %v2603_v19 = vor.u32 %v2602_v61, %v2598_v39  ;;  %v9136_v45 = vld [vmem:[#allocation9] ss:$0 sm:$0xff]  ;;  %v9142_v59 = vstv %s5961_s16 }
 0x1db   : > { %v2592_v50 = vrot.slane %v2590_v42, 5 }
 0x1dc   : > { %6468 = vmatmul.mubr.msk.bf16.gmra.mrb[12].mxu0 %vm827_vm3, %v5933_v33  ;;  %v2512_v33 = vrot.slane %v2510_v60, 5  ;;  %v2555_v60 = vor.u32 %v2554_v12, %v2550_v30  ;;  %v2580_v1 = vrot.slane %v2579_v62, 4  ;;  %v2604_v49 = vrot.slane %v2603_v19, 4  ;;  %v5032_v19 = vld [vmem:[%s7467_s23 + $0x20] sm:$0xff] }
 0x1dd   : > { %6304 = vmatmul.mubr.msk.bf16.gmra.mrb[28].mxu1 %vm827_vm3, %v6903_v27  ;;  %6471 = vmatprep.mubr.msk.bf16.mxu0 %vm827_vm3, %v5934_v10  ;;  %v2532_v10 = vrot.slane %v2531_v38, 4  ;;  %v2565_v27 = vrot.slane %v2563_v0, 4  ;;  %v2551_v0 = vsel %vm7491_vm2, %v2546_v3, %v2550_v30 }
 0x1de   : > { %6327 = vmatprep.mubr.msk.bf16.mxu1 %vm827_vm3, %v5654_v43  ;;  %v2568_v43 = vrot.slane %v2566_v53, 5  ;;  %v2513_v23 = vsel %vm7491_vm2, %v2508_v54, %v2512_v33  ;;  %v2556_v8 = vrot.slane %v2555_v60, 4  ;;  %v2584_v33 = vrot.slane %v2582_v18, 5 }
 0x1df   : > { %v2537_v32 = vsel %vm7491_vm2, %v2532_v10, %v2536_v48  ;;  %v5657_v38 = vcombine.low %v2503_v6, %v2513_v23  ;;  %v2606_v54 = vshll.u32 %v6964_v15, 16  ;;  %v9139_v6 = vstv %s5060_s29 }
 0x1e0   : > { %v5658_v13 = vcombine.low %v2527_v2, %v2537_v32  ;;  %v2561_v53 = vsel %vm7491_vm2, %v2556_v8, %v2560_v40  ;;  %v2585_v55 = vsel %vm7491_vm2, %v2580_v1, %v2584_v33  ;;  %v5028_v32 = vld [vmem:[%s7467_s23] sm:$0xff]  ;;  %v5063_v40 = vmul.f32 %v9139_v6, %v5029_v24  ;;  %v5034_v1 = vld [vmem:[%s7467_s23 + $0x30] sm:$0xff] }
 0x1e1   : > { %v2608_v5 = vrot.slane %v2606_v54, 5  ;;  %v5062_v62 = vmul.f32 %v9139_v6, %v5028_v32 }
 0x1e4   : > { %6472 = vmatmul.mubr.msk.bf16.gmra.mrb[16].mxu0 %vm827_vm3, %v5935_v9  ;;  %v2569_v9 = vor.u32 %v2568_v43, %v2565_v27 }
 0x1e5   : > { %6328 = vmatmul.mubr.msk.bf16.vlgmr.msra.gmra.mrb[16].mxu1 %vm827_vm3, %v8836_v36  ;;  %6475 = vmatprep.mubr.msk.bf16.mxu0 %vm827_vm3, %v5936_v17  ;;  %v2587_v36 = vshrl.u32 %v5643_v57, 16  ;;  %v5030_v57 = vld [vmem:[%s7467_s23 + $0x10] sm:$0xff] }
 0x1e6   : > { %6331 = vmatprep.mubr.msk.bf16.mxu1 %vm827_vm3, %v5656_v52  ;;  %v2570_v17 = vrot.slane %v2569_v9, 4  ;;  %v5064_v42 = vmul.f32 %v9139_v6, %v5030_v57 }
 0x1e7   : > { %v2589_v14 = vrot.slane %v2587_v36, 4 }
 0x1e8   : > { %v2575_v16 = vsel %vm7491_vm2, %v2570_v17, %v2574_v26 }
 0x1e9   : > { %v2593_v47 = vor.u32 %v2592_v50, %v2589_v14  ;;  %v5660_v29 = vcombine.low %v2575_v16, %v2585_v55 }
 0x1eb   : > { %v2594_v48 = vrot.slane %v2593_v47, 4 }
 0x1ec   : > { %6476 = vmatmul.mubr.msk.bf16.gmra.mrb[20].mxu0 %vm827_vm3, %v5937_v41  ;;  %v5659_v41 = vcombine.low %v2551_v0, %v2561_v53 }
 0x1ed   : > { %6332 = vmatmul.mubr.msk.bf16.gmra.mrb[20].mxu1 %vm827_vm3, %v5657_v38  ;;  %6479 = vmatprep.mubr.msk.bf16.mxu0 %vm827_vm3, %v5938_v58  ;;  %v2599_v22 = vsel %vm7491_vm2, %v2594_v48, %v2598_v39  ;;  %v2609_v58 = vsel %vm7491_vm2, %v2604_v49, %v2608_v5  ;;  %v5068_v49 = vmul.f32 %v9139_v6, %v5034_v1 }
 0x1ee   : > { %6335 = vmatprep.mubr.msk.bf16.mxu1 %vm827_vm3, %v5658_v13  ;;  %v5661_v10 = vcombine.low %v2599_v22, %v2609_v58  ;;  %v5065_v13 = vmul.f32 %v9139_v6, %v5031_v51  ;;  %v5033_v58 = vld [vmem:[%s7467_s23 + $0x28] sm:$0xff] }
 0x1ef   : > { %v5067_v57 = vmul.f32 %v9139_v6, %v5033_v58 }
 0x1f4   : > { %6480 = vmatmul.mubr.msk.bf16.gmra.mrb[24].mxu0 %vm827_vm3, %v5939_v37 }
 0x1f5   : > { %6336 = vmatmul.mubr.msk.bf16.gmra.mrb[24].mxu1 %vm827_vm3, %v5659_v41  ;;  %6483 = vmatprep.mubr.msk.bf16.mxu0 %vm827_vm3, %v5940_v31  ;;  %v5035_v41 = vld [vmem:[%s7467_s23 + $0x38] sm:$0xff] }
 0x1f6   : > { %6339 = vmatprep.mubr.msk.bf16.mxu1 %vm827_vm3, %v5660_v29 }
 0x1fc   : > { %6484 = vmatmul.mubr.msk.bf16.gmra.mrb[28].mxu0 %vm827_vm3, %v5941_v11 }
 0x1fd   : > { %6340 = vmatmul.mubr.msk.bf16.gmra.mrb[28].mxu1 %vm827_vm3, %v5661_v10 }
 0x278   : > { %v6277_v7 = vpop.f32.mrb[0].mxu1 }
 0x279   : > { %v2019_v34 = vpop.f32.mrb[1].mxu1 }
 0x27a   : > { %v6278_v37 = vpop.f32.mrb[2].mxu1 }
 0x27b   : > { %v2022_v46 = vpop.f32.mrb[3].mxu1 }
 0x280   : > { %v6281_v28 = vpop.f32.mrb[4].mxu1 }
 0x281   : > { %v2035_v31 = vpop.f32.mrb[5].mxu1 }
 0x282   : > { %v6282_v63 = vpop.f32.mrb[6].mxu1 }
 0x283   : > { %v9118_v30 = vpop.f32.mrb[7].mxu1 }
 0x288   : > { %v9120_v25 = vpop.f32.mrb[8].mxu1 }
 0x289   : > { %v9122_v12 = vpop.f32.mrb[9].mxu1 }
 0x28a   : > { %v9124_v52 = vpop.f32.mrb[10].mxu1 }
 0x28b   : > { %v9126_v44 = vpop.f32.mrb[11].mxu1 }
 0x290   : > { %v9128_v21 = vpop.f32.mrb[12].mxu1 }
 0x291   : > { %v9130_v11 = vpop.f32.mrb[13].mxu1 }
 0x292   : > { %v9132_v27 = vpop.f32.mrb[14].mxu1 }
 0x293   : > { %v9134_v43 = vpop.f32.mrb[15].mxu1 }
 0x297   : > { %v6457_v26 = vpop.f32.mrb[0].mxu0 }
 0x298   : > { %v6491_v23 = vadd.f32 %v6457_v26, %v6277_v7  ;;  %v4830_v2 = vpop.f32.mrb[1].mxu0 }
 0x299   : > { %v6492_v60 = vadd.f32 %v4830_v2, %v2019_v34  ;;  %v6458_v20 = vpop.f32.mrb[2].mxu0  ;;  %v5066_v34 = vmul.f32 %v9139_v6, %v5032_v19 }
 0x29a   : > { %v4998_v36 = vadd.f32 %v6491_v23, %v9136_v45  ;;  %v6493_v35 = vadd.f32 %v6458_v20, %v6278_v37  ;;  %v4833_v4 = vpop.f32.mrb[3].mxu0  ;;  %v5038_v20 = vld [vmem:[%s7467_s23 + $0x50] sm:$0xff] }
 0x29b   : > { %v4996_v9 = vadd.f32 %v6492_v60, %v9136_v45  ;;  %v6494_v56 = vadd.f32 %v4833_v4, %v2022_v46  ;;  %v5036_v4 = vld [vmem:[%s7467_s23 + $0x40] sm:$0xff] }
 0x29c   : > { %v5098_v18 = vmul.f32 %v9142_v59, %v4998_v36  ;;  %v4999_v38 = vadd.f32 %v6493_v35, %v9136_v45 }
 0x29d   : > { %v5096_v3 = vmul.f32 %v9142_v59, %v4996_v9  ;;  %v4997_v8 = vadd.f32 %v6494_v56, %v9136_v45 }
 0x29e   : > { %v5130_v14 = vsub.f32 %v5064_v42, %v5098_v18  ;;  %v5099_v50 = vmul.f32 %v9142_v59, %v4999_v38  ;;  %v5039_v18 = vld [vmem:[%s7467_s23 + $0x58] sm:$0xff] }
 0x29f   : > { %v5128_v39 = vsub.f32 %v5062_v62, %v5096_v3  ;;  %v5097_v61 = vmul.f32 %v9142_v59, %v4997_v8  ;;  %v6461_v17 = vpop.f32.mrb[4].mxu0  ;;  %v5072_v3 = vmul.f32 %v9139_v6, %v5038_v20 }
 0x2a0   : > { %v5964_v33 = vclamps-f32 %v5130_v14, 1.0  ;;  %v5131_v0 = vsub.f32 %v5065_v13, %v5099_v50  ;;  %v6495_v53 = vadd.f32 %v6461_v17, %v6281_v28  ;;  %v4846_v47 = vpop.f32.mrb[5].mxu0 }
 0x2a1   : > { %v5962_v15 = vclamps-f32 %v5128_v39, 1.0  ;;  %v5129_v54 = vsub.f32 %v5063_v40, %v5097_v61  ;;  %v6496_v16 = vadd.f32 %v4846_v47, %v2035_v31  ;;  %v6462_v55 = vpop.f32.mrb[6].mxu0  ;;  %v5069_v31 = vmul.f32 %v9139_v6, %v5035_v41  ;;  %v5037_v40 = vld [vmem:[%s7467_s23 + $0x48] sm:$0xff] }
 0x2a2   : > { %5227 = vst.msk [vmem:[%s9163_s24 + $0x10] sm:$0xff] %vm5224_vm7, %v5964_v33  ;;  %v5965_v29 = vclamps-f32 %v5131_v0, 1.0  ;;  %v5002_v48 = vadd.f32 %v6495_v53, %v9136_v45  ;;  %v6497_v5 = vadd.f32 %v6462_v55, %v6282_v63  ;;  %v4849_v22 = vpop.f32.mrb[7].mxu0  ;;  %v5071_v0 = vmul.f32 %v9139_v6, %v5037_v40  ;;  %v5047_v40 = vld [vmem:[%s7467_s23 + $0x98] sm:$0xff] }
 0x2a3   : > { %5225 = vst.msk [vmem:[%s9163_s24] sm:$0xff] %vm5224_vm7, %v5962_v15  ;;  %v5963_v10 = vclamps-f32 %v5129_v54, 1.0  ;;  %v5000_v7 = vadd.f32 %v6496_v16, %v9136_v45  ;;  %v6498_v37 = vadd.f32 %v4849_v22, %v9118_v30  ;;  %v5042_v54 = vld [vmem:[%s7467_s23 + $0x70] sm:$0xff] }
 0x2a4   : > { %5228 = vst.msk [vmem:[%s9163_s24 + $0x18] sm:$0xff] %vm5224_vm7, %v5965_v29  ;;  %v5102_v46 = vmul.f32 %v9142_v59, %v5002_v48  ;;  %v5003_v28 = vadd.f32 %v6497_v5, %v9136_v45  ;;  %v5040_v48 = vld [vmem:[%s7467_s23 + $0x60] sm:$0xff] }
 0x2a5   : > { %5226 = vst.msk [vmem:[%s9163_s24 + $0x8] sm:$0xff] %vm5224_vm7, %v5963_v10  ;;  %v5100_v63 = vmul.f32 %v9142_v59, %v5000_v7  ;;  %v5001_v26 = vadd.f32 %v6498_v37, %v9136_v45  ;;  %v5043_v10 = vld [vmem:[%s7467_s23 + $0x78] sm:$0xff]  ;;  %v5076_v37 = vmul.f32 %v9139_v6, %v5042_v54 }
 0x2a6   : > { %v5134_v23 = vsub.f32 %v5068_v49, %v5102_v46  ;;  %v5103_v30 = vmul.f32 %v9142_v59, %v5003_v28  ;;  %v5041_v28 = vld [vmem:[%s7467_s23 + $0x68] sm:$0xff] }
 0x2a7   : > { %v5132_v2 = vsub.f32 %v5066_v34, %v5100_v63  ;;  %v5101_v32 = vmul.f32 %v9142_v59, %v5001_v26  ;;  %v6465_v60 = vpop.f32.mrb[8].mxu0 }
 0x2a8   : > { %v5968_v51 = vclamps-f32 %v5134_v23, 1.0  ;;  %v5135_v36 = vsub.f32 %v5069_v31, %v5103_v30  ;;  %v6499_v42 = vadd.f32 %v6465_v60, %v9120_v25  ;;  %v4862_v35 = vpop.f32.mrb[9].mxu0 }
 0x2a9   : > { %v5966_v24 = vclamps-f32 %v5132_v2, 1.0  ;;  %v5133_v9 = vsub.f32 %v5067_v57, %v5101_v32  ;;  %v6500_v62 = vadd.f32 %v4862_v35, %v9122_v12  ;;  %v6466_v56 = vpop.f32.mrb[10].mxu0  ;;  %v5070_v12 = vmul.f32 %v9139_v6, %v5036_v4  ;;  %v5046_v35 = vld [vmem:[%s7467_s23 + $0x90] sm:$0xff] }
 0x2aa   : > { %5231 = vst.msk [vmem:[%s9163_s24 + $0x30] sm:$0xff] %vm5224_vm7, %v5968_v51  ;;  %v5969_v38 = vclamps-f32 %v5135_v36, 1.0  ;;  %v5006_v13 = vadd.f32 %v6499_v42, %v9136_v45  ;;  %v6501_v8 = vadd.f32 %v6466_v56, %v9124_v52  ;;  %v4865_v25 = vpop.f32.mrb[11].mxu0  ;;  %v5073_v52 = vmul.f32 %v9139_v6, %v5039_v18  ;;  %v5044_v18 = vld [vmem:[%s7467_s23 + $0x80] sm:$0xff] }
 0x2ab   : > { %5229 = vst.msk [vmem:[%s9163_s24 + $0x20] sm:$0xff] %vm5224_vm7, %v5966_v24  ;;  %v5967_v14 = vclamps-f32 %v5133_v9, 1.0  ;;  %v5004_v50 = vadd.f32 %v6500_v62, %v9136_v45  ;;  %v6502_v39 = vadd.f32 %v4865_v25, %v9126_v44  ;;  %v5075_v32 = vmul.f32 %v9139_v6, %v5041_v28 }
 0x2ac   : > { %5232 = vst.msk [vmem:[%s9163_s24 + $0x38] sm:$0xff] %vm5224_vm7, %v5969_v38  ;;  %v5106_v61 = vmul.f32 %v9142_v59, %v5006_v13  ;;  %v5007_v17 = vadd.f32 %v6501_v8, %v9136_v45 }
 0x2ad   : > { %5230 = vst.msk [vmem:[%s9163_s24 + $0x28] sm:$0xff] %vm5224_vm7, %v5967_v14  ;;  %v5104_v1 = vmul.f32 %v9142_v59, %v5004_v50  ;;  %v5005_v33 = vadd.f32 %v6502_v39, %v9136_v45 }
 0x2ae   : > { %v5138_v53 = vsub.f32 %v5072_v3, %v5106_v61  ;;  %v5107_v44 = vmul.f32 %v9142_v59, %v5007_v17 }
 0x2af   : > { %v5136_v47 = vsub.f32 %v5070_v12, %v5104_v1  ;;  %v5105_v19 = vmul.f32 %v9142_v59, %v5005_v33  ;;  %v6469_v15 = vpop.f32.mrb[12].mxu0  ;;  %v5080_v12 = vmul.f32 %v9139_v6, %v5046_v35 }
 0x2b0   : > { %v5972_v16 = vclamps-f32 %v5138_v53, 1.0  ;;  %v5139_v55 = vsub.f32 %v5073_v52, %v5107_v44  ;;  %v6503_v41 = vadd.f32 %v6469_v15, %v9128_v21  ;;  %v4878_v29 = vpop.f32.mrb[13].mxu0  ;;  %v5045_v52 = vld [vmem:[%s7467_s23 + $0x88] sm:$0xff] }
 0x2b1   : > { %v5970_v49 = vclamps-f32 %v5136_v47, 1.0  ;;  %v5137_v5 = vsub.f32 %v5071_v0, %v5105_v19  ;;  %v6504_v22 = vadd.f32 %v4878_v29, %v9130_v11  ;;  %v6470_v58 = vpop.f32.mrb[14].mxu0  ;;  %v5074_v11 = vmul.f32 %v9139_v6, %v5040_v48 }
 0x2b2   : > { %5235 = vst.msk [vmem:[%s9163_s24 + $0x50] sm:$0xff] %vm5224_vm7, %v5972_v16  ;;  %v5973_v7 = vclamps-f32 %v5139_v55, 1.0  ;;  %v5010_v34 = vadd.f32 %v6503_v41, %v9136_v45  ;;  %v6505_v46 = vadd.f32 %v6470_v58, %v9132_v27  ;;  %v4881_v21 = vpop.f32.mrb[15].mxu0  ;;  %v5077_v27 = vmul.f32 %v9139_v6, %v5043_v10 }
 0x2b3   : > { %5233 = vst.msk [vmem:[%s9163_s24 + $0x40] sm:$0xff] %vm5224_vm7, %v5970_v49  ;;  %v5971_v31 = vclamps-f32 %v5137_v5, 1.0  ;;  %v5008_v63 = vadd.f32 %v6504_v22, %v9136_v45  ;;  %v6506_v26 = vadd.f32 %v4881_v21, %v9134_v43  ;;  %v5078_v0 = vmul.f32 %v9139_v6, %v5044_v18  ;;  %v5050_v22 = vld [vmem:[%s7467_s23 + $0xb0] sm:$0xff] }
 0x2b4   : > { %5236 = vst.msk [vmem:[%s9163_s24 + $0x58] sm:$0xff] %vm5224_vm7, %v5973_v7  ;;  %v5110_v57 = vmul.f32 %v9142_v59, %v5010_v34  ;;  %v5011_v23 = vadd.f32 %v6505_v46, %v9136_v45  ;;  %v5081_v19 = vmul.f32 %v9139_v6, %v5047_v40  ;;  %v5079_v16 = vmul.f32 %v9139_v6, %v5045_v52  ;;  %v5048_v46 = vld [vmem:[%s7467_s23 + $0xa0] sm:$0xff] }
 0x2b5   : > { %5234 = vst.msk [vmem:[%s9163_s24 + $0x48] sm:$0xff] %vm5224_vm7, %v5971_v31  ;;  %v5108_v30 = vmul.f32 %v9142_v59, %v5008_v63  ;;  %v5009_v2 = vadd.f32 %v6506_v26, %v9136_v45  ;;  %v5051_v26 = vld [vmem:[%s7467_s23 + $0xb8] sm:$0xff] }
 0x2b6   : > { %v5142_v60 = vsub.f32 %v5076_v37, %v5110_v57  ;;  %v5111_v43 = vmul.f32 %v9142_v59, %v5011_v23 }
 0x2b7   : > { %v5140_v20 = vsub.f32 %v5074_v11, %v5108_v30  ;;  %v5109_v51 = vmul.f32 %v9142_v59, %v5009_v2  ;;  %v6473_v42 = vpop.f32.mrb[16].mxu0 }
 0x2b8   : > { %v6329_v36 = vpop.f32.mrb[16].mxu1  ;;  %v5976_v4 = vclamps-f32 %v5142_v60, 1.0  ;;  %v5143_v24 = vsub.f32 %v5077_v27, %v5111_v43  ;;  %v4894_v56 = vpop.f32.mrb[17].mxu0  ;;  %v5084_v27 = vmul.f32 %v9139_v6, %v5050_v22  ;;  %v5049_v60 = vld [vmem:[%s7467_s23 + $0xa8] sm:$0xff] }
 0x2b9   : > { %v6507_v9 = vadd.f32 %v6473_v42, %v6329_v36  ;;  %v2821_v62 = vpop.f32.mrb[17].mxu1  ;;  %v5974_v38 = vclamps-f32 %v5140_v20, 1.0  ;;  %v5141_v13 = vsub.f32 %v5075_v32, %v5109_v51  ;;  %v6474_v25 = vpop.f32.mrb[18].mxu0  ;;  %v5082_v51 = vmul.f32 %v9139_v6, %v5048_v46 }
 0x2ba   : > { %v6508_v3 = vadd.f32 %v4894_v56, %v2821_v62  ;;  %v6330_v8 = vpop.f32.mrb[18].mxu1  ;;  %5239 = vst.msk [vmem:[%s9163_s24 + $0x70] sm:$0xff] %vm5224_vm7, %v5976_v4  ;;  %v5977_v14 = vclamps-f32 %v5143_v24, 1.0  ;;  %v4897_v17 = vpop.f32.mrb[19].mxu0  ;;  %v5085_v4 = vmul.f32 %v9139_v6, %v5051_v26  ;;  %v5083_v62 = vmul.f32 %v9139_v6, %v5049_v60 }
 0x2bb   : > { %v5014_v50 = vadd.f32 %v6507_v9, %v9136_v45  ;;  %v6509_v39 = vadd.f32 %v6474_v25, %v6330_v8  ;;  %v2824_v61 = vpop.f32.mrb[19].mxu1  ;;  %5237 = vst.msk [vmem:[%s9163_s24 + $0x60] sm:$0xff] %vm5224_vm7, %v5974_v38  ;;  %v5975_v1 = vclamps-f32 %v5141_v13, 1.0  ;;  %v5054_v25 = vld [vmem:[%s7467_s23 + $0xd0] sm:$0xff] }
 0x2bc   : > { %v5012_v33 = vadd.f32 %v6508_v3, %v9136_v45  ;;  %v6510_v53 = vadd.f32 %v4897_v17, %v2824_v61  ;;  %5240 = vst.msk [vmem:[%s9163_s24 + $0x78] sm:$0xff] %vm5224_vm7, %v5977_v14  ;;  %v5052_v61 = vld [vmem:[%s7467_s23 + $0xc0] sm:$0xff] }
 0x2bd   : > { %v5114_v44 = vmul.f32 %v9142_v59, %v5014_v50  ;;  %v5015_v47 = vadd.f32 %v6509_v39, %v9136_v45  ;;  %5238 = vst.msk [vmem:[%s9163_s24 + $0x68] sm:$0xff] %vm5224_vm7, %v5975_v1 }
 0x2be   : > { %v5112_v15 = vmul.f32 %v9142_v59, %v5012_v33  ;;  %v5013_v54 = vadd.f32 %v6510_v53, %v9136_v45  ;;  %v5055_v53 = vld [vmem:[%s7467_s23 + $0xd8] sm:$0xff] }
 0x2bf   : > { %v5146_v55 = vsub.f32 %v5080_v12, %v5114_v44  ;;  %v5115_v41 = vmul.f32 %v9142_v59, %v5015_v47  ;;  %v6477_v5 = vpop.f32.mrb[20].mxu0 }
 0x2c0   : > { %v5144_v29 = vsub.f32 %v5078_v0, %v5112_v15  ;;  %v5113_v48 = vmul.f32 %v9142_v59, %v5013_v54  ;;  %v6333_v49 = vpop.f32.mrb[20].mxu1  ;;  %v4910_v37 = vpop.f32.mrb[21].mxu0 }
 0x2c1   : > { %v5980_v58 = vclamps-f32 %v5146_v55, 1.0  ;;  %v5147_v10 = vsub.f32 %v5081_v19, %v5115_v41  ;;  %v6511_v7 = vadd.f32 %v6477_v5, %v6333_v49  ;;  %v2837_v34 = vpop.f32.mrb[21].mxu1  ;;  %v6478_v11 = vpop.f32.mrb[22].mxu0  ;;  %v5088_v19 = vmul.f32 %v9139_v6, %v5054_v25  ;;  %v5053_v55 = vld [vmem:[%s7467_s23 + $0xc8] sm:$0xff] }
 0x2c2   : > { %v5978_v21 = vclamps-f32 %v5144_v29, 1.0  ;;  %v5145_v28 = vsub.f32 %v5079_v16, %v5113_v48  ;;  %v6512_v31 = vadd.f32 %v4910_v37, %v2837_v34  ;;  %v6334_v63 = vpop.f32.mrb[22].mxu1  ;;  %v4913_v32 = vpop.f32.mrb[23].mxu0  ;;  %v5086_v48 = vmul.f32 %v9139_v6, %v5052_v61 }
 0x2c3   : > { %5243 = vst.msk [vmem:[%s9163_s24 + $0x90] sm:$0xff] %vm5224_vm7, %v5980_v58  ;;  %v5981_v57 = vclamps-f32 %v5147_v10, 1.0  ;;  %v5018_v23 = vadd.f32 %v6511_v7, %v9136_v45  ;;  %v6513_v30 = vadd.f32 %v6478_v11, %v6334_v63  ;;  %v2840_v2 = vpop.f32.mrb[23].mxu1  ;;  %v5089_v58 = vmul.f32 %v9139_v6, %v5055_v53  ;;  %v5058_v11 = vld [vmem:[%s7467_s23 + $0xf0] sm:$0xff] }
 0x2c4   : > { %5241 = vst.msk [vmem:[%s9163_s24 + $0x80] sm:$0xff] %vm5224_vm7, %v5978_v21  ;;  %v5979_v43 = vclamps-f32 %v5145_v28, 1.0  ;;  %v5016_v20 = vadd.f32 %v6512_v31, %v9136_v45  ;;  %v6514_v36 = vadd.f32 %v4913_v32, %v2840_v2  ;;  %v5087_v34 = vmul.f32 %v9139_v6, %v5053_v55  ;;  %v5056_v2 = vld [vmem:[%s7467_s23 + $0xe0] sm:$0xff] }
 0x2c5   : > { %5244 = vst.msk [vmem:[%s9163_s24 + $0x98] sm:$0xff] %vm5224_vm7, %v5981_v57  ;;  %v5118_v42 = vmul.f32 %v9142_v59, %v5018_v23  ;;  %v5019_v35 = vadd.f32 %v6513_v30, %v9136_v45 }
 0x2c6   : > { %5242 = vst.msk [vmem:[%s9163_s24 + $0x88] sm:$0xff] %vm5224_vm7, %v5979_v43  ;;  %v5116_v24 = vmul.f32 %v9142_v59, %v5016_v20  ;;  %v5017_v9 = vadd.f32 %v6514_v36, %v9136_v45  ;;  %v5059_v36 = vld [vmem:[%s7467_s23 + $0xf8] sm:$0xff] }
 0x2c7   : > { %v5150_v56 = vsub.f32 %v5084_v27, %v5118_v42  ;;  %v5119_v18 = vmul.f32 %v9142_v59, %v5019_v35  ;;  %v6481_v8 = vpop.f32.mrb[24].mxu0 }
 0x2c8   : > { %v5148_v38 = vsub.f32 %v5082_v51, %v5116_v24  ;;  %v5117_v13 = vmul.f32 %v9142_v59, %v5017_v9  ;;  %v6337_v3 = vpop.f32.mrb[24].mxu1  ;;  %v4926_v39 = vpop.f32.mrb[25].mxu0 }
 0x2c9   : > { %v5984_v40 = vclamps-f32 %v5150_v56, 1.0  ;;  %v5151_v14 = vsub.f32 %v5085_v4, %v5119_v18  ;;  %v6515_v50 = vadd.f32 %v6481_v8, %v6337_v3  ;;  %v2853_v12 = vpop.f32.mrb[25].mxu1  ;;  %v6482_v0 = vpop.f32.mrb[26].mxu0  ;;  %v5092_v4 = vmul.f32 %v9139_v6, %v5058_v11  ;;  %v5057_v56 = vld [vmem:[%s7467_s23 + $0xe8] sm:$0xff] }
 0x2ca   : > { %v5982_v17 = vclamps-f32 %v5148_v38, 1.0  ;;  %v5149_v52 = vsub.f32 %v5083_v62, %v5117_v13  ;;  %v6516_v1 = vadd.f32 %v4926_v39, %v2853_v12  ;;  %v6338_v33 = vpop.f32.mrb[26].mxu1  ;;  %v4929_v16 = vpop.f32.mrb[27].mxu0  ;;  %v5090_v13 = vmul.f32 %v9139_v6, %v5056_v2 }
 0x2cb   : > { %5247 = vst.msk [vmem:[%s9163_s24 + $0xb0] sm:$0xff] %vm5224_vm7, %v5984_v40  ;;  %v5985_v44 = vclamps-f32 %v5151_v14, 1.0  ;;  %v5022_v47 = vadd.f32 %v6515_v50, %v9136_v45  ;;  %v6517_v15 = vadd.f32 %v6482_v0, %v6338_v33  ;;  %v2856_v54 = vpop.f32.mrb[27].mxu1  ;;  %v5093_v40 = vmul.f32 %v9139_v6, %v5059_v36 }
 0x2cc   : > { %5245 = vst.msk [vmem:[%s9163_s24 + $0xa0] sm:$0xff] %vm5224_vm7, %v5982_v17  ;;  %v5983_v41 = vclamps-f32 %v5149_v52, 1.0  ;;  %v5020_v29 = vadd.f32 %v6516_v1, %v9136_v45  ;;  %v6518_v49 = vadd.f32 %v4929_v16, %v2856_v54  ;;  %v5091_v12 = vmul.f32 %v9139_v6, %v5057_v56 }
 0x2cd   : > { %5248 = vst.msk [vmem:[%s9163_s24 + $0xb8] sm:$0xff] %vm5224_vm7, %v5985_v44  ;;  %v5122_v5 = vmul.f32 %v9142_v59, %v5022_v47  ;;  %v5023_v22 = vadd.f32 %v6517_v15, %v9136_v45 }
 0x2ce   : > { %5246 = vst.msk [vmem:[%s9163_s24 + $0xa8] sm:$0xff] %vm5224_vm7, %v5983_v41  ;;  %v5120_v10 = vmul.f32 %v9142_v59, %v5020_v29  ;;  %v5021_v7 = vadd.f32 %v6518_v49, %v9136_v45 }
 0x2cf   : > { %v5154_v37 = vsub.f32 %v5088_v19, %v5122_v5  ;;  %v5123_v46 = vmul.f32 %v9142_v59, %v5023_v22  ;;  %v6485_v63 = vpop.f32.mrb[28].mxu0 }
 0x2d0   : > { %v5152_v21 = vsub.f32 %v5086_v48, %v5120_v10  ;;  %v5121_v28 = vmul.f32 %v9142_v59, %v5021_v7  ;;  %v6341_v31 = vpop.f32.mrb[28].mxu1  ;;  %v4942_v30 = vpop.f32.mrb[29].mxu0 }
 0x2d1   : > { %v5988_v26 = vclamps-f32 %v5154_v37, 1.0  ;;  %v5155_v57 = vsub.f32 %v5089_v58, %v5123_v46  ;;  %v6519_v23 = vadd.f32 %v6485_v63, %v6341_v31  ;;  %v2869_v27 = vpop.f32.mrb[29].mxu1  ;;  %v6486_v51 = vpop.f32.mrb[30].mxu0 }
 0x2d2   : > { %v5986_v32 = vclamps-f32 %v5152_v21, 1.0  ;;  %v5153_v60 = vsub.f32 %v5087_v34, %v5121_v28  ;;  %v6520_v43 = vadd.f32 %v4942_v30, %v2869_v27  ;;  %v6342_v20 = vpop.f32.mrb[30].mxu1  ;;  %v4945_v62 = vpop.f32.mrb[31].mxu0 }
 0x2d3   : > { %5251 = vst.msk [vmem:[%s9163_s24 + $0xd0] sm:$0xff] %vm5224_vm7, %v5988_v26  ;;  %v5989_v42 = vclamps-f32 %v5155_v57, 1.0  ;;  %v5026_v35 = vadd.f32 %v6519_v23, %v9136_v45  ;;  %v6521_v24 = vadd.f32 %v6486_v51, %v6342_v20  ;;  %v2872_v9 = vpop.f32.mrb[31].mxu1 }
 0x2d4   : > { %5249 = vst.msk [vmem:[%s9163_s24 + $0xc0] sm:$0xff] %vm5224_vm7, %v5986_v32  ;;  %v5987_v18 = vclamps-f32 %v5153_v60, 1.0  ;;  %v5024_v38 = vadd.f32 %v6520_v43, %v9136_v45  ;;  %v6522_v3 = vadd.f32 %v4945_v62, %v2872_v9 }
 0x2d5   : > { %5252 = vst.msk [vmem:[%s9163_s24 + $0xd8] sm:$0xff] %vm5224_vm7, %v5989_v42  ;;  %v5126_v8 = vmul.f32 %v9142_v59, %v5026_v35  ;;  %v5027_v25 = vadd.f32 %v6521_v24, %v9136_v45 }
 0x2d6   : > { %5250 = vst.msk [vmem:[%s9163_s24 + $0xc8] sm:$0xff] %vm5224_vm7, %v5987_v18  ;;  %v5124_v14 = vmul.f32 %v9142_v59, %v5024_v38  ;;  %v5025_v50 = vadd.f32 %v6522_v3, %v9136_v45 }
 0x2d7   : > { %v5158_v39 = vsub.f32 %v5092_v4, %v5126_v8  ;;  %v5127_v61 = vmul.f32 %v9142_v59, %v5027_v25 }
 0x2d8   : > { %v5156_v17 = vsub.f32 %v5090_v13, %v5124_v14  ;;  %v5125_v52 = vmul.f32 %v9142_v59, %v5025_v50 }
 0x2d9   : > { %v5992_v1 = vclamps-f32 %v5158_v39, 1.0  ;;  %v5159_v33 = vsub.f32 %v5093_v40, %v5127_v61 }
 0x2da   : > { %v5990_v0 = vclamps-f32 %v5156_v17, 1.0  ;;  %v5157_v53 = vsub.f32 %v5091_v12, %v5125_v52 }
 0x2db   : > { %5255 = vst.msk [vmem:[%s9163_s24 + $0xf0] sm:$0xff] %vm5224_vm7, %v5992_v1  ;;  %v5993_v45 = vclamps-f32 %v5159_v33, 1.0 }
 0x2dc   : > { %5253 = vst.msk [vmem:[%s9163_s24 + $0xe0] sm:$0xff] %vm5224_vm7, %v5990_v0  ;;  %v5991_v6 = vclamps-f32 %v5157_v53, 1.0 }
 0x2dd   : > { %5256 = vst.msk [vmem:[%s9163_s24 + $0xf8] sm:$0xff] %vm5224_vm7, %v5993_v45 }
 0x2de   : > { %5254 = vst.msk [vmem:[%s9163_s24 + $0xe8] sm:$0xff] %vm5224_vm7, %v5991_v6 }
 0x2df   : > { %7107 = shalt.err (!%p7104_p11)
}
 0x2e0   : > { %s7108_s11 = scalar_lea.hbm %s9346_s28, 4096  ;;  %s7112_s7 = scalar_lea.hbm %s9403_s5, 8192 }
 0x2e1   : > { %p7109_p3 = scmp.ne.s32.totalorder %s9346_s28, %s7108_s11  ;;  %p7113_p0 = scmp.lt.u32.totalorder %s9346_s28, %s9403_s5 }
 0x2e2   : > { %p7114_p7 = scmp.lt.u32.totalorder %s7112_s7, %s7108_s11  ;;  %p7116_p2 = scmp.lt.u32.totalorder %s7108_s11, %s9346_s28 }
 0x2e3   : > { %p7110_p5 = pnand %p7109_p3, %p9499_p8 }
 0x2e4   : > { %p7115_p13 = por %p7114_p7, %p7113_p0 }
 0x2e5   : > { %p7111_p12 = pneg %p7110_p5 }
 0x2e6   : > { %p7117_p10 = por %p7116_p2, %p7115_p13 }
 0x2e8   : > { %p7118_p1 = pnand %p7117_p10, %p7111_p12 }
 0x2ea   : > { %7121 = shalt.err (!%p7118_p1)
}
 0x2eb   : > { %s7184_s29 = smov 128   ;;  %s7185_s16 = smov 8  }
 0x2ec   : > { %6766 = dma.vmem_to_hbm [thread:$0]  (%p9499_p8), %s9348_s25, 4096, %s9346_s28, %s5258_s22, %s7184_s29, %s7184_s29, %s7185_s16  }
 0x2ed PF: > { %s9500_s24 = sld [smem:[#allocation20_spill]]  ;;  %s5286_s27 = sand.u32 1, %s7160_s18  }
 0x2ee   : > { %p9502_p4 = scmp.ge.s32.totalorder %s7172_s21, 2  ;;  %s5287_s6 = scalar_lea.sflag [#allocation4], %s5286_s27 }
 0x2f3   : > { %p9501_p9 = scmp.ne.s32.totalorder %s9500_s24, 0 }
 0x2f5   : > { %p6786_p6 = pnand %p9502_p4, %p9501_p9 }
 0x2f7   : > { %7155 = dma.done.wait (!%p6786_p6), %s5287_s6, 4096  }
 0x2f8   : > { %7157 = vsyncadd (!%p6786_p6), %s5287_s6, 4294963200  ;;  %s9503_s21 = sld [smem:[#allocation18_spill]]  ;;  %s9504_s26 = sld [smem:[#allocation19_spill]] }
 0x2f9   : > { %s9505_s18 = smov %s7164_s19  ;;  %s9506_s19 = smov %s7168_s20 }
 0x2fe   : > { %p23_p11 = scmp.ge.s32.totalorder %s9503_s21, 4   ;;  %s9507_s20 = smov %s9504_s26 }
 0x300   :  { %25 = sbr.rel (!%p23_p11) target bundleno = 9 (0x9), region = 121 }
 0x307   :  { %5292 = vsyncpa [#allocation3], 1 }
 0x308   :  { %5294 = vsyncpa [#allocation3 + $0x1], 1 }
 0x309   :  { %5295 = vsyncpa [#allocation8], 1 }
 0x30a   :  { %5296 = vsyncpa [#allocation11], 1 }
 0x30b   :  { %5298 = vsyncpa [#allocation11 + $0x1], 1 }
 0x30c   :  { %5299 = vsyncpa [#allocation4], 1 }
 0x30d   :  { %5301 = vsyncpa [#allocation4 + $0x1], 1 }
 0x30e   :  { %5302 = vsyncpa [#allocation5], 1 }
 0x30f   :  { %5304 = vsyncpa [#allocation5 + $0x1], 1 }

// kernel: _forward_impl.4
= control target key start
LH: loop header
LB: loop body
LE: loop exit
PB: predicated region body
PF: predicated region fallthrough
CT: control target
= control target key end

     0   :  { %8 = vsyncpa [#allocation3], 0  ;;  %s9345_s0 = inlined_call_operand.hbm [shape: bf16[2,18,18,4], index: 0, kind: input, shape index: {}]   ;;  %s9346_s1 = inlined_call_operand.hbm [shape: bf16[9,4,32], index: 1, kind: input, shape index: {}]   ;;  %s9347_s2 = inlined_call_operand.hbm [shape: f32[1,32], index: 2, kind: input, shape index: {}]   ;;  %s9348_s3 = inlined_call_operand.hbm [shape: bf16[2,16,16,32], index: 3, kind: output, shape index: {}]  }
   0x1   :  { %10 = vsyncpa [#allocation3 + $0x1], 0 }
   0x2   :  { %11 = vsyncpa [#allocation6], 0 }
   0x3   :  { %12 = vsyncpa [#allocation4], 0 }
   0x4   :  { %14 = vsyncpa [#allocation4 + $0x1], 0  ;;  %s7169_s12 = smov 0   ;;  %s7171_s13 = smov 0  }
   0x5   :  { %s7173_s14 = smov 0   ;;  %s7175_s15 = smov 0  }
   0x6 LB: > { %s7190_s16 = sadd.s32 4294967295, %s7137_s15   ;;  %s5306_s17 = sadd.s32 4294967294, %s7137_s15   ;;  %s7137_s15 = sphi %s7175_s15, %s9454_s15   ;;  %s7133_s14 = sphi %s7173_s14, %s9453_s14   ;;  %s7129_s13 = sphi %s7171_s13, %s9452_s13   ;;  %s7125_s12 = sphi %s7169_s12, %s9451_s12  }
   0x7   : > { %p40_p0 = scmp.ne.s32.totalorder %s7129_s13, %s7125_s12  ;;  %p9349_p1 = scmp.eq.s32.totalorder %s7190_s16, 0 }
   0x8   : > { %p112_p3 = scmp.eq.s32.totalorder %s5306_s17, 1  ;;  %p5307_p5 = scmp.ge.s32.totalorder %s7137_s15, 1 }
   0x9   : > { %p7199_p4 = por %p9349_p1, %p40_p0  ;;  %p119_p7 = scmp.lt.s32.totalorder %s7137_s15, 3 }
   0xa   : > { %p7204_p6 = por %p112_p3, %p40_p0  ;;  %s7139_s21 = smov [#allocation5]  }
   0xb   : > { %s9371_s18 = scalar_select %p7199_p4, 1, 0 }
   0xc   : > { %s9372_s19 = scalar_select %p7204_p6, 1, 0 }
   0xd   : > { %p7209_p8 = pnand %p5307_p5, %p119_p7  ;;  %s131_s22 = sshll.u32 %s7139_s21, 4  ;;  %s7213_s22 = int_to_ptr.vmem [resolvable:$true] %s131_s22 }
   0xe   : > { %s7140_s24 = smov [#allocation7]   ;;  %s6981_s28 = scalar_lea.hbm %s9346_s1, 288 }
   0xf   : > { %p6689_p9 = pneg %p7209_p8  ;;  %s145_s25 = sshll.u32 %s7140_s24, 4  ;;  %s7224_s25 = int_to_ptr.vmem [resolvable:$true] %s145_s25 }
  0x10   : > { %p6982_p12 = scmp.ne.s32.totalorder %s9346_s1, %s6981_s28  ;;  %p6988_p5 = scmp.lt.u32.totalorder %s6981_s28, %s9346_s1 }
  0x11   : > { %p7220_p11 = pnand %p6689_p9, %p9349_p1 }
  0x13   : > { %p6983_p13 = pneg %p7220_p11 }
  0x15   : > { %p6984_p0 = pnand %p6983_p13, %p6982_p12 }
  0x17   : > { %p6985_p3 = pneg %p6984_p0 }
  0x19   : > { %p6990_p7 = pnand %p6988_p5, %p6985_p3 }
  0x1b   : > { %6993 = shalt.err (!%p6990_p7)
}
  0x1c   : > { %s6994_s6 = scalar_lea.vmem %s7213_s22, 288  ;;  %p7002_p2 = scmp.lt.s32.totalorder %s7213_s22, %s7213_s22 }
  0x1d   : > { %p6995_p9 = scmp.ne.s32.totalorder %s7213_s22, %s6994_s6  ;;  %p7003_p12 = scmp.lt.s32.totalorder %s6994_s6, %s6994_s6 }
  0x1f   : > { %p6997_p10 = pnand %p6995_p9, %p6983_p13  ;;  %p7004_p0 = por %p7003_p12, %p7002_p2 }
  0x21   : > { %p6998_p1 = pneg %p6997_p10 }
  0x23   : > { %p7005_p6 = pnand %p7004_p0, %p6998_p1 }
  0x25   : > { %7008 = shalt.err (!%p7005_p6)
}
  0x26   : > { %s7141_s7 = smov 32   ;;  %s7142_s8 = smov 2  }
  0x27   : > { %6692 = dma.hbm_to_vmem [thread:$0]  (!%p7220_p11), %s9346_s1, 288, %s7213_s22, [#allocation6], %s7141_s7, %s7141_s7, %s7142_s8  }
  0x28   : > { %s7009_s21 = scalar_lea.hbm %s9347_s2, 16 }
  0x29   : > { %p7010_p2 = scmp.ne.s32.totalorder %s9347_s2, %s7009_s21  ;;  %p7016_p10 = scmp.lt.u32.totalorder %s7009_s21, %s9347_s2 }
  0x2b   : > { %p7012_p1 = pnand %p7010_p2, %p6983_p13 }
  0x2d   : > { %p7013_p6 = pneg %p7012_p1 }
  0x2f   : > { %p7018_p3 = pnand %p7016_p10, %p7013_p6 }
  0x31   : > { %7021 = shalt.err (!%p7018_p3)
}
  0x32   : > { %s7022_s22 = scalar_lea.vmem %s7224_s25, 16  ;;  %s7029_s29 = scalar_lea.vmem %s7224_s25, 32 }
  0x33   : > { %p7023_p5 = scmp.ne.s32.totalorder %s7224_s25, %s7022_s22  ;;  %p7030_p12 = scmp.lt.s32.totalorder %s7224_s25, %s7224_s25 }
  0x34   : > { %p7031_p0 = scmp.lt.s32.totalorder %s7029_s29, %s7022_s22 }
  0x35   : > { %p7025_p7 = pnand %p7023_p5, %p6983_p13 }
  0x36   : > { %p7032_p2 = por %p7031_p0, %p7030_p12 }
  0x37   : > { %p7026_p9 = pneg %p7025_p7 }
  0x39   : > { %p7033_p1 = pnand %p7032_p2, %p7026_p9 }
  0x3b   : > { %7036 = shalt.err (!%p7033_p1)
}
  0x3c   : > { %6695 = dma.hbm_to_vmem [thread:$0]  (!%p7220_p11), %s9347_s2, 16, %s7224_s25, [#allocation6]  }
  0x3d   : > { %s7280_s5 = sadd.s32 1, %s7137_s15   ;;  %s27_s23 = sadd.s32 1, %s7133_s14 }
  0x3e   : > { %s24_s6 = ssub.s32 %s7137_s15, %s7280_s5  ;;  %p34_p13 = scmp.ne.s32.totalorder %s7133_s14, %s7129_s13 }
  0x3f   : > { %p25_p6 = scmp.eq.s32.totalorder %s24_s6, 0  ;;  %p35_p10 = scmp.eq.s32.totalorder %s7137_s15, 0 }
  0x40   : > { %p9375_p3 = scmp.eq.s32.totalorder %s7190_s16, 1  ;;  %p6706_p7 = scmp.lt.s32.totalorder %s7137_s15, 2 }
  0x41   : > { %s7296_s8 = scalar_select %p25_p6, %s7133_s14, %s27_s23  }
  0x42   : > { %p7290_p5 = por %p9375_p3, %p34_p13  ;;  %p36_p9 = por %p35_p10, %p34_p13 }
  0x43   : > { %s156_s9 = sand.u32 1, %s7133_s14   ;;  %s6675_s25 = smul.u32 3456, %s7137_s15 }
  0x44   : > { %s9376_s7 = scalar_select %p7290_p5, 1, 0 }
  0x45   : > { %s6674_s10 = smul.u32 216, %s156_s9  ;;  %p7300_p11 = pnand %p6706_p7, %p36_p9 }
  0x46   : > { %s7307_s24 = scalar_lea.hbm %s9345_s0, %s6675_s25  ;;  %s7311_s28 = scalar_lea.sflag [#allocation3], %s156_s9 }
  0x47   : > { %s160_s26 = scalar_lea.vmem [#allocation2], %s6674_s10  ;;  %s7037_s22 = scalar_lea.hbm %s7307_s24, 3456 }
  0x48   : > { %s167_s27 = sshll.u32 %s160_s26, 4  ;;  %p7038_p12 = scmp.ne.s32.totalorder %s7307_s24, %s7037_s22  ;;  %s7309_s27 = int_to_ptr.vmem [resolvable:$true] %s167_s27 }
  0x49   : > { %p7039_p0 = pneg %p7300_p11  ;;  %s7042_s4 = scalar_lea.hbm %s9345_s0, 6912 }
  0x4a   : > { %p7043_p13 = scmp.lt.u32.totalorder %s7307_s24, %s9345_s0  ;;  %p7044_p6 = scmp.lt.u32.totalorder %s7042_s4, %s7037_s22 }
  0x4b   : > { %p7040_p2 = pnand %p7039_p0, %p7038_p12  ;;  %p7046_p3 = scmp.lt.u32.totalorder %s7037_s22, %s7307_s24 }
  0x4c   : > { %p7045_p10 = por %p7044_p6, %p7043_p13 }
  0x4d   : > { %p7041_p1 = pneg %p7040_p2 }
  0x4e   : > { %p7047_p7 = por %p7046_p3, %p7045_p10 }
  0x50   : > { %p7048_p9 = pnand %p7047_p7, %p7041_p1 }
  0x52   : > { %7051 = shalt.err (!%p7048_p9)
}
  0x53   : > { %s7052_s9 = scalar_lea.vmem %s7309_s27, 3456  ;;  %s7143_s10 = smov [#allocation2]  }
  0x54   : > { %p7053_p12 = scmp.ne.s32.totalorder %s7309_s27, %s7052_s9  ;;  %s7057_s25 = sshll.u32 %s7143_s10, 4  ;;  %s7058_s25 = int_to_ptr.vmem [resolvable:$false] %s7057_s25 }
  0x55   : > { %s7059_s17 = scalar_lea.vmem %s7058_s25, 6912  ;;  %p7060_p4 = scmp.lt.s32.totalorder %s7309_s27, %s7058_s25 }
  0x56   : > { %p7055_p2 = pnand %p7053_p12, %p7039_p0  ;;  %p7061_p13 = scmp.lt.s32.totalorder %s7059_s17, %s7052_s9 }
  0x58   : > { %p7056_p5 = pneg %p7055_p2  ;;  %p7062_p6 = por %p7061_p13, %p7060_p4 }
  0x5a   : > { %p7063_p10 = pnand %p7062_p6, %p7056_p5 }
  0x5c   : > { %7066 = shalt.err (!%p7063_p10)
}
  0x5d   : > { %s7144_s21 = smov 64   ;;  %s7145_s26 = smov 4  }
  0x5e   : > { %6699 = dma.hbm_to_vmem [thread:$0]  (!%p7300_p11), %s7307_s24, 3456, %s7309_s27, %s7311_s28, %s7144_s21, %s7144_s21, %s7145_s26  }
  0x5f   : > { %179 = sbr.rel (%p7209_p8) target bundleno = 729 (0x2d9), region = 32 }
  0x66   : > { %s7342_s22 = sand.u32 1, %s7129_s13   ;;  %p9378_p4 = scmp.ne.s32.totalorder %s9371_s18, 0 }
  0x67   : > { %s6676_s29 = smul.u32 216, %s7342_s22  ;;  %s182_s30 = scalar_lea.sflag [#allocation3], %s7342_s22 }
  0x69   : > { %s7346_s4 = scalar_lea.vmem [#allocation2], %s6676_s29 }
  0x6a   : > { %7112 = dma.done.wait (%p9378_p4), %s182_s30, 3456  }
  0x6b   : > { %7114 = vsyncadd (%p9378_p4), %s182_s30, 4294963840  ;;  %p9379_p5 = scmp.eq.s32.totalorder %s7190_s16, 0 }
  0x6d   : > { %7116 = dma.done.wait (%p9379_p5), [#allocation6], 304   ;;  %p9380_p8 = pmov %p9379_p5 }
  0x6e   : > { %vm752_vm0 = vcmask 1041408   ;;  %vm266_vm1 = vsmask.f32 3328  ;;  %vm267_vm2 = vsmask.f32 7440  ;;  %vm703_vm4 = vcmask 31744  }
  0x6f   : > { %7118 = vsyncadd (%p9380_p8), [#allocation6], 4294966992  ;;  %v654_v0 = vld [vmem:[#allocation5 + $0x2] sm:$0x3]  ;;  %v2458_v1 = vld [vmem:[#allocation5 + $0x8] sm:$0x3] }
  0x70   : > { %v217_v2 = vld [vmem:[%s7346_s4] sm:$0xf]  ;;  %6664 = vmatprep.subr.msk.bf16.mxu1 %vm752_vm0, %v654_v0  ;;  %6668 = vmatprep.subr.msk.bf16.mxu0 %vm752_vm0, %v2458_v1  ;;  %v754_v3 = vsel %vm752_vm0, %v654_v0, 0  ;;  %v7361_v4 = vsel %vm752_vm0, %v2458_v1, 0  ;;  %v218_v5 = vld [vmem:[%s7346_s4 + $0x4] sm:$0xf]  ;;  %vm7384_vm3 = vmor %vm266_vm1, %vm267_vm2 }
  0x71   : > { %9381 = vst [vmem:[#allocation12_spill] sm:$0xff] %v7361_v4  ;;  %v250_v6 = vld [vmem:[%s7346_s4 + $0x8] sm:$0x1]  ;;  %6101 = vmatpush3.bf16.msra.mxu1 %v754_v3  ;;  %6237 = vmatpush3.bf16.msra.mxu0 %v7361_v4  ;;  %v270_v7 = vshrl.u32 %v217_v2, 16  ;;  %v273_v8 = vshll.u32 %v217_v2, 16  ;;  %v279_v9 = vshll.u32 %v218_v5, 16 }
  0x72   : > { %v283_v10 = vshrl.u32 %v218_v5, 16  ;;  %v249_v11 = vld [vmem:[#allocation5] sm:$0x3]  ;;  %v289_v12 = vshll.u32 %v250_v6, 16  ;;  %v5492_v13 = vld [vmem:[%s7346_s4 + $0xc] sm:$0xf] }
  0x73   : > { %6665 = vmatprep.subr.msk.bf16.mxu1 %vm752_vm0, %v249_v11  ;;  %v7369_v14 = vld [vmem:[%s7346_s4 + $0x10] sm:$0xf]  ;;  %v272_v15 = vrot.slane %v270_v7, 4  ;;  %v275_v16 = vrot.slane %v273_v8, 5  ;;  %v281_v17 = vrot.slane %v279_v9, 5  ;;  %v2074_v21 = vshrl.u32 %v5492_v13, 16 }
  0x74   : > { %v285_v18 = vrot.slane %v283_v10, 4  ;;  %v7372_v19 = vld [vmem:[%s7346_s4 + $0x14] sm:$0x1]  ;;  %v291_v20 = vrot.slane %v289_v12, 5  ;;  %v2077_v22 = vshll.u32 %v5492_v13, 16  ;;  %v2083_v23 = vshll.u32 %v7369_v14, 16 }
  0x75   : > { %v7375_v24 = vld [vmem:[#allocation5 + $0xa] sm:$0x3]  ;;  %v276_v25 = vor.u32 %v275_v16, %v272_v15  ;;  %v2087_v27 = vshrl.u32 %v7369_v14, 16  ;;  %v2093_v28 = vshll.u32 %v7372_v19, 16  ;;  %v219_v29 = vld [vmem:[%s7346_s4 + $0xc] sm:$0xf] }
  0x76   : > { %v286_v26 = vor.u32 %v285_v18, %v281_v17  ;;  %6670 = vmatprep.subr.msk.bf16.mxu0 %vm752_vm0, %v7375_v24  ;;  %v2076_v31 = vrot.slane %v2074_v21, 4  ;;  %v2079_v32 = vrot.slane %v2077_v22, 5  ;;  %v2085_v33 = vrot.slane %v2083_v23, 5  ;;  %v220_v34 = vld [vmem:[%s7346_s4 + $0x10] sm:$0xf]  ;;  %s5315_s18 = sshll.u32 %s7342_s22, 7 }
  0x77   : > { %v277_v35 = vrot.slane %v276_v25, 4  ;;  %v2089_v37 = vrot.slane %v2087_v27, 4  ;;  %v2095_v39 = vrot.slane %v2093_v28, 5  ;;  %v251_v40 = vld [vmem:[%s7346_s4 + $0x14] sm:$0x1]  ;;  %v294_v41 = vshrl.u32 %v219_v29, 16 }
  0x78   : > { %v287_v36 = vrot.slane %v286_v26, 4  ;;  %v2080_v38 = vor.u32 %v2079_v32, %v2076_v31  ;;  %v297_v42 = vshll.u32 %v219_v29, 16  ;;  %v303_v46 = vshll.u32 %v220_v34, 16  ;;  %v5495_v55 = vld [vmem:[%s7346_s4 + $0x18] sm:$0xf]  ;;  %s9136_s20 = scalar_lea.vmem [#allocation8], %s5315_s18 }
  0x79   : > { %v282_v43 = vsel %vm7384_vm3, %v277_v35, %v281_v17  ;;  %v2090_v45 = vor.u32 %v2089_v37, %v2085_v33  ;;  %v296_v49 = vrot.slane %v294_v41, 4  ;;  %v307_v53 = vshrl.u32 %v220_v34, 16  ;;  %v7401_v60 = vld [vmem:[%s7346_s4 + $0x1c] sm:$0xf]  ;;  %v7404_v61 = vld [vmem:[%s7346_s4 + $0x20] sm:$0x1] }
  0x7a   : > { %v292_v44 = vsel %vm7384_vm3, %v287_v36, %v291_v20  ;;  %v2081_v48 = vrot.slane %v2080_v38, 4  ;;  %v299_v50 = vrot.slane %v297_v42, 5  ;;  %v305_v52 = vrot.slane %v303_v46, 5  ;;  %v221_v16 = vld [vmem:[%s7346_s4 + $0x18] sm:$0xf]  ;;  %s5946_s11 = sshll.u32 %s7190_s16, 11 }
  0x7b   : > { %v5316_v47 = vcombine.low %v282_v43, %v292_v44  ;;  %v2091_v51 = vrot.slane %v2090_v45, 4  ;;  %v313_v54 = vshll.u32 %v251_v40, 16  ;;  %v2817_v57 = vrot.slane %v7369_v14, 5  ;;  %v222_v22 = vld [vmem:[%s7346_s4 + $0x1c] sm:$0xf]  ;;  %s5214_s24 = sshll.u32 %s9136_s20, 4  ;;  %s9293_s23 = scalar_lea.hbm %s9348_s3, %s5946_s11  ;;  %s9295_s24 = int_to_ptr.vmem [resolvable:$true] %s5214_s24 }
  0x7c   : > { %v2086_v56 = vsel %vm7384_vm3, %v2081_v48, %v2085_v33  ;;  %v2820_v58 = vrot.slane %v7372_v19, 5  ;;  %v300_v59 = vor.u32 %v299_v50, %v296_v49  ;;  %v309_v63 = vrot.slane %v307_v53, 4  ;;  %v252_v28 = vld [vmem:[%s7346_s4 + $0x20] sm:$0x1]  ;;  %v5498_v34 = vld [vmem:[%s7346_s4 + $0x24] sm:$0xf] }
  0x7d   : > { %6102 = vmatprep.mubr.msk.bf16.mxu1 %vm703_vm4, %v5316_v47  ;;  %v2096_v62 = vsel %vm7384_vm3, %v2091_v51, %v2095_v39  ;;  %v315_v0 = vrot.slane %v313_v54, 5  ;;  %v1046_v1 = vsel %vm752_vm0, %v249_v11, 0  ;;  %v2098_v5 = vshrl.u32 %v5495_v55, 16  ;;  %v7430_v43 = vld [vmem:[%s7346_s4 + $0x28] sm:$0xf]  ;;  %s5201_s16 = scalar_lea.sflag [#allocation4], %s7342_s22 }
  0x7e   : > { %v5540_v2 = vcombine.low %v2086_v56, %v2096_v62  ;;  %v301_v3 = vrot.slane %v300_v59, 4  ;;  %v2101_v6 = vshll.u32 %v5495_v55, 16  ;;  %v310_v7 = vor.u32 %v309_v63, %v305_v52  ;;  %v7436_v46 = vld [vmem:[%s7346_s4 + $0x2c] sm:$0x1]  ;;  %s7067_s6 = scalar_lea.vmem %s9295_s24, 2048  ;;  %p9448_p0 = scmp.ne.s32.totalorder %s9376_s7, 0 }
  0x7f   : > { %v2107_v8 = vshll.u32 %v7401_v60, 16  ;;  %v2111_v9 = vshrl.u32 %v7401_v60, 16  ;;  %v2117_v10 = vshll.u32 %v7404_v61, 16  ;;  %v2100_v13 = vrot.slane %v2098_v5, 4  ;;  %p7068_p11 = scmp.ne.s32.totalorder %s9295_s24, %s7067_s6  ;;  %s7146_s9 = smov [#allocation8]  }
  0x80   : > { %6238 = vmatprep.mubr.msk.bf16.mxu0 %vm703_vm4, %v5540_v2  ;;  %v306_v12 = vsel %vm7384_vm3, %v301_v3, %v305_v52  ;;  %v2103_v11 = vrot.slane %v2101_v6, 5  ;;  %v2824_v15 = vrot.slane %v7401_v60, 5  ;;  %v311_v17 = vrot.slane %v310_v7, 4  ;;  %v223_v52 = vld [vmem:[%s7346_s4 + $0x24] sm:$0xf]  ;;  %s7071_s10 = sshll.u32 %s7146_s9, 4  ;;  %s7072_s10 = int_to_ptr.vmem [resolvable:$false] %s7071_s10 }
  0x81   : > { %v2109_v18 = vrot.slane %v2107_v8, 5  ;;  %v2113_v20 = vrot.slane %v2111_v9, 4  ;;  %v2119_v21 = vrot.slane %v2117_v10, 5  ;;  %v2827_v26 = vrot.slane %v7404_v61, 5  ;;  %p7069_p1 = pnand %p7068_p11, %p9448_p0  ;;  %s7073_s25 = scalar_lea.vmem %s7072_s10, 4096 }
  0x82   : > { %v2104_v23 = vor.u32 %v2103_v11, %v2100_v13  ;;  %v7420_v25 = vrot.slane %v2824_v15, 4  ;;  %v3026_v27 = vsel %vm752_vm0, %v7375_v24, 0  ;;  %v316_v29 = vsel %vm7384_vm3, %v311_v17, %v315_v0  ;;  %v5501_v13 = vld [vmem:[%s7346_s4 + $0x30] sm:$0xf]  ;;  %p7074_p7 = scmp.lt.s32.totalorder %s9295_s24, %s7072_s10  ;;  %p7075_p9 = scmp.lt.s32.totalorder %s7073_s25, %s7067_s6 }
  0x83   : > { %v2114_v31 = vor.u32 %v2113_v20, %v2109_v18  ;;  %v318_v32 = vshrl.u32 %v221_v16, 16  ;;  %v321_v33 = vshll.u32 %v221_v16, 16  ;;  %v5317_v35 = vcombine.low %v306_v12, %v316_v29  ;;  %v253_v12 = vld [vmem:[%s7346_s4 + $0x2c] sm:$0x1]  ;;  %p7070_p3 = pneg %p7069_p1 }
  0x84   : > { %v2105_v36 = vrot.slane %v2104_v23, 4  ;;  %v327_v37 = vshll.u32 %v222_v22, 16  ;;  %v331_v38 = vshrl.u32 %v222_v22, 16  ;;  %v337_v42 = vshll.u32 %v252_v28, 16  ;;  %p7076_p12 = por %p7075_p9, %p7074_p7 }
  0x85   : > { %v2115_v39 = vrot.slane %v2114_v31, 4  ;;  %v320_v40 = vrot.slane %v318_v32, 4  ;;  %v323_v41 = vrot.slane %v321_v33, 5  ;;  %6103 = vmatmul.mubr.msk.bf16.vlgmr.msra.gmra.mrb[0].mxu1 %vm703_vm4, %v5317_v35  ;;  %v2122_v47 = vshrl.u32 %v5498_v34, 16 }
  0x86   : > { %v2110_v24 = vsel %vm7384_vm3, %v2105_v36, %v2109_v18  ;;  %v329_v44 = vrot.slane %v327_v37, 5  ;;  %v333_v45 = vrot.slane %v331_v38, 4  ;;  %6135 = vmatpush3.bf16.msra.mxu1 %v1046_v1  ;;  %v339_v50 = vrot.slane %v337_v42, 5  ;;  %v224_v1 = vld [vmem:[%s7346_s4 + $0x28] sm:$0xf]  ;;  %p7077_p2 = pnand %p7076_p12, %p7070_p3 }
  0x87   : > { %v2120_v48 = vsel %vm7384_vm3, %v2115_v39, %v2119_v21  ;;  %v324_v49 = vor.u32 %v323_v41, %v320_v40  ;;  %v2125_v51 = vshll.u32 %v5498_v34, 16  ;;  %v2124_v55 = vrot.slane %v2122_v47, 4  ;;  %v7459_v36 = vld [vmem:[%s7346_s4 + $0x38] sm:$0x1]  ;;  %v225_v42 = vld [vmem:[%s7346_s4 + $0x30] sm:$0xf] }
  0x88   : > { %v5541_v53 = vcombine.low %v2110_v24, %v2120_v48  ;;  %v334_v54 = vor.u32 %v333_v45, %v329_v44  ;;  %v2131_v56 = vshll.u32 %v7430_v43, 16  ;;  %v2135_v63 = vshrl.u32 %v7430_v43, 16  ;;  %v226_v48 = vld [vmem:[%s7346_s4 + $0x34] sm:$0xf] }
  0x89   : > { %v325_v59 = vrot.slane %v324_v49, 4  ;;  %v2127_v62 = vrot.slane %v2125_v51, 5  ;;  %v2141_v0 = vshll.u32 %v7436_v46, 16  ;;  %v342_v5 = vshrl.u32 %v223_v52, 16 }
  0x8a   : > { %6239 = vmatmul.mubr.msk.bf16.vlgmr.msra.gmra.mrb[0].mxu0 %vm703_vm4, %v5541_v53  ;;  %v335_v2 = vrot.slane %v334_v54, 4  ;;  %v2133_v3 = vrot.slane %v2131_v56, 5  ;;  %v345_v6 = vshll.u32 %v223_v52, 16  ;;  %v2137_v9 = vrot.slane %v2135_v63, 4  ;;  %v254_v56 = vld [vmem:[%s7346_s4 + $0x38] sm:$0x1] }
  0x8b   : > { %6271 = vmatpush3.bf16.msra.mxu0 %v3026_v27  ;;  %v330_v7 = vsel %vm7384_vm3, %v325_v59, %v329_v44  ;;  %v2128_v8 = vor.u32 %v2127_v62, %v2124_v55  ;;  %v2143_v10 = vrot.slane %v2141_v0, 5  ;;  %v344_v16 = vrot.slane %v342_v5, 4  ;;  %v7453_v27 = vld [vmem:[%s7346_s4 + $0x34] sm:$0xf] }
  0x8c   : > { %v340_v11 = vsel %vm7384_vm3, %v335_v2, %v339_v50  ;;  %v347_v17 = vrot.slane %v345_v6, 5  ;;  %v351_v18 = vshll.u32 %v224_v1, 16  ;;  %v2138_v22 = vor.u32 %v2137_v9, %v2133_v3  ;;  %v5504_v2 = vld [vmem:[%s7346_s4 + $0x3c] sm:$0xf] }
  0x8d   : > { %v5318_v20 = vcombine.low %v330_v7, %v340_v11  ;;  %v2129_v21 = vrot.slane %v2128_v8, 4  ;;  %v355_v23 = vshrl.u32 %v224_v1, 16  ;;  %v361_v31 = vshll.u32 %v253_v12, 16  ;;  %v7476_v8 = vld [vmem:[%s7346_s4 + $0x40] sm:$0xf] }
  0x8e   : > { %v348_v28 = vor.u32 %v347_v17, %v344_v16  ;;  %v353_v29 = vrot.slane %v351_v18, 5  ;;  %v2146_v32 = vshrl.u32 %v5501_v13, 16  ;;  %v2139_v34 = vrot.slane %v2138_v22, 4  ;;  %v7481_v18 = vld [vmem:[%s7346_s4 + $0x44] sm:$0x1] }
  0x8f   : > { %6106 = vmatprep.mubr.msk.bf16.mxu1 %vm703_vm4, %v5318_v20  ;;  %v2134_v33 = vsel %vm7384_vm3, %v2129_v21, %v2133_v3  ;;  %v357_v35 = vrot.slane %v355_v23, 4  ;;  %v2149_v37 = vshll.u32 %v5501_v13, 16  ;;  %v363_v39 = vrot.slane %v361_v31, 5  ;;  %v7486_v31 = vld [vmem:[#allocation5 + $0xc] sm:$0x3] }
  0x90   : > { %v349_v38 = vrot.slane %v348_v28, 4  ;;  %v2148_v40 = vrot.slane %v2146_v32, 4  ;;  %v2155_v41 = vshll.u32 %v7453_v27, 16  ;;  %v2144_v24 = vsel %vm7384_vm3, %v2139_v34, %v2143_v10  ;;  %6671 = vmatprep.subr.msk.bf16.mxu0 %vm752_vm0, %v7486_v31 }
  0x91   : > { %v358_v44 = vor.u32 %v357_v35, %v353_v29  ;;  %v2151_v45 = vrot.slane %v2149_v37, 5  ;;  %v2159_v47 = vshrl.u32 %v7453_v27, 16  ;;  %v5542_v49 = vcombine.low %v2134_v33, %v2144_v24 }
  0x92   : > { %v354_v50 = vsel %vm7384_vm3, %v349_v38, %v353_v29  ;;  %v2157_v51 = vrot.slane %v2155_v41, 5  ;;  %v2165_v52 = vshll.u32 %v7459_v36, 16  ;;  %v366_v59 = vshrl.u32 %v225_v42, 16  ;;  %v227_v29 = vld [vmem:[%s7346_s4 + $0x3c] sm:$0xf] }
  0x93   : > { %v359_v53 = vrot.slane %v358_v44, 4  ;;  %v2152_v54 = vor.u32 %v2151_v45, %v2148_v40  ;;  %v2161_v55 = vrot.slane %v2159_v47, 4  ;;  %6242 = vmatprep.mubr.msk.bf16.mxu0 %vm703_vm4, %v5542_v49  ;;  %v369_v63 = vshll.u32 %v225_v42, 16  ;;  %v228_v44 = vld [vmem:[%s7346_s4 + $0x40] sm:$0xf] }
  0x94   : > { %v2167_v62 = vrot.slane %v2165_v52, 5  ;;  %v375_v0 = vshll.u32 %v226_v48, 16  ;;  %v379_v1 = vshrl.u32 %v226_v48, 16  ;;  %v368_v7 = vrot.slane %v366_v59, 4  ;;  %v5507_v52 = vld [vmem:[%s7346_s4 + $0x48] sm:$0xf] }
  0x95   : > { %v364_v3 = vsel %vm7384_vm3, %v359_v53, %v363_v39  ;;  %v2153_v5 = vrot.slane %v2152_v54, 4  ;;  %v2162_v6 = vor.u32 %v2161_v55, %v2157_v51  ;;  %v371_v10 = vrot.slane %v369_v63, 5 }
  0x96   : > { %v5319_v9 = vcombine.low %v354_v50, %v364_v3  ;;  %v377_v12 = vrot.slane %v375_v0, 5  ;;  %v381_v13 = vrot.slane %v379_v1, 4  ;;  %v385_v17 = vshll.u32 %v254_v56, 16  ;;  %v255_v50 = vld [vmem:[%s7346_s4 + $0x44] sm:$0x1] }
  0x97   : > { %v2158_v11 = vsel %vm7384_vm3, %v2153_v5, %v2157_v51  ;;  %v2163_v16 = vrot.slane %v2162_v6, 4  ;;  %v2170_v20 = vshrl.u32 %v5504_v2, 16  ;;  %v372_v21 = vor.u32 %v371_v10, %v368_v7  ;;  %v7504_v3 = vld [vmem:[%s7346_s4 + $0x4c] sm:$0xf] }
  0x98   : > { %6107 = vmatmul.mubr.msk.bf16.gmra.mrb[4].mxu1 %vm703_vm4, %v5319_v9  ;;  %v382_v22 = vor.u32 %v381_v13, %v377_v12  ;;  %v2173_v23 = vshll.u32 %v5504_v2, 16  ;;  %v2179_v28 = vshll.u32 %v7476_v8, 16  ;;  %v387_v33 = vrot.slane %v385_v17, 5  ;;  %v7509_v13 = vld [vmem:[%s7346_s4 + $0x50] sm:$0x1] }
  0x99   : > { %v2168_v32 = vsel %vm7384_vm3, %v2163_v16, %v2167_v62  ;;  %v2172_v34 = vrot.slane %v2170_v20, 4  ;;  %v2183_v35 = vshrl.u32 %v7476_v8, 16  ;;  %v373_v38 = vrot.slane %v372_v21, 4 }
  0x9a   : > { %v5543_v37 = vcombine.low %v2158_v11, %v2168_v32  ;;  %v383_v39 = vrot.slane %v382_v22, 4  ;;  %v2175_v40 = vrot.slane %v2173_v23, 5  ;;  %v2181_v41 = vrot.slane %v2179_v28, 5  ;;  %v7512_v11 = vld [vmem:[%s7346_s4 + $0x48] sm:$0xf] }
  0x9b   : > { %v2185_v42 = vrot.slane %v2183_v35, 4  ;;  %v2189_v24 = vshll.u32 %v7481_v18, 16  ;;  %v390_v45 = vshrl.u32 %v227_v29, 16  ;;  %v378_v47 = vsel %vm7384_vm3, %v373_v38, %v377_v12  ;;  %v7520_v35 = vld [vmem:[%s7346_s4 + $0x4c] sm:$0xf] }
  0x9c   : > { %6243 = vmatmul.mubr.msk.bf16.gmra.mrb[4].mxu0 %vm703_vm4, %v5543_v37  ;;  %v388_v48 = vsel %vm7384_vm3, %v383_v39, %v387_v33  ;;  %v2176_v49 = vor.u32 %v2175_v40, %v2172_v34  ;;  %v393_v51 = vshll.u32 %v227_v29, 16  ;;  %v399_v63 = vshll.u32 %v228_v44, 16 }
  0x9d   : > { %v5320_v53 = vcombine.low %v378_v47, %v388_v48  ;;  %v2186_v54 = vor.u32 %v2185_v42, %v2181_v41  ;;  %v2191_v55 = vrot.slane %v2189_v24, 5  ;;  %v392_v56 = vrot.slane %v390_v45, 4  ;;  %v5510_v48 = vld [vmem:[%s7346_s4 + $0x54] sm:$0xf] }
  0x9e   : > { %v2177_v59 = vrot.slane %v2176_v49, 4  ;;  %v395_v62 = vrot.slane %v393_v51, 5  ;;  %v403_v0 = vshrl.u32 %v228_v44, 16  ;;  %v409_v2 = vshll.u32 %v255_v50, 16 }
  0x9f   : > { %6110 = vmatprep.mubr.msk.bf16.mxu1 %vm703_vm4, %v5320_v53  ;;  %v2187_v1 = vrot.slane %v2186_v54, 4  ;;  %v2194_v5 = vshrl.u32 %v5507_v52, 16  ;;  %v2197_v6 = vshll.u32 %v5507_v52, 16  ;;  %v401_v10 = vrot.slane %v399_v63, 5  ;;  %v7534_v53 = vld [vmem:[%s7346_s4 + $0x58] sm:$0xf] }
  0xa0   : > { %v2182_v7 = vsel %vm7384_vm3, %v2177_v59, %v2181_v41  ;;  %v396_v9 = vor.u32 %v395_v62, %v392_v56  ;;  %v405_v12 = vrot.slane %v403_v0, 4  ;;  %v411_v17 = vrot.slane %v409_v2, 5  ;;  %v256_v41 = vld [vmem:[%s7346_s4 + $0x50] sm:$0x1] }
  0xa1   : > { %v2192_v16 = vsel %vm7384_vm3, %v2187_v1, %v2191_v55  ;;  %v2196_v20 = vrot.slane %v2194_v5, 4  ;;  %v2199_v21 = vrot.slane %v2197_v6, 5  ;;  %v2203_v29 = vshll.u32 %v7504_v3, 16  ;;  %v7539_v1 = vld [vmem:[%s7346_s4 + $0x5c] sm:$0x1] }
  0xa2   : > { %v5544_v22 = vcombine.low %v2182_v7, %v2192_v16  ;;  %v397_v23 = vrot.slane %v396_v9, 4  ;;  %v406_v28 = vor.u32 %v405_v12, %v401_v10  ;;  %v2207_v33 = vshrl.u32 %v7504_v3, 16 }
  0xa3   : > { %v2200_v32 = vor.u32 %v2199_v21, %v2196_v20  ;;  %v2213_v34 = vshll.u32 %v7509_v13, 16  ;;  %v414_v37 = vshrl.u32 %v7512_v11, 16  ;;  %v2205_v40 = vrot.slane %v2203_v29, 5  ;;  %v7545_v20 = vld [vmem:[%s7346_s4 + $0x54] sm:$0xf] }
  0xa4   : > { %6246 = vmatprep.mubr.msk.bf16.mxu0 %vm703_vm4, %v5544_v22  ;;  %v402_v38 = vsel %vm7384_vm3, %v397_v23, %v401_v10  ;;  %v407_v39 = vrot.slane %v406_v28, 4  ;;  %v417_v42 = vshll.u32 %v7512_v11, 16  ;;  %v2209_v44 = vrot.slane %v2207_v33, 4  ;;  %v7551_v29 = vld [vmem:[%s7346_s4 + $0x58] sm:$0xf] }
  0xa5   : > { %v2201_v24 = vrot.slane %v2200_v32, 4  ;;  %v2215_v45 = vrot.slane %v2213_v34, 5  ;;  %v416_v47 = vrot.slane %v414_v37, 4  ;;  %v423_v51 = vshll.u32 %v7520_v35, 16 }
  0xa6   : > { %v412_v49 = vsel %vm7384_vm3, %v407_v39, %v411_v17  ;;  %v419_v50 = vrot.slane %v417_v42, 5  ;;  %v427_v52 = vshrl.u32 %v7520_v35, 16  ;;  %v2210_v56 = vor.u32 %v2209_v44, %v2205_v40 }
  0xa7   : > { %v5321_v54 = vcombine.low %v402_v38, %v412_v49  ;;  %v2206_v55 = vsel %vm7384_vm3, %v2201_v24, %v2205_v40  ;;  %v433_v59 = vshll.u32 %v256_v41, 16  ;;  %v425_v63 = vrot.slane %v423_v51, 5  ;;  %v257_v40 = vld [vmem:[%s7346_s4 + $0x5c] sm:$0x1] }
  0xa8   : > { %v420_v62 = vor.u32 %v419_v50, %v416_v47  ;;  %v429_v0 = vrot.slane %v427_v52, 4  ;;  %v2218_v2 = vshrl.u32 %v5510_v48, 16  ;;  %v2211_v5 = vrot.slane %v2210_v56, 4  ;;  %v7564_v49 = vld [vmem:[#allocation5 + $0x4] sm:$0x3] }
  0xa9   : > { %6111 = vmatmul.mubr.msk.bf16.gmra.mrb[8].mxu1 %vm703_vm4, %v5321_v54  ;;  %v435_v6 = vrot.slane %v433_v59, 5  ;;  %v2221_v7 = vshll.u32 %v5510_v48, 16  ;;  %v2227_v9 = vshll.u32 %v7534_v53, 16  ;;  %v2231_v17 = vshrl.u32 %v7534_v53, 16  ;;  %v5513_v48 = vld [vmem:[%s7346_s4 + $0x60] sm:$0xf]  ;;  %6666 = vmatprep.subr.msk.bf16.mxu1 %vm752_vm0, %v7564_v49 }
  0xaa   : > { %v421_v10 = vrot.slane %v420_v62, 4  ;;  %v430_v12 = vor.u32 %v429_v0, %v425_v63  ;;  %v2220_v16 = vrot.slane %v2218_v2, 4  ;;  %v2216_v21 = vsel %vm7384_vm3, %v2211_v5, %v2215_v45  ;;  %v7575_v5 = vld [vmem:[%s7346_s4 + $0x68] sm:$0x1] }
  0xab   : > { %v2223_v22 = vrot.slane %v2221_v7, 5  ;;  %v2229_v23 = vrot.slane %v2227_v9, 5  ;;  %v2237_v28 = vshll.u32 %v7539_v1, 16  ;;  %v5545_v32 = vcombine.low %v2206_v55, %v2216_v21  ;;  %v7567_v55 = vld [vmem:[%s7346_s4 + $0x64] sm:$0xf] }
  0xac   : > { %v426_v33 = vsel %vm7384_vm3, %v421_v10, %v425_v63  ;;  %v431_v34 = vrot.slane %v430_v12, 4  ;;  %v2233_v37 = vrot.slane %v2231_v17, 4  ;;  %v438_v41 = vshrl.u32 %v7545_v20, 16  ;;  %v7581_v17 = vld [vmem:[%s7346_s4 + $0x60] sm:$0xf] }
  0xad   : > { %v2224_v38 = vor.u32 %v2223_v22, %v2220_v16  ;;  %v2239_v39 = vrot.slane %v2237_v28, 5  ;;  %v441_v42 = vshll.u32 %v7545_v20, 16  ;;  %vm1257_vm5 = vcmask 1042432   ;;  %6247 = vmatmul.mubr.msk.bf16.gmra.mrb[8].mxu0 %vm703_vm4, %v5545_v32 }
  0xae   : > { %vm1258_vm6 = vcmask 1046532   ;;  %v436_v24 = vsel %vm7384_vm3, %v431_v34, %v435_v6  ;;  %v2234_v44 = vor.u32 %v2233_v37, %v2229_v23  ;;  %v447_v45 = vshll.u32 %v7551_v29, 16 }
  0xaf   : > { %v451_v47 = vshrl.u32 %v7551_v29, 16  ;;  %v5322_v50 = vcombine.low %v426_v33, %v436_v24  ;;  %v2225_v51 = vrot.slane %v2224_v38, 4  ;;  %v440_v52 = vrot.slane %v438_v41, 4  ;;  %v258_v41 = vld [vmem:[%s7346_s4 + $0x68] sm:$0x1]  ;;  %vm7604_vm7 = vmor %vm1257_vm5, %vm1258_vm6 }
  0xb0   : > { %v443_v54 = vrot.slane %v441_v42, 5  ;;  %v2235_v56 = vrot.slane %v2234_v44, 4  ;;  %v449_v59 = vrot.slane %v447_v45, 5  ;;  %v457_v63 = vshll.u32 %v257_v40, 16 }
  0xb1   : > { %v453_v62 = vrot.slane %v451_v47, 4  ;;  %6114 = vmatprep.mubr.msk.bf16.mxu1 %vm703_vm4, %v5322_v50  ;;  %v2230_v0 = vsel %vm7384_vm3, %v2225_v51, %v2229_v23  ;;  %v2242_v6 = vshrl.u32 %v5513_v48, 16  ;;  %v2245_v7 = vshll.u32 %v5513_v48, 16  ;;  %v7584_v23 = vld [vmem:[%s7346_s4 + $0x64] sm:$0xf] }
  0xb2   : > { %v444_v2 = vor.u32 %v443_v54, %v440_v52  ;;  %v2240_v9 = vsel %vm7384_vm3, %v2235_v56, %v2239_v39  ;;  %v459_v12 = vrot.slane %v457_v63, 5  ;;  %v2251_v16 = vshll.u32 %v7567_v55, 16  ;;  %v5572_v50 = vld [vmem:[%s7346_s4 + $0xc] sm:$0xe] }
  0xb3   : > { %v454_v10 = vor.u32 %v453_v62, %v449_v59  ;;  %v5546_v21 = vcombine.low %v2230_v0, %v2240_v9  ;;  %v2244_v28 = vrot.slane %v2242_v6, 4  ;;  %v2247_v32 = vrot.slane %v2245_v7, 5 }
  0xb4   : > { %v445_v22 = vrot.slane %v444_v2, 4  ;;  %v2253_v34 = vrot.slane %v2251_v16, 5  ;;  %v2255_v37 = vshrl.u32 %v7567_v55, 16  ;;  %v2261_v38 = vshll.u32 %v7575_v5, 16 }
  0xb5   : > { %v455_v33 = vrot.slane %v454_v10, 4  ;;  %6250 = vmatprep.mubr.msk.bf16.mxu0 %vm703_vm4, %v5546_v21  ;;  %v2248_v40 = vor.u32 %v2247_v32, %v2244_v28  ;;  %v462_v42 = vshrl.u32 %v7581_v17, 16  ;;  %v465_v24 = vshll.u32 %v7581_v17, 16  ;;  %v7614_v28 = vld [vmem:[%s7346_s4 + $0x70] sm:$0xf] }
  0xb6   : > { %v450_v39 = vsel %vm7384_vm3, %v445_v22, %v449_v59  ;;  %v2257_v45 = vrot.slane %v2255_v37, 4  ;;  %v2263_v47 = vrot.slane %v2261_v38, 5  ;;  %v471_v48 = vshll.u32 %v7584_v23, 16  ;;  %v7599_v59 = vld [vmem:[%s7346_s4 + $0x6c] sm:$0xf] }
  0xb7   : > { %v460_v44 = vsel %vm7384_vm3, %v455_v33, %v459_v12  ;;  %v2249_v52 = vrot.slane %v2248_v40, 4  ;;  %v464_v54 = vrot.slane %v462_v42, 4  ;;  %v467_v56 = vrot.slane %v465_v24, 5  ;;  %v259_v38 = vld [vmem:[%s7346_s4 + $0x74] sm:$0x1] }
  0xb8   : > { %v5323_v51 = vcombine.low %v450_v39, %v460_v44  ;;  %v2258_v62 = vor.u32 %v2257_v45, %v2253_v34  ;;  %v473_v63 = vrot.slane %v471_v48, 5  ;;  %v475_v0 = vshrl.u32 %v7584_v23, 16  ;;  %v5573_v40 = vld [vmem:[%s7346_s4 + $0x18] sm:$0xe]  ;;  %v7637_v48 = vld [vmem:[%s7346_s4 + $0x7c] sm:$0xf] }
  0xb9   : > { %v481_v2 = vshll.u32 %v258_v41, 16  ;;  %v2254_v7 = vsel %vm7384_vm3, %v2249_v52, %v2253_v34  ;;  %v468_v9 = vor.u32 %v467_v56, %v464_v54  ;;  %v5588_v10 = vrot.slane %v5572_v50, 9  ;;  %v260_v54 = vld [vmem:[%s7346_s4 + $0x80] sm:$0x1]  ;;  %v5574_v56 = vld [vmem:[%s7346_s4 + $0x24] sm:$0xe] }
  0xba   : > { %6115 = vmatmul.mubr.msk.bf16.gmra.mrb[12].mxu1 %vm703_vm4, %v5323_v51  ;;  %v2819_v12 = vrot.slane %v2817_v57, 4  ;;  %v2259_v16 = vrot.slane %v2258_v62, 4  ;;  %v477_v21 = vrot.slane %v475_v0, 4  ;;  %v486_v32 = vshrl.u32 %v7599_v59, 16 }
  0xbb   : > { %v483_v22 = vrot.slane %v481_v2, 5  ;;  %v469_v33 = vrot.slane %v468_v9, 4  ;;  %v2818_v34 = vsel %vm7604_vm7, %v5588_v10, %v2817_v57  ;;  %v489_v39 = vshll.u32 %v7599_v59, 16 }
  0xbc   : > { %v2821_v37 = vsel %vm7604_vm7, %v2819_v12, %v2820_v58  ;;  %v2264_v41 = vsel %vm7384_vm3, %v2259_v16, %v2263_v47  ;;  %v478_v42 = vor.u32 %v477_v21, %v473_v63  ;;  %v488_v14 = vrot.slane %v486_v32, 4  ;;  %v7634_v58 = vld [vmem:[%s7346_s4 + $0x78] sm:$0xf]  ;;  %v7658_v12 = vld [vmem:[%s7346_s4 + $0x84] sm:$0xf] }
  0xbd   : > { %v5604_v24 = vcombine.low %v2818_v34, %v2821_v37  ;;  %v5547_v44 = vcombine.low %v2254_v7, %v2264_v41  ;;  %v474_v57 = vsel %vm7384_vm3, %v469_v33, %v473_v63  ;;  %v491_v19 = vrot.slane %v489_v39, 5 }
  0xbe   : > { %v495_v45 = vshll.u32 %v7614_v28, 16  ;;  %v479_v50 = vrot.slane %v478_v42, 4  ;;  %v499_v51 = vshrl.u32 %v7614_v28, 16  ;;  %v505_v52 = vshll.u32 %v259_v38, 16  ;;  %v7668_v38 = vld [vmem:[%s7346_s4 + $0x88] sm:$0xf] }
  0xbf   : > { %v5589_v47 = vrot.slane %v5573_v40, 9  ;;  %6251 = vmatmul.mubr.msk.bf16.gmra.mrb[12].mxu0 %vm703_vm4, %v5547_v44  ;;  %v492_v62 = vor.u32 %v491_v19, %v488_v14  ;;  %v2828_v63 = vsel %vm7604_vm7, %v7420_v25, %v2827_v26  ;;  %v3385_v2 = vsel %vm752_vm0, %v7486_v31, 0  ;;  %v5575_v14 = vld [vmem:[%s7346_s4 + $0x30] sm:$0xe]  ;;  %v7672_v44 = vld [vmem:[#allocation5 + $0xe] sm:$0x3] }
  0xc0   : > { %v497_v0 = vrot.slane %v495_v45, 5  ;;  %v484_v7 = vsel %vm7384_vm3, %v479_v50, %v483_v22  ;;  %6272 = vmatprep.mubr.msk.bf16.mxu0 %vm703_vm4, %v5604_v24  ;;  %v501_v9 = vrot.slane %v499_v51, 4  ;;  %v507_v10 = vrot.slane %v505_v52, 5  ;;  %v261_v24 = vld [vmem:[%s7346_s4 + $0x8c] sm:$0x1] }
  0xc1   : > { %v2825_v61 = vsel %vm7604_vm7, %v5589_v47, %v2824_v15  ;;  %v5324_v16 = vcombine.low %v474_v57, %v484_v7  ;;  %v493_v25 = vrot.slane %v492_v62, 4  ;;  %v510_v31 = vshrl.u32 %v7634_v58, 16 }
  0xc2   : > { %v5605_v26 = vcombine.low %v2825_v61, %v2828_v63  ;;  %v502_v21 = vor.u32 %v501_v9, %v497_v0  ;;  %v513_v22 = vshll.u32 %v7634_v58, 16  ;;  %v519_v32 = vshll.u32 %v7637_v48, 16 }
  0xc3   : > { %v523_v60 = vshrl.u32 %v7637_v48, 16  ;;  %6118 = vmatprep.mubr.msk.bf16.mxu1 %vm703_vm4, %v5324_v16  ;;  %v498_v15 = vsel %vm7384_vm3, %v493_v25, %v497_v0  ;;  %v512_v33 = vrot.slane %v510_v31, 4  ;;  %v529_v34 = vshll.u32 %v260_v54, 16 }
  0xc4   : > { %v5590_v37 = vrot.slane %v5574_v56, 9  ;;  %v503_v39 = vrot.slane %v502_v21, 4  ;;  %v515_v40 = vrot.slane %v513_v22, 5  ;;  %v521_v41 = vrot.slane %v519_v32, 5  ;;  %v7698_v32 = vld [vmem:[%s7346_s4 + $0x94] sm:$0xf] }
  0xc5   : > { %v525_v42 = vrot.slane %v523_v60, 4  ;;  %v531_v57 = vrot.slane %v529_v34, 5  ;;  %v2831_v19 = vrot.slane %v7430_v43, 5  ;;  %v2834_v45 = vrot.slane %v7436_v46, 5  ;;  %v7684_v43 = vld [vmem:[%s7346_s4 + $0x90] sm:$0xf] }
  0xc6   : > { %v534_v50 = vshrl.u32 %v7658_v12, 16  ;;  %v508_v51 = vsel %vm7384_vm3, %v503_v39, %v507_v10  ;;  %v516_v52 = vor.u32 %v515_v40, %v512_v33  ;;  %v537_v54 = vshll.u32 %v7658_v12, 16 }
  0xc7   : > { %v526_v47 = vor.u32 %v525_v42, %v521_v41  ;;  %v5325_v56 = vcombine.low %v498_v15, %v508_v51  ;;  %6273 = vmatmul.mubr.msk.bf16.vlgmr.msra.gmra.mrb[0].mxu0 %vm703_vm4, %v5605_v26  ;;  %v2832_v62 = vsel %vm7604_vm7, %v5590_v37, %v2831_v19  ;;  %v2833_v0 = vrot.slane %v2831_v19, 4  ;;  %v262_v37 = vld [vmem:[%s7346_s4 + $0x98] sm:$0x1] }
  0xc8   : > { %v536_v63 = vrot.slane %v534_v50, 4  ;;  %6305 = vmatpush3.bf16.msra.mxu0 %v3385_v2  ;;  %v517_v46 = vrot.slane %v516_v52, 4  ;;  %v539_v9 = vrot.slane %v537_v54, 5  ;;  %v543_v10 = vshll.u32 %v7668_v38, 16  ;;  %v7715_v52 = vld [vmem:[%s7346_s4 + $0x9c] sm:$0xf] }
  0xc9   : > { %v527_v7 = vrot.slane %v526_v47, 4  ;;  %6119 = vmatmul.mubr.msk.bf16.gmra.mrb[16].mxu1 %vm703_vm4, %v5325_v56  ;;  %v2835_v61 = vsel %vm7604_vm7, %v2833_v0, %v2834_v45  ;;  %v547_v16 = vshrl.u32 %v7668_v38, 16  ;;  %v553_v25 = vshll.u32 %v261_v24, 16  ;;  %6672 = vmatprep.subr.msk.bf16.mxu0 %vm752_vm0, %v7672_v44  ;;  %v5576_v45 = vld [vmem:[%s7346_s4 + $0x3c] sm:$0xe] }
  0xca   : > { %v5591_v26 = vrot.slane %v5575_v14, 9  ;;  %v522_v2 = vsel %vm7384_vm3, %v517_v46, %v521_v41  ;;  %v5606_v21 = vcombine.low %v2832_v62, %v2835_v61  ;;  %v540_v22 = vor.u32 %v539_v9, %v536_v63  ;;  %v7718_v0 = vld [vmem:[%s7346_s4 + $0xa0] sm:$0xf] }
  0xcb   : > { %v532_v31 = vsel %vm7384_vm3, %v527_v7, %v531_v57  ;;  %v545_v15 = vrot.slane %v543_v10, 5  ;;  %v549_v33 = vrot.slane %v547_v16, 4  ;;  %v555_v34 = vrot.slane %v553_v25, 5 }
  0xcc   : > { %v5326_v60 = vcombine.low %v522_v2, %v532_v31  ;;  %6276 = vmatprep.mubr.msk.bf16.mxu0 %vm703_vm4, %v5606_v21  ;;  %v541_v39 = vrot.slane %v540_v22, 4  ;;  %v2838_v40 = vrot.slane %v7453_v27, 5  ;;  %v2841_v41 = vrot.slane %v7459_v36, 5 }
  0xcd   : > { %v558_v42 = vshrl.u32 %v7684_v43, 16  ;;  %v550_v24 = vor.u32 %v549_v33, %v545_v15  ;;  %v561_v14 = vshll.u32 %v7684_v43, 16  ;;  %v567_v57 = vshll.u32 %v7698_v32, 16 }
  0xce   : > { %6122 = vmatprep.mubr.msk.bf16.mxu1 %vm703_vm4, %v5326_v60  ;;  %v571_v19 = vshrl.u32 %v7698_v32, 16  ;;  %v546_v50 = vsel %vm7384_vm3, %v541_v39, %v545_v15  ;;  %v2839_v27 = vsel %vm7604_vm7, %v5591_v26, %v2838_v40  ;;  %v2840_v36 = vrot.slane %v2838_v40, 4  ;;  %v263_v26 = vld [vmem:[%s7346_s4 + $0xa4] sm:$0x1]  ;;  %v5577_v60 = vld [vmem:[%s7346_s4 + $0x48] sm:$0xe] }
  0xcf   : > { %v560_v51 = vrot.slane %v558_v42, 4  ;;  %v551_v47 = vrot.slane %v550_v24, 4  ;;  %v563_v54 = vrot.slane %v561_v14, 5  ;;  %v569_v56 = vrot.slane %v567_v57, 5 }
  0xd0   : > { %v573_v62 = vrot.slane %v571_v19, 4  ;;  %v2842_v63 = vsel %vm7604_vm7, %v2840_v36, %v2841_v41  ;;  %v577_v46 = vshll.u32 %v262_v37, 16  ;;  %v5592_v7 = vrot.slane %v5576_v45, 9  ;;  %v7733_v37 = vld [vmem:[%s7346_s4 + $0xa8] sm:$0xf] }
  0xd1   : > { %v2845_v9 = vrot.slane %v7476_v8, 5  ;;  %v556_v10 = vsel %vm7384_vm3, %v551_v47, %v555_v34  ;;  %v5607_v61 = vcombine.low %v2839_v27, %v2842_v63  ;;  %v564_v16 = vor.u32 %v563_v54, %v560_v51  ;;  %v7746_v19 = vld [vmem:[%s7346_s4 + $0xac] sm:$0xf]  ;;  %v264_v51 = vld [vmem:[%s7346_s4 + $0xb0] sm:$0x1] }
  0xd2   : > { %v574_v25 = vor.u32 %v573_v62, %v569_v56  ;;  %v5327_v2 = vcombine.low %v546_v50, %v556_v10  ;;  %v579_v31 = vrot.slane %v577_v46, 5  ;;  %v2848_v33 = vrot.slane %v7481_v18, 5 }
  0xd3   : > { %v2846_v21 = vsel %vm7604_vm7, %v5592_v7, %v2845_v9  ;;  %v2847_v22 = vrot.slane %v2845_v9, 4  ;;  %6277 = vmatmul.mubr.msk.bf16.gmra.mrb[4].mxu0 %vm703_vm4, %v5607_v61  ;;  %v565_v15 = vrot.slane %v564_v16, 4  ;;  %v582_v34 = vshrl.u32 %v7715_v52, 16 }
  0xd4   : > { %v575_v8 = vrot.slane %v574_v25, 4  ;;  %6123 = vmatmul.mubr.msk.bf16.gmra.mrb[20].mxu1 %vm703_vm4, %v5327_v2  ;;  %v585_v39 = vshll.u32 %v7715_v52, 16  ;;  %v591_v40 = vshll.u32 %v7718_v0, 16  ;;  %v595_v41 = vshrl.u32 %v7718_v0, 16 }
  0xd5   : > { %v601_v42 = vshll.u32 %v263_v26, 16  ;;  %v570_v24 = vsel %vm7384_vm3, %v565_v15, %v569_v56  ;;  %v2849_v14 = vsel %vm7604_vm7, %v2847_v22, %v2848_v33  ;;  %v584_v57 = vrot.slane %v582_v34, 4 }
  0xd6   : > { %v580_v18 = vsel %vm7384_vm3, %v575_v8, %v579_v31  ;;  %v5608_v50 = vcombine.low %v2846_v21, %v2849_v14  ;;  %v587_v27 = vrot.slane %v585_v39, 5  ;;  %v593_v36 = vrot.slane %v591_v40, 5  ;;  %v7765_v40 = vld [vmem:[%s7346_s4 + $0xb4] sm:$0xf]  ;;  %v7771_v14 = vld [vmem:[%s7346_s4 + $0xb8] sm:$0xf] }
  0xd7   : > { %v5328_v45 = vcombine.low %v570_v24, %v580_v18  ;;  %v597_v47 = vrot.slane %v595_v41, 4  ;;  %v603_v54 = vrot.slane %v601_v42, 5  ;;  %v5593_v62 = vrot.slane %v5577_v60, 9 }
  0xd8   : > { %v2852_v56 = vrot.slane %v7504_v3, 5  ;;  %6280 = vmatprep.mubr.msk.bf16.mxu0 %vm703_vm4, %v5608_v50  ;;  %v588_v63 = vor.u32 %v587_v27, %v584_v57  ;;  %v2855_v46 = vrot.slane %v7509_v13, 5  ;;  %v606_v7 = vshrl.u32 %v7733_v37, 16  ;;  %v5578_v3 = vld [vmem:[%s7346_s4 + $0x54] sm:$0xe] }
  0xd9   : > { %6126 = vmatprep.mubr.msk.bf16.mxu1 %vm703_vm4, %v5328_v45  ;;  %v609_v9 = vshll.u32 %v7733_v37, 16  ;;  %v598_v10 = vor.u32 %v597_v47, %v593_v36  ;;  %v615_v25 = vshll.u32 %v7746_v19, 16  ;;  %v619_v21 = vshrl.u32 %v7746_v19, 16 }
  0xda   : > { %v2853_v61 = vsel %vm7604_vm7, %v5593_v62, %v2852_v56  ;;  %v2854_v16 = vrot.slane %v2852_v56, 4  ;;  %v589_v26 = vrot.slane %v588_v63, 4  ;;  %v608_v2 = vrot.slane %v606_v7, 4 }
  0xdb   : > { %v611_v31 = vrot.slane %v609_v9, 5  ;;  %v599_v13 = vrot.slane %v598_v10, 4  ;;  %v617_v60 = vrot.slane %v615_v25, 5  ;;  %v625_v15 = vshll.u32 %v264_v51, 16 }
  0xdc   : > { %v2856_v22 = vsel %vm7604_vm7, %v2854_v16, %v2855_v46  ;;  %v594_v8 = vsel %vm7384_vm3, %v589_v26, %v593_v36  ;;  %v621_v39 = vrot.slane %v619_v21, 4  ;;  %v5594_v24 = vrot.slane %v5578_v3, 9  ;;  %v7776_v36 = vld [vmem:[%s7346_s4 + $0xbc] sm:$0x1]  ;;  %v5579_v46 = vld [vmem:[%s7346_s4 + $0x60] sm:$0xe] }
  0xdd   : > { %v5609_v33 = vcombine.low %v2853_v61, %v2856_v22  ;;  %v612_v34 = vor.u32 %v611_v31, %v608_v2  ;;  %v604_v41 = vsel %vm7384_vm3, %v599_v13, %v603_v54  ;;  %v627_v42 = vrot.slane %v625_v15, 5  ;;  %v5580_v16 = vld [vmem:[%s7346_s4 + $0x6c] sm:$0xe]  ;;  %v5517_v31 = vld [vmem:[%s7346_s4 + $0x70] sm:$0xf] }
  0xde   : > { %v2859_v18 = vrot.slane %v7534_v53, 5  ;;  %v5329_v57 = vcombine.low %v594_v8, %v604_v41  ;;  %v622_v50 = vor.u32 %v621_v39, %v617_v60  ;;  %v2862_v27 = vrot.slane %v7539_v1, 5  ;;  %v5518_v21 = vld [vmem:[%s7346_s4 + $0x74] sm:$0x1] }
  0xdf   : > { %6281 = vmatmul.mubr.msk.bf16.gmra.mrb[8].mxu0 %vm703_vm4, %v5609_v33  ;;  %v613_v45 = vrot.slane %v612_v34, 4  ;;  %v630_v54 = vshrl.u32 %v7765_v40, 16  ;;  %v633_v53 = vshll.u32 %v7765_v40, 16  ;;  %v639_v1 = vshll.u32 %v7771_v14, 16 }
  0xe0   : > { %v2860_v51 = vsel %vm7604_vm7, %v5594_v24, %v2859_v18  ;;  %v2861_v47 = vrot.slane %v2859_v18, 4  ;;  %6127 = vmatmul.mubr.msk.bf16.gmra.mrb[24].mxu1 %vm703_vm4, %v5329_v57  ;;  %v623_v56 = vrot.slane %v622_v50, 4  ;;  %v643_v63 = vshrl.u32 %v7771_v14, 16 }
  0xe1   : > { %v618_v62 = vsel %vm7384_vm3, %v613_v45, %v617_v60  ;;  %v632_v9 = vrot.slane %v630_v54, 4  ;;  %v635_v10 = vrot.slane %v633_v53, 5  ;;  %v649_v61 = vshll.u32 %v7776_v36, 16  ;;  %v6926_v54 = vld [vmem:[%s7346_s4] sm:$0xf] }
  0xe2   : > { %v2863_v7 = vsel %vm7604_vm7, %v2861_v47, %v2862_v27  ;;  %v628_v25 = vsel %vm7384_vm3, %v623_v56, %v627_v42  ;;  %v641_v26 = vrot.slane %v639_v1, 5  ;;  %v645_v2 = vrot.slane %v643_v63, 4  ;;  %v5581_v27 = vld [vmem:[%s7346_s4 + $0x78] sm:$0xe]  ;;  %v7813_v53 = vld [vmem:[%s7346_s4 + $0x4] sm:$0xf] }
  0xe3   : > { %v5610_v3 = vcombine.low %v2860_v51, %v2863_v7  ;;  %v5330_v13 = vcombine.low %v618_v62, %v628_v25  ;;  %v636_v22 = vor.u32 %v635_v10, %v632_v9  ;;  %v651_v60 = vrot.slane %v649_v61, 5  ;;  %v7817_v56 = vld [vmem:[%s7346_s4 + $0x7c] sm:$0xf]  ;;  %v7820_v1 = vld [vmem:[%s7346_s4 + $0x80] sm:$0x1] }
  0xe4   : > { %v5595_v15 = vrot.slane %v5579_v46, 9  ;;  %v646_v8 = vor.u32 %v645_v2, %v641_v26  ;;  %v2866_v33 = vrot.slane %v7567_v55, 5  ;;  %v2869_v34 = vrot.slane %v7575_v5, 5  ;;  %v5582_v63 = vld [vmem:[%s7346_s4 + $0x84] sm:$0xe] }
  0xe5   : > { %6284 = vmatprep.mubr.msk.bf16.mxu0 %vm703_vm4, %v5610_v3  ;;  %v5596_v39 = vrot.slane %v5580_v16, 9  ;;  %6130 = vmatprep.mubr.msk.bf16.mxu1 %vm703_vm4, %v5330_v13  ;;  %v637_v41 = vrot.slane %v636_v22, 4  ;;  %v2873_v42 = vrot.slane %v5517_v31, 5  ;;  %v2876_v24 = vrot.slane %v5518_v21, 5  ;;  %v5523_v10 = vld [vmem:[%s7346_s4 + $0x88] sm:$0xf] }
  0xe6   : > { %v647_v18 = vrot.slane %v646_v8, 4  ;;  %v2867_v57 = vsel %vm7604_vm7, %v5595_v15, %v2866_v33  ;;  %v2868_v45 = vrot.slane %v2866_v33, 4  ;;  %v5348_v62 = vcombine.low %v6926_v54, %v7813_v53  ;;  %v5524_v61 = vld [vmem:[%s7346_s4 + $0x8c] sm:$0x1]  ;;  %v5526_v3 = vld [vmem:[%s7346_s4 + $0x94] sm:$0xf] }
  0xe7   : > { %v642_v55 = vsel %vm7384_vm3, %v637_v41, %v641_v26  ;;  %v2874_v5 = vsel %vm7604_vm7, %v5596_v39, %v2873_v42  ;;  %v2875_v50 = vrot.slane %v2873_v42, 4  ;;  %v5597_v25 = vrot.slane %v5581_v27, 9  ;;  %v5527_v22 = vld [vmem:[%s7346_s4 + $0x98] sm:$0x1]  ;;  %v6928_v39 = vld [vmem:[%s7346_s4 + $0xc] sm:$0xf] }
  0xe8   : > { %v652_v51 = vsel %vm7384_vm3, %v647_v18, %v651_v60  ;;  %v2870_v47 = vsel %vm7604_vm7, %v2868_v45, %v2869_v34  ;;  %v2880_v26 = vrot.slane %v7817_v56, 5  ;;  %v2883_v2 = vrot.slane %v7820_v1, 5  ;;  %v5583_v60 = vld [vmem:[%s7346_s4 + $0x90] sm:$0xe]  ;;  %v5529_v34 = vld [vmem:[%s7346_s4 + $0xa0] sm:$0xf] }
  0xe9   : > { %v5331_v46 = vcombine.low %v642_v55, %v652_v51  ;;  %v5611_v7 = vcombine.low %v2867_v57, %v2870_v47  ;;  %v2877_v9 = vsel %vm7604_vm7, %v2875_v50, %v2876_v24  ;;  %v5598_v31 = vrot.slane %v5582_v63, 9  ;;  %v7841_v41 = vld [vmem:[%s7346_s4 + $0x10] sm:$0xf]  ;;  %v5530_v57 = vld [vmem:[%s7346_s4 + $0xa4] sm:$0x1] }
  0xea   : > { %v5612_v16 = vcombine.low %v2874_v5, %v2877_v9  ;;  %v2887_v21 = vrot.slane %v5523_v10, 5  ;;  %v2890_v13 = vrot.slane %v5524_v61, 5  ;;  %v2881_v15 = vsel %vm7604_vm7, %v5597_v25, %v2880_v26  ;;  %v5584_v45 = vld [vmem:[%s7346_s4 + $0x9c] sm:$0xe]  ;;  %v6930_v5 = vld [vmem:[%s7346_s4 + $0x18] sm:$0xf] }
  0xeb   : > { %6131 = vmatmul.mubr.msk.bf16.gmra.mrb[28].mxu1 %vm703_vm4, %v5331_v46  ;;  %6285 = vmatmul.mubr.msk.bf16.gmra.mrb[12].mxu0 %vm703_vm4, %v5611_v7  ;;  %v2882_v8 = vrot.slane %v2880_v26, 4  ;;  %v2894_v33 = vrot.slane %v5526_v3, 5  ;;  %v5349_v42 = vcombine.low %v6928_v39, %v7841_v41  ;;  %v7852_v50 = vld [vmem:[%s7346_s4 + $0x1c] sm:$0xf]  ;;  %v5599_v51 = vrot.slane %v5583_v60, 9 }
  0xec   : > { %6136 = vmatprep.mubr.msk.bf16.mxu1 %vm703_vm4, %v5348_v62  ;;  %6288 = vmatprep.mubr.msk.bf16.mxu0 %vm703_vm4, %v5612_v16  ;;  %v2888_v24 = vsel %vm7604_vm7, %v5598_v31, %v2887_v21  ;;  %v2889_v18 = vrot.slane %v2887_v21, 4  ;;  %v5350_v27 = vcombine.low %v6930_v5, %v7852_v50  ;;  %v2897_v47 = vrot.slane %v5527_v22, 5  ;;  %v5532_v7 = vld [vmem:[%s7346_s4 + $0xac] sm:$0xf]  ;;  %v5535_v9 = vld [vmem:[%s7346_s4 + $0xb8] sm:$0xf] }
  0xed   : > { %v2884_v55 = vsel %vm7604_vm7, %v2882_v8, %v2883_v2  ;;  %v2896_v63 = vrot.slane %v2894_v33, 4  ;;  %v2901_v46 = vrot.slane %v5529_v34, 5  ;;  %v1471_v10 = vsel %vm752_vm0, %v7564_v49, 0  ;;  %v7861_v26 = vld [vmem:[#allocation5 + $0x6] sm:$0x3] }
  0xee   : > { %v5613_v54 = vcombine.low %v2881_v15, %v2884_v55  ;;  %v2891_v62 = vsel %vm7604_vm7, %v2889_v18, %v2890_v13  ;;  %v5600_v16 = vrot.slane %v5584_v45, 9  ;;  %v2904_v25 = vrot.slane %v5530_v57, 5  ;;  %v5533_v31 = vld [vmem:[%s7346_s4 + $0xb0] sm:$0x1]  ;;  %v5585_v60 = vld [vmem:[%s7346_s4 + $0xa8] sm:$0xe] }
  0xef   : > { %v5614_v61 = vcombine.low %v2888_v24, %v2891_v62  ;;  %v2903_v3 = vrot.slane %v2901_v46, 4  ;;  %v2895_v49 = vsel %vm7604_vm7, %v5599_v51, %v2894_v33  ;;  %v2898_v2 = vsel %vm7604_vm7, %v2896_v63, %v2897_v47  ;;  %v5536_v8 = vld [vmem:[%s7346_s4 + $0xbc] sm:$0x1]  ;;  %v5586_v33 = vld [vmem:[%s7346_s4 + $0xb4] sm:$0xe] }
  0xf0   : > { %v2908_v21 = vrot.slane %v5532_v7, 5  ;;  %v2902_v13 = vsel %vm7604_vm7, %v5600_v16, %v2901_v46  ;;  %v2915_v15 = vrot.slane %v5535_v9, 5  ;;  %v6932_v34 = vld [vmem:[%s7346_s4 + $0x24] sm:$0xf]  ;;  %v7883_v39 = vld [vmem:[%s7346_s4 + $0x28] sm:$0xf]  ;;  %v5615_v24 = vcombine.low %v2895_v49, %v2898_v2 }
  0xf1   : > { %v2905_v22 = vsel %vm7604_vm7, %v2903_v3, %v2904_v25  ;;  %v6934_v18 = vld [vmem:[%s7346_s4 + $0x30] sm:$0xf]  ;;  %v7888_v57 = vld [vmem:[%s7346_s4 + $0x34] sm:$0xf]  ;;  %v5538_v55 = vld [vmem:[%s7346_s4 + $0xc4] sm:$0xf] }
  0xf2   : > { %v5352_v45 = vcombine.low %v6934_v18, %v7888_v57  ;;  %v5616_v5 = vcombine.low %v2902_v13, %v2905_v22  ;;  %v2910_v51 = vrot.slane %v2908_v21, 4  ;;  %v2911_v47 = vrot.slane %v5533_v31, 5  ;;  %v5539_v16 = vld [vmem:[%s7346_s4 + $0xc8] sm:$0x1]  ;;  %v5587_v25 = vld [vmem:[%s7346_s4 + $0xc0] sm:$0xe] }
  0xf3   : > { %6137 = vmatmul.mubr.msk.bf16.vlgmr.msra.gmra.mrb[0].mxu1 %vm703_vm4, %v5349_v42  ;;  %6289 = vmatmul.mubr.msk.bf16.gmra.mrb[16].mxu0 %vm703_vm4, %v5613_v54  ;;  %v5351_v42 = vcombine.low %v6932_v34, %v7883_v39  ;;  %v5602_v54 = vrot.slane %v5586_v33, 9  ;;  %v2917_v62 = vrot.slane %v2915_v15, 4  ;;  %v2918_v63 = vrot.slane %v5536_v8, 5  ;;  %v6936_v3 = vld [vmem:[%s7346_s4 + $0x3c] sm:$0xf] }
  0xf4   : > { %6169 = vmatpush3.bf16.msra.mxu1 %v1471_v10  ;;  %6140 = vmatprep.mubr.msk.bf16.mxu1 %vm703_vm4, %v5350_v27  ;;  %v5601_v27 = vrot.slane %v5585_v60, 9  ;;  %v2912_v7 = vsel %vm7604_vm7, %v2910_v51, %v2911_v47  ;;  %v2922_v9 = vrot.slane %v5538_v55, 5  ;;  %v7908_v49 = vld [vmem:[%s7346_s4 + $0x40] sm:$0xf]  ;;  %v5603_v22 = vrot.slane %v5587_v25, 9  ;;  %v6761_v25 = vld [vmem:[%s7346_s4 + $0x24] sm:$0xff]  }
  0xf5   : > { %6292 = vmatprep.mubr.msk.bf16.mxu0 %vm703_vm4, %v5614_v61  ;;  %6667 = vmatprep.subr.msk.bf16.mxu1 %vm752_vm0, %v7861_v26  ;;  %v2916_v10 = vsel %vm7604_vm7, %v5602_v54, %v2915_v15  ;;  %v2919_v61 = vsel %vm7604_vm7, %v2917_v62, %v2918_v63  ;;  %v5353_v2 = vcombine.low %v6936_v3, %v7908_v49  ;;  %v2925_v8 = vrot.slane %v5539_v16, 5  ;;  %v1210_v51 = vld [vmem:[%s7346_s4 + $0xc] sm:$0xe]  ;;  %v7937_v47 = vld [vmem:[%s7346_s4 + $0x8] sm:$0x1] }
  0xf6   : > { %v2909_v46 = vsel %vm7604_vm7, %v5601_v27, %v2908_v21  ;;  %v5354_v21 = vcombine.low %v7512_v11, %v7520_v35  ;;  %v5618_v13 = vcombine.low %v2916_v10, %v2919_v61  ;;  %v2924_v60 = vrot.slane %v2922_v9, 4  ;;  %v1211_v63 = vld [vmem:[%s7346_s4 + $0x18] sm:$0xe]  ;;  %v1212_v61 = vld [vmem:[%s7346_s4 + $0x24] sm:$0xe] }
  0xf7   : > { %v5617_v31 = vcombine.low %v2909_v46, %v2912_v7  ;;  %v2299_v15 = vshll.u32 %v7817_v56, 16  ;;  %v2303_v33 = vshrl.u32 %v7817_v56, 16  ;;  %v2923_v11 = vsel %vm7604_vm7, %v5603_v22, %v2922_v9  ;;  %v1213_v16 = vld [vmem:[%s7346_s4 + $0x30] sm:$0xe] }
  0xf8   : > { %v2926_v35 = vsel %vm7604_vm7, %v2924_v60, %v2925_v8  ;;  %v5356_v18 = vcombine.low %v7581_v17, %v7584_v23  ;;  %v1269_v27 = vrot.slane %v7841_v41, 5  ;;  %v1209_v23 = vld [vmem:[%s7346_s4] sm:$0xe]  ;;  %v5357_v54 = vcombine.low %v7599_v59, %v7614_v28 }
  0xf9   : > { %v7923_v34 = vrot.slane %v2299_v15, 5  ;;  %v2305_v56 = vrot.slane %v2303_v33, 4  ;;  %v1262_v62 = vrot.slane %v7813_v53, 5  ;;  %v4111_v46 = vsel %vm752_vm0, %v7672_v44, 0  ;;  %v1214_v44 = vld [vmem:[%s7346_s4 + $0x3c] sm:$0xe] }
  0xfa   : > { %v5381_v7 = vrot.slane %v1210_v51, 9  ;;  %v1271_v9 = vrot.slane %v1269_v27, 4  ;;  %v1276_v10 = vrot.slane %v7852_v50, 5  ;;  %v5358_v3 = vcombine.low %v7634_v58, %v7637_v48  ;;  %v6763_v53 = vld [vmem:[%s7346_s4 + $0x30] sm:$0xff]   ;;  %v7970_v58 = vld [vmem:[#allocation5 + $0x10] sm:$0x3] }
  0xfb   : > { %6141 = vmatmul.mubr.msk.bf16.gmra.mrb[4].mxu1 %vm703_vm4, %v5351_v42  ;;  %6293 = vmatmul.mubr.msk.bf16.gmra.mrb[20].mxu0 %vm703_vm4, %v5615_v24  ;;  %9386 = vst [vmem:[#allocation13_spill] sm:$0xff] %v7923_v34  ;;  %v5355_v42 = vcombine.low %v7545_v20, %v7551_v29  ;;  %v5619_v24 = vcombine.low %v2923_v11, %v2926_v35  ;;  %v1265_v20 = vrot.slane %v7937_v47, 5  ;;  %v6939_v29 = vld [vmem:[%s7346_s4 + $0x14] sm:$0x1]  ;;  %v1283_v28 = vrot.slane %v7883_v39, 5 }
  0xfc   : > { %6144 = vmatprep.mubr.msk.bf16.mxu1 %vm703_vm4, %v5352_v45  ;;  %6296 = vmatprep.mubr.msk.bf16.mxu0 %vm703_vm4, %v5616_v5  ;;  %v6759_v45 = vld [vmem:[%s7346_s4 + $0x18] sm:$0xff]   ;;  %v2306_v55 = vor.u32 %v2305_v56, %v7923_v34  ;;  %v2309_v5 = vshll.u32 %v7820_v1, 16  ;;  %v1272_v17 = vrot.slane %v6939_v29, 5  ;;  %v5360_v59 = vcombine.low %v7684_v43, %v7698_v32  ;;  %v6940_v33 = vld [vmem:[%s7346_s4 + $0x20] sm:$0x1] }
  0xfd   : > { %v1264_v60 = vrot.slane %v1262_v62, 4  ;;  %v1297_v39 = vrot.slane %v7908_v49, 5  ;;  %v7979_v8 = vsel %vm7604_vm7, %v5381_v7, %v1269_v27  ;;  %v1279_v11 = vrot.slane %v6940_v33, 5  ;;  %v6941_v56 = vld [vmem:[%s7346_s4 + $0x2c] sm:$0x1] }
  0xfe   : > { %v7944_v1 = vrot.slane %v2306_v55, 4  ;;  %v7946_v41 = vrot.slane %v2309_v5, 5  ;;  %v7983_v15 = vsel %vm7604_vm7, %v1271_v9, %v1272_v17  ;;  %v5383_v49 = vrot.slane %v1212_v61, 9  ;;  %v1215_v27 = vld [vmem:[%s7346_s4 + $0x48] sm:$0xe]  ;;  %v6765_v17 = vld [vmem:[%s7346_s4 + $0x3c] sm:$0xff]  }
  0xff   : > { %v1285_v35 = vrot.slane %v1283_v28, 4  ;;  %v5385_v5 = vrot.slane %v1214_v44, 9  ;;  %v6943_v51 = vld [vmem:[%s7346_s4 + $0x4c] sm:$0xf]  ;;  %v8010_v9 = vsel %vm7604_vm7, %v1264_v60, %v1265_v20  ;;  %v5386_v44 = vrot.slane %v1215_v27, 9 }
 0x100   : > { %9387 = vst [vmem:[#allocation14_spill] sm:$0xff] %v7944_v1  ;;  %9388 = vst [vmem:[#allocation15_spill] sm:$0xff] %v7946_v41  ;;  %v1304_v29 = vrot.slane %v6943_v51, 5  ;;  %v8027_v47 = vsel %vm7604_vm7, %v5383_v49, %v1283_v28  ;;  %v6945_v60 = vld [vmem:[%s7346_s4 + $0x50] sm:$0x1]  ;;  %vm5167_vm8 = vcmask 257024  }
 0x101   : > { %v6947_v51 = vld [vmem:[%s7346_s4 + $0x5c] sm:$0x1]  ;;  %v5702_v43 = vld [vmem:[%s7346_s4 + $0x20] sm:$0x1]  ;;  %v5704_v32 = vld [vmem:[%s7346_s4 + $0x28] sm:$0xf] }
 0x102   : > { %v1306_v28 = vrot.slane %v1304_v29, 4  ;;  %v8287_v34 = vld [vmem:[%s7346_s4 + $0x64] sm:$0xf] }
 0x103   : > { %6145 = vmatmul.mubr.msk.bf16.gmra.mrb[8].mxu1 %vm703_vm4, %v5353_v2  ;;  %6297 = vmatmul.mubr.msk.bf16.gmra.mrb[24].mxu0 %vm703_vm4, %v5617_v31  ;;  %v5359_v2 = vcombine.low %v7658_v12, %v7668_v38  ;;  %v5380_v31 = vrot.slane %v1209_v23, 9  ;;  %v5703_v12 = vld [vmem:[%s7346_s4 + $0x24] sm:$0xf]  ;;  %9401 = vst [vmem:[#allocation22_spill] sm:$0xff] %v8287_v34 }
 0x104   : > { %6148 = vmatprep.mubr.msk.bf16.mxu1 %vm703_vm4, %v5354_v21  ;;  %6300 = vmatprep.mubr.msk.bf16.mxu0 %vm703_vm4, %v5618_v13  ;;  %v5382_v21 = vrot.slane %v1211_v63, 9  ;;  %v1290_v13 = vrot.slane %v7888_v57, 5  ;;  %v1278_v57 = vrot.slane %v1276_v10, 4  ;;  %v1299_v63 = vrot.slane %v1297_v39, 4 }
 0x105   : > { %v7997_v23 = vsel %vm7604_vm7, %v5380_v31, %v1262_v62 }
 0x106   : > { %v8020_v61 = vsel %vm7604_vm7, %v1278_v57, %v1279_v11  ;;  %v1307_v57 = vrot.slane %v6945_v60, 5  ;;  %v3656_v60 = vshll.u32 %v5703_v12, 16 }
 0x108   : > { %v3658_v50 = vrot.slane %v3656_v60, 5  ;;  %v8144_v60 = vld [vmem:[%s7346_s4 + $0x38] sm:$0x1] }
 0x109   : > { %9392 = vst [vmem:[#allocation17_spill] sm:$0xff] %v8144_v60 }
 0x10b   : > { %6149 = vmatmul.mubr.msk.bf16.gmra.mrb[12].mxu1 %vm703_vm4, %v5355_v42  ;;  %6301 = vmatmul.mubr.msk.bf16.gmra.mrb[28].mxu0 %vm703_vm4, %v5619_v24  ;;  %v1286_v42 = vrot.slane %v6941_v56, 5  ;;  %v5384_v24 = vrot.slane %v1213_v16, 9  ;;  %v1216_v16 = vld [vmem:[%s7346_s4 + $0x54] sm:$0xe] }
 0x10c   : > { %6152 = vmatprep.mubr.msk.bf16.mxu1 %vm703_vm4, %v5356_v18  ;;  %6306 = vmatprep.mubr.msk.bf16.mxu0 %vm703_vm4, %v6759_v45  ;;  %v1292_v18 = vrot.slane %v1290_v13, 4  ;;  %v6942_v45 = vld [vmem:[%s7346_s4 + $0x38] sm:$0x1] }
 0x10d   : > { %v1293_v55 = vrot.slane %v6942_v45, 5  ;;  %v8031_v20 = vsel %vm7604_vm7, %v1285_v35, %v1286_v42  ;;  %v3662_v45 = vshll.u32 %v5704_v32, 16 }
 0x10f   : > { %v8040_v31 = vsel %vm7604_vm7, %v1292_v18, %v1293_v55  ;;  %v8069_v55 = vsel %vm7604_vm7, %v5386_v44, %v1304_v29  ;;  %v1314_v29 = vrot.slane %v6947_v51, 5  ;;  %v1218_v51 = vld [vmem:[%s7346_s4 + $0x6c] sm:$0xe]  ;;  %v6771_v18 = vld [vmem:[%s7346_s4 + $0x60] sm:$0xff]  }
 0x113   : > { %6153 = vmatmul.mubr.msk.bf16.gmra.mrb[16].mxu1 %vm703_vm4, %v5357_v54  ;;  %6307 = vmatmul.mubr.msk.bf16.vlgmr.msra.gmra.mrb[0].mxu0 %vm703_vm4, %v6761_v25  ;;  %v8001_v54 = vsel %vm752_vm0, %v7861_v26, 0  ;;  %v8016_v26 = vsel %vm7604_vm7, %v5382_v21, %v1276_v10  ;;  %v5700_v25 = vld [vmem:[%s7346_s4 + $0x18] sm:$0xf]  ;;  %v8035_v10 = vsel %vm7604_vm7, %v5384_v24, %v1290_v13  ;;  %v8044_v21 = vsel %vm7604_vm7, %v5385_v5, %v1297_v39  ;;  %v8056_v39 = vld [vmem:[%s7346_s4 + $0x60] sm:$0xe] }
 0x114   : > { %6339 = vmatpush3.bf16.msra.mxu0 %v4111_v46  ;;  %6156 = vmatprep.mubr.msk.bf16.mxu1 %vm703_vm4, %v5358_v3  ;;  %v6944_v46 = vld [vmem:[%s7346_s4 + $0x44] sm:$0x1]  ;;  %v6767_v3 = vld [vmem:[%s7346_s4 + $0x48] sm:$0xff]   ;;  %v5387_v13 = vrot.slane %v1216_v16, 9  ;;  %v3629_v11 = vshrl.u32 %v5700_v25, 16  ;;  %v3632_v49 = vshll.u32 %v5700_v25, 16  ;;  %v9404_v4 = vcombine.low %v8035_v10, %v8040_v31 }
 0x115   : > { %6310 = vmatprep.mubr.msk.bf16.mxu0 %vm703_vm4, %v6763_v53  ;;  %v1300_v7 = vrot.slane %v6944_v46, 5  ;;  %6673 = vmatprep.subr.msk.bf16.mxu0 %vm752_vm0, %v7970_v58  ;;  %v5701_v53 = vld [vmem:[%s7346_s4 + $0x1c] sm:$0xf]  ;;  %v6946_v5 = vld [vmem:[%s7346_s4 + $0x58] sm:$0xf] }
 0x116   : > { %v3638_v42 = vshll.u32 %v5701_v53, 16  ;;  %v3642_v24 = vshrl.u32 %v5701_v53, 16  ;;  %v1311_v27 = vrot.slane %v6946_v5, 5  ;;  %v6769_v46 = vld [vmem:[%s7346_s4 + $0x54] sm:$0xff]   ;;  %v3631_v16 = vrot.slane %v3629_v11, 4 }
 0x117   : > { %v8049_v33 = vsel %vm7604_vm7, %v1299_v63, %v1300_v7  ;;  %v5388_v7 = vrot.slane %v8056_v39, 9  ;;  %v3634_v25 = vrot.slane %v3632_v49, 5  ;;  %v6950_v39 = vld [vmem:[%s7346_s4 + $0x68] sm:$0x1] }
 0x118   : > { %v8095_v44 = vrot.slane %v3638_v42, 5  ;;  %v3644_v53 = vrot.slane %v3642_v24, 4  ;;  %v1313_v5 = vrot.slane %v1311_v27, 4  ;;  %v1321_v11 = vrot.slane %v6950_v39, 5  ;;  %v6951_v39 = vld [vmem:[%s7346_s4 + $0x74] sm:$0x1] }
 0x119   : > { %v3635_v35 = vor.u32 %v3634_v25, %v3631_v16  ;;  %v3648_v42 = vshll.u32 %v5702_v43, 16  ;;  %v8109_v16 = vrot.slane %v3662_v45, 5  ;;  %v9390_v25 = vcombine.low %v7733_v37, %v7746_v19  ;;  %v8125_v45 = vld [vmem:[%s7346_s4 + $0x2c] sm:$0x1] }
 0x11a   : > { %9391 = vst [vmem:[#allocation16_spill] sm:$0xff] %v8125_v45 }
 0x11b   : > { %6157 = vmatmul.mubr.msk.bf16.gmra.mrb[20].mxu1 %vm703_vm4, %v5359_v2  ;;  %6311 = vmatmul.mubr.msk.bf16.gmra.mrb[4].mxu0 %vm703_vm4, %v6765_v17  ;;  %v8082_v2 = vsel %vm7604_vm7, %v1306_v28, %v1307_v57  ;;  %v6948_v17 = vld [vmem:[%s7346_s4 + $0x64] sm:$0xf]  ;;  %v3653_v28 = vshrl.u32 %v5703_v12, 16  ;;  %v5707_v57 = vld [vmem:[%s7346_s4 + $0x34] sm:$0xf]  ;;  %v3645_v12 = vor.u32 %v3644_v53, %v8095_v44 }
 0x11c   : > { %6160 = vmatprep.mubr.msk.bf16.mxu1 %vm703_vm4, %v5360_v59  ;;  %6314 = vmatprep.mubr.msk.bf16.mxu0 %vm703_vm4, %v6767_v3  ;;  %v1318_v63 = vrot.slane %v6948_v17, 5  ;;  %v8091_v59 = vsel %vm7604_vm7, %v5387_v13, %v1311_v27  ;;  %v5706_v3 = vld [vmem:[%s7346_s4 + $0x30] sm:$0xf]  ;;  %v3666_v13 = vshrl.u32 %v5704_v32, 16  ;;  %v3686_v22 = vshll.u32 %v5707_v57, 16 }
 0x11d   : > { %v6949_v17 = vld [vmem:[%s7346_s4 + $0x70] sm:$0xf]  ;;  %v3677_v62 = vshrl.u32 %v5706_v3, 16  ;;  %v3680_v49 = vshll.u32 %v5706_v3, 16  ;;  %v3690_v24 = vshrl.u32 %v5707_v57, 16  ;;  %v5389_v27 = vrot.slane %v1218_v51, 9 }
 0x11e   : > { %v1325_v38 = vrot.slane %v6949_v17, 5  ;;  %v1320_v56 = vrot.slane %v1318_v63, 4  ;;  %v3655_v48 = vrot.slane %v3653_v28, 4  ;;  %v9389_v32 = vcombine.low %v7715_v52, %v7718_v0  ;;  %v6952_v51 = vld [vmem:[%s7346_s4 + $0x7c] sm:$0xf] }
 0x11f   : > { %v1328_v3 = vrot.slane %v6951_v39, 5  ;;  %v3668_v43 = vrot.slane %v3666_v13, 4  ;;  %v8118_v52 = vsel %vm7604_vm7, %v1313_v5, %v1314_v29  ;;  %v8122_v0 = vsel %vm7604_vm7, %v5388_v7, %v1318_v63  ;;  %v1219_v5 = vld [vmem:[%s7346_s4 + $0x78] sm:$0xe]  ;;  %v5709_v39 = vld [vmem:[%s7346_s4 + $0x3c] sm:$0xf] }
 0x120   : > { %v1327_v17 = vrot.slane %v1325_v38, 4  ;;  %v3682_v37 = vrot.slane %v3680_v49, 5  ;;  %v8129_v19 = vsel %vm7604_vm7, %v1320_v56, %v1321_v11  ;;  %v8133_v53 = vrot.slane %v3686_v22, 5  ;;  %v6773_v56 = vld [vmem:[%s7346_s4 + $0x6c] sm:$0xff]  }
 0x121   : > { %v3692_v29 = vrot.slane %v3690_v24, 4  ;;  %v8135_v28 = vrot.slane %v3645_v12, 4  ;;  %v8137_v63 = vrot.slane %v3648_v42, 5  ;;  %v8141_v7 = vsel %vm7604_vm7, %v5389_v27, %v1325_v38  ;;  %v6774_v38 = vld [vmem:[%s7346_s4 + $0x78] sm:$0xff]   ;;  %v1220_v27 = vld [vmem:[%s7346_s4 + $0x84] sm:$0xe] }
 0x122   : > { %v3669_v22 = vor.u32 %v3668_v43, %v8109_v16  ;;  %v3672_v57 = vshll.u32 %v8125_v45, 16  ;;  %v1332_v13 = vrot.slane %v6952_v51, 5  ;;  %v3696_v12 = vshll.u32 %v8144_v60, 16  ;;  %v6954_v51 = vld [vmem:[%s7346_s4 + $0x80] sm:$0x1] }
 0x123   : > { %6161 = vmatmul.mubr.msk.bf16.gmra.mrb[24].mxu1 %vm703_vm4, %v9389_v32  ;;  %6315 = vmatmul.mubr.msk.bf16.gmra.mrb[8].mxu0 %vm703_vm4, %v6769_v46  ;;  %v3679_v46 = vrot.slane %v3677_v62, 4  ;;  %v3659_v62 = vor.u32 %v3658_v50, %v3655_v48  ;;  %v3693_v24 = vor.u32 %v3692_v29, %v8133_v53  ;;  %v6953_v32 = vld [vmem:[%s7346_s4 + $0x88] sm:$0xf]  ;;  %v6955_v43 = vld [vmem:[%s7346_s4 + $0x8c] sm:$0x1] }
 0x124   : > { %6164 = vmatprep.mubr.msk.bf16.mxu1 %vm703_vm4, %v9390_v25  ;;  %6318 = vmatprep.mubr.msk.bf16.mxu0 %vm703_vm4, %v6771_v18  ;;  %v8131_v18 = vrot.slane %v3635_v35, 4  ;;  %v8149_v35 = vsel %vm7604_vm7, %v1327_v17, %v1328_v3  ;;  %v1339_v17 = vrot.slane %v6953_v32, 5  ;;  %v3651_v3 = vsel %vm7384_vm3, %v8135_v28, %v8137_v63  ;;  %v8184_v28 = vld [vmem:[%s7346_s4 + $0x40] sm:$0xf] }
 0x125   : > { %v3683_v49 = vor.u32 %v3682_v37, %v3679_v46  ;;  %v3660_v25 = vrot.slane %v3659_v62, 4  ;;  %v9393_v46 = vcombine.low %v7765_v40, %v7771_v14  ;;  %v3670_v37 = vrot.slane %v3669_v22, 4  ;;  %9394 = vst [vmem:[#allocation18_spill] sm:$0xff] %v8184_v28 }
 0x126   : > { %v3641_v42 = vsel %vm7384_vm3, %v8131_v18, %v8095_v44  ;;  %v5390_v44 = vrot.slane %v1219_v5, 9  ;;  %v3674_v18 = vrot.slane %v3672_v57, 5  ;;  %v1334_v29 = vrot.slane %v1332_v13, 4  ;;  %v5712_v5 = vld [vmem:[%s7346_s4 + $0x48] sm:$0xf] }
 0x127   : > { %v1335_v32 = vrot.slane %v6954_v51, 5  ;;  %v9395_v63 = vcombine.low %v7997_v23, %v8010_v9  ;;  %v3684_v40 = vrot.slane %v3683_v49, 4  ;;  %v5391_v62 = vrot.slane %v1220_v27, 9  ;;  %v8203_v27 = vld [vmem:[%s7346_s4 + $0x4c] sm:$0xf] }
 0x128   : > { %v3704_v22 = vshll.u32 %v5709_v39, 16  ;;  %v3694_v57 = vrot.slane %v3693_v24, 4  ;;  %v1341_v51 = vrot.slane %v1339_v17, 4  ;;  %v1342_v11 = vrot.slane %v6955_v43, 5  ;;  %v6775_v24 = vld [vmem:[%s7346_s4 + $0x84] sm:$0xff]  }
 0x129   : > { %v3665_v23 = vsel %vm7384_vm3, %v3660_v25, %v8109_v16  ;;  %v8198_v9 = vsel %vm7604_vm7, %v5390_v44, %v1332_v13  ;;  %v3714_v49 = vshrl.u32 %v8184_v28, 16  ;;  %v3725_v43 = vshrl.u32 %v5712_v5, 16  ;;  %v8220_v44 = vld [vmem:[%s7346_s4 + $0x44] sm:$0x1] }
 0x12a   : > { %v3728_v16 = vshll.u32 %v5712_v5, 16  ;;  %v3689_v13 = vsel %vm7384_vm3, %v3684_v40, %v8133_v53  ;;  %v8217_v25 = vsel %vm7604_vm7, %v5391_v62, %v1339_v17  ;;  %9396 = vst [vmem:[#allocation19_spill] sm:$0xff] %v8220_v44  ;;  %v3706_v48 = vrot.slane %v3704_v22, 5  ;;  %v5715_v22 = vld [vmem:[%s7346_s4 + $0x54] sm:$0xf] }
 0x12b   : > { %6165 = vmatmul.mubr.msk.bf16.gmra.mrb[28].mxu1 %vm703_vm4, %v9393_v46  ;;  %6319 = vmatmul.mubr.msk.bf16.gmra.mrb[12].mxu0 %vm703_vm4, %v6773_v56  ;;  %v3701_v56 = vshrl.u32 %v5709_v39, 16  ;;  %v3698_v46 = vrot.slane %v3696_v12, 5  ;;  %v3675_v12 = vsel %vm7384_vm3, %v3670_v37, %v3674_v18  ;;  %v8210_v39 = vsel %vm7604_vm7, %v1334_v29, %v1335_v32  ;;  %v6776_v37 = vld [vmem:[%s7346_s4 + $0x90] sm:$0xff]  }
 0x12c   : > { %6170 = vmatprep.mubr.msk.bf16.mxu1 %vm703_vm4, %v9395_v63  ;;  %6322 = vmatprep.mubr.msk.bf16.mxu0 %vm703_vm4, %v6774_v38  ;;  %v3710_v38 = vshll.u32 %v8184_v28, 16  ;;  %v8227_v29 = vsel %vm7604_vm7, %v1341_v51, %v1342_v11  ;;  %v3734_v32 = vshll.u32 %v8203_v27, 16  ;;  %v3738_v53 = vshrl.u32 %v8203_v27, 16  ;;  %v1222_v11 = vld [vmem:[%s7346_s4 + $0x9c] sm:$0xe] }
 0x12d   : > { %v3703_v63 = vrot.slane %v3701_v56, 4  ;;  %v3699_v18 = vsel %vm7384_vm3, %v3694_v57, %v3698_v46  ;;  %v8231_v40 = vcombine.low %v3641_v42, %v3651_v3  ;;  %v8233_v17 = vcombine.low %v3665_v23, %v3675_v12  ;;  %v8247_v46 = vld [vmem:[%s7346_s4 + $0x58] sm:$0xf] }
 0x12e   : > { %v8235_v62 = vrot.slane %v3710_v38, 5  ;;  %v3716_v56 = vrot.slane %v3714_v49, 4  ;;  %v9397_v5 = vcombine.low %v7979_v8, %v7983_v15  ;;  %v3720_v42 = vshll.u32 %v8220_v44, 16  ;;  %9398 = vst [vmem:[#allocation20_spill] sm:$0xff] %v8247_v46  ;;  %v1221_v49 = vld [vmem:[%s7346_s4 + $0x90] sm:$0xe] }
 0x12f   : > { %v3727_v3 = vrot.slane %v3725_v43, 4  ;;  %v3730_v57 = vrot.slane %v3728_v16, 5  ;;  %v9399_v51 = vcombine.low %v8016_v26, %v8020_v61  ;;  %v8256_v8 = vsel %vm752_vm0, %v7970_v58, 0  ;;  %v5718_v58 = vld [vmem:[%s7346_s4 + $0x60] sm:$0xf] }
 0x130   : > { %v8258_v15 = vcombine.low %v3689_v13, %v3699_v18  ;;  %v3707_v38 = vor.u32 %v3706_v48, %v3703_v63  ;;  %v3740_v26 = vrot.slane %v3738_v53, 4  ;;  %v3749_v61 = vshrl.u32 %v5715_v22, 16  ;;  %v6956_v12 = vld [vmem:[#allocation5 + $0x8] sm:$0x3]  ;;  %v6957_v48 = vld [vmem:[%s7346_s4 + $0x94] sm:$0xf] }
 0x131   : > { %v3717_v43 = vor.u32 %v3716_v56, %v8235_v62  ;;  %v1346_v16 = vrot.slane %v6957_v48, 5  ;;  %v8271_v13 = vld [vmem:[%s7346_s4 + $0x50] sm:$0x1]  ;;  %v3758_v63 = vshll.u32 %v8247_v46, 16  ;;  %v6777_v18 = vld [vmem:[%s7346_s4 + $0x9c] sm:$0xff]   ;;  %v8277_v53 = vrot.slane %v3720_v42, 5 }
 0x132   : > { %9400 = vst [vmem:[#allocation21_spill] sm:$0xff] %v8271_v13  ;;  %v8280_v56 = vrot.slane %v3707_v38, 4  ;;  %v6959_v23 = vld [vmem:[%s7346_s4 + $0x98] sm:$0x1]  ;;  %v3773_v50 = vshrl.u32 %v5718_v58, 16  ;;  %v3776_v44 = vshll.u32 %v5718_v58, 16 }
 0x133   : > { %6171 = vmatmul.mubr.msk.bf16.vlgmr.msra.gmra.mrb[0].mxu1 %vm703_vm4, %v9397_v5  ;;  %6323 = vmatmul.mubr.msk.bf16.gmra.mrb[16].mxu0 %vm703_vm4, %v6775_v24  ;;  %v3752_v24 = vshll.u32 %v5715_v22, 16  ;;  %v5392_v22 = vrot.slane %v1221_v49, 9  ;;  %v3731_v5 = vor.u32 %v3730_v57, %v3727_v3  ;;  %v1349_v48 = vrot.slane %v6959_v23, 5  ;;  %v8290_v49 = vld [vmem:[%s7346_s4 + $0x5c] sm:$0x1] }
 0x134   : > { %6203 = vmatpush3.bf16.msra.mxu1 %v8001_v54  ;;  %6174 = vmatprep.mubr.msk.bf16.mxu1 %vm703_vm4, %v9399_v51  ;;  %v8264_v54 = vrot.slane %v3734_v32, 5  ;;  %v6778_v32 = vld [vmem:[%s7346_s4 + $0xa8] sm:$0xff]   ;;  %v6958_v51 = vld [vmem:[%s7346_s4 + $0xa0] sm:$0xf]  ;;  %v3744_v60 = vshll.u32 %v8271_v13, 16  ;;  %v3751_v45 = vrot.slane %v3749_v61, 4  ;;  %v9403_v23 = vcombine.low %v8027_v47, %v8031_v20 }
 0x135   : > { %6326 = vmatprep.mubr.msk.bf16.mxu0 %vm703_vm4, %v6776_v37  ;;  %6669 = vmatprep.subr.msk.bf16.mxu1 %vm752_vm0, %v6956_v12  ;;  %v3762_v37 = vshrl.u32 %v8247_v46, 16  ;;  %v1353_v12 = vrot.slane %v6958_v51, 5  ;;  %v3754_v42 = vrot.slane %v3752_v24, 5  ;;  %v3718_v3 = vrot.slane %v3717_v43, 4  ;;  %9402 = vst [vmem:[#allocation23_spill] sm:$0xff] %v8290_v49 }
 0x136   : > { %v3741_v28 = vor.u32 %v3740_v26, %v8264_v54  ;;  %v1348_v57 = vrot.slane %v1346_v16, 4  ;;  %v8292_v38 = vrot.slane %v3758_v63, 5  ;;  %v3732_v26 = vrot.slane %v3731_v5, 4  ;;  %v6960_v24 = vld [vmem:[%s7346_s4 + $0xa4] sm:$0x1] }
 0x137   : > { %v3764_v51 = vrot.slane %v3762_v37, 4  ;;  %v5393_v58 = vrot.slane %v1222_v11, 9  ;;  %v1355_v61 = vrot.slane %v1353_v12, 4  ;;  %v1356_v43 = vrot.slane %v6960_v24, 5 }
 0x138   : > { %v3775_v47 = vrot.slane %v3773_v50, 4  ;;  %v3778_v20 = vrot.slane %v3776_v44, 5  ;;  %v3782_v63 = vshll.u32 %v8287_v34, 16  ;;  %v3786_v37 = vshrl.u32 %v8287_v34, 16  ;;  %v1223_v50 = vld [vmem:[%s7346_s4 + $0xa8] sm:$0xe] }
 0x139   : > { %v3742_v11 = vrot.slane %v3741_v28, 4  ;;  %v3755_v5 = vor.u32 %v3754_v42, %v3751_v45  ;;  %v8314_v10 = vsel %vm7604_vm7, %v5392_v22, %v1346_v16  ;;  %v3765_v31 = vor.u32 %v3764_v51, %v8292_v38  ;;  %v6961_v44 = vld [vmem:[%s7346_s4 + $0xac] sm:$0xf]  ;;  %v8335_v22 = vld [vmem:[%s7346_s4 + $0x68] sm:$0x1] }
 0x13a   : > { %v1360_v28 = vrot.slane %v6961_v44, 5  ;;  %v3723_v45 = vsel %vm7384_vm3, %v3718_v3, %v8277_v53  ;;  %v8332_v16 = vsel %vm7604_vm7, %v5393_v58, %v1353_v12  ;;  %9406 = vst [vmem:[#allocation25_spill] sm:$0xff] %v8335_v22  ;;  %v8340_v42 = vsel %vm7604_vm7, %v1355_v61, %v1356_v43  ;;  %v1224_v58 = vld [vmem:[%s7346_s4 + $0xb4] sm:$0xe]  ;;  %v6962_v61 = vld [vmem:[%s7346_s4 + $0xb0] sm:$0x1] }
 0x13b   : > { %6175 = vmatmul.mubr.msk.bf16.gmra.mrb[4].mxu1 %vm703_vm4, %v9403_v23  ;;  %6327 = vmatmul.mubr.msk.bf16.gmra.mrb[20].mxu0 %vm703_vm4, %v6777_v18  ;;  %v3746_v18 = vrot.slane %v3744_v60, 5  ;;  %v3768_v23 = vshll.u32 %v8290_v49, 16  ;;  %v8325_v60 = vsel %vm7604_vm7, %v1348_v57, %v1349_v48  ;;  %9405 = vst [vmem:[#allocation24_spill] sm:$0xff] %v8332_v16  ;;  %9407 = vst [vmem:[#allocation26_spill] sm:$0xff] %v8340_v42  ;;  %v8342_v3 = vrot.slane %v3782_v63, 5 }
 0x13c   : > { %6178 = vmatprep.mubr.msk.bf16.mxu1 %vm703_vm4, %v9404_v4  ;;  %6330 = vmatprep.mubr.msk.bf16.mxu0 %vm703_vm4, %v6778_v32  ;;  %v3713_v4 = vsel %vm7384_vm3, %v8280_v56, %v8235_v62  ;;  %v6779_v32 = vld [vmem:[%s7346_s4 + $0xb4] sm:$0xff]   ;;  %v3737_v62 = vsel %vm7384_vm3, %v3732_v26, %v8264_v54  ;;  %v6780_v56 = vld [vmem:[%s7346_s4 + $0xc0] sm:$0xff]   ;;  %v3779_v53 = vor.u32 %v3778_v20, %v3775_v47  ;;  %v3788_v48 = vrot.slane %v3786_v37, 4  ;;  %v5721_v57 = vld [vmem:[%s7346_s4 + $0x6c] sm:$0xf] }
 0x13d   : > { %v3747_v54 = vsel %vm7384_vm3, %v3742_v11, %v3746_v18  ;;  %v8347_v51 = vrot.slane %v3755_v5, 4  ;;  %v8349_v26 = vrot.slane %v3768_v23, 5  ;;  %v5394_v12 = vrot.slane %v1223_v50, 9  ;;  %v6781_v50 = vld [vmem:[%s7346_s4 + $0xcc] sm:$0xff]   ;;  %v8469_v34 = vld [vmem:[%s7346_s4 + $0x98] sm:$0x1] }
 0x13e   : > { %v8352_v24 = vrot.slane %v3765_v31, 4  ;;  %v1362_v44 = vrot.slane %v1360_v28, 4  ;;  %v1363_v43 = vrot.slane %v6962_v61, 5  ;;  %v3792_v47 = vshll.u32 %v8335_v22, 16  ;;  %v8375_v31 = vld [vmem:[%s7346_s4 + $0x70] sm:$0xf] }
 0x13f   : > { %v9408_v20 = vcombine.low %v8044_v21, %v8049_v33  ;;  %v8361_v63 = vcombine.low %v3713_v4, %v3723_v45  ;;  %v3797_v11 = vshrl.u32 %v5721_v57, 16  ;;  %v3800_v18 = vshll.u32 %v5721_v57, 16  ;;  %9410 = vst [vmem:[#allocation27_spill] sm:$0xff] %v8375_v31  ;;  %v8403_v57 = vld [vmem:[%s7346_s4 + $0x7c] sm:$0xf] }
 0x140   : > { %v9409_v5 = vcombine.low %v8069_v55, %v8082_v2  ;;  %v8370_v21 = vrot.slane %v3779_v53, 4  ;;  %v3789_v33 = vor.u32 %v3788_v48, %v8342_v3  ;;  %v5395_v23 = vrot.slane %v1224_v58, 9  ;;  %9411 = vst [vmem:[#allocation28_spill] sm:$0xff] %v8403_v57  ;;  %v8432_v48 = vld [vmem:[%s7346_s4 + $0x94] sm:$0xf] }
 0x141   : > { %v1367_v4 = vrot.slane %v7771_v14, 5  ;;  %v8388_v45 = vsel %vm7604_vm7, %v5394_v12, %v1360_v28  ;;  %v8399_v53 = vrot.slane %v3792_v47, 5  ;;  %v5727_v28 = vld [vmem:[%s7346_s4 + $0x84] sm:$0xf]  ;;  %v8408_v12 = vrot.slane %v3800_v18, 5  ;;  %9414 = vst [vmem:[#allocation31_spill] sm:$0xff] %v8432_v48 }
 0x142   : > { %v3806_v58 = vshll.u32 %v8375_v31, 16  ;;  %v3810_v61 = vshrl.u32 %v8375_v31, 16  ;;  %v8426_v18 = vld [vmem:[%s7346_s4 + $0x74] sm:$0x1]  ;;  %v3830_v14 = vshll.u32 %v8403_v57, 16  ;;  %v3834_v37 = vshrl.u32 %v8403_v57, 16 }
 0x143   : > { %6179 = vmatmul.mubr.msk.bf16.gmra.mrb[8].mxu1 %vm703_vm4, %v9408_v20  ;;  %6331 = vmatmul.mubr.msk.bf16.gmra.mrb[24].mxu0 %vm703_vm4, %v6779_v32  ;;  %v8378_v32 = vcombine.low %v3737_v62, %v3747_v54  ;;  %v8397_v62 = vsel %vm7604_vm7, %v1362_v44, %v1363_v43  ;;  %v8406_v54 = vrot.slane %v3797_v11, 4  ;;  %v8413_v20 = vld [vmem:[%s7346_s4 + $0x88] sm:$0xf]  ;;  %v8419_v43 = vrot.slane %v3789_v33, 4  ;;  %9413 = vst [vmem:[#allocation30_spill] sm:$0xff] %v8426_v18 }
 0x144   : > { %6182 = vmatprep.mubr.msk.bf16.mxu1 %vm703_vm4, %v9409_v5  ;;  %6334 = vmatprep.mubr.msk.bf16.mxu0 %vm703_vm4, %v6780_v56  ;;  %v5724_v56 = vld [vmem:[%s7346_s4 + $0x78] sm:$0xf]  ;;  %9412 = vst [vmem:[#allocation29_spill] sm:$0xff] %v8413_v20  ;;  %v8423_v47 = vsel %vm7604_vm7, %v5395_v23, %v1367_v4  ;;  %v1369_v11 = vrot.slane %v1367_v4, 4  ;;  %v5730_v5 = vld [vmem:[%s7346_s4 + $0x90] sm:$0xf]  ;;  %v9415_v4 = vcombine.low %v8091_v59, %v8118_v52 }
 0x145   : > { %v3821_v55 = vshrl.u32 %v5724_v56, 16  ;;  %v3824_v2 = vshll.u32 %v5724_v56, 16  ;;  %v3845_v44 = vshrl.u32 %v5727_v28, 16  ;;  %v3848_v33 = vshll.u32 %v5727_v28, 16  ;;  %v5733_v31 = vld [vmem:[%s7346_s4 + $0x9c] sm:$0xf] }
 0x146   : > { %v3854_v1 = vshll.u32 %v8413_v20, 16  ;;  %v3858_v23 = vshrl.u32 %v8413_v20, 16  ;;  %v3803_v56 = vor.u32 %v8408_v12, %v8406_v54  ;;  %v8443_v41 = vrot.slane %v3806_v58, 5  ;;  %v8456_v12 = vld [vmem:[%s7346_s4 + $0xa0] sm:$0xf] }
 0x147   : > { %v3812_v28 = vrot.slane %v3810_v61, 4  ;;  %v3816_v57 = vshll.u32 %v8426_v18, 16  ;;  %v9416_v20 = vcombine.low %v8122_v0, %v8129_v19  ;;  %v3869_v59 = vshrl.u32 %v5730_v5, 16  ;;  %9417 = vst [vmem:[#allocation32_spill] sm:$0xff] %v8456_v12  ;;  %v8459_v58 = vld [vmem:[%s7346_s4 + $0x80] sm:$0x1] }
 0x148   : > { %v3872_v52 = vshll.u32 %v5730_v5, 16  ;;  %v3882_v54 = vshrl.u32 %v8432_v48, 16  ;;  %v3823_v61 = vrot.slane %v3821_v55, 4  ;;  %v8461_v18 = vrot.slane %v3830_v14, 5  ;;  %v8464_v19 = vld [vmem:[%s7346_s4 + $0x8c] sm:$0x1] }
 0x149   : > { %v3836_v0 = vrot.slane %v3834_v37, 4  ;;  %v8466_v22 = vrot.slane %v3854_v1, 5  ;;  %v3860_v5 = vrot.slane %v3858_v23, 4  ;;  %v3893_v49 = vshrl.u32 %v5733_v31, 16 }
 0x14a   : > { %v3902_v42 = vshll.u32 %v8456_v12, 16  ;;  %v3906_v16 = vshrl.u32 %v8456_v12, 16  ;;  %v3871_v55 = vrot.slane %v3869_v59, 4  ;;  %v3884_v37 = vrot.slane %v3882_v54, 4 }
 0x14b   : > { %6183 = vmatmul.mubr.msk.bf16.gmra.mrb[12].mxu1 %vm703_vm4, %v9415_v4  ;;  %6335 = vmatmul.mubr.msk.bf16.gmra.mrb[28].mxu0 %vm703_vm4, %v6781_v50  ;;  %v3878_v50 = vshll.u32 %v8432_v48, 16  ;;  %v3826_v4 = vrot.slane %v3824_v2, 5  ;;  %v3896_v48 = vshll.u32 %v5733_v31, 16  ;;  %v3874_v2 = vrot.slane %v3872_v52, 5 }
 0x14c   : > { %6186 = vmatprep.mubr.msk.bf16.mxu1 %vm703_vm4, %v9416_v20  ;;  %6340 = vmatprep.mubr.msk.bf16.mxu0 %vm703_vm4, %v8231_v40  ;;  %v3847_v20 = vrot.slane %v3845_v44, 4  ;;  %v3850_v40 = vrot.slane %v3848_v33, 5  ;;  %v3813_v46 = vor.u32 %v3812_v28, %v8443_v41  ;;  %v3837_v1 = vor.u32 %v3836_v0, %v8461_v18 }
 0x14d   : > { %v8473_v14 = vrot.slane %v3878_v50, 5  ;;  %v3827_v44 = vor.u32 %v3826_v4, %v3823_v61  ;;  %v3840_v33 = vshll.u32 %v8459_v58, 16  ;;  %v3861_v31 = vor.u32 %v3860_v5, %v8466_v22  ;;  %v5736_v4 = vld [vmem:[%s7346_s4 + $0xa8] sm:$0xf] }
 0x14e   : > { %v3851_v23 = vor.u32 %v3850_v40, %v3847_v20  ;;  %v3864_v13 = vshll.u32 %v8464_v19, 16  ;;  %v3888_v12 = vshll.u32 %v8469_v34, 16  ;;  %v9418_v59 = vcombine.low %v8141_v7, %v8149_v35 }
 0x14f   : > { %v3895_v28 = vrot.slane %v3893_v49, 4  ;;  %v3898_v52 = vrot.slane %v3896_v48, 5  ;;  %v8487_v50 = vrot.slane %v3902_v42, 5  ;;  %v3908_v54 = vrot.slane %v3906_v16, 4  ;;  %v8502_v42 = vld [vmem:[%s7346_s4 + $0xa4] sm:$0x1] }
 0x150   : > { %v9419_v61 = vcombine.low %v8198_v9, %v8210_v39  ;;  %v9420_v7 = vrot.slane %v7776_v36, 5  ;;  %v3875_v49 = vor.u32 %v3874_v2, %v3871_v55  ;;  %v3885_v48 = vor.u32 %v3884_v37, %v8473_v14  ;;  %v8510_v2 = vld [vmem:[%s7346_s4 + $0xac] sm:$0xf] }
 0x151   : > { %v3814_v9 = vrot.slane %v3813_v46, 4  ;;  %v3828_v39 = vrot.slane %v3827_v44, 4  ;;  %v3842_v16 = vrot.slane %v3840_v33, 5  ;;  %v3838_v36 = vrot.slane %v3837_v1, 4 }
 0x152   : > { %v8498_v35 = vsel %vm7604_vm7, %v1369_v11, %v9420_v7  ;;  %v3852_v0 = vrot.slane %v3851_v23, 4  ;;  %v3862_v20 = vrot.slane %v3861_v31, 4  ;;  %v3866_v11 = vrot.slane %v3864_v13, 5 }
 0x153   : > { %6187 = vmatmul.mubr.msk.bf16.gmra.mrb[16].mxu1 %vm703_vm4, %v9418_v59  ;;  %6341 = vmatmul.mubr.msk.bf16.vlgmr.msra.gmra.mrb[0].mxu0 %vm703_vm4, %v8233_v17  ;;  %v3818_v17 = vrot.slane %v3816_v57, 5  ;;  %v3890_v40 = vrot.slane %v3888_v12, 5  ;;  %v3899_v57 = vor.u32 %v3898_v52, %v3895_v28  ;;  %v3909_v5 = vor.u32 %v3908_v54, %v8487_v50 }
 0x154   : > { %6373 = vmatpush3.bf16.msra.mxu0 %v8256_v8  ;;  %6190 = vmatprep.mubr.msk.bf16.mxu1 %vm703_vm4, %v9419_v61  ;;  %v3804_v8 = vrot.slane %v3803_v56, 4  ;;  %v3912_v55 = vshll.u32 %v8502_v42, 16  ;;  %v3876_v37 = vrot.slane %v3875_v49, 4  ;;  %v3886_v59 = vrot.slane %v3885_v48, 4 }
 0x155   : > { %6344 = vmatprep.mubr.msk.bf16.mxu0 %vm703_vm4, %v8258_v15  ;;  %v3917_v15 = vshrl.u32 %v5736_v4, 16  ;;  %v3920_v56 = vshll.u32 %v5736_v4, 16  ;;  %v3795_v46 = vsel %vm7384_vm3, %v8419_v43, %v8399_v53  ;;  %v3819_v12 = vsel %vm7384_vm3, %v3814_v9, %v3818_v17  ;;  %v5785_v9 = vld [vmem:[%s7346_s4 + $0x54] sm:$0xe] }
 0x156   : > { %v3809_v13 = vsel %vm7384_vm3, %v3804_v8, %v8443_v41  ;;  %v3833_v44 = vsel %vm7384_vm3, %v3828_v39, %v8461_v18  ;;  %v3843_v1 = vsel %vm7384_vm3, %v3838_v36, %v3842_v16  ;;  %v3857_v33 = vsel %vm7384_vm3, %v3852_v0, %v8466_v22 }
 0x157   : > { %v3926_v53 = vshll.u32 %v8510_v2, 16  ;;  %v3930_v43 = vshrl.u32 %v8510_v2, 16  ;;  %v9421_v41 = vcombine.low %v8217_v25, %v8227_v29  ;;  %v3867_v18 = vsel %vm7384_vm3, %v3862_v20, %v3866_v11 }
 0x158   : > { %v3900_v23 = vrot.slane %v3899_v57, 4  ;;  %v3910_v31 = vrot.slane %v3909_v5, 4  ;;  %v3914_v22 = vrot.slane %v3912_v55, 5  ;;  %v9422_v28 = vcombine.low %v8314_v10, %v8325_v60 }
 0x159   : > { %v3881_v25 = vsel %vm7384_vm3, %v3876_v37, %v8473_v14  ;;  %v3891_v29 = vsel %vm7384_vm3, %v3886_v59, %v3890_v40  ;;  %v8552_v52 = vrot.slane %v3920_v56, 5  ;;  %v9423_v10 = vsel %vm7384_vm3, %v8352_v24, %v8349_v26  ;;  %v8574_v26 = vld [vmem:[%s7346_s4 + $0xb0] sm:$0x1]  ;;  %v5739_v24 = vld [vmem:[%s7346_s4 + $0xb4] sm:$0xf] }
 0x15a   : > { %v9424_v60 = vsel %vm7384_vm3, %v8347_v51, %v8292_v38  ;;  %v5410_v14 = vcombine.low %v8388_v45, %v8397_v62  ;;  %v9425_v54 = vsel %vm7384_vm3, %v8370_v21, %v8342_v3  ;;  %v5411_v7 = vcombine.low %v8423_v47, %v8498_v35  ;;  %v8584_v45 = vld [vmem:[%s7346_s4 + $0xb8] sm:$0xf]  ;;  %v5784_v62 = vld [vmem:[%s7346_s4 + $0x48] sm:$0xe]  ;;  %v5787_v56 = vld [vmem:[%s7346_s4 + $0x6c] sm:$0xe] }
 0x15b   : > { %6191 = vmatmul.mubr.msk.bf16.gmra.mrb[20].mxu1 %vm703_vm4, %v9421_v41  ;;  %6345 = vmatmul.mubr.msk.bf16.gmra.mrb[4].mxu0 %vm703_vm4, %v8361_v63  ;;  %v8550_v63 = vrot.slane %v3917_v15, 4  ;;  %v5754_v61 = vcombine.low %v9425_v54, %v3795_v46  ;;  %v8577_v17 = vcombine.low %v3809_v13, %v3819_v12  ;;  %v8579_v38 = vcombine.low %v3833_v44, %v3843_v1  ;;  %v9426_v40 = vld [vmem:[#allocation21_spill] sm:$0xff]  ;;  %v9427_v59 = vld [vmem:[#allocation20_spill] sm:$0xff]  ;;  %v9429_v13 = vld [vmem:[#allocation26_spill] sm:$0xff] }
 0x15c   : > { %6194 = vmatprep.mubr.msk.bf16.mxu1 %vm703_vm4, %v9422_v28  ;;  %6348 = vmatprep.mubr.msk.bf16.mxu0 %vm703_vm4, %v8378_v32  ;;  %v5753_v32 = vcombine.low %v9424_v60, %v9423_v10  ;;  %v8581_v51 = vrot.slane %v3926_v53, 5  ;;  %v3932_v49 = vrot.slane %v3930_v43, 4  ;;  %v8587_v48 = vcombine.low %v3857_v33, %v3867_v18  ;;  %v9428_v46 = vld [vmem:[#allocation24_spill] sm:$0xff]  ;;  %v9431_v33 = vld [vmem:[#allocation23_spill] sm:$0xff] }
 0x15d   : > { %v8589_v3 = vcombine.low %v3881_v25, %v3891_v29  ;;  %v3905_v21 = vsel %vm7384_vm3, %v3900_v23, %v8487_v50  ;;  %v3915_v8 = vsel %vm7384_vm3, %v3910_v31, %v3914_v22  ;;  %v3923_v39 = vor.u32 %v8552_v52, %v8550_v63  ;;  %v5786_v50 = vld [vmem:[%s7346_s4 + $0x60] sm:$0xe]  ;;  %v9433_v25 = vld [vmem:[#allocation25_spill] sm:$0xff]  ;;  %v8696_v47 = vld [vmem:[%s7346_s4 + $0xbc] sm:$0x1] }
 0x15e   : > { %v3936_v16 = vshll.u32 %v8574_v26, 16  ;;  %v3941_v4 = vshrl.u32 %v5739_v24, 16  ;;  %v3944_v36 = vshll.u32 %v5739_v24, 16  ;;  %v3950_v0 = vshll.u32 %v8584_v45, 16  ;;  %v9432_v23 = vld [vmem:[#allocation22_spill] sm:$0xff]  ;;  %v9434_v52 = vld [vmem:[#allocation27_spill] sm:$0xff] }
 0x15f   : > { %v5800_v20 = vrot.slane %v5784_v62, 9  ;;  %v4400_v11 = vrot.slane %v8203_v27, 5  ;;  %v4403_v57 = vrot.slane %v9426_v40, 5  ;;  %v8604_v5 = vcombine.low %v3905_v21, %v3915_v8  ;;  %v5742_v22 = vld [vmem:[%s7346_s4 + $0xc0] sm:$0xf] }
 0x160   : > { %v3933_v55 = vor.u32 %v3932_v49, %v8581_v51  ;;  %v5801_v37 = vrot.slane %v5785_v9, 9  ;;  %v4407_v15 = vrot.slane %v9427_v59, 5  ;;  %v9430_v12 = vcombine.low %v9428_v46, %v9429_v13  ;;  %v9435_v21 = vld [vmem:[#allocation30_spill] sm:$0xff]  ;;  %v6782_v9 = vld [vmem:[%s7346_s4 + $0xc] sm:$0xff]  }
 0x161   : > { %v3954_v27 = vshrl.u32 %v8584_v45, 16  ;;  %v8617_v44 = vsel %vm7604_vm7, %v5800_v20, %v4400_v11  ;;  %v4402_v1 = vrot.slane %v4400_v11, 4  ;;  %v4410_v53 = vrot.slane %v9431_v33, 5  ;;  %v5789_v33 = vld [vmem:[%s7346_s4 + $0x84] sm:$0xe] }
 0x162   : > { %v8624_v43 = vsel %vm7604_vm7, %v5801_v37, %v4407_v15  ;;  %v4409_v41 = vrot.slane %v4407_v15, 4  ;;  %v5802_v18 = vrot.slane %v5786_v50, 9  ;;  %v4414_v31 = vrot.slane %v9432_v23, 5  ;;  %v5788_v50 = vld [vmem:[%s7346_s4 + $0x78] sm:$0xe]  ;;  %v9437_v23 = vld [vmem:[#allocation15_spill] sm:$0xff] }
 0x163   : > { %6195 = vmatmul.mubr.msk.bf16.gmra.mrb[24].mxu1 %vm703_vm4, %v9430_v12  ;;  %6349 = vmatmul.mubr.msk.bf16.gmra.mrb[8].mxu0 %vm703_vm4, %v5753_v32  ;;  %v8630_v28 = vsel %vm7604_vm7, %v4402_v1, %v4403_v57  ;;  %v4417_v29 = vrot.slane %v9433_v25, 5  ;;  %v5803_v63 = vrot.slane %v5787_v56, 9  ;;  %v4421_v10 = vrot.slane %v9434_v52, 5  ;;  %v9436_v1 = vld [vmem:[#allocation28_spill] sm:$0xff] }
 0x164   : > { %6198 = vmatprep.mubr.msk.bf16.mxu1 %vm703_vm4, %v5410_v14  ;;  %6352 = vmatprep.mubr.msk.bf16.mxu0 %vm703_vm4, %v5754_v61  ;;  %v5816_v60 = vcombine.low %v8617_v44, %v8630_v28  ;;  %v8638_v32 = vsel %vm7604_vm7, %v4409_v41, %v4410_v53  ;;  %v8642_v14 = vsel %vm7604_vm7, %v5802_v18, %v4414_v31  ;;  %v4416_v54 = vrot.slane %v4414_v31, 4  ;;  %v8645_v61 = vld [vmem:[%s7346_s4 + $0xc4] sm:$0xf]  ;;  %v9438_v31 = vld [vmem:[#allocation14_spill] sm:$0xff] }
 0x165   : > { %v5817_v24 = vcombine.low %v8624_v43, %v8638_v32  ;;  %v8651_v49 = vsel %vm7604_vm7, %v5803_v63, %v4421_v10  ;;  %v4423_v62 = vrot.slane %v4421_v10, 4  ;;  %v4424_v8 = vrot.slane %v9435_v21, 5  ;;  %v6783_v63 = vld [vmem:[%s7346_s4 + $0x18] sm:$0xff]  }
 0x166   : > { %v8655_v20 = vrot.slane %v3936_v16, 5  ;;  %v8657_v11 = vrot.slane %v3941_v4, 4  ;;  %v3965_v40 = vshrl.u32 %v5742_v22, 16  ;;  %v8661_v57 = vsel %vm7604_vm7, %v4416_v54, %v4417_v29  ;;  %v5519_v4 = vld [vmem:[%s7346_s4 + $0x78] sm:$0xf] }
 0x167   : > { %v8664_v37 = vrot.slane %v3923_v39, 4  ;;  %v8666_v59 = vrot.slane %v3944_v36, 5  ;;  %v5818_v15 = vcombine.low %v8642_v14, %v8661_v57  ;;  %v8672_v16 = vsel %vm7604_vm7, %v4423_v62, %v4424_v8  ;;  %v9439_v54 = vld [vmem:[#allocation29_spill] sm:$0xff]  ;;  %v6784_v8 = vld [vmem:[%s7346_s4 + $0x24] sm:$0xff]  }
 0x168   : > { %v8675_v56 = vrot.slane %v3933_v55, 4  ;;  %v8677_v46 = vrot.slane %v3950_v0, 5  ;;  %v3968_v13 = vshll.u32 %v5742_v22, 16  ;;  %v5819_v39 = vcombine.low %v8651_v49, %v8672_v16  ;;  %v5531_v57 = vld [vmem:[%s7346_s4 + $0xa8] sm:$0xf] }
 0x169   : > { %v8687_v36 = vrot.slane %v3954_v27, 4  ;;  %v3974_v12 = vshll.u32 %v8645_v61, 16  ;;  %v5804_v55 = vrot.slane %v5788_v50, 9  ;;  %v4428_v0 = vrot.slane %v9436_v1, 5  ;;  %v5745_v50 = vld [vmem:[%s7346_s4 + $0xcc] sm:$0xf] }
 0x16a   : > { %v3967_v35 = vrot.slane %v3965_v40, 4  ;;  %v2293_v27 = vshll.u32 %v5519_v4, 16  ;;  %v3978_v53 = vshrl.u32 %v8645_v61, 16  ;;  %v3970_v22 = vrot.slane %v3968_v13, 5 }
 0x16b   : > { %6199 = vmatmul.mubr.msk.bf16.gmra.mrb[28].mxu1 %vm703_vm4, %v5411_v7  ;;  %6353 = vmatmul.mubr.msk.bf16.gmra.mrb[12].mxu0 %vm703_vm4, %v8577_v17  ;;  %v4431_v7 = vrot.slane %v8459_v58, 5  ;;  %v2290_v17 = vshrl.u32 %v5519_v4, 16  ;;  %v8702_v41 = vsel %vm7604_vm7, %v5804_v55, %v4428_v0  ;;  %v4430_v18 = vrot.slane %v4428_v0, 4  ;;  %v8725_v4 = vld [vmem:[%s7346_s4 + $0xd0] sm:$0xf] }
 0x16c   : > { %6204 = vmatprep.mubr.msk.bf16.mxu1 %vm703_vm4, %v6782_v9  ;;  %6356 = vmatprep.mubr.msk.bf16.mxu0 %vm703_vm4, %v8579_v38  ;;  %v2312_v38 = vsel %vm7384_vm3, %v9438_v31, %v9437_v23  ;;  %v2295_v58 = vrot.slane %v2293_v27, 5  ;;  %v5805_v29 = vrot.slane %v5789_v33, 9  ;;  %v3960_v52 = vshll.u32 %v8696_v47, 16 }
 0x16d   : > { %v2292_v25 = vrot.slane %v2290_v17, 4  ;;  %v8712_v10 = vsel %vm7604_vm7, %v4430_v18, %v4431_v7  ;;  %v4435_v62 = vrot.slane %v9439_v54, 5  ;;  %v4438_v21 = vrot.slane %v8464_v19, 5  ;;  %v5790_v7 = vld [vmem:[%s7346_s4 + $0x90] sm:$0xe] }
 0x16e   : > { %v3929_v9 = vsel %vm7384_vm3, %v8664_v37, %v8581_v51  ;;  %v3947_v40 = vor.u32 %v8666_v59, %v8657_v11  ;;  %v5820_v13 = vcombine.low %v8702_v41, %v8712_v10  ;;  %v8729_v1 = vrot.slane %v3974_v12, 5  ;;  %v8743_v37 = vld [vmem:[%s7346_s4 + $0xc8] sm:$0x1] }
 0x16f   : > { %v2296_v55 = vor.u32 %v2295_v58, %v2292_v25  ;;  %v3980_v0 = vrot.slane %v3978_v53, 4  ;;  %v8733_v19 = vsel %vm7604_vm7, %v5805_v29, %v4435_v62  ;;  %v4437_v33 = vrot.slane %v4435_v62, 4  ;;  %v6785_v29 = vld [vmem:[%s7346_s4 + $0x30] sm:$0xff]   ;;  %v9442_v62 = vld [vmem:[#allocation31_spill] sm:$0xff] }
 0x170   : > { %v3939_v51 = vsel %vm7384_vm3, %v8675_v56, %v8655_v20  ;;  %v3957_v11 = vor.u32 %v8687_v36, %v8677_v46  ;;  %v3971_v59 = vor.u32 %v3970_v22, %v3967_v35  ;;  %v3989_v17 = vshrl.u32 %v5745_v50, 16  ;;  %v9440_v56 = vld [vmem:[#allocation12_spill] sm:$0xff]  ;;  %v9441_v35 = vld [vmem:[#allocation13_spill] sm:$0xff] }
 0x171   : > { %v2297_v12 = vrot.slane %v2296_v55, 4  ;;  %v3992_v27 = vshll.u32 %v5745_v50, 16  ;;  %v3998_v53 = vshll.u32 %v8725_v4, 16  ;;  %v8751_v20 = vsel %vm7604_vm7, %v4437_v33, %v4438_v21 }
 0x172   : > { %v4002_v36 = vshrl.u32 %v8725_v4, 16  ;;  %v5806_v23 = vrot.slane %v5790_v7, 9  ;;  %v3962_v31 = vrot.slane %v3960_v52, 5  ;;  %v3981_v22 = vor.u32 %v3980_v0, %v8729_v1  ;;  %v8773_v52 = vld [vmem:[%s7346_s4 + $0xd4] sm:$0x1] }
 0x173   : > { %6205 = vmatmul.mubr.msk.bf16.vlgmr.msra.gmra.mrb[0].mxu1 %vm703_vm4, %v6783_v63  ;;  %6357 = vmatmul.mubr.msk.bf16.gmra.mrb[16].mxu0 %vm703_vm4, %v8587_v48  ;;  %v2302_v18 = vsel %vm7384_vm3, %v2297_v12, %v9441_v35  ;;  %v5821_v48 = vcombine.low %v8733_v19, %v8751_v20  ;;  %v3984_v25 = vshll.u32 %v8743_v37, 16  ;;  %v5760_v63 = vcombine.low %v3929_v9, %v3939_v51  ;;  %v6786_v12 = vld [vmem:[%s7346_s4 + $0x3c] sm:$0xff]   ;;  %v6978_v19 = vld [vmem:[%s7346_s4 + $0xc4] sm:$0xf] }
 0x174   : > { %6407 = vmatpush3.bf16.msra.mxu1 %v9440_v56  ;;  %6208 = vmatprep.mubr.msk.bf16.mxu1 %vm703_vm4, %v6784_v8  ;;  %v8765_v58 = vcombine.low %v2302_v18, %v2312_v38  ;;  %v3948_v54 = vrot.slane %v3947_v40, 4  ;;  %v4442_v21 = vrot.slane %v9442_v62, 5  ;;  %v4445_v8 = vrot.slane %v8469_v34, 5  ;;  %v5792_v62 = vld [vmem:[%s7346_s4 + $0xa8] sm:$0xe] }
 0x175   : > { %6360 = vmatprep.mubr.msk.bf16.mxu0 %vm703_vm4, %v8589_v3  ;;  %v3958_v50 = vrot.slane %v3957_v11, 4  ;;  %v3972_v55 = vrot.slane %v3971_v59, 4  ;;  %v3991_v33 = vrot.slane %v3989_v17, 4  ;;  %v3994_v7 = vrot.slane %v3992_v27, 5  ;;  %v5791_v3 = vld [vmem:[%s7346_s4 + $0x9c] sm:$0xe] }
 0x176   : > { %v8775_v0 = vrot.slane %v3998_v53, 5  ;;  %v4004_v56 = vrot.slane %v4002_v36, 4  ;;  %v8779_v38 = vsel %vm7604_vm7, %v5806_v23, %v4442_v21  ;;  %v4444_v9 = vrot.slane %v4442_v21, 4  ;;  %v9443_v53 = vld [vmem:[#allocation32_spill] sm:$0xff]  ;;  %v5780_v23 = vld [vmem:[%s7346_s4 + $0x18] sm:$0xe] }
 0x177   : > { %v3982_v40 = vrot.slane %v3981_v22, 4  ;;  %v3986_v51 = vrot.slane %v3984_v25, 5  ;;  %v3953_v34 = vsel %vm7384_vm3, %v3948_v54, %v8677_v46  ;;  %v5807_v59 = vrot.slane %v5791_v3, 9  ;;  %v6963_v25 = vld [vmem:[%s7346_s4 + $0x1c] sm:$0xf] }
 0x178   : > { %v8786_v11 = vsel %vm7604_vm7, %v4444_v9, %v4445_v8  ;;  %v3963_v17 = vsel %vm7384_vm3, %v3958_v50, %v3962_v31  ;;  %v4008_v27 = vshll.u32 %v8773_v52, 16  ;;  %v4449_v36 = vrot.slane %v9443_v53, 5  ;;  %v6964_v9 = vld [vmem:[%s7346_s4 + $0x20] sm:$0x1] }
 0x179   : > { %v5822_v46 = vcombine.low %v8779_v38, %v8786_v11  ;;  %v3995_v35 = vor.u32 %v3994_v7, %v3991_v33  ;;  %v4005_v18 = vor.u32 %v4004_v56, %v8775_v0  ;;  %v4452_v31 = vrot.slane %v8502_v42, 5 }
 0x17a   : > { %v3987_v22 = vsel %vm7384_vm3, %v3982_v40, %v3986_v51  ;;  %v4451_v54 = vrot.slane %v4449_v36, 4  ;;  %v5761_v21 = vcombine.low %v3953_v34, %v3963_v17  ;;  %v4010_v8 = vrot.slane %v4008_v27, 5  ;;  %v5781_v17 = vld [vmem:[%s7346_s4 + $0x24] sm:$0xe] }
 0x17b   : > { %6209 = vmatmul.mubr.msk.bf16.gmra.mrb[4].mxu1 %vm703_vm4, %v6785_v29  ;;  %6361 = vmatmul.mubr.msk.bf16.gmra.mrb[20].mxu0 %vm703_vm4, %v8604_v5  ;;  %v3977_v5 = vsel %vm7384_vm3, %v3972_v55, %v8729_v1  ;;  %v4372_v29 = vrot.slane %v6963_v25, 5  ;;  %v6787_v1 = vld [vmem:[%s7346_s4 + $0x48] sm:$0xff]   ;;  %v5796_v50 = vrot.slane %v5780_v23, 9  ;;  %v6788_v55 = vld [vmem:[%s7346_s4 + $0x54] sm:$0xff]   ;;  %v3996_v7 = vrot.slane %v3995_v35, 4 }
 0x17c   : > { %6212 = vmatprep.mubr.msk.bf16.mxu1 %vm703_vm4, %v6786_v12  ;;  %6364 = vmatprep.mubr.msk.bf16.mxu0 %vm703_vm4, %v5760_v63  ;;  %v8810_v63 = vsel %vm7604_vm7, %v5807_v59, %v4449_v36  ;;  %v8816_v42 = vsel %vm7604_vm7, %v4451_v54, %v4452_v31  ;;  %v5762_v33 = vcombine.low %v3977_v5, %v3987_v22  ;;  %v4006_v3 = vrot.slane %v4005_v18, 4  ;;  %v6965_v36 = vld [vmem:[%s7346_s4 + $0x28] sm:$0xf]  ;;  %v5793_v35 = vld [vmem:[%s7346_s4 + $0xb4] sm:$0xe] }
 0x17d   : > { %v5823_v12 = vcombine.low %v8810_v63, %v8816_v42  ;;  %v4374_v56 = vrot.slane %v4372_v29, 4  ;;  %v4375_v40 = vrot.slane %v6964_v9, 5  ;;  %v5808_v51 = vrot.slane %v5792_v62, 9  ;;  %v5782_v31 = vld [vmem:[%s7346_s4 + $0x30] sm:$0xe] }
 0x17e   : > { %v4456_v34 = vrot.slane %v8510_v2, 5  ;;  %v4459_v59 = vrot.slane %v8574_v26, 5  ;;  %v4001_v2 = vsel %vm7384_vm3, %v3996_v7, %v8775_v0  ;;  %v4011_v26 = vsel %vm7384_vm3, %v4006_v3, %v4010_v8  ;;  %v6966_v22 = vld [vmem:[%s7346_s4 + $0x34] sm:$0xf]  ;;  %v9444_v8 = vld [vmem:[#allocation16_spill] sm:$0xff] }
 0x17f   : > { %v4379_v5 = vrot.slane %v6965_v36, 5  ;;  %v4373_v18 = vsel %vm7604_vm7, %v5796_v50, %v4372_v29  ;;  %v4376_v23 = vsel %vm7604_vm7, %v4374_v56, %v4375_v40  ;;  %v4386_v25 = vrot.slane %v6966_v22, 5 }
 0x180   : > { %v8829_v27 = vsel %vm7604_vm7, %v5808_v51, %v4456_v34  ;;  %v4458_v53 = vrot.slane %v4456_v34, 4  ;;  %v5797_v0 = vrot.slane %v5781_v17, 9  ;;  %v5809_v29 = vrot.slane %v5793_v35, 9  ;;  %v9445_v51 = vld [vmem:[#allocation17_spill] sm:$0xff]  ;;  %v5783_v35 = vld [vmem:[%s7346_s4 + $0x3c] sm:$0xe] }
 0x181   : > { %v4463_v50 = vrot.slane %v8584_v45, 5  ;;  %v5812_v7 = vcombine.low %v4373_v18, %v4376_v23  ;;  %v4381_v3 = vrot.slane %v4379_v5, 4  ;;  %v5798_v56 = vrot.slane %v5782_v31, 9  ;;  %v9446_v45 = vld [vmem:[#allocation18_spill] sm:$0xff] }
 0x182   : > { %v8848_v54 = vsel %vm7604_vm7, %v4458_v53, %v4459_v59  ;;  %v4466_v9 = vrot.slane %v8696_v47, 5  ;;  %v4388_v40 = vrot.slane %v4386_v25, 4  ;;  %v4389_v34 = vrot.slane %v9445_v51, 5  ;;  %v5794_v53 = vld [vmem:[%s7346_s4 + $0xc0] sm:$0xe] }
 0x183   : > { %6213 = vmatmul.mubr.msk.bf16.gmra.mrb[8].mxu1 %vm703_vm4, %v6787_v1  ;;  %6365 = vmatmul.mubr.msk.bf16.gmra.mrb[24].mxu0 %vm703_vm4, %v5761_v21  ;;  %v5824_v62 = vcombine.low %v8829_v27, %v8848_v54  ;;  %v6789_v1 = vld [vmem:[%s7346_s4 + $0x60] sm:$0xff]   ;;  %v5763_v21 = vcombine.low %v4001_v2, %v4011_v26  ;;  %v8860_v59 = vsel %vm7604_vm7, %v5809_v29, %v4463_v50  ;;  %v4465_v17 = vrot.slane %v4463_v50, 4  ;;  %v5795_v50 = vld [vmem:[%s7346_s4 + $0xcc] sm:$0xe] }
 0x184   : > { %6216 = vmatprep.mubr.msk.bf16.mxu1 %vm703_vm4, %v6788_v55  ;;  %6368 = vmatprep.mubr.msk.bf16.mxu0 %vm703_vm4, %v5762_v33  ;;  %v4382_v55 = vrot.slane %v9444_v8, 5  ;;  %v6790_v33 = vld [vmem:[%s7346_s4 + $0x6c] sm:$0xff]   ;;  %v4393_v2 = vrot.slane %v9446_v45, 5  ;;  %v4380_v26 = vsel %vm7604_vm7, %v5797_v0, %v4379_v5  ;;  %v4387_v23 = vsel %vm7604_vm7, %v5798_v56, %v4386_v25  ;;  %v6791_v5 = vld [vmem:[%s7346_s4 + $0x78] sm:$0xff]  }
 0x185   : > { %v8868_v47 = vsel %vm7604_vm7, %v4465_v17, %v4466_v9  ;;  %v4390_v31 = vsel %vm7604_vm7, %v4388_v40, %v4389_v34  ;;  %v5810_v22 = vrot.slane %v5794_v53, 9  ;;  %v4473_v8 = vrot.slane %v8743_v37, 5  ;;  %v6967_v34 = vld [vmem:[%s7346_s4 + $0x70] sm:$0xf] }
 0x186   : > { %v4383_v36 = vsel %vm7604_vm7, %v4381_v3, %v4382_v55  ;;  %v5825_v18 = vcombine.low %v8860_v59, %v8868_v47  ;;  %v5799_v55 = vrot.slane %v5783_v35, 9  ;;  %v4395_v29 = vrot.slane %v4393_v2, 4  ;;  %v9447_v3 = vld [vmem:[#allocation19_spill] sm:$0xff] }
 0x187   : > { %v5813_v0 = vcombine.low %v4380_v26, %v4383_v36  ;;  %v4396_v9 = vrot.slane %v9447_v3, 5  ;;  %v5811_v37 = vrot.slane %v5795_v50, 9  ;;  %v2275_v17 = vshll.u32 %v6967_v34, 16 }
 0x188   : > { %v2279_v53 = vshrl.u32 %v6967_v34, 16  ;;  %v4477_v26 = vrot.slane %v8725_v4, 5  ;;  %v4394_v36 = vsel %vm7604_vm7, %v5799_v55, %v4393_v2  ;;  %v6794_v55 = vld [vmem:[%s7346_s4 + $0x9c] sm:$0xff]   ;;  %v5525_v34 = vld [vmem:[%s7346_s4 + $0x90] sm:$0xf]  ;;  %v2443_v20 = vshll.u32 %v6978_v19, 16 }
 0x189   : > { %v4397_v35 = vsel %vm7604_vm7, %v4395_v29, %v4396_v9  ;;  %v5522_v29 = vld [vmem:[%s7346_s4 + $0x84] sm:$0xf]  ;;  %v2338_v28 = vshrl.u32 %v5525_v34, 16 }
 0x18a   : > { %v4479_v4 = vrot.slane %v4477_v26, 4  ;;  %v2314_v6 = vshrl.u32 %v5522_v29, 16  ;;  %v2317_v9 = vshll.u32 %v5522_v29, 16  ;;  %v2445_v38 = vrot.slane %v2443_v20, 5 }
 0x18b   : > { %6217 = vmatmul.mubr.msk.bf16.gmra.mrb[12].mxu1 %vm703_vm4, %v6789_v1  ;;  %6369 = vmatmul.mubr.msk.bf16.gmra.mrb[28].mxu0 %vm703_vm4, %v5763_v21  ;;  %v5516_v1 = vld [vmem:[%s7346_s4 + $0x6c] sm:$0xf]  ;;  %v4470_v21 = vrot.slane %v8645_v61, 5 }
 0x18c   : > { %6220 = vmatprep.mubr.msk.bf16.mxu1 %vm703_vm4, %v6790_v33  ;;  %6374 = vmatprep.mubr.msk.bf16.mxu0 %vm703_vm4, %v5812_v7  ;;  %v6792_v33 = vld [vmem:[%s7346_s4 + $0x84] sm:$0xff]   ;;  %v5814_v7 = vcombine.low %v4387_v23, %v4390_v31  ;;  %v2266_v40 = vshrl.u32 %v5516_v1, 16  ;;  %v2269_v51 = vshll.u32 %v5516_v1, 16  ;;  %v4480_v23 = vrot.slane %v8773_v52, 5 }
 0x18d   : > { %v8892_v25 = vsel %vm7604_vm7, %v5810_v22, %v4470_v21  ;;  %v4472_v56 = vrot.slane %v4470_v21, 4  ;;  %v8913_v1 = vsel %vm7604_vm7, %v5811_v37, %v4477_v26  ;;  %v6793_v21 = vld [vmem:[%s7346_s4 + $0x90] sm:$0xff]  }
 0x18e   : > { %v2268_v31 = vrot.slane %v2266_v40, 4  ;;  %v2271_v22 = vrot.slane %v2269_v51, 5  ;;  %v8918_v2 = vsel %vm7604_vm7, %v4479_v4, %v4480_v23  ;;  %v5528_v23 = vld [vmem:[%s7346_s4 + $0x9c] sm:$0xf] }
 0x18f   : > { %v8896_v61 = vsel %vm7604_vm7, %v4472_v56, %v4473_v8  ;;  %v5815_v8 = vcombine.low %v4394_v36, %v4397_v35  ;;  %v5827_v52 = vcombine.low %v8913_v1, %v8918_v2  ;;  %v6969_v56 = vld [vmem:[%s7346_s4 + $0x88] sm:$0xf]  ;;  %v2316_v36 = vrot.slane %v2314_v6, 4 }
 0x190   : > { %v5826_v45 = vcombine.low %v8892_v25, %v8896_v61  ;;  %v2272_v50 = vor.u32 %v2271_v22, %v2268_v31  ;;  %v2323_v40 = vshll.u32 %v6969_v56, 16  ;;  %v2327_v51 = vshrl.u32 %v6969_v56, 16  ;;  %v6796_v31 = vld [vmem:[%s7346_s4 + $0xb4] sm:$0xff]  }
 0x191   : > { %v2319_v35 = vrot.slane %v2317_v9, 5  ;;  %v2365_v29 = vshll.u32 %v5528_v23, 16 }
 0x192   : > { %v2273_v37 = vrot.slane %v2272_v50, 4  ;;  %v8937_v22 = vrot.slane %v2323_v40, 5  ;;  %v2329_v44 = vrot.slane %v2327_v51, 4 }
 0x193   : > { %6221 = vmatmul.mubr.msk.bf16.gmra.mrb[16].mxu1 %vm703_vm4, %v6791_v5  ;;  %6375 = vmatmul.mubr.msk.bf16.vlgmr.msra.gmra.mrb[0].mxu0 %vm703_vm4, %v5813_v0  ;;  %v2277_v5 = vrot.slane %v2275_v17, 5  ;;  %v2281_v0 = vrot.slane %v2279_v53, 4  ;;  %v6795_v17 = vld [vmem:[%s7346_s4 + $0xa8] sm:$0xff]   ;;  %v2320_v43 = vor.u32 %v2319_v35, %v2316_v36 }
 0x194   : > { %6224 = vmatprep.mubr.msk.bf16.mxu1 %vm703_vm4, %v6792_v33  ;;  %6378 = vmatprep.mubr.msk.bf16.mxu0 %vm703_vm4, %v5814_v7  ;;  %v6968_v7 = vld [vmem:[%s7346_s4 + $0x74] sm:$0x1]  ;;  %v2330_v32 = vor.u32 %v2329_v44, %v8937_v22 }
 0x195   : > { %v2282_v33 = vor.u32 %v2281_v0, %v2277_v5  ;;  %v2285_v3 = vshll.u32 %v6968_v7, 16  ;;  %v2278_v4 = vsel %vm7384_vm3, %v2273_v37, %v2277_v5  ;;  %v2367_v37 = vrot.slane %v2365_v29, 5  ;;  %v6975_v29 = vld [vmem:[%s7346_s4 + $0xac] sm:$0xf] }
 0x196   : > { %v2331_v36 = vrot.slane %v2330_v32, 4 }
 0x197   : > { %v2283_v53 = vrot.slane %v2282_v33, 4  ;;  %v2287_v26 = vrot.slane %v2285_v3, 5  ;;  %v6971_v33 = vld [vmem:[%s7346_s4 + $0x8c] sm:$0x1]  ;;  %v6972_v3 = vld [vmem:[%s7346_s4 + $0xa0] sm:$0xf] }
 0x198   : > { %v2333_v7 = vshll.u32 %v6971_v33, 16  ;;  %v2371_v5 = vshll.u32 %v6972_v3, 16  ;;  %v2375_v6 = vshrl.u32 %v6972_v3, 16  ;;  %v2399_v33 = vshrl.u32 %v6975_v29, 16 }
 0x199   : > { %v2288_v50 = vsel %vm7384_vm3, %v2283_v53, %v2287_v26 }
 0x19a   : > { %v2335_v53 = vrot.slane %v2333_v7, 5  ;;  %v8960_v26 = vrot.slane %v2371_v5, 5  ;;  %v2377_v14 = vrot.slane %v2375_v6, 4  ;;  %v6976_v6 = vld [vmem:[%s7346_s4 + $0xb8] sm:$0xf] }
 0x19b   : > { %6225 = vmatmul.mubr.msk.bf16.gmra.mrb[20].mxu1 %vm703_vm4, %v6793_v21  ;;  %6379 = vmatmul.mubr.msk.bf16.gmra.mrb[4].mxu0 %vm703_vm4, %v5815_v8  ;;  %v6970_v21 = vld [vmem:[%s7346_s4 + $0x94] sm:$0xf]  ;;  %v2423_v32 = vshrl.u32 %v6976_v6, 16 }
 0x19c   : > { %6228 = vmatprep.mubr.msk.bf16.mxu1 %vm703_vm4, %v6794_v55  ;;  %6382 = vmatprep.mubr.msk.bf16.mxu0 %vm703_vm4, %v5816_v60  ;;  %v2341_v60 = vshll.u32 %v5525_v34, 16  ;;  %v2347_v8 = vshll.u32 %v6970_v21, 16  ;;  %v2351_v0 = vshrl.u32 %v6970_v21, 16  ;;  %v2362_v55 = vshrl.u32 %v5528_v23, 16  ;;  %v6797_v34 = vld [vmem:[%s7346_s4 + $0xc0] sm:$0xff]  }
 0x19d   : > { %v6973_v23 = vld [vmem:[%s7346_s4 + $0x98] sm:$0x1]  ;;  %v2336_v49 = vsel %vm7384_vm3, %v2331_v36, %v2335_v53 }
 0x19e   : > { %v2343_v9 = vrot.slane %v2341_v60, 5  ;;  %v8957_v56 = vrot.slane %v2347_v8, 5  ;;  %v2353_v40 = vrot.slane %v2351_v0, 4  ;;  %v2364_v51 = vrot.slane %v2362_v55, 4  ;;  %v6974_v60 = vld [vmem:[%s7346_s4 + $0xa4] sm:$0x1] }
 0x19f   : > { %v2381_v21 = vshll.u32 %v6974_v60, 16  ;;  %v2386_v8 = vshrl.u32 %v5531_v57, 16  ;;  %v5534_v0 = vld [vmem:[%s7346_s4 + $0xb4] sm:$0xf]  ;;  %v2389_v55 = vshll.u32 %v5531_v57, 16  ;;  %v2447_v60 = vshrl.u32 %v6978_v19, 16 }
 0x1a0   : > { %v2354_v44 = vor.u32 %v2353_v40, %v8957_v56  ;;  %v2410_v3 = vshrl.u32 %v5534_v0, 16  ;;  %v2413_v5 = vshll.u32 %v5534_v0, 16  ;;  %v5537_v57 = vld [vmem:[%s7346_s4 + $0xc0] sm:$0xf] }
 0x1a1   : > { %v2383_v41 = vrot.slane %v2381_v21, 5  ;;  %v2388_v10 = vrot.slane %v2386_v8, 4  ;;  %v2391_v40 = vrot.slane %v2389_v55, 5  ;;  %v6979_v8 = vld [vmem:[%s7346_s4 + $0xbc] sm:$0x1]  ;;  %v2449_v11 = vrot.slane %v2447_v60, 4 }
 0x1a2   : > { %v2429_v0 = vshll.u32 %v6979_v8, 16 }
 0x1a3   : > { %6229 = vmatmul.mubr.msk.bf16.gmra.mrb[24].mxu1 %vm703_vm4, %v6795_v17  ;;  %6383 = vmatmul.mubr.msk.bf16.gmra.mrb[8].mxu0 %vm703_vm4, %v5817_v24  ;;  %v2340_v24 = vrot.slane %v2338_v28, 4  ;;  %v5548_v17 = vcombine.low %v2278_v4, %v2288_v50  ;;  %v2368_v28 = vor.u32 %v2367_v37, %v2364_v51  ;;  %v2378_v4 = vor.u32 %v2377_v14, %v8960_v26 }
 0x1a4   : > { %6232 = vmatprep.mubr.msk.bf16.mxu1 %vm703_vm4, %v6796_v31  ;;  %6386 = vmatprep.mubr.msk.bf16.mxu0 %vm703_vm4, %v5818_v15  ;;  %v2321_v15 = vrot.slane %v2320_v43, 4  ;;  %v2357_v31 = vshll.u32 %v6973_v23, 16  ;;  %v2395_v50 = vshll.u32 %v6975_v29, 16  ;;  %v2419_v43 = vshll.u32 %v6976_v6, 16 }
 0x1a5   : > { %v2344_v35 = vor.u32 %v2343_v9, %v2340_v24  ;;  %v2355_v24 = vrot.slane %v2354_v44, 4  ;;  %v2369_v9 = vrot.slane %v2368_v28, 4  ;;  %v2425_v14 = vrot.slane %v2423_v32, 4  ;;  %v6977_v44 = vld [vmem:[%s7346_s4 + $0xb0] sm:$0x1] }
 0x1a6   : > { %v2326_v7 = vsel %vm7384_vm3, %v2321_v15, %v8937_v22  ;;  %v2397_v51 = vrot.slane %v2395_v50, 5  ;;  %v2401_v22 = vrot.slane %v2399_v33, 4  ;;  %v2421_v53 = vrot.slane %v2419_v43, 5  ;;  %v6980_v32 = vld [vmem:[%s7346_s4 + $0xc8] sm:$0x1] }
 0x1a7   : > { %v2345_v16 = vrot.slane %v2344_v35, 4  ;;  %v5550_v37 = vcombine.low %v2326_v7, %v2336_v49  ;;  %v2374_v35 = vsel %vm7384_vm3, %v2369_v9, %v8960_v26  ;;  %v2405_v28 = vshll.u32 %v6977_v44, 16 }
 0x1a8   : > { %v2437_v26 = vshll.u32 %v5537_v57, 16  ;;  %v2426_v21 = vor.u32 %v2425_v14, %v2421_v53  ;;  %v2450_v43 = vor.u32 %v2449_v11, %v2445_v38  ;;  %v9058_v14 = vld [vmem:[#allocation7] ss:$0 sm:$0xff] }
 0x1a9   : > { %v2350_v15 = vsel %vm7384_vm3, %v2345_v16, %v8957_v56  ;;  %v2392_v56 = vor.u32 %v2391_v40, %v2388_v10  ;;  %v2407_v33 = vrot.slane %v2405_v28, 5 }
 0x1aa   : > { %v2439_v49 = vrot.slane %v2437_v26, 5  ;;  %v2427_v16 = vrot.slane %v2426_v21, 4  ;;  %v2451_v10 = vrot.slane %v2450_v43, 4 }
 0x1ab   : > { %6233 = vmatmul.mubr.msk.bf16.gmra.mrb[28].mxu1 %vm703_vm4, %v6797_v34  ;;  %6387 = vmatmul.mubr.msk.bf16.gmra.mrb[12].mxu0 %vm703_vm4, %v5819_v39  ;;  %v2359_v39 = vrot.slane %v2357_v31, 5  ;;  %v2412_v34 = vrot.slane %v2410_v3, 4  ;;  %v2402_v31 = vor.u32 %v2401_v22, %v2397_v51  ;;  %v2393_v29 = vrot.slane %v2392_v56, 4 }
 0x1ac   : > { %6254 = vmatprep.mubr.msk.bf16.mxu1 %vm703_vm4, %v5548_v17  ;;  %6390 = vmatprep.mubr.msk.bf16.mxu0 %vm703_vm4, %v5820_v13  ;;  %v2379_v13 = vrot.slane %v2378_v4, 4  ;;  %v2415_v17 = vrot.slane %v2413_v5, 5 }
 0x1ad   : > { %v2360_v36 = vsel %vm7384_vm3, %v2355_v24, %v2359_v39  ;;  %v2403_v50 = vrot.slane %v2402_v31, 4  ;;  %v2431_v39 = vrot.slane %v2429_v0, 5  ;;  %v2398_v3 = vsel %vm7384_vm3, %v2393_v29, %v2397_v51 }
 0x1ae   : > { %v2384_v23 = vsel %vm7384_vm3, %v2379_v13, %v2383_v41  ;;  %v5551_v4 = vcombine.low %v2350_v15, %v2360_v36  ;;  %v2453_v24 = vshll.u32 %v6980_v32, 16 }
 0x1af   : > { %v5552_v55 = vcombine.low %v2374_v35, %v2384_v23  ;;  %v2408_v5 = vsel %vm7384_vm3, %v2403_v50, %v2407_v33  ;;  %v2432_v42 = vsel %vm7384_vm3, %v2427_v16, %v2431_v39 }
 0x1b0   : > { %v2455_v27 = vrot.slane %v2453_v24, 5 }
 0x1b3   : > { %6255 = vmatmul.mubr.msk.bf16.vlgmr.msra.gmra.mrb[16].mxu1 %vm703_vm4, %v8765_v58  ;;  %6391 = vmatmul.mubr.msk.bf16.gmra.mrb[16].mxu0 %vm703_vm4, %v5821_v48  ;;  %v2434_v58 = vshrl.u32 %v5537_v57, 16  ;;  %v2416_v48 = vor.u32 %v2415_v17, %v2412_v34 }
 0x1b4   : > { %6258 = vmatprep.mubr.msk.bf16.mxu1 %vm703_vm4, %v5550_v37  ;;  %6394 = vmatprep.mubr.msk.bf16.mxu0 %vm703_vm4, %v5822_v46 }
 0x1b5   : > { %v2436_v7 = vrot.slane %v2434_v58, 4  ;;  %v2417_v46 = vrot.slane %v2416_v48, 4 }
 0x1b7   : > { %v2440_v6 = vor.u32 %v2439_v49, %v2436_v7  ;;  %v2422_v63 = vsel %vm7384_vm3, %v2417_v46, %v2421_v53 }
 0x1b8   : > { %v5554_v9 = vcombine.low %v2422_v63, %v2432_v42 }
 0x1b9   : > { %v2441_v41 = vrot.slane %v2440_v6, 4 }
 0x1bb   : > { %6259 = vmatmul.mubr.msk.bf16.gmra.mrb[20].mxu1 %vm703_vm4, %v5551_v4  ;;  %6395 = vmatmul.mubr.msk.bf16.gmra.mrb[20].mxu0 %vm703_vm4, %v5823_v12  ;;  %v5553_v12 = vcombine.low %v2398_v3, %v2408_v5  ;;  %v2446_v54 = vsel %vm7384_vm3, %v2441_v41, %v2445_v38 }
 0x1bc   : > { %6262 = vmatprep.mubr.msk.bf16.mxu1 %vm703_vm4, %v5552_v55  ;;  %6398 = vmatprep.mubr.msk.bf16.mxu0 %vm703_vm4, %v5824_v62  ;;  %v2456_v62 = vsel %vm7384_vm3, %v2451_v10, %v2455_v27 }
 0x1bd   : > { %v5555_v13 = vcombine.low %v2446_v54, %v2456_v62 }
 0x1c3   : > { %6263 = vmatmul.mubr.msk.bf16.gmra.mrb[24].mxu1 %vm703_vm4, %v5553_v12  ;;  %6399 = vmatmul.mubr.msk.bf16.gmra.mrb[24].mxu0 %vm703_vm4, %v5825_v18 }
 0x1c4   : > { %6266 = vmatprep.mubr.msk.bf16.mxu1 %vm703_vm4, %v5554_v9  ;;  %6402 = vmatprep.mubr.msk.bf16.mxu0 %vm703_vm4, %v5826_v45 }
 0x1cb   : > { %6267 = vmatmul.mubr.msk.bf16.gmra.mrb[28].mxu1 %vm703_vm4, %v5555_v13  ;;  %6403 = vmatmul.mubr.msk.bf16.gmra.mrb[28].mxu0 %vm703_vm4, %v5827_v52 }
 0x246   : > { %v6206_v59 = vpop.f32.mrb[0].mxu1 }
 0x247   : > { %v1866_v47 = vpop.f32.mrb[1].mxu1 }
 0x248   : > { %v6207_v18 = vpop.f32.mrb[2].mxu1 }
 0x249   : > { %v1869_v25 = vpop.f32.mrb[3].mxu1 }
 0x24e   : > { %v6210_v61 = vpop.f32.mrb[4].mxu1 }
 0x24f   : > { %v1882_v45 = vpop.f32.mrb[5].mxu1 }
 0x250   : > { %v6211_v40 = vpop.f32.mrb[6].mxu1 }
 0x251   : > { %v1885_v51 = vpop.f32.mrb[7].mxu1 }
 0x256   : > { %v6214_v22 = vpop.f32.mrb[8].mxu1 }
 0x257   : > { %v1898_v37 = vpop.f32.mrb[9].mxu1 }
 0x258   : > { %v6215_v30 = vpop.f32.mrb[10].mxu1 }
 0x259   : > { %v9048_v34 = vpop.f32.mrb[11].mxu1 }
 0x25e   : > { %v9050_v17 = vpop.f32.mrb[12].mxu1 }
 0x25f   : > { %v9052_v53 = vpop.f32.mrb[13].mxu1 }
 0x260   : > { %v9054_v1 = vpop.f32.mrb[14].mxu1 }
 0x261   : > { %v9056_v2 = vpop.f32.mrb[15].mxu1 }
 0x266   : > { %v6376_v52 = vpop.f32.mrb[0].mxu0 }
 0x267   : > { %v6408_v57 = vadd.f32 %v6376_v52, %v6206_v59  ;;  %v4617_v15 = vpop.f32.mrb[1].mxu0 }
 0x268   : > { %v6409_v36 = vadd.f32 %v4617_v15, %v1866_v47  ;;  %v6377_v35 = vpop.f32.mrb[2].mxu0 }
 0x269   : > { %v9061_v23 = vadd.f32 %v6408_v57, %v9058_v14  ;;  %v6410_v56 = vadd.f32 %v6377_v35, %v6207_v18  ;;  %v4620_v31 = vpop.f32.mrb[3].mxu0 }
 0x26a   : > { %v9064_v44 = vadd.f32 %v6409_v36, %v9058_v14  ;;  %v6411_v28 = vadd.f32 %v4620_v31, %v1869_v25 }
 0x26b   : > { %v5847_v58 = vmul.f32 -1.442695, %v9061_v23  ;;  %v9068_v26 = vadd.f32 %v6410_v56, %v9058_v14 }
 0x26c   : > { %v5845_v19 = vmul.f32 -1.442695, %v9064_v44  ;;  %v9072_v20 = vadd.f32 %v6411_v28, %v9058_v14 }
 0x26d   : > { %6798 = vpow2.f32 %v5847_v58  ;;  %v5848_v60 = vmul.f32 -1.442695, %v9068_v26 }
 0x26e   : > { %6800 = vpow2.f32 %v5845_v19  ;;  %v5846_v48 = vmul.f32 -1.442695, %v9072_v20  ;;  %v6380_v21 = vpop.f32.mrb[4].mxu0 }
 0x26f   : > { %6802 = vpow2.f32 %v5848_v60  ;;  %v6412_v8 = vadd.f32 %v6380_v21, %v6210_v61  ;;  %v4633_v0 = vpop.f32.mrb[5].mxu0 }
 0x270   : > { %6804 = vpow2.f32 %v5846_v48  ;;  %v6413_v4 = vadd.f32 %v4633_v0, %v1882_v45  ;;  %v6381_v55 = vpop.f32.mrb[6].mxu0 }
 0x271   : > { %v9077_v29 = vadd.f32 %v6412_v8, %v9058_v14  ;;  %v6414_v50 = vadd.f32 %v6381_v55, %v6211_v40  ;;  %v4636_v33 = vpop.f32.mrb[7].mxu0 }
 0x272   : > { %v9080_v7 = vadd.f32 %v6413_v4, %v9058_v14  ;;  %v6415_v49 = vadd.f32 %v4636_v33, %v1885_v51 }
 0x273   : > { %v5851_v38 = vmul.f32 -1.442695, %v9077_v29  ;;  %v9084_v11 = vadd.f32 %v6414_v50, %v9058_v14 }
 0x274   : > { %v5849_v46 = vmul.f32 -1.442695, %v9080_v7  ;;  %v9088_v16 = vadd.f32 %v6415_v49, %v9058_v14 }
 0x275   : > { %6806 = vpow2.f32 %v5851_v38  ;;  %v5852_v39 = vmul.f32 -1.442695, %v9084_v11 }
 0x276   : > { %6808 = vpow2.f32 %v5849_v46  ;;  %v5850_v3 = vmul.f32 -1.442695, %v9088_v16  ;;  %v6384_v5 = vpop.f32.mrb[8].mxu0 }
 0x277   : > { %v6799_v6 = vpop.eup %6798  ;;  %6810 = vpow2.f32 %v5852_v39  ;;  %v6416_v43 = vadd.f32 %v6384_v5, %v6214_v22  ;;  %v4649_v32 = vpop.f32.mrb[9].mxu0 }
 0x278   : > { %v6801_v24 = vpop.eup %6800  ;;  %v4913_v63 = vadd.f32 1.0, %v6799_v6  ;;  %6812 = vpow2.f32 %v5850_v3  ;;  %v6417_v42 = vadd.f32 %v4649_v32, %v1898_v37  ;;  %v6385_v12 = vpop.f32.mrb[10].mxu0 }
 0x279   : > { %v6803_v9 = vpop.eup %6802  ;;  %v4911_v41 = vadd.f32 1.0, %v6801_v24  ;;  %v9093_v10 = vadd.f32 %v6416_v43, %v9058_v14  ;;  %v6418_v27 = vadd.f32 %v6385_v12, %v6215_v30  ;;  %v4652_v54 = vpop.f32.mrb[11].mxu0 }
 0x27a   : > { %v6805_v62 = vpop.eup %6804  ;;  %6814 = vrcp.f32 %v4913_v63  ;;  %v4914_v13 = vadd.f32 1.0, %v6803_v9  ;;  %v9096_v59 = vadd.f32 %v6417_v42, %v9058_v14  ;;  %v6419_v47 = vadd.f32 %v4652_v54, %v9048_v34 }
 0x27b   : > { %6816 = vrcp.f32 %v4911_v41  ;;  %v4912_v18 = vadd.f32 1.0, %v6805_v62  ;;  %v5855_v25 = vmul.f32 -1.442695, %v9093_v10  ;;  %v9101_v61 = vadd.f32 %v6418_v27, %v9058_v14 }
 0x27c   : > { %6818 = vrcp.f32 %v4914_v13  ;;  %v5853_v45 = vmul.f32 -1.442695, %v9096_v59  ;;  %v9105_v40 = vadd.f32 %v6419_v47, %v9058_v14 }
 0x27d   : > { %6820 = vrcp.f32 %v4912_v18  ;;  %v5856_v51 = vmul.f32 -1.442695, %v9101_v61 }
 0x27e   : > { %6822 = vpow2.f32 %v5855_v25  ;;  %v5854_v22 = vmul.f32 -1.442695, %v9105_v40  ;;  %v6388_v37 = vpop.f32.mrb[12].mxu0 }
 0x27f   : > { %v6807_v30 = vpop.eup %6806  ;;  %6824 = vpow2.f32 %v5853_v45  ;;  %v6420_v34 = vadd.f32 %v6388_v37, %v9050_v17  ;;  %v4665_v52 = vpop.f32.mrb[13].mxu0 }
 0x280   : > { %v6809_v57 = vpop.eup %6808  ;;  %v4917_v15 = vadd.f32 1.0, %v6807_v30  ;;  %6826 = vpow2.f32 %v5856_v51  ;;  %v6421_v36 = vadd.f32 %v4665_v52, %v9052_v53  ;;  %v6389_v35 = vpop.f32.mrb[14].mxu0 }
 0x281   : > { %v6811_v56 = vpop.eup %6810  ;;  %v4915_v31 = vadd.f32 1.0, %v6809_v57  ;;  %6828 = vpow2.f32 %v5854_v22  ;;  %v9112_v28 = vadd.f32 %v6420_v34, %v9058_v14  ;;  %v6422_v58 = vadd.f32 %v6389_v35, %v9054_v1  ;;  %v4668_v19 = vpop.f32.mrb[15].mxu0 }
 0x282   : > { %v6813_v60 = vpop.eup %6812  ;;  %6830 = vrcp.f32 %v4917_v15  ;;  %v4918_v17 = vadd.f32 1.0, %v6811_v56  ;;  %v9116_v48 = vadd.f32 %v6421_v36, %v9058_v14  ;;  %v6423_v21 = vadd.f32 %v4668_v19, %v9056_v2 }
 0x283   : > { %6832 = vrcp.f32 %v4915_v31  ;;  %v4916_v53 = vadd.f32 1.0, %v6813_v60  ;;  %v5859_v8 = vmul.f32 -1.442695, %v9112_v28  ;;  %v9122_v0 = vadd.f32 %v6422_v58, %v9058_v14 }
 0x284   : > { %v6815_v4 = vpop.eup %6814  ;;  %6834 = vrcp.f32 %v4918_v17  ;;  %v5857_v1 = vmul.f32 -1.442695, %v9116_v48  ;;  %v9126_v55 = vadd.f32 %v6423_v21, %v9058_v14 }
 0x285   : > { %v6817_v50 = vpop.eup %6816  ;;  %v5009_v33 = vmul.f32 %v6815_v4, %v9061_v23  ;;  %6836 = vrcp.f32 %v4916_v53  ;;  %v5860_v2 = vmul.f32 -1.442695, %v9122_v0 }
 0x286   : > { %v6819_v49 = vpop.eup %6818  ;;  %v5007_v38 = vmul.f32 %v6817_v50, %v9064_v44  ;;  %6838 = vpow2.f32 %v5859_v8  ;;  %v5858_v46 = vmul.f32 -1.442695, %v9126_v55  ;;  %v6256_v39 = vpop.f32.mrb[16].mxu1 }
 0x287   : > { %v6392_v3 = vpop.f32.mrb[16].mxu0  ;;  %v6821_v5 = vpop.eup %6820  ;;  %v5916_v6 = vpack.c.bf16 %v5009_v33, %v5009_v33  ;;  %v5010_v43 = vmul.f32 %v6819_v49, %v9068_v26  ;;  %6840 = vpow2.f32 %v5857_v1 }
 0x288   : > { %v6424_v32 = vadd.f32 %v6392_v3, %v6256_v39  ;;  %v2656_v23 = vpop.f32.mrb[17].mxu1  ;;  %v4681_v24 = vpop.f32.mrb[17].mxu0  ;;  %v5914_v42 = vpack.c.bf16 %v5007_v38, %v5007_v38  ;;  %v5008_v12 = vmul.f32 %v6821_v5, %v9072_v20  ;;  %6842 = vpow2.f32 %v5860_v2 }
 0x289   : > { %v6823_v63 = vpop.eup %6822  ;;  %v6425_v44 = vadd.f32 %v4681_v24, %v2656_v23  ;;  %v6257_v9 = vpop.f32.mrb[18].mxu1  ;;  %5170 = vst.msk [vmem:[%s9136_s20 + $0x8] sm:$0xf] %vm5167_vm8, %v5916_v6  ;;  %v5917_v26 = vpack.c.bf16 %v5010_v43, %v5010_v43  ;;  %6844 = vpow2.f32 %v5858_v46 }
 0x28a   : > { %v6393_v41 = vpop.f32.mrb[18].mxu0  ;;  %v6825_v27 = vpop.eup %6824  ;;  %v4921_v54 = vadd.f32 1.0, %v6823_v63  ;;  %v9141_v62 = vadd.f32 %v6424_v32, %v9058_v14  ;;  %5168 = vst.msk [vmem:[%s9136_s20] sm:$0xf] %vm5167_vm8, %v5914_v42  ;;  %v5915_v18 = vpack.c.bf16 %v5008_v12, %v5008_v12 }
 0x28b   : > { %v2659_v20 = vpop.f32.mrb[19].mxu1  ;;  %v4684_v13 = vpop.f32.mrb[19].mxu0  ;;  %v4919_v25 = vadd.f32 1.0, %v6825_v27  ;;  %v9146_v45 = vadd.f32 %v6425_v44, %v9058_v14  ;;  %v6426_v51 = vadd.f32 %v6393_v41, %v6257_v9  ;;  %5171 = vst.msk [vmem:[%s9136_s20 + $0xc] sm:$0xf] %vm5167_vm8, %v5917_v26 }
 0x28c   : > { %v6827_v47 = vpop.eup %6826  ;;  %6846 = vrcp.f32 %v4921_v54  ;;  %v5863_v30 = vmul.f32 -1.442695, %v9141_v62  ;;  %v6427_v34 = vadd.f32 %v4684_v13, %v2659_v20  ;;  %5169 = vst.msk [vmem:[%s9136_s20 + $0x4] sm:$0xf] %vm5167_vm8, %v5915_v18 }
 0x28d   : > { %v6829_v22 = vpop.eup %6828  ;;  %v4922_v37 = vadd.f32 1.0, %v6827_v47  ;;  %6848 = vrcp.f32 %v4919_v25  ;;  %v5861_v15 = vmul.f32 -1.442695, %v9146_v45  ;;  %v9155_v36 = vadd.f32 %v6426_v51, %v9058_v14 }
 0x28e   : > { %v6831_v52 = vpop.eup %6830  ;;  %v4920_v57 = vadd.f32 1.0, %v6829_v22  ;;  %v9159_v31 = vadd.f32 %v6427_v34, %v9058_v14  ;;  %v6260_v17 = vpop.f32.mrb[20].mxu1 }
 0x28f   : > { %v6833_v35 = vpop.eup %6832  ;;  %v5013_v56 = vmul.f32 %v6831_v52, %v9077_v29  ;;  %6850 = vrcp.f32 %v4922_v37  ;;  %v5864_v60 = vmul.f32 -1.442695, %v9155_v36  ;;  %v6396_v21 = vpop.f32.mrb[20].mxu0 }
 0x290   : > { %v6835_v58 = vpop.eup %6834  ;;  %v5011_v19 = vmul.f32 %v6833_v35, %v9080_v7  ;;  %6852 = vrcp.f32 %v4920_v57  ;;  %v5862_v29 = vmul.f32 -1.442695, %v9159_v31  ;;  %v2672_v1 = vpop.f32.mrb[21].mxu1  ;;  %v6428_v49 = vadd.f32 %v6396_v21, %v6260_v17 }
 0x291   : > { %v6837_v53 = vpop.eup %6836  ;;  %v5920_v8 = vpack.c.bf16 %v5013_v56, %v5013_v56  ;;  %v5014_v4 = vmul.f32 %v6835_v58, %v9084_v11  ;;  %6854 = vpow2.f32 %v5863_v30  ;;  %v4697_v50 = vpop.f32.mrb[21].mxu0 }
 0x292   : > { %v6839_v33 = vpop.eup %6838  ;;  %v5918_v2 = vpack.c.bf16 %v5011_v19, %v5011_v19  ;;  %v5012_v7 = vmul.f32 %v6837_v53, %v9088_v16  ;;  %6856 = vpow2.f32 %v5861_v15  ;;  %v6261_v38 = vpop.f32.mrb[22].mxu1  ;;  %v6429_v5 = vadd.f32 %v4697_v50, %v2672_v1 }
 0x293   : > { %v6397_v46 = vpop.f32.mrb[22].mxu0  ;;  %v6841_v39 = vpop.eup %6840  ;;  %5174 = vst.msk [vmem:[%s9136_s20 + $0x18] sm:$0xf] %vm5167_vm8, %v5920_v8  ;;  %v5921_v3 = vpack.c.bf16 %v5014_v4, %v5014_v4  ;;  %v4925_v11 = vadd.f32 1.0, %v6839_v33  ;;  %6858 = vpow2.f32 %v5864_v60  ;;  %v9171_v24 = vadd.f32 %v6428_v49, %v9058_v14 }
 0x294   : > { %v2675_v6 = vpop.f32.mrb[23].mxu1  ;;  %v4700_v43 = vpop.f32.mrb[23].mxu0  ;;  %5172 = vst.msk [vmem:[%s9136_s20 + $0x10] sm:$0xf] %vm5167_vm8, %v5918_v2  ;;  %v5919_v23 = vpack.c.bf16 %v5012_v7, %v5012_v7  ;;  %v4923_v16 = vadd.f32 1.0, %v6841_v39  ;;  %6860 = vpow2.f32 %v5862_v29  ;;  %v9176_v12 = vadd.f32 %v6429_v5, %v9058_v14 }
 0x295   : > { %v6843_v32 = vpop.eup %6842  ;;  %5175 = vst.msk [vmem:[%s9136_s20 + $0x1c] sm:$0xf] %vm5167_vm8, %v5921_v3  ;;  %6862 = vrcp.f32 %v4925_v11  ;;  %v6430_v44 = vadd.f32 %v6397_v46, %v6261_v38  ;;  %v5867_v41 = vmul.f32 -1.442695, %v9171_v24  ;;  %v6431_v27 = vadd.f32 %v4700_v43, %v2675_v6 }
 0x296   : > { %v6845_v63 = vpop.eup %6844  ;;  %v4926_v42 = vadd.f32 1.0, %v6843_v32  ;;  %5173 = vst.msk [vmem:[%s9136_s20 + $0x14] sm:$0xf] %vm5167_vm8, %v5919_v23  ;;  %6864 = vrcp.f32 %v4923_v16  ;;  %v5865_v54 = vmul.f32 -1.442695, %v9176_v12  ;;  %v6264_v25 = vpop.f32.mrb[24].mxu1 }
 0x297   : > { %v4924_v9 = vadd.f32 1.0, %v6845_v63  ;;  %v6847_v26 = vpop.eup %6846  ;;  %v9183_v20 = vadd.f32 %v6430_v44, %v9058_v14  ;;  %v9187_v18 = vadd.f32 %v6431_v27, %v9058_v14  ;;  %v6400_v51 = vpop.f32.mrb[24].mxu0 }
 0x298   : > { %6866 = vrcp.f32 %v4926_v42  ;;  %v6849_v13 = vpop.eup %6848  ;;  %v5017_v47 = vmul.f32 %v6847_v26, %v9093_v10  ;;  %v6432_v34 = vadd.f32 %v6400_v51, %v6264_v25  ;;  %v2688_v52 = vpop.f32.mrb[25].mxu1 }
 0x299   : > { %6868 = vrcp.f32 %v4924_v9  ;;  %v6851_v22 = vpop.eup %6850  ;;  %v5015_v37 = vmul.f32 %v6849_v13, %v9096_v59  ;;  %v5868_v30 = vmul.f32 -1.442695, %v9183_v20  ;;  %v4713_v57 = vpop.f32.mrb[25].mxu0  ;;  %v5866_v56 = vmul.f32 -1.442695, %v9187_v18 }
 0x29a   : > { %6870 = vpow2.f32 %v5867_v41  ;;  %v6853_v15 = vpop.eup %6852  ;;  %v5924_v35 = vpack.c.bf16 %v5017_v47, %v5017_v47  ;;  %v5018_v10 = vmul.f32 %v6851_v22, %v9101_v61  ;;  %v6265_v58 = vpop.f32.mrb[26].mxu1  ;;  %v9195_v21 = vadd.f32 %v6432_v34, %v9058_v14 }
 0x29b   : > { %6872 = vpow2.f32 %v5865_v54  ;;  %v6401_v19 = vpop.f32.mrb[26].mxu0  ;;  %v6855_v60 = vpop.eup %6854  ;;  %v5922_v17 = vpack.c.bf16 %v5015_v37, %v5015_v37  ;;  %v5016_v59 = vmul.f32 %v6853_v15, %v9105_v40  ;;  %v6433_v1 = vadd.f32 %v4713_v57, %v2688_v52 }
 0x29c   : > { %6874 = vpow2.f32 %v5868_v30  ;;  %v2691_v53 = vpop.f32.mrb[27].mxu1  ;;  %v4716_v8 = vpop.f32.mrb[27].mxu0  ;;  %5178 = vst.msk [vmem:[%s9136_s20 + $0x28] sm:$0xf] %vm5167_vm8, %v5924_v35  ;;  %v5925_v61 = vpack.c.bf16 %v5018_v10, %v5018_v10  ;;  %v4929_v29 = vadd.f32 1.0, %v6855_v60  ;;  %v6434_v7 = vadd.f32 %v6401_v19, %v6265_v58 }
 0x29d   : > { %v6857_v4 = vpop.eup %6856  ;;  %6876 = vpow2.f32 %v5866_v56  ;;  %5176 = vst.msk [vmem:[%s9136_s20 + $0x20] sm:$0xf] %vm5167_vm8, %v5922_v17  ;;  %v5923_v33 = vpack.c.bf16 %v5016_v59, %v5016_v59  ;;  %v5871_v2 = vmul.f32 -1.442695, %v9195_v21  ;;  %v9205_v46 = vadd.f32 %v6433_v1, %v9058_v14 }
 0x29e   : > { %v6859_v50 = vpop.eup %6858  ;;  %v4927_v40 = vadd.f32 1.0, %v6857_v4  ;;  %5179 = vst.msk [vmem:[%s9136_s20 + $0x2c] sm:$0xf] %vm5167_vm8, %v5925_v61  ;;  %6878 = vrcp.f32 %v4929_v29  ;;  %v6435_v39 = vadd.f32 %v4716_v8, %v2691_v53  ;;  %v9210_v5 = vadd.f32 %v6434_v7, %v9058_v14  ;;  %v6268_v16 = vpop.f32.mrb[28].mxu1 }
 0x29f   : > { %v6861_v49 = vpop.eup %6860  ;;  %v4930_v38 = vadd.f32 1.0, %v6859_v50  ;;  %5177 = vst.msk [vmem:[%s9136_s20 + $0x24] sm:$0xf] %vm5167_vm8, %v5923_v33  ;;  %v5869_v32 = vmul.f32 -1.442695, %v9205_v46  ;;  %v6404_v63 = vpop.f32.mrb[28].mxu0 }
 0x2a0   : > { %v6863_v3 = vpop.eup %6862  ;;  %6880 = vrcp.f32 %v4927_v40  ;;  %v4928_v11 = vadd.f32 1.0, %v6861_v49  ;;  %v9215_v23 = vadd.f32 %v6435_v39, %v9058_v14  ;;  %v5872_v9 = vmul.f32 -1.442695, %v9210_v5  ;;  %v2704_v27 = vpop.f32.mrb[29].mxu1 }
 0x2a1   : > { %v6865_v6 = vpop.eup %6864  ;;  %v5021_v43 = vmul.f32 %v6863_v3, %v9112_v28  ;;  %6882 = vrcp.f32 %v4930_v38  ;;  %v6436_v41 = vadd.f32 %v6404_v63, %v6268_v16  ;;  %v4729_v26 = vpop.f32.mrb[29].mxu0 }
 0x2a2   : > { %v6867_v42 = vpop.eup %6866  ;;  %v5019_v44 = vmul.f32 %v6865_v6, %v9116_v48  ;;  %6884 = vrcp.f32 %v4928_v11  ;;  %v5870_v47 = vmul.f32 -1.442695, %v9215_v23  ;;  %v6269_v25 = vpop.f32.mrb[30].mxu1  ;;  %v6437_v35 = vadd.f32 %v4729_v26, %v2704_v27 }
 0x2a3   : > { %v6869_v54 = vpop.eup %6868  ;;  %v5928_v28 = vpack.c.bf16 %v5021_v43, %v5021_v43  ;;  %v5022_v13 = vmul.f32 %v6867_v42, %v9122_v0  ;;  %6886 = vpow2.f32 %v5871_v2  ;;  %v6405_v51 = vpop.f32.mrb[30].mxu0  ;;  %v9223_v30 = vadd.f32 %v6436_v41, %v9058_v14 }
 0x2a4   : > { %v6871_v22 = vpop.eup %6870  ;;  %v5926_v37 = vpack.c.bf16 %v5019_v44, %v5019_v44  ;;  %v5020_v48 = vmul.f32 %v6869_v54, %v9126_v55  ;;  %6888 = vpow2.f32 %v5869_v32  ;;  %v2707_v34 = vpop.f32.mrb[31].mxu1  ;;  %v9233_v17 = vadd.f32 %v6437_v35, %v9058_v14 }
 0x2a5   : > { %v4732_v52 = vpop.f32.mrb[31].mxu0  ;;  %v6873_v57 = vpop.eup %6872  ;;  %5182 = vst.msk [vmem:[%s9136_s20 + $0x38] sm:$0xf] %vm5167_vm8, %v5928_v28  ;;  %v5929_v0 = vpack.c.bf16 %v5022_v13, %v5022_v13  ;;  %v4933_v15 = vadd.f32 1.0, %v6871_v22  ;;  %6890 = vpow2.f32 %v5872_v9  ;;  %v5875_v58 = vmul.f32 -1.442695, %v9223_v30 }
 0x2a6   : > { %v6875_v10 = vpop.eup %6874  ;;  %5180 = vst.msk [vmem:[%s9136_s20 + $0x30] sm:$0xf] %vm5167_vm8, %v5926_v37  ;;  %v5927_v56 = vpack.c.bf16 %v5020_v48, %v5020_v48  ;;  %v4931_v55 = vadd.f32 1.0, %v6873_v57  ;;  %6892 = vpow2.f32 %v5870_v47  ;;  %v6438_v59 = vadd.f32 %v6405_v51, %v6269_v25 }
 0x2a7   : > { %v6877_v19 = vpop.eup %6876  ;;  %5183 = vst.msk [vmem:[%s9136_s20 + $0x3c] sm:$0xf] %vm5167_vm8, %v5929_v0  ;;  %6894 = vrcp.f32 %v4933_v15  ;;  %v4934_v60 = vadd.f32 1.0, %v6875_v10  ;;  %v6439_v8 = vadd.f32 %v4732_v52, %v2707_v34  ;;  %v5873_v61 = vmul.f32 -1.442695, %v9233_v17 }
 0x2a8   : > { %5181 = vst.msk [vmem:[%s9136_s20 + $0x34] sm:$0xf] %vm5167_vm8, %v5927_v56  ;;  %6896 = vrcp.f32 %v4931_v55  ;;  %v4932_v53 = vadd.f32 1.0, %v6877_v19  ;;  %v6879_v4 = vpop.eup %6878  ;;  %v9239_v29 = vadd.f32 %v6438_v59, %v9058_v14 }
 0x2a9   : > { %6898 = vrcp.f32 %v4934_v60  ;;  %v5025_v50 = vmul.f32 %v6879_v4, %v9141_v62  ;;  %v9243_v33 = vadd.f32 %v6439_v8, %v9058_v14 }
 0x2aa   : > { %v6881_v1 = vpop.eup %6880  ;;  %6900 = vrcp.f32 %v4932_v53  ;;  %v5876_v7 = vmul.f32 -1.442695, %v9239_v29 }
 0x2ab   : > { %v6883_v40 = vpop.eup %6882  ;;  %v5023_v2 = vmul.f32 %v6881_v1, %v9146_v45  ;;  %6902 = vpow2.f32 %v5875_v58  ;;  %v5932_v38 = vpack.c.bf16 %v5025_v50, %v5025_v50  ;;  %v5874_v62 = vmul.f32 -1.442695, %v9243_v33 }
 0x2ac   : > { %v6885_v49 = vpop.eup %6884  ;;  %v5026_v39 = vmul.f32 %v6883_v40, %v9155_v36  ;;  %6904 = vpow2.f32 %v5873_v61 }
 0x2ad   : > { %v6887_v3 = vpop.eup %6886  ;;  %v5930_v11 = vpack.c.bf16 %v5023_v2, %v5023_v2  ;;  %v5024_v14 = vmul.f32 %v6885_v49, %v9159_v31  ;;  %6906 = vpow2.f32 %v5876_v7  ;;  %5186 = vst.msk [vmem:[%s9136_s20 + $0x48] sm:$0xf] %vm5167_vm8, %v5932_v38 }
 0x2ae   : > { %v6889_v6 = vpop.eup %6888  ;;  %v5933_v45 = vpack.c.bf16 %v5026_v39, %v5026_v39  ;;  %v4937_v43 = vadd.f32 1.0, %v6887_v3  ;;  %6908 = vpow2.f32 %v5874_v62 }
 0x2af   : > { %v6891_v32 = vpop.eup %6890  ;;  %5184 = vst.msk [vmem:[%s9136_s20 + $0x40] sm:$0xf] %vm5167_vm8, %v5930_v11  ;;  %v5931_v36 = vpack.c.bf16 %v5024_v14, %v5024_v14  ;;  %v4935_v16 = vadd.f32 1.0, %v6889_v6 }
 0x2b0   : > { %v6893_v63 = vpop.eup %6892  ;;  %5187 = vst.msk [vmem:[%s9136_s20 + $0x4c] sm:$0xf] %vm5167_vm8, %v5933_v45  ;;  %6910 = vrcp.f32 %v4937_v43  ;;  %v4938_v42 = vadd.f32 1.0, %v6891_v32 }
 0x2b1   : > { %v6895_v44 = vpop.eup %6894  ;;  %5185 = vst.msk [vmem:[%s9136_s20 + $0x44] sm:$0xf] %vm5167_vm8, %v5931_v36  ;;  %6912 = vrcp.f32 %v4935_v16  ;;  %v4936_v31 = vadd.f32 1.0, %v6893_v63 }
 0x2b2   : > { %v6897_v9 = vpop.eup %6896  ;;  %v5029_v41 = vmul.f32 %v6895_v44, %v9171_v24  ;;  %6914 = vrcp.f32 %v4938_v42 }
 0x2b3   : > { %v6899_v27 = vpop.eup %6898  ;;  %v5027_v26 = vmul.f32 %v6897_v9, %v9176_v12  ;;  %6916 = vrcp.f32 %v4936_v31 }
 0x2b4   : > { %v6901_v54 = vpop.eup %6900  ;;  %v5936_v28 = vpack.c.bf16 %v5029_v41, %v5029_v41  ;;  %v5030_v13 = vmul.f32 %v6899_v27, %v9183_v20 }
 0x2b5   : > { %v6903_v47 = vpop.eup %6902  ;;  %v5934_v25 = vpack.c.bf16 %v5027_v26, %v5027_v26  ;;  %v5028_v51 = vmul.f32 %v6901_v54, %v9187_v18 }
 0x2b6   : > { %v6905_v22 = vpop.eup %6904  ;;  %5190 = vst.msk [vmem:[%s9136_s20 + $0x58] sm:$0xf] %vm5167_vm8, %v5936_v28  ;;  %v5937_v24 = vpack.c.bf16 %v5030_v13, %v5030_v13  ;;  %v4941_v37 = vadd.f32 1.0, %v6903_v47 }
 0x2b7   : > { %v6907_v48 = vpop.eup %6906  ;;  %5188 = vst.msk [vmem:[%s9136_s20 + $0x50] sm:$0xf] %vm5167_vm8, %v5934_v25  ;;  %v5935_v12 = vpack.c.bf16 %v5028_v51, %v5028_v51  ;;  %v4939_v34 = vadd.f32 1.0, %v6905_v22 }
 0x2b8   : > { %v6909_v52 = vpop.eup %6908  ;;  %5191 = vst.msk [vmem:[%s9136_s20 + $0x5c] sm:$0xf] %vm5167_vm8, %v5937_v24  ;;  %6918 = vrcp.f32 %v4941_v37  ;;  %v4942_v20 = vadd.f32 1.0, %v6907_v48 }
 0x2b9   : > { %5189 = vst.msk [vmem:[%s9136_s20 + $0x54] sm:$0xf] %vm5167_vm8, %v5935_v12  ;;  %6920 = vrcp.f32 %v4939_v34  ;;  %v4940_v18 = vadd.f32 1.0, %v6909_v52 }
 0x2ba   : > { %v6911_v57 = vpop.eup %6910  ;;  %6922 = vrcp.f32 %v4942_v20 }
 0x2bb   : > { %v6913_v0 = vpop.eup %6912  ;;  %v5033_v15 = vmul.f32 %v6911_v57, %v9195_v21  ;;  %6924 = vrcp.f32 %v4940_v18 }
 0x2bc   : > { %v6915_v35 = vpop.eup %6914  ;;  %v5031_v10 = vmul.f32 %v6913_v0, %v9205_v46 }
 0x2bd   : > { %v6917_v56 = vpop.eup %6916  ;;  %v5940_v55 = vpack.c.bf16 %v5033_v15, %v5033_v15  ;;  %v5034_v58 = vmul.f32 %v6915_v35, %v9210_v5 }
 0x2be   : > { %v5938_v19 = vpack.c.bf16 %v5031_v10, %v5031_v10  ;;  %v5032_v60 = vmul.f32 %v6917_v56, %v9215_v23 }
 0x2bf   : > { %5194 = vst.msk [vmem:[%s9136_s20 + $0x68] sm:$0xf] %vm5167_vm8, %v5940_v55  ;;  %v5941_v59 = vpack.c.bf16 %v5034_v58, %v5034_v58 }
 0x2c0   : > { %5192 = vst.msk [vmem:[%s9136_s20 + $0x60] sm:$0xf] %vm5167_vm8, %v5938_v19  ;;  %v5939_v21 = vpack.c.bf16 %v5032_v60, %v5032_v60 }
 0x2c1   : > { %5195 = vst.msk [vmem:[%s9136_s20 + $0x6c] sm:$0xf] %vm5167_vm8, %v5941_v59 }
 0x2c2   : > { %v6919_v53 = vpop.eup %6918  ;;  %5193 = vst.msk [vmem:[%s9136_s20 + $0x64] sm:$0xf] %vm5167_vm8, %v5939_v21 }
 0x2c3   : > { %v6921_v46 = vpop.eup %6920  ;;  %v5037_v8 = vmul.f32 %v6919_v53, %v9223_v30 }
 0x2c4   : > { %v6923_v5 = vpop.eup %6922  ;;  %v5035_v23 = vmul.f32 %v6921_v46, %v9233_v17 }
 0x2c5   : > { %v6925_v4 = vpop.eup %6924  ;;  %v5944_v61 = vpack.c.bf16 %v5037_v8, %v5037_v8  ;;  %v5038_v1 = vmul.f32 %v6923_v5, %v9239_v29 }
 0x2c6   : > { %v5942_v50 = vpack.c.bf16 %v5035_v23, %v5035_v23  ;;  %v5036_v40 = vmul.f32 %v6925_v4, %v9243_v33 }
 0x2c7   : > { %5198 = vst.msk [vmem:[%s9136_s20 + $0x78] sm:$0xf] %vm5167_vm8, %v5944_v61  ;;  %v5945_v2 = vpack.c.bf16 %v5038_v1, %v5038_v1 }
 0x2c8   : > { %5196 = vst.msk [vmem:[%s9136_s20 + $0x70] sm:$0xf] %vm5167_vm8, %v5942_v50  ;;  %v5943_v30 = vpack.c.bf16 %v5036_v40, %v5036_v40 }
 0x2c9   : > { %5199 = vst.msk [vmem:[%s9136_s20 + $0x7c] sm:$0xf] %vm5167_vm8, %v5945_v2 }
 0x2ca   : > { %5197 = vst.msk [vmem:[%s9136_s20 + $0x74] sm:$0xf] %vm5167_vm8, %v5943_v30 }
 0x2cb   : > { %7080 = shalt.err (!%p7077_p2)
}
 0x2cc   : > { %s7081_s17 = scalar_lea.hbm %s9293_s23, 2048  ;;  %s7085_s29 = scalar_lea.hbm %s9348_s3, 4096 }
 0x2cd   : > { %p7082_p13 = scmp.ne.s32.totalorder %s9293_s23, %s7081_s17  ;;  %p7086_p4 = scmp.lt.u32.totalorder %s9293_s23, %s9348_s3 }
 0x2ce   : > { %p7087_p5 = scmp.lt.u32.totalorder %s7085_s29, %s7081_s17  ;;  %p7089_p11 = scmp.lt.u32.totalorder %s7081_s17, %s9293_s23 }
 0x2cf   : > { %p7083_p6 = pnand %p7082_p13, %p9448_p0 }
 0x2d0   : > { %p7088_p8 = por %p7087_p5, %p7086_p4 }
 0x2d1   : > { %p7084_p10 = pneg %p7083_p6 }
 0x2d2   : > { %p7090_p1 = por %p7089_p11, %p7088_p8 }
 0x2d4   : > { %p7091_p3 = pnand %p7090_p1, %p7084_p10 }
 0x2d6   : > { %7094 = shalt.err (!%p7091_p3)
}
 0x2d7   : > { %s7147_s18 = smov 64   ;;  %s7148_s20 = smov 4  }
 0x2d8   : > { %6687 = dma.vmem_to_hbm [thread:$0]  (%p9448_p0), %s9295_s24, 2048, %s9293_s23, %s5201_s16, %s7147_s18, %s7147_s18, %s7148_s20  }
 0x2d9 PF: > { %s5229_s11 = sand.u32 1, %s7125_s12   ;;  %p9449_p7 = scmp.ne.s32.totalorder %s9372_s19, 0 }
 0x2da   : > { %p9450_p9 = scmp.ge.s32.totalorder %s7137_s15, 2  ;;  %s5230_s27 = scalar_lea.sflag [#allocation4], %s5229_s11 }
 0x2dc   : > { %p6701_p12 = pnand %p9450_p9, %p9449_p7 }
 0x2de   : > { %7120 = dma.done.wait (!%p6701_p12), %s5230_s27, 2048  }
 0x2df   : > { %7122 = vsyncadd (!%p6701_p12), %s5230_s27, 4294965248  ;;  %p17_p2 = scmp.ge.s32.totalorder %s7280_s5, 4   ;;  %s9451_s12 = smov %s7129_s13 }
 0x2e0   : > { %s9452_s13 = smov %s7133_s14  ;;  %s9453_s14 = smov %s7296_s8 }
 0x2e1   : > { %s9454_s15 = smov %s7280_s5  ;;  %19 = sbr.rel (!%p17_p2) target bundleno = 6 (0x6), region = 95 }
 0x2e8   :  { %5235 = vsyncpa [#allocation3], 1 }
 0x2e9   :  { %5237 = vsyncpa [#allocation3 + $0x1], 1 }
 0x2ea   :  { %5238 = vsyncpa [#allocation6], 1 }
 0x2eb   :  { %5239 = vsyncpa [#allocation4], 1 }
 0x2ec   :  { %5241 = vsyncpa [#allocation4 + $0x1], 1 }

</bundles_post_ra>
